<compile_context>
chip_gen: v6e
topology: v6e:2x2x1
jax: 0.10.0
libtpu: 0.0.40
codegen_flags: <defaults>
</compile_context>

<pallas_src>
import functools

import jax
import jax.numpy as jnp
from jax import lax
from jax.experimental import pallas as pl
from jax.experimental.pallas import tpu as pltpu


# ---------------------------------------------------------------------------
# helpers
# ---------------------------------------------------------------------------
def _round_up(x, m):
    return ((x + m - 1) // m) * m


def _slab_layout(vocab_padded, hidden_size, num_layers):
    """Row offsets of every constant inside the single 128-lane weight slab."""
    H = hidden_size
    offs, r = {}, 0
    offs["e0"] = r
    r += vocab_padded                      # tanh(emb) @ W_ih0 + b0   (vocab, 4H)
    for l in range(num_layers):
        offs[f"whh_{l}"] = r
        r += H                             # W_hh_l  (H, 4H)
    for l in range(1, num_layers):
        offs[f"wih_{l}"] = r
        r += H                             # W_ih_l  (H, 4H)
    for l in range(1, num_layers):
        offs[f"b_{l}"] = r
        r += 8                             # bias row (1 used, 8 for alignment)
    return offs, _round_up(r, 8)


def pack_params(params, *, num_layers, hidden_size, vocab_size):
    """One-time host-side packing of all call-invariant weights."""
    H = hidden_size
    hp = lax.Precision.HIGHEST
    VP = _round_up(max(vocab_size, 8), 8)
    offs, total = _slab_layout(VP, H, num_layers)

    # Fold the tanh'ed embedding table through layer-0's input projection:
    # row v = tanh(word2vec[v]) @ W_ih0 + b0.  Selecting a row of this table
    # IS the layer-0 pre-activation for token v (tanh commutes with gather,
    # and the fold is just matmul associativity).
    e0 = (jnp.dot(jnp.tanh(params["word2vec"].astype(jnp.float32)),
                  params["wih_0"], precision=hp) + params["b_0"])

    slab = jnp.zeros((total, 4 * H), jnp.float32)
    slab = slab.at[offs["e0"]:offs["e0"] + vocab_size].set(e0)
    for l in range(num_layers):
        o = offs[f"whh_{l}"]
        slab = slab.at[o:o + H].set(params[f"whh_{l}"])
    for l in range(1, num_layers):
        o = offs[f"wih_{l}"]
        slab = slab.at[o:o + H].set(params[f"wih_{l}"])
        o = offs[f"b_{l}"]
        slab = slab.at[o:o + 1].set(params[f"b_{l}"])

    # fc_w (2*L*H, E) rows followed by the fc_b row.
    fc_slab = jnp.concatenate([params["fc_w"], params["fc_b"]], axis=0)
    return slab, fc_slab, VP


# ---------------------------------------------------------------------------
# Fused kernel: embedding gather + 2-layer LSTM (skewed / interleaved) +
# final-state assembly + tanh + FC.   PyTorch gate order: i, f, g, o.
# ---------------------------------------------------------------------------
def _make_fused_kernel(num_layers, hidden_size, seq_len, batch, vocab_padded,
                       embed_size):
    H, T, B, VP, L, E = hidden_size, seq_len, batch, vocab_padded, num_layers, embed_size
    BP = max(8, _round_up(B, 8))           # sublane-aligned batch
    offs, _ = _slab_layout(VP, H, L)
    hp = lax.Precision.HIGHEST

    def kernel(q_ref, slab_ref, fc_ref, o_ref):
        # ---- hoisted, loop-invariant loads / masks ------------------------
        e0 = slab_ref[offs["e0"]:offs["e0"] + VP, :]              # (VP, 4H)
        whh = [slab_ref[offs[f"whh_{l}"]:offs[f"whh_{l}"] + H, :] for l in range(L)]
        wih = [None] + [slab_ref[offs[f"wih_{l}"]:offs[f"wih_{l}"] + H, :]
                        for l in range(1, L)]
        bias = [None] + [slab_ref[offs[f"b_{l}"]:offs[f"b_{l}"] + 1, :]
                         for l in range(1, L)]

        lane4h = lax.broadcasted_iota(jnp.int32, (BP, 4 * H), 1)
        g_lane = (lane4h >= 2 * H) & (lane4h < 3 * H)             # "g" gate lanes
        pre_scale = jnp.where(g_lane, 1.0, 0.5).astype(jnp.float32)

        sub_v = lax.broadcasted_iota(jnp.int32, (BP, VP), 0)
        lane_v = lax.broadcasted_iota(jnp.int32, (BP, VP), 1)

        def in_proj0(t):
            # In-kernel embedding "gather": exact one-hot MXU matmul against
            # the pre-folded per-token projection table (bias already folded).
            oh = jnp.zeros((BP, VP), jnp.float32)
            for b in range(B):
                idx = q_ref[b, t]                                  # SMEM scalar
                oh = jnp.where((sub_v == b) & (lane_v == idx), 1.0, oh)
            return jnp.dot(oh, e0, precision=hp,
                           preferred_element_type=jnp.float32)    # (BP, 4H)

        def cell(pre, h_l, c_l, whh_l):
            gates = pre + jnp.dot(h_l, whh_l, precision=hp,
                                  preferred_element_type=jnp.float32)
            # Single EUP transcendental per gate vector:
            #   sigmoid(x) = 0.5 * tanh(0.5 * x) + 0.5
            y = jnp.tanh(gates * pre_scale)
            act = jnp.where(g_lane, y, 0.5 * y + 0.5)
            i_g = act[:, 0 * H:1 * H]
            f_g = act[:, 1 * H:2 * H]
            g_g = act[:, 2 * H:3 * H]
            o_g = act[:, 3 * H:4 * H]
            c_n = f_g * c_l + i_g * g_g
            h_n = o_g * jnp.tanh(c_n)
            return h_n, c_n

        h = [jnp.zeros((BP, H), jnp.float32) for _ in range(L)]
        c = [jnp.zeros((BP, H), jnp.float32) for _ in range(L)]
        h_hist = [[None] * T for _ in range(L)]

        # Layer recurrences interleaved with a one-step skew (software
        # pipeline): at wave s, layer l advances its own step t = s - l, so
        # the per-layer serial chains overlap and layer-1's x_t @ W_ih is
        # computed per step off its own h-chain (no hs concatenate, no
        # serializing hoisted projection).
        for s in range(T + L - 1):
            for l in range(L):
                t = s - l
                if t < 0 or t >= T:
                    continue
                if l == 0:
                    pre = in_proj0(t)
                else:
                    pre = jnp.dot(h_hist[l - 1][t], wih[l], precision=hp,
                                  preferred_element_type=jnp.float32) + bias[l]
                h[l], c[l] = cell(pre, h[l], c[l], whh[l])
                h_hist[l][t] = h[l]

        # torch: cat((hidden, cell), 2).transpose(0,1).reshape(B, -1)
        #   -> per batch row: [h_0 | c_0 | h_1 | c_1 | ...]
        parts = []
        for l in range(L):
            parts.append(h[l])
            parts.append(c[l])
        feat = jnp.tanh(jnp.concatenate(parts, axis=1))            # (BP, 2*L*H)
        fcw = fc_ref[0:2 * L * H, :]                               # (2LH, E)
        fcb = fc_ref[2 * L * H:2 * L * H + 1, :]                   # (1, E)
        out = jnp.dot(feat, fcw, precision=hp,
                      preferred_element_type=jnp.float32) + fcb    # (BP, E)
        o_ref[...] = out[:B, :].astype(o_ref.dtype)                # drop pad rows

    return kernel


# ---------------------------------------------------------------------------
# Full QstEncoder forward: ONE gridless pallas_call, zero surrounding glue.
# ---------------------------------------------------------------------------
@functools.partial(jax.jit,
                   static_argnames=("num_layers", "hidden_size", "vocab_padded"))
def qst_encoder_forward(question, slab, fc_slab, *, num_layers, hidden_size,
                        vocab_padded):
    B, T = question.shape
    E = fc_slab.shape[1]
    H = hidden_size
    BP = max(8, _round_up(B, 8))

    kernel = _make_fused_kernel(num_layers, H, T, B, vocab_padded, E)

    flops = (2 * BP * 4 * H * (T * num_layers * H + T * (num_layers - 1) * H
                               + T * vocab_padded)
             + 2 * BP * 2 * num_layers * H * E)
    transcendentals = T * num_layers * BP * 5 * H + BP * 2 * num_layers * H
    bytes_accessed = (slab.size + fc_slab.size + question.size + B * E) * 4

    return pl.pallas_call(
        kernel,
        in_specs=[
            pl.BlockSpec(memory_space=pltpu.MemorySpace.SMEM),   # token ids
            pl.BlockSpec(memory_space=pltpu.MemorySpace.VMEM),   # weight slab
            pl.BlockSpec(memory_space=pltpu.MemorySpace.VMEM),   # fc slab
        ],
        out_specs=pl.BlockSpec(memory_space=pltpu.MemorySpace.VMEM),
        out_shape=jax.ShapeDtypeStruct((B, E), jnp.float32),
        cost_estimate=pl.CostEstimate(flops=int(flops),
                                      transcendentals=int(transcendentals),
                                      bytes_accessed=int(bytes_accessed)),
    )(question, slab, fc_slab)


# ---------------------------------------------------------------------------
# Pure-JAX reference (raw params, highest precision) for verification
# ---------------------------------------------------------------------------
def qst_encoder_reference(question, params, *, num_layers, hidden_size):
    H = hidden_size
    hp = lax.Precision.HIGHEST
    qv = jnp.tanh(jnp.take(params["word2vec"], question, axis=0))
    x = jnp.transpose(qv, (1, 0, 2))
    h_finals, c_finals = [], []
    for l in range(num_layers):
        wih, whh, b = params[f"wih_{l}"], params[f"whh_{l}"], params[f"b_{l}"]
        T, B, _ = x.shape
        h = jnp.zeros((B, H), jnp.float32)
        c = jnp.zeros((B, H), jnp.float32)
        outs = []
        for t in range(T):
            gates = (jnp.dot(x[t], wih, precision=hp)
                     + jnp.dot(h, whh, precision=hp) + b)
            i_g = jax.nn.sigmoid(gates[:, 0 * H:1 * H])
            f_g = jax.nn.sigmoid(gates[:, 1 * H:2 * H])
            g_g = jnp.tanh(gates[:, 2 * H:3 * H])
            o_g = jax.nn.sigmoid(gates[:, 3 * H:4 * H])
            c = f_g * c + i_g * g_g
            h = o_g * jnp.tanh(c)
            outs.append(h)
        x = jnp.stack(outs, axis=0)
        h_finals.append(h)
        c_finals.append(c)
    hidden = jnp.stack(h_finals, 0)
    cell = jnp.stack(c_finals, 0)
    feat = jnp.concatenate([hidden, cell], axis=2)
    feat = jnp.transpose(feat, (1, 0, 2)).reshape(question.shape[0], -1)
    feat = jnp.tanh(feat)
    return jnp.dot(feat, params["fc_w"], precision=hp) + params["fc_b"]


# ---------------------------------------------------------------------------
# main
# ---------------------------------------------------------------------------
if __name__ == "__main__":
    # QstEncoder(qst_vocab_size, word_embed_size, embed_size, num_layers, hidden_size)
    qst_vocab_size = 20
    word_embed_size = 32
    embed_size = 32
    num_layers = 2
    hidden_size = 32
    batch = 2
    seq_len = 8

    key = jax.random.PRNGKey(0)
    keys = jax.random.split(key, 16)

    params = {}
    # nn.Embedding(qst_vocab_size, word_embed_size)
    params["word2vec"] = 0.5 * jax.random.normal(
        keys[0], (qst_vocab_size, word_embed_size), jnp.float32)

    # nn.LSTM(word_embed_size, hidden_size, num_layers) — weights pre-transposed
    for l in range(num_layers):
        d_in = word_embed_size if l == 0 else hidden_size
        w_ih = 0.1 * jax.random.normal(keys[1 + 3 * l],
                                       (4 * hidden_size, d_in), jnp.float32)
        w_hh = 0.1 * jax.random.normal(keys[2 + 3 * l],
                                       (4 * hidden_size, hidden_size), jnp.float32)
        b_ih = 0.1 * jax.random.normal(keys[3 + 3 * l],
                                       (4 * hidden_size,), jnp.float32)
        b_hh = jnp.zeros((4 * hidden_size,), jnp.float32)
        params[f"wih_{l}"] = jnp.transpose(w_ih)                 # (d_in, 4H)
        params[f"whh_{l}"] = jnp.transpose(w_hh)                 # (H, 4H)
        params[f"b_{l}"] = (b_ih + b_hh).reshape(1, 4 * hidden_size)

    # nn.Linear(2 * num_layers * hidden_size, embed_size)
    in_feat = 2 * num_layers * hidden_size
    fc_w = 0.1 * jax.random.normal(keys[10], (embed_size, in_feat), jnp.float32)
    fc_b = 0.1 * jax.random.normal(keys[11], (embed_size,), jnp.float32)
    params["fc_w"] = jnp.transpose(fc_w)                         # (in_feat, E)
    params["fc_b"] = fc_b.reshape(1, embed_size)

    # question token ids: (batch, seq_len) int32
    question = jax.random.randint(keys[12], (batch, seq_len), 0,
                                  qst_vocab_size, dtype=jnp.int32)

    # One-time host-side weight packing (call-invariant).
    slab, fc_slab, vocab_padded = pack_params(
        params, num_layers=num_layers, hidden_size=hidden_size,
        vocab_size=qst_vocab_size)

    out = qst_encoder_forward(question, slab, fc_slab,
                              num_layers=num_layers, hidden_size=hidden_size,
                              vocab_padded=vocab_padded)
    out = jax.block_until_ready(out)

    ref = qst_encoder_reference(question, params,
                                num_layers=num_layers, hidden_size=hidden_size)
    ref = jax.block_until_ready(ref)

    assert out.shape == (batch, embed_size), out.shape
    assert jnp.allclose(out, ref, atol=1e-3, rtol=1e-3), (
        "mismatch vs reference: max abs err "
        f"{float(jnp.max(jnp.abs(out - ref)))}")

    print("KERNEL_OK")
</pallas_src>

<mosaic_0001>
module attributes {stable_mosaic.version = 11 : i64} {
  func.func @kernel(%arg0: memref<2x8xi32, #tpu.memory_space<smem>>, %arg1: memref<128x128xf32, #tpu.memory_space<vmem>>, %arg2: memref<129x32xf32, #tpu.memory_space<vmem>>, %arg3: memref<2x32xf32, #tpu.memory_space<vmem>>) attributes {dimension_semantics = [], scalar_prefetch = 0 : i64, scratch_operands = 0 : i64, tpu.core_type = #tpu.core_type<tc>} {
    %c0 = arith.constant 0 : index
    %c0_0 = arith.constant 0 : index
    %0 = vector.load %arg1[%c0, %c0_0] : memref<128x128xf32, #tpu.memory_space<vmem>>, vector<24x128xf32>
    %c24 = arith.constant 24 : index
    %c0_1 = arith.constant 0 : index
    %1 = vector.load %arg1[%c24, %c0_1] : memref<128x128xf32, #tpu.memory_space<vmem>>, vector<32x128xf32>
    %c56 = arith.constant 56 : index
    %c0_2 = arith.constant 0 : index
    %2 = vector.load %arg1[%c56, %c0_2] : memref<128x128xf32, #tpu.memory_space<vmem>>, vector<32x128xf32>
    %c88 = arith.constant 88 : index
    %c0_3 = arith.constant 0 : index
    %3 = vector.load %arg1[%c88, %c0_3] : memref<128x128xf32, #tpu.memory_space<vmem>>, vector<32x128xf32>
    %c120 = arith.constant 120 : index
    %c0_4 = arith.constant 0 : index
    %4 = vector.load %arg1[%c120, %c0_4] : memref<128x128xf32, #tpu.memory_space<vmem>>, vector<1x128xf32>
    %5 = tpu.iota {dimensions = array<i32: 1>} : vector<8x128xi32>
    %c64_i32 = arith.constant 64 : i32
    %6 = vector.broadcast %c64_i32 : i32 to vector<8x128xi32>
    %7 = arith.cmpi sge, %5, %6 : vector<8x128xi32>
    %c96_i32 = arith.constant 96 : i32
    %8 = vector.broadcast %c96_i32 : i32 to vector<8x128xi32>
    %9 = arith.cmpi slt, %5, %8 : vector<8x128xi32>
    %10 = arith.andi %7, %9 : vector<8x128xi1>
    %cst = arith.constant 1.000000e+00 : f32
    %cst_5 = arith.constant 5.000000e-01 : f32
    %11 = vector.broadcast %cst : f32 to vector<8x128xf32>
    %12 = vector.broadcast %cst_5 : f32 to vector<8x128xf32>
    %13 = arith.select %10, %11, %12 : vector<8x128xi1>, vector<8x128xf32>
    %14 = tpu.iota {dimensions = array<i32: 0>} : vector<8x24xi32>
    %15 = tpu.iota {dimensions = array<i32: 1>} : vector<8x24xi32>
    %cst_6 = arith.constant 0.000000e+00 : f32
    %16 = vector.broadcast %cst_6 : f32 to vector<8x32xf32>
    %cst_7 = arith.constant 0.000000e+00 : f32
    %17 = vector.broadcast %cst_7 : f32 to vector<8x32xf32>
    %cst_8 = arith.constant 0.000000e+00 : f32
    %18 = vector.broadcast %cst_8 : f32 to vector<8x32xf32>
    %cst_9 = arith.constant 0.000000e+00 : f32
    %19 = vector.broadcast %cst_9 : f32 to vector<8x32xf32>
    %cst_10 = arith.constant 0.000000e+00 : f32
    %20 = vector.broadcast %cst_10 : f32 to vector<8x24xf32>
    %c0_11 = arith.constant 0 : index
    %c0_12 = arith.constant 0 : index
    %21 = memref.load %arg0[%c0_11, %c0_12] : memref<2x8xi32, #tpu.memory_space<smem>>
    %c0_i32 = arith.constant 0 : i32
    %22 = vector.broadcast %c0_i32 : i32 to vector<8x24xi32>
    %23 = arith.cmpi eq, %14, %22 : vector<8x24xi32>
    %24 = vector.broadcast %21 : i32 to vector<8x24xi32>
    %25 = arith.cmpi eq, %15, %24 : vector<8x24xi32>
    %26 = arith.andi %23, %25 : vector<8x24xi1>
    %cst_13 = arith.constant 1.000000e+00 : f32
    %27 = vector.broadcast %cst_13 : f32 to vector<8x24xf32>
    %28 = arith.select %26, %27, %20 : vector<8x24xi1>, vector<8x24xf32>
    %c1 = arith.constant 1 : index
    %c0_14 = arith.constant 0 : index
    %29 = memref.load %arg0[%c1, %c0_14] : memref<2x8xi32, #tpu.memory_space<smem>>
    %c1_i32 = arith.constant 1 : i32
    %30 = vector.broadcast %c1_i32 : i32 to vector<8x24xi32>
    %31 = arith.cmpi eq, %14, %30 : vector<8x24xi32>
    %32 = vector.broadcast %29 : i32 to vector<8x24xi32>
    %33 = arith.cmpi eq, %15, %32 : vector<8x24xi32>
    %34 = arith.andi %31, %33 : vector<8x24xi1>
    %cst_15 = arith.constant 1.000000e+00 : f32
    %35 = vector.broadcast %cst_15 : f32 to vector<8x24xf32>
    %36 = arith.select %34, %35, %28 : vector<8x24xi1>, vector<8x24xf32>
    %cst_16 = arith.constant dense<0.000000e+00> : vector<8x128xf32>
    %37 = tpu.matmul %36, %0, %cst_16 {dimension_numbers = #tpu.dot_dimension_numbers<[1], [0], [0], [1], [0, 0, 1, 1], [], []>, precision = #tpu.contract_precision<fp32>} : vector<8x24xf32>, vector<24x128xf32>, vector<8x128xf32> -> vector<8x128xf32>
    %cst_17 = arith.constant dense<0.000000e+00> : vector<8x128xf32>
    %38 = tpu.matmul %16, %1, %cst_17 {dimension_numbers = #tpu.dot_dimension_numbers<[1], [0], [0], [1], [0, 0, 1, 1], [], []>, precision = #tpu.contract_precision<fp32>} : vector<8x32xf32>, vector<32x128xf32>, vector<8x128xf32> -> vector<8x128xf32>
    %39 = arith.addf %37, %38 : vector<8x128xf32>
    %40 = arith.mulf %39, %13 : vector<8x128xf32>
    %41 = math.tanh %40 : vector<8x128xf32>
    %cst_18 = arith.constant 5.000000e-01 : f32
    %42 = vector.broadcast %cst_18 : f32 to vector<8x128xf32>
    %43 = arith.mulf %42, %41 : vector<8x128xf32>
    %cst_19 = arith.constant 5.000000e-01 : f32
    %44 = vector.broadcast %cst_19 : f32 to vector<8x128xf32>
    %45 = arith.addf %43, %44 : vector<8x128xf32>
    %46 = arith.select %10, %41, %45 : vector<8x128xi1>, vector<8x128xf32>
    %47 = vector.extract_strided_slice %46 {offsets = [0, 0], sizes = [8, 32], strides = [1, 1]} : vector<8x128xf32> to vector<8x32xf32>
    %48 = vector.extract_strided_slice %46 {offsets = [0, 32], sizes = [8, 32], strides = [1, 1]} : vector<8x128xf32> to vector<8x32xf32>
    %49 = vector.extract_strided_slice %46 {offsets = [0, 64], sizes = [8, 32], strides = [1, 1]} : vector<8x128xf32> to vector<8x32xf32>
    %50 = vector.extract_strided_slice %46 {offsets = [0, 96], sizes = [8, 32], strides = [1, 1]} : vector<8x128xf32> to vector<8x32xf32>
    %51 = arith.mulf %48, %18 : vector<8x32xf32>
    %52 = arith.mulf %47, %49 : vector<8x32xf32>
    %53 = arith.addf %51, %52 : vector<8x32xf32>
    %54 = math.tanh %53 : vector<8x32xf32>
    %55 = arith.mulf %50, %54 : vector<8x32xf32>
    %cst_20 = arith.constant 0.000000e+00 : f32
    %56 = vector.broadcast %cst_20 : f32 to vector<8x24xf32>
    %c0_21 = arith.constant 0 : index
    %c1_22 = arith.constant 1 : index
    %57 = memref.load %arg0[%c0_21, %c1_22] : memref<2x8xi32, #tpu.memory_space<smem>>
    %c0_i32_23 = arith.constant 0 : i32
    %58 = vector.broadcast %c0_i32_23 : i32 to vector<8x24xi32>
    %59 = arith.cmpi eq, %14, %58 : vector<8x24xi32>
    %60 = vector.broadcast %57 : i32 to vector<8x24xi32>
    %61 = arith.cmpi eq, %15, %60 : vector<8x24xi32>
    %62 = arith.andi %59, %61 : vector<8x24xi1>
    %cst_24 = arith.constant 1.000000e+00 : f32
    %63 = vector.broadcast %cst_24 : f32 to vector<8x24xf32>
    %64 = arith.select %62, %63, %56 : vector<8x24xi1>, vector<8x24xf32>
    %c1_25 = arith.constant 1 : index
    %c1_26 = arith.constant 1 : index
    %65 = memref.load %arg0[%c1_25, %c1_26] : memref<2x8xi32, #tpu.memory_space<smem>>
    %c1_i32_27 = arith.constant 1 : i32
    %66 = vector.broadcast %c1_i32_27 : i32 to vector<8x24xi32>
    %67 = arith.cmpi eq, %14, %66 : vector<8x24xi32>
    %68 = vector.broadcast %65 : i32 to vector<8x24xi32>
    %69 = arith.cmpi eq, %15, %68 : vector<8x24xi32>
    %70 = arith.andi %67, %69 : vector<8x24xi1>
    %cst_28 = arith.constant 1.000000e+00 : f32
    %71 = vector.broadcast %cst_28 : f32 to vector<8x24xf32>
    %72 = arith.select %70, %71, %64 : vector<8x24xi1>, vector<8x24xf32>
    %cst_29 = arith.constant dense<0.000000e+00> : vector<8x128xf32>
    %73 = tpu.matmul %72, %0, %cst_29 {dimension_numbers = #tpu.dot_dimension_numbers<[1], [0], [0], [1], [0, 0, 1, 1], [], []>, precision = #tpu.contract_precision<fp32>} : vector<8x24xf32>, vector<24x128xf32>, vector<8x128xf32> -> vector<8x128xf32>
    %cst_30 = arith.constant dense<0.000000e+00> : vector<8x128xf32>
    %74 = tpu.matmul %55, %1, %cst_30 {dimension_numbers = #tpu.dot_dimension_numbers<[1], [0], [0], [1], [0, 0, 1, 1], [], []>, precision = #tpu.contract_precision<fp32>} : vector<8x32xf32>, vector<32x128xf32>, vector<8x128xf32> -> vector<8x128xf32>
    %75 = arith.addf %73, %74 : vector<8x128xf32>
    %76 = arith.mulf %75, %13 : vector<8x128xf32>
    %77 = math.tanh %76 : vector<8x128xf32>
    %cst_31 = arith.constant 5.000000e-01 : f32
    %78 = vector.broadcast %cst_31 : f32 to vector<8x128xf32>
    %79 = arith.mulf %78, %77 : vector<8x128xf32>
    %cst_32 = arith.constant 5.000000e-01 : f32
    %80 = vector.broadcast %cst_32 : f32 to vector<8x128xf32>
    %81 = arith.addf %79, %80 : vector<8x128xf32>
    %82 = arith.select %10, %77, %81 : vector<8x128xi1>, vector<8x128xf32>
    %83 = vector.extract_strided_slice %82 {offsets = [0, 0], sizes = [8, 32], strides = [1, 1]} : vector<8x128xf32> to vector<8x32xf32>
    %84 = vector.extract_strided_slice %82 {offsets = [0, 32], sizes = [8, 32], strides = [1, 1]} : vector<8x128xf32> to vector<8x32xf32>
    %85 = vector.extract_strided_slice %82 {offsets = [0, 64], sizes = [8, 32], strides = [1, 1]} : vector<8x128xf32> to vector<8x32xf32>
    %86 = vector.extract_strided_slice %82 {offsets = [0, 96], sizes = [8, 32], strides = [1, 1]} : vector<8x128xf32> to vector<8x32xf32>
    %87 = arith.mulf %84, %53 : vector<8x32xf32>
    %88 = arith.mulf %83, %85 : vector<8x32xf32>
    %89 = arith.addf %87, %88 : vector<8x32xf32>
    %90 = math.tanh %89 : vector<8x32xf32>
    %91 = arith.mulf %86, %90 : vector<8x32xf32>
    %cst_33 = arith.constant dense<0.000000e+00> : vector<8x128xf32>
    %92 = tpu.matmul %55, %3, %cst_33 {dimension_numbers = #tpu.dot_dimension_numbers<[1], [0], [0], [1], [0, 0, 1, 1], [], []>, precision = #tpu.contract_precision<fp32>} : vector<8x32xf32>, vector<32x128xf32>, vector<8x128xf32> -> vector<8x128xf32>
    %93 = vector.broadcast %4 : vector<1x128xf32> to vector<8x128xf32>
    %94 = arith.addf %92, %93 : vector<8x128xf32>
    %cst_34 = arith.constant dense<0.000000e+00> : vector<8x128xf32>
    %95 = tpu.matmul %17, %2, %cst_34 {dimension_numbers = #tpu.dot_dimension_numbers<[1], [0], [0], [1], [0, 0, 1, 1], [], []>, precision = #tpu.contract_precision<fp32>} : vector<8x32xf32>, vector<32x128xf32>, vector<8x128xf32> -> vector<8x128xf32>
    %96 = arith.addf %94, %95 : vector<8x128xf32>
    %97 = arith.mulf %96, %13 : vector<8x128xf32>
    %98 = math.tanh %97 : vector<8x128xf32>
    %cst_35 = arith.constant 5.000000e-01 : f32
    %99 = vector.broadcast %cst_35 : f32 to vector<8x128xf32>
    %100 = arith.mulf %99, %98 : vector<8x128xf32>
    %cst_36 = arith.constant 5.000000e-01 : f32
    %101 = vector.broadcast %cst_36 : f32 to vector<8x128xf32>
    %102 = arith.addf %100, %101 : vector<8x128xf32>
    %103 = arith.select %10, %98, %102 : vector<8x128xi1>, vector<8x128xf32>
    %104 = vector.extract_strided_slice %103 {offsets = [0, 0], sizes = [8, 32], strides = [1, 1]} : vector<8x128xf32> to vector<8x32xf32>
    %105 = vector.extract_strided_slice %103 {offsets = [0, 32], sizes = [8, 32], strides = [1, 1]} : vector<8x128xf32> to vector<8x32xf32>
    %106 = vector.extract_strided_slice %103 {offsets = [0, 64], sizes = [8, 32], strides = [1, 1]} : vector<8x128xf32> to vector<8x32xf32>
    %107 = vector.extract_strided_slice %103 {offsets = [0, 96], sizes = [8, 32], strides = [1, 1]} : vector<8x128xf32> to vector<8x32xf32>
    %108 = arith.mulf %105, %19 : vector<8x32xf32>
    %109 = arith.mulf %104, %106 : vector<8x32xf32>
    %110 = arith.addf %108, %109 : vector<8x32xf32>
    %111 = math.tanh %110 : vector<8x32xf32>
    %112 = arith.mulf %107, %111 : vector<8x32xf32>
    %cst_37 = arith.constant 0.000000e+00 : f32
    %113 = vector.broadcast %cst_37 : f32 to vector<8x24xf32>
    %c0_38 = arith.constant 0 : index
    %c2 = arith.constant 2 : index
    %114 = memref.load %arg0[%c0_38, %c2] : memref<2x8xi32, #tpu.memory_space<smem>>
    %c0_i32_39 = arith.constant 0 : i32
    %115 = vector.broadcast %c0_i32_39 : i32 to vector<8x24xi32>
    %116 = arith.cmpi eq, %14, %115 : vector<8x24xi32>
    %117 = vector.broadcast %114 : i32 to vector<8x24xi32>
    %118 = arith.cmpi eq, %15, %117 : vector<8x24xi32>
    %119 = arith.andi %116, %118 : vector<8x24xi1>
    %cst_40 = arith.constant 1.000000e+00 : f32
    %120 = vector.broadcast %cst_40 : f32 to vector<8x24xf32>
    %121 = arith.select %119, %120, %113 : vector<8x24xi1>, vector<8x24xf32>
    %c1_41 = arith.constant 1 : index
    %c2_42 = arith.constant 2 : index
    %122 = memref.load %arg0[%c1_41, %c2_42] : memref<2x8xi32, #tpu.memory_space<smem>>
    %c1_i32_43 = arith.constant 1 : i32
    %123 = vector.broadcast %c1_i32_43 : i32 to vector<8x24xi32>
    %124 = arith.cmpi eq, %14, %123 : vector<8x24xi32>
    %125 = vector.broadcast %122 : i32 to vector<8x24xi32>
    %126 = arith.cmpi eq, %15, %125 : vector<8x24xi32>
    %127 = arith.andi %124, %126 : vector<8x24xi1>
    %cst_44 = arith.constant 1.000000e+00 : f32
    %128 = vector.broadcast %cst_44 : f32 to vector<8x24xf32>
    %129 = arith.select %127, %128, %121 : vector<8x24xi1>, vector<8x24xf32>
    %cst_45 = arith.constant dense<0.000000e+00> : vector<8x128xf32>
    %130 = tpu.matmul %129, %0, %cst_45 {dimension_numbers = #tpu.dot_dimension_numbers<[1], [0], [0], [1], [0, 0, 1, 1], [], []>, precision = #tpu.contract_precision<fp32>} : vector<8x24xf32>, vector<24x128xf32>, vector<8x128xf32> -> vector<8x128xf32>
    %cst_46 = arith.constant dense<0.000000e+00> : vector<8x128xf32>
    %131 = tpu.matmul %91, %1, %cst_46 {dimension_numbers = #tpu.dot_dimension_numbers<[1], [0], [0], [1], [0, 0, 1, 1], [], []>, precision = #tpu.contract_precision<fp32>} : vector<8x32xf32>, vector<32x128xf32>, vector<8x128xf32> -> vector<8x128xf32>
    %132 = arith.addf %130, %131 : vector<8x128xf32>
    %133 = arith.mulf %132, %13 : vector<8x128xf32>
    %134 = math.tanh %133 : vector<8x128xf32>
    %cst_47 = arith.constant 5.000000e-01 : f32
    %135 = vector.broadcast %cst_47 : f32 to vector<8x128xf32>
    %136 = arith.mulf %135, %134 : vector<8x128xf32>
    %cst_48 = arith.constant 5.000000e-01 : f32
    %137 = vector.broadcast %cst_48 : f32 to vector<8x128xf32>
    %138 = arith.addf %136, %137 : vector<8x128xf32>
    %139 = arith.select %10, %134, %138 : vector<8x128xi1>, vector<8x128xf32>
    %140 = vector.extract_strided_slice %139 {offsets = [0, 0], sizes = [8, 32], strides = [1, 1]} : vector<8x128xf32> to vector<8x32xf32>
    %141 = vector.extract_strided_slice %139 {offsets = [0, 32], sizes = [8, 32], strides = [1, 1]} : vector<8x128xf32> to vector<8x32xf32>
    %142 = vector.extract_strided_slice %139 {offsets = [0, 64], sizes = [8, 32], strides = [1, 1]} : vector<8x128xf32> to vector<8x32xf32>
    %143 = vector.extract_strided_slice %139 {offsets = [0, 96], sizes = [8, 32], strides = [1, 1]} : vector<8x128xf32> to vector<8x32xf32>
    %144 = arith.mulf %141, %89 : vector<8x32xf32>
    %145 = arith.mulf %140, %142 : vector<8x32xf32>
    %146 = arith.addf %144, %145 : vector<8x32xf32>
    %147 = math.tanh %146 : vector<8x32xf32>
    %148 = arith.mulf %143, %147 : vector<8x32xf32>
    %cst_49 = arith.constant dense<0.000000e+00> : vector<8x128xf32>
    %149 = tpu.matmul %91, %3, %cst_49 {dimension_numbers = #tpu.dot_dimension_numbers<[1], [0], [0], [1], [0, 0, 1, 1], [], []>, precision = #tpu.contract_precision<fp32>} : vector<8x32xf32>, vector<32x128xf32>, vector<8x128xf32> -> vector<8x128xf32>
    %150 = vector.broadcast %4 : vector<1x128xf32> to vector<8x128xf32>
    %151 = arith.addf %149, %150 : vector<8x128xf32>
    %cst_50 = arith.constant dense<0.000000e+00> : vector<8x128xf32>
    %152 = tpu.matmul %112, %2, %cst_50 {dimension_numbers = #tpu.dot_dimension_numbers<[1], [0], [0], [1], [0, 0, 1, 1], [], []>, precision = #tpu.contract_precision<fp32>} : vector<8x32xf32>, vector<32x128xf32>, vector<8x128xf32> -> vector<8x128xf32>
    %153 = arith.addf %151, %152 : vector<8x128xf32>
    %154 = arith.mulf %153, %13 : vector<8x128xf32>
    %155 = math.tanh %154 : vector<8x128xf32>
    %cst_51 = arith.constant 5.000000e-01 : f32
    %156 = vector.broadcast %cst_51 : f32 to vector<8x128xf32>
    %157 = arith.mulf %156, %155 : vector<8x128xf32>
    %cst_52 = arith.constant 5.000000e-01 : f32
    %158 = vector.broadcast %cst_52 : f32 to vector<8x128xf32>
    %159 = arith.addf %157, %158 : vector<8x128xf32>
    %160 = arith.select %10, %155, %159 : vector<8x128xi1>, vector<8x128xf32>
    %161 = vector.extract_strided_slice %160 {offsets = [0, 0], sizes = [8, 32], strides = [1, 1]} : vector<8x128xf32> to vector<8x32xf32>
    %162 = vector.extract_strided_slice %160 {offsets = [0, 32], sizes = [8, 32], strides = [1, 1]} : vector<8x128xf32> to vector<8x32xf32>
    %163 = vector.extract_strided_slice %160 {offsets = [0, 64], sizes = [8, 32], strides = [1, 1]} : vector<8x128xf32> to vector<8x32xf32>
    %164 = vector.extract_strided_slice %160 {offsets = [0, 96], sizes = [8, 32], strides = [1, 1]} : vector<8x128xf32> to vector<8x32xf32>
    %165 = arith.mulf %162, %110 : vector<8x32xf32>
    %166 = arith.mulf %161, %163 : vector<8x32xf32>
    %167 = arith.addf %165, %166 : vector<8x32xf32>
    %168 = math.tanh %167 : vector<8x32xf32>
    %169 = arith.mulf %164, %168 : vector<8x32xf32>
    %cst_53 = arith.constant 0.000000e+00 : f32
    %170 = vector.broadcast %cst_53 : f32 to vector<8x24xf32>
    %c0_54 = arith.constant 0 : index
    %c3 = arith.constant 3 : index
    %171 = memref.load %arg0[%c0_54, %c3] : memref<2x8xi32, #tpu.memory_space<smem>>
    %c0_i32_55 = arith.constant 0 : i32
    %172 = vector.broadcast %c0_i32_55 : i32 to vector<8x24xi32>
    %173 = arith.cmpi eq, %14, %172 : vector<8x24xi32>
    %174 = vector.broadcast %171 : i32 to vector<8x24xi32>
    %175 = arith.cmpi eq, %15, %174 : vector<8x24xi32>
    %176 = arith.andi %173, %175 : vector<8x24xi1>
    %cst_56 = arith.constant 1.000000e+00 : f32
    %177 = vector.broadcast %cst_56 : f32 to vector<8x24xf32>
    %178 = arith.select %176, %177, %170 : vector<8x24xi1>, vector<8x24xf32>
    %c1_57 = arith.constant 1 : index
    %c3_58 = arith.constant 3 : index
    %179 = memref.load %arg0[%c1_57, %c3_58] : memref<2x8xi32, #tpu.memory_space<smem>>
    %c1_i32_59 = arith.constant 1 : i32
    %180 = vector.broadcast %c1_i32_59 : i32 to vector<8x24xi32>
    %181 = arith.cmpi eq, %14, %180 : vector<8x24xi32>
    %182 = vector.broadcast %179 : i32 to vector<8x24xi32>
    %183 = arith.cmpi eq, %15, %182 : vector<8x24xi32>
    %184 = arith.andi %181, %183 : vector<8x24xi1>
    %cst_60 = arith.constant 1.000000e+00 : f32
    %185 = vector.broadcast %cst_60 : f32 to vector<8x24xf32>
    %186 = arith.select %184, %185, %178 : vector<8x24xi1>, vector<8x24xf32>
    %cst_61 = arith.constant dense<0.000000e+00> : vector<8x128xf32>
    %187 = tpu.matmul %186, %0, %cst_61 {dimension_numbers = #tpu.dot_dimension_numbers<[1], [0], [0], [1], [0, 0, 1, 1], [], []>, precision = #tpu.contract_precision<fp32>} : vector<8x24xf32>, vector<24x128xf32>, vector<8x128xf32> -> vector<8x128xf32>
    %cst_62 = arith.constant dense<0.000000e+00> : vector<8x128xf32>
    %188 = tpu.matmul %148, %1, %cst_62 {dimension_numbers = #tpu.dot_dimension_numbers<[1], [0], [0], [1], [0, 0, 1, 1], [], []>, precision = #tpu.contract_precision<fp32>} : vector<8x32xf32>, vector<32x128xf32>, vector<8x128xf32> -> vector<8x128xf32>
    %189 = arith.addf %187, %188 : vector<8x128xf32>
    %190 = arith.mulf %189, %13 : vector<8x128xf32>
    %191 = math.tanh %190 : vector<8x128xf32>
    %cst_63 = arith.constant 5.000000e-01 : f32
    %192 = vector.broadcast %cst_63 : f32 to vector<8x128xf32>
    %193 = arith.mulf %192, %191 : vector<8x128xf32>
    %cst_64 = arith.constant 5.000000e-01 : f32
    %194 = vector.broadcast %cst_64 : f32 to vector<8x128xf32>
    %195 = arith.addf %193, %194 : vector<8x128xf32>
    %196 = arith.select %10, %191, %195 : vector<8x128xi1>, vector<8x128xf32>
    %197 = vector.extract_strided_slice %196 {offsets = [0, 0], sizes = [8, 32], strides = [1, 1]} : vector<8x128xf32> to vector<8x32xf32>
    %198 = vector.extract_strided_slice %196 {offsets = [0, 32], sizes = [8, 32], strides = [1, 1]} : vector<8x128xf32> to vector<8x32xf32>
    %199 = vector.extract_strided_slice %196 {offsets = [0, 64], sizes = [8, 32], strides = [1, 1]} : vector<8x128xf32> to vector<8x32xf32>
    %200 = vector.extract_strided_slice %196 {offsets = [0, 96], sizes = [8, 32], strides = [1, 1]} : vector<8x128xf32> to vector<8x32xf32>
    %201 = arith.mulf %198, %146 : vector<8x32xf32>
    %202 = arith.mulf %197, %199 : vector<8x32xf32>
    %203 = arith.addf %201, %202 : vector<8x32xf32>
    %204 = math.tanh %203 : vector<8x32xf32>
    %205 = arith.mulf %200, %204 : vector<8x32xf32>
    %cst_65 = arith.constant dense<0.000000e+00> : vector<8x128xf32>
    %206 = tpu.matmul %148, %3, %cst_65 {dimension_numbers = #tpu.dot_dimension_numbers<[1], [0], [0], [1], [0, 0, 1, 1], [], []>, precision = #tpu.contract_precision<fp32>} : vector<8x32xf32>, vector<32x128xf32>, vector<8x128xf32> -> vector<8x128xf32>
    %207 = vector.broadcast %4 : vector<1x128xf32> to vector<8x128xf32>
    %208 = arith.addf %206, %207 : vector<8x128xf32>
    %cst_66 = arith.constant dense<0.000000e+00> : vector<8x128xf32>
    %209 = tpu.matmul %169, %2, %cst_66 {dimension_numbers = #tpu.dot_dimension_numbers<[1], [0], [0], [1], [0, 0, 1, 1], [], []>, precision = #tpu.contract_precision<fp32>} : vector<8x32xf32>, vector<32x128xf32>, vector<8x128xf32> -> vector<8x128xf32>
    %210 = arith.addf %208, %209 : vector<8x128xf32>
    %211 = arith.mulf %210, %13 : vector<8x128xf32>
    %212 = math.tanh %211 : vector<8x128xf32>
    %cst_67 = arith.constant 5.000000e-01 : f32
    %213 = vector.broadcast %cst_67 : f32 to vector<8x128xf32>
    %214 = arith.mulf %213, %212 : vector<8x128xf32>
    %cst_68 = arith.constant 5.000000e-01 : f32
    %215 = vector.broadcast %cst_68 : f32 to vector<8x128xf32>
    %216 = arith.addf %214, %215 : vector<8x128xf32>
    %217 = arith.select %10, %212, %216 : vector<8x128xi1>, vector<8x128xf32>
    %218 = vector.extract_strided_slice %217 {offsets = [0, 0], sizes = [8, 32], strides = [1, 1]} : vector<8x128xf32> to vector<8x32xf32>
    %219 = vector.extract_strided_slice %217 {offsets = [0, 32], sizes = [8, 32], strides = [1, 1]} : vector<8x128xf32> to vector<8x32xf32>
    %220 = vector.extract_strided_slice %217 {offsets = [0, 64], sizes = [8, 32], strides = [1, 1]} : vector<8x128xf32> to vector<8x32xf32>
    %221 = vector.extract_strided_slice %217 {offsets = [0, 96], sizes = [8, 32], strides = [1, 1]} : vector<8x128xf32> to vector<8x32xf32>
    %222 = arith.mulf %219, %167 : vector<8x32xf32>
    %223 = arith.mulf %218, %220 : vector<8x32xf32>
    %224 = arith.addf %222, %223 : vector<8x32xf32>
    %225 = math.tanh %224 : vector<8x32xf32>
    %226 = arith.mulf %221, %225 : vector<8x32xf32>
    %cst_69 = arith.constant 0.000000e+00 : f32
    %227 = vector.broadcast %cst_69 : f32 to vector<8x24xf32>
    %c0_70 = arith.constant 0 : index
    %c4 = arith.constant 4 : index
    %228 = memref.load %arg0[%c0_70, %c4] : memref<2x8xi32, #tpu.memory_space<smem>>
    %c0_i32_71 = arith.constant 0 : i32
    %229 = vector.broadcast %c0_i32_71 : i32 to vector<8x24xi32>
    %230 = arith.cmpi eq, %14, %229 : vector<8x24xi32>
    %231 = vector.broadcast %228 : i32 to vector<8x24xi32>
    %232 = arith.cmpi eq, %15, %231 : vector<8x24xi32>
    %233 = arith.andi %230, %232 : vector<8x24xi1>
    %cst_72 = arith.constant 1.000000e+00 : f32
    %234 = vector.broadcast %cst_72 : f32 to vector<8x24xf32>
    %235 = arith.select %233, %234, %227 : vector<8x24xi1>, vector<8x24xf32>
    %c1_73 = arith.constant 1 : index
    %c4_74 = arith.constant 4 : index
    %236 = memref.load %arg0[%c1_73, %c4_74] : memref<2x8xi32, #tpu.memory_space<smem>>
    %c1_i32_75 = arith.constant 1 : i32
    %237 = vector.broadcast %c1_i32_75 : i32 to vector<8x24xi32>
    %238 = arith.cmpi eq, %14, %237 : vector<8x24xi32>
    %239 = vector.broadcast %236 : i32 to vector<8x24xi32>
    %240 = arith.cmpi eq, %15, %239 : vector<8x24xi32>
    %241 = arith.andi %238, %240 : vector<8x24xi1>
    %cst_76 = arith.constant 1.000000e+00 : f32
    %242 = vector.broadcast %cst_76 : f32 to vector<8x24xf32>
    %243 = arith.select %241, %242, %235 : vector<8x24xi1>, vector<8x24xf32>
    %cst_77 = arith.constant dense<0.000000e+00> : vector<8x128xf32>
    %244 = tpu.matmul %243, %0, %cst_77 {dimension_numbers = #tpu.dot_dimension_numbers<[1], [0], [0], [1], [0, 0, 1, 1], [], []>, precision = #tpu.contract_precision<fp32>} : vector<8x24xf32>, vector<24x128xf32>, vector<8x128xf32> -> vector<8x128xf32>
    %cst_78 = arith.constant dense<0.000000e+00> : vector<8x128xf32>
    %245 = tpu.matmul %205, %1, %cst_78 {dimension_numbers = #tpu.dot_dimension_numbers<[1], [0], [0], [1], [0, 0, 1, 1], [], []>, precision = #tpu.contract_precision<fp32>} : vector<8x32xf32>, vector<32x128xf32>, vector<8x128xf32> -> vector<8x128xf32>
    %246 = arith.addf %244, %245 : vector<8x128xf32>
    %247 = arith.mulf %246, %13 : vector<8x128xf32>
    %248 = math.tanh %247 : vector<8x128xf32>
    %cst_79 = arith.constant 5.000000e-01 : f32
    %249 = vector.broadcast %cst_79 : f32 to vector<8x128xf32>
    %250 = arith.mulf %249, %248 : vector<8x128xf32>
    %cst_80 = arith.constant 5.000000e-01 : f32
    %251 = vector.broadcast %cst_80 : f32 to vector<8x128xf32>
    %252 = arith.addf %250, %251 : vector<8x128xf32>
    %253 = arith.select %10, %248, %252 : vector<8x128xi1>, vector<8x128xf32>
    %254 = vector.extract_strided_slice %253 {offsets = [0, 0], sizes = [8, 32], strides = [1, 1]} : vector<8x128xf32> to vector<8x32xf32>
    %255 = vector.extract_strided_slice %253 {offsets = [0, 32], sizes = [8, 32], strides = [1, 1]} : vector<8x128xf32> to vector<8x32xf32>
    %256 = vector.extract_strided_slice %253 {offsets = [0, 64], sizes = [8, 32], strides = [1, 1]} : vector<8x128xf32> to vector<8x32xf32>
    %257 = vector.extract_strided_slice %253 {offsets = [0, 96], sizes = [8, 32], strides = [1, 1]} : vector<8x128xf32> to vector<8x32xf32>
    %258 = arith.mulf %255, %203 : vector<8x32xf32>
    %259 = arith.mulf %254, %256 : vector<8x32xf32>
    %260 = arith.addf %258, %259 : vector<8x32xf32>
    %261 = math.tanh %260 : vector<8x32xf32>
    %262 = arith.mulf %257, %261 : vector<8x32xf32>
    %cst_81 = arith.constant dense<0.000000e+00> : vector<8x128xf32>
    %263 = tpu.matmul %205, %3, %cst_81 {dimension_numbers = #tpu.dot_dimension_numbers<[1], [0], [0], [1], [0, 0, 1, 1], [], []>, precision = #tpu.contract_precision<fp32>} : vector<8x32xf32>, vector<32x128xf32>, vector<8x128xf32> -> vector<8x128xf32>
    %264 = vector.broadcast %4 : vector<1x128xf32> to vector<8x128xf32>
    %265 = arith.addf %263, %264 : vector<8x128xf32>
    %cst_82 = arith.constant dense<0.000000e+00> : vector<8x128xf32>
    %266 = tpu.matmul %226, %2, %cst_82 {dimension_numbers = #tpu.dot_dimension_numbers<[1], [0], [0], [1], [0, 0, 1, 1], [], []>, precision = #tpu.contract_precision<fp32>} : vector<8x32xf32>, vector<32x128xf32>, vector<8x128xf32> -> vector<8x128xf32>
    %267 = arith.addf %265, %266 : vector<8x128xf32>
    %268 = arith.mulf %267, %13 : vector<8x128xf32>
    %269 = math.tanh %268 : vector<8x128xf32>
    %cst_83 = arith.constant 5.000000e-01 : f32
    %270 = vector.broadcast %cst_83 : f32 to vector<8x128xf32>
    %271 = arith.mulf %270, %269 : vector<8x128xf32>
    %cst_84 = arith.constant 5.000000e-01 : f32
    %272 = vector.broadcast %cst_84 : f32 to vector<8x128xf32>
    %273 = arith.addf %271, %272 : vector<8x128xf32>
    %274 = arith.select %10, %269, %273 : vector<8x128xi1>, vector<8x128xf32>
    %275 = vector.extract_strided_slice %274 {offsets = [0, 0], sizes = [8, 32], strides = [1, 1]} : vector<8x128xf32> to vector<8x32xf32>
    %276 = vector.extract_strided_slice %274 {offsets = [0, 32], sizes = [8, 32], strides = [1, 1]} : vector<8x128xf32> to vector<8x32xf32>
    %277 = vector.extract_strided_slice %274 {offsets = [0, 64], sizes = [8, 32], strides = [1, 1]} : vector<8x128xf32> to vector<8x32xf32>
    %278 = vector.extract_strided_slice %274 {offsets = [0, 96], sizes = [8, 32], strides = [1, 1]} : vector<8x128xf32> to vector<8x32xf32>
    %279 = arith.mulf %276, %224 : vector<8x32xf32>
    %280 = arith.mulf %275, %277 : vector<8x32xf32>
    %281 = arith.addf %279, %280 : vector<8x32xf32>
    %282 = math.tanh %281 : vector<8x32xf32>
    %283 = arith.mulf %278, %282 : vector<8x32xf32>
    %cst_85 = arith.constant 0.000000e+00 : f32
    %284 = vector.broadcast %cst_85 : f32 to vector<8x24xf32>
    %c0_86 = arith.constant 0 : index
    %c5 = arith.constant 5 : index
    %285 = memref.load %arg0[%c0_86, %c5] : memref<2x8xi32, #tpu.memory_space<smem>>
    %c0_i32_87 = arith.constant 0 : i32
    %286 = vector.broadcast %c0_i32_87 : i32 to vector<8x24xi32>
    %287 = arith.cmpi eq, %14, %286 : vector<8x24xi32>
    %288 = vector.broadcast %285 : i32 to vector<8x24xi32>
    %289 = arith.cmpi eq, %15, %288 : vector<8x24xi32>
    %290 = arith.andi %287, %289 : vector<8x24xi1>
    %cst_88 = arith.constant 1.000000e+00 : f32
    %291 = vector.broadcast %cst_88 : f32 to vector<8x24xf32>
    %292 = arith.select %290, %291, %284 : vector<8x24xi1>, vector<8x24xf32>
    %c1_89 = arith.constant 1 : index
    %c5_90 = arith.constant 5 : index
    %293 = memref.load %arg0[%c1_89, %c5_90] : memref<2x8xi32, #tpu.memory_space<smem>>
    %c1_i32_91 = arith.constant 1 : i32
    %294 = vector.broadcast %c1_i32_91 : i32 to vector<8x24xi32>
    %295 = arith.cmpi eq, %14, %294 : vector<8x24xi32>
    %296 = vector.broadcast %293 : i32 to vector<8x24xi32>
    %297 = arith.cmpi eq, %15, %296 : vector<8x24xi32>
    %298 = arith.andi %295, %297 : vector<8x24xi1>
    %cst_92 = arith.constant 1.000000e+00 : f32
    %299 = vector.broadcast %cst_92 : f32 to vector<8x24xf32>
    %300 = arith.select %298, %299, %292 : vector<8x24xi1>, vector<8x24xf32>
    %cst_93 = arith.constant dense<0.000000e+00> : vector<8x128xf32>
    %301 = tpu.matmul %300, %0, %cst_93 {dimension_numbers = #tpu.dot_dimension_numbers<[1], [0], [0], [1], [0, 0, 1, 1], [], []>, precision = #tpu.contract_precision<fp32>} : vector<8x24xf32>, vector<24x128xf32>, vector<8x128xf32> -> vector<8x128xf32>
    %cst_94 = arith.constant dense<0.000000e+00> : vector<8x128xf32>
    %302 = tpu.matmul %262, %1, %cst_94 {dimension_numbers = #tpu.dot_dimension_numbers<[1], [0], [0], [1], [0, 0, 1, 1], [], []>, precision = #tpu.contract_precision<fp32>} : vector<8x32xf32>, vector<32x128xf32>, vector<8x128xf32> -> vector<8x128xf32>
    %303 = arith.addf %301, %302 : vector<8x128xf32>
    %304 = arith.mulf %303, %13 : vector<8x128xf32>
    %305 = math.tanh %304 : vector<8x128xf32>
    %cst_95 = arith.constant 5.000000e-01 : f32
    %306 = vector.broadcast %cst_95 : f32 to vector<8x128xf32>
    %307 = arith.mulf %306, %305 : vector<8x128xf32>
    %cst_96 = arith.constant 5.000000e-01 : f32
    %308 = vector.broadcast %cst_96 : f32 to vector<8x128xf32>
    %309 = arith.addf %307, %308 : vector<8x128xf32>
    %310 = arith.select %10, %305, %309 : vector<8x128xi1>, vector<8x128xf32>
    %311 = vector.extract_strided_slice %310 {offsets = [0, 0], sizes = [8, 32], strides = [1, 1]} : vector<8x128xf32> to vector<8x32xf32>
    %312 = vector.extract_strided_slice %310 {offsets = [0, 32], sizes = [8, 32], strides = [1, 1]} : vector<8x128xf32> to vector<8x32xf32>
    %313 = vector.extract_strided_slice %310 {offsets = [0, 64], sizes = [8, 32], strides = [1, 1]} : vector<8x128xf32> to vector<8x32xf32>
    %314 = vector.extract_strided_slice %310 {offsets = [0, 96], sizes = [8, 32], strides = [1, 1]} : vector<8x128xf32> to vector<8x32xf32>
    %315 = arith.mulf %312, %260 : vector<8x32xf32>
    %316 = arith.mulf %311, %313 : vector<8x32xf32>
    %317 = arith.addf %315, %316 : vector<8x32xf32>
    %318 = math.tanh %317 : vector<8x32xf32>
    %319 = arith.mulf %314, %318 : vector<8x32xf32>
    %cst_97 = arith.constant dense<0.000000e+00> : vector<8x128xf32>
    %320 = tpu.matmul %262, %3, %cst_97 {dimension_numbers = #tpu.dot_dimension_numbers<[1], [0], [0], [1], [0, 0, 1, 1], [], []>, precision = #tpu.contract_precision<fp32>} : vector<8x32xf32>, vector<32x128xf32>, vector<8x128xf32> -> vector<8x128xf32>
    %321 = vector.broadcast %4 : vector<1x128xf32> to vector<8x128xf32>
    %322 = arith.addf %320, %321 : vector<8x128xf32>
    %cst_98 = arith.constant dense<0.000000e+00> : vector<8x128xf32>
    %323 = tpu.matmul %283, %2, %cst_98 {dimension_numbers = #tpu.dot_dimension_numbers<[1], [0], [0], [1], [0, 0, 1, 1], [], []>, precision = #tpu.contract_precision<fp32>} : vector<8x32xf32>, vector<32x128xf32>, vector<8x128xf32> -> vector<8x128xf32>
    %324 = arith.addf %322, %323 : vector<8x128xf32>
    %325 = arith.mulf %324, %13 : vector<8x128xf32>
    %326 = math.tanh %325 : vector<8x128xf32>
    %cst_99 = arith.constant 5.000000e-01 : f32
    %327 = vector.broadcast %cst_99 : f32 to vector<8x128xf32>
    %328 = arith.mulf %327, %326 : vector<8x128xf32>
    %cst_100 = arith.constant 5.000000e-01 : f32
    %329 = vector.broadcast %cst_100 : f32 to vector<8x128xf32>
    %330 = arith.addf %328, %329 : vector<8x128xf32>
    %331 = arith.select %10, %326, %330 : vector<8x128xi1>, vector<8x128xf32>
    %332 = vector.extract_strided_slice %331 {offsets = [0, 0], sizes = [8, 32], strides = [1, 1]} : vector<8x128xf32> to vector<8x32xf32>
    %333 = vector.extract_strided_slice %331 {offsets = [0, 32], sizes = [8, 32], strides = [1, 1]} : vector<8x128xf32> to vector<8x32xf32>
    %334 = vector.extract_strided_slice %331 {offsets = [0, 64], sizes = [8, 32], strides = [1, 1]} : vector<8x128xf32> to vector<8x32xf32>
    %335 = vector.extract_strided_slice %331 {offsets = [0, 96], sizes = [8, 32], strides = [1, 1]} : vector<8x128xf32> to vector<8x32xf32>
    %336 = arith.mulf %333, %281 : vector<8x32xf32>
    %337 = arith.mulf %332, %334 : vector<8x32xf32>
    %338 = arith.addf %336, %337 : vector<8x32xf32>
    %339 = math.tanh %338 : vector<8x32xf32>
    %340 = arith.mulf %335, %339 : vector<8x32xf32>
    %cst_101 = arith.constant 0.000000e+00 : f32
    %341 = vector.broadcast %cst_101 : f32 to vector<8x24xf32>
    %c0_102 = arith.constant 0 : index
    %c6 = arith.constant 6 : index
    %342 = memref.load %arg0[%c0_102, %c6] : memref<2x8xi32, #tpu.memory_space<smem>>
    %c0_i32_103 = arith.constant 0 : i32
    %343 = vector.broadcast %c0_i32_103 : i32 to vector<8x24xi32>
    %344 = arith.cmpi eq, %14, %343 : vector<8x24xi32>
    %345 = vector.broadcast %342 : i32 to vector<8x24xi32>
    %346 = arith.cmpi eq, %15, %345 : vector<8x24xi32>
    %347 = arith.andi %344, %346 : vector<8x24xi1>
    %cst_104 = arith.constant 1.000000e+00 : f32
    %348 = vector.broadcast %cst_104 : f32 to vector<8x24xf32>
    %349 = arith.select %347, %348, %341 : vector<8x24xi1>, vector<8x24xf32>
    %c1_105 = arith.constant 1 : index
    %c6_106 = arith.constant 6 : index
    %350 = memref.load %arg0[%c1_105, %c6_106] : memref<2x8xi32, #tpu.memory_space<smem>>
    %c1_i32_107 = arith.constant 1 : i32
    %351 = vector.broadcast %c1_i32_107 : i32 to vector<8x24xi32>
    %352 = arith.cmpi eq, %14, %351 : vector<8x24xi32>
    %353 = vector.broadcast %350 : i32 to vector<8x24xi32>
    %354 = arith.cmpi eq, %15, %353 : vector<8x24xi32>
    %355 = arith.andi %352, %354 : vector<8x24xi1>
    %cst_108 = arith.constant 1.000000e+00 : f32
    %356 = vector.broadcast %cst_108 : f32 to vector<8x24xf32>
    %357 = arith.select %355, %356, %349 : vector<8x24xi1>, vector<8x24xf32>
    %cst_109 = arith.constant dense<0.000000e+00> : vector<8x128xf32>
    %358 = tpu.matmul %357, %0, %cst_109 {dimension_numbers = #tpu.dot_dimension_numbers<[1], [0], [0], [1], [0, 0, 1, 1], [], []>, precision = #tpu.contract_precision<fp32>} : vector<8x24xf32>, vector<24x128xf32>, vector<8x128xf32> -> vector<8x128xf32>
    %cst_110 = arith.constant dense<0.000000e+00> : vector<8x128xf32>
    %359 = tpu.matmul %319, %1, %cst_110 {dimension_numbers = #tpu.dot_dimension_numbers<[1], [0], [0], [1], [0, 0, 1, 1], [], []>, precision = #tpu.contract_precision<fp32>} : vector<8x32xf32>, vector<32x128xf32>, vector<8x128xf32> -> vector<8x128xf32>
    %360 = arith.addf %358, %359 : vector<8x128xf32>
    %361 = arith.mulf %360, %13 : vector<8x128xf32>
    %362 = math.tanh %361 : vector<8x128xf32>
    %cst_111 = arith.constant 5.000000e-01 : f32
    %363 = vector.broadcast %cst_111 : f32 to vector<8x128xf32>
    %364 = arith.mulf %363, %362 : vector<8x128xf32>
    %cst_112 = arith.constant 5.000000e-01 : f32
    %365 = vector.broadcast %cst_112 : f32 to vector<8x128xf32>
    %366 = arith.addf %364, %365 : vector<8x128xf32>
    %367 = arith.select %10, %362, %366 : vector<8x128xi1>, vector<8x128xf32>
    %368 = vector.extract_strided_slice %367 {offsets = [0, 0], sizes = [8, 32], strides = [1, 1]} : vector<8x128xf32> to vector<8x32xf32>
    %369 = vector.extract_strided_slice %367 {offsets = [0, 32], sizes = [8, 32], strides = [1, 1]} : vector<8x128xf32> to vector<8x32xf32>
    %370 = vector.extract_strided_slice %367 {offsets = [0, 64], sizes = [8, 32], strides = [1, 1]} : vector<8x128xf32> to vector<8x32xf32>
    %371 = vector.extract_strided_slice %367 {offsets = [0, 96], sizes = [8, 32], strides = [1, 1]} : vector<8x128xf32> to vector<8x32xf32>
    %372 = arith.mulf %369, %317 : vector<8x32xf32>
    %373 = arith.mulf %368, %370 : vector<8x32xf32>
    %374 = arith.addf %372, %373 : vector<8x32xf32>
    %375 = math.tanh %374 : vector<8x32xf32>
    %376 = arith.mulf %371, %375 : vector<8x32xf32>
    %cst_113 = arith.constant dense<0.000000e+00> : vector<8x128xf32>
    %377 = tpu.matmul %319, %3, %cst_113 {dimension_numbers = #tpu.dot_dimension_numbers<[1], [0], [0], [1], [0, 0, 1, 1], [], []>, precision = #tpu.contract_precision<fp32>} : vector<8x32xf32>, vector<32x128xf32>, vector<8x128xf32> -> vector<8x128xf32>
    %378 = vector.broadcast %4 : vector<1x128xf32> to vector<8x128xf32>
    %379 = arith.addf %377, %378 : vector<8x128xf32>
    %cst_114 = arith.constant dense<0.000000e+00> : vector<8x128xf32>
    %380 = tpu.matmul %340, %2, %cst_114 {dimension_numbers = #tpu.dot_dimension_numbers<[1], [0], [0], [1], [0, 0, 1, 1], [], []>, precision = #tpu.contract_precision<fp32>} : vector<8x32xf32>, vector<32x128xf32>, vector<8x128xf32> -> vector<8x128xf32>
    %381 = arith.addf %379, %380 : vector<8x128xf32>
    %382 = arith.mulf %381, %13 : vector<8x128xf32>
    %383 = math.tanh %382 : vector<8x128xf32>
    %cst_115 = arith.constant 5.000000e-01 : f32
    %384 = vector.broadcast %cst_115 : f32 to vector<8x128xf32>
    %385 = arith.mulf %384, %383 : vector<8x128xf32>
    %cst_116 = arith.constant 5.000000e-01 : f32
    %386 = vector.broadcast %cst_116 : f32 to vector<8x128xf32>
    %387 = arith.addf %385, %386 : vector<8x128xf32>
    %388 = arith.select %10, %383, %387 : vector<8x128xi1>, vector<8x128xf32>
    %389 = vector.extract_strided_slice %388 {offsets = [0, 0], sizes = [8, 32], strides = [1, 1]} : vector<8x128xf32> to vector<8x32xf32>
    %390 = vector.extract_strided_slice %388 {offsets = [0, 32], sizes = [8, 32], strides = [1, 1]} : vector<8x128xf32> to vector<8x32xf32>
    %391 = vector.extract_strided_slice %388 {offsets = [0, 64], sizes = [8, 32], strides = [1, 1]} : vector<8x128xf32> to vector<8x32xf32>
    %392 = vector.extract_strided_slice %388 {offsets = [0, 96], sizes = [8, 32], strides = [1, 1]} : vector<8x128xf32> to vector<8x32xf32>
    %393 = arith.mulf %390, %338 : vector<8x32xf32>
    %394 = arith.mulf %389, %391 : vector<8x32xf32>
    %395 = arith.addf %393, %394 : vector<8x32xf32>
    %396 = math.tanh %395 : vector<8x32xf32>
    %397 = arith.mulf %392, %396 : vector<8x32xf32>
    %cst_117 = arith.constant 0.000000e+00 : f32
    %398 = vector.broadcast %cst_117 : f32 to vector<8x24xf32>
    %c0_118 = arith.constant 0 : index
    %c7 = arith.constant 7 : index
    %399 = memref.load %arg0[%c0_118, %c7] : memref<2x8xi32, #tpu.memory_space<smem>>
    %c0_i32_119 = arith.constant 0 : i32
    %400 = vector.broadcast %c0_i32_119 : i32 to vector<8x24xi32>
    %401 = arith.cmpi eq, %14, %400 : vector<8x24xi32>
    %402 = vector.broadcast %399 : i32 to vector<8x24xi32>
    %403 = arith.cmpi eq, %15, %402 : vector<8x24xi32>
    %404 = arith.andi %401, %403 : vector<8x24xi1>
    %cst_120 = arith.constant 1.000000e+00 : f32
    %405 = vector.broadcast %cst_120 : f32 to vector<8x24xf32>
    %406 = arith.select %404, %405, %398 : vector<8x24xi1>, vector<8x24xf32>
    %c1_121 = arith.constant 1 : index
    %c7_122 = arith.constant 7 : index
    %407 = memref.load %arg0[%c1_121, %c7_122] : memref<2x8xi32, #tpu.memory_space<smem>>
    %c1_i32_123 = arith.constant 1 : i32
    %408 = vector.broadcast %c1_i32_123 : i32 to vector<8x24xi32>
    %409 = arith.cmpi eq, %14, %408 : vector<8x24xi32>
    %410 = vector.broadcast %407 : i32 to vector<8x24xi32>
    %411 = arith.cmpi eq, %15, %410 : vector<8x24xi32>
    %412 = arith.andi %409, %411 : vector<8x24xi1>
    %cst_124 = arith.constant 1.000000e+00 : f32
    %413 = vector.broadcast %cst_124 : f32 to vector<8x24xf32>
    %414 = arith.select %412, %413, %406 : vector<8x24xi1>, vector<8x24xf32>
    %cst_125 = arith.constant dense<0.000000e+00> : vector<8x128xf32>
    %415 = tpu.matmul %414, %0, %cst_125 {dimension_numbers = #tpu.dot_dimension_numbers<[1], [0], [0], [1], [0, 0, 1, 1], [], []>, precision = #tpu.contract_precision<fp32>} : vector<8x24xf32>, vector<24x128xf32>, vector<8x128xf32> -> vector<8x128xf32>
    %cst_126 = arith.constant dense<0.000000e+00> : vector<8x128xf32>
    %416 = tpu.matmul %376, %1, %cst_126 {dimension_numbers = #tpu.dot_dimension_numbers<[1], [0], [0], [1], [0, 0, 1, 1], [], []>, precision = #tpu.contract_precision<fp32>} : vector<8x32xf32>, vector<32x128xf32>, vector<8x128xf32> -> vector<8x128xf32>
    %417 = arith.addf %415, %416 : vector<8x128xf32>
    %418 = arith.mulf %417, %13 : vector<8x128xf32>
    %419 = math.tanh %418 : vector<8x128xf32>
    %cst_127 = arith.constant 5.000000e-01 : f32
    %420 = vector.broadcast %cst_127 : f32 to vector<8x128xf32>
    %421 = arith.mulf %420, %419 : vector<8x128xf32>
    %cst_128 = arith.constant 5.000000e-01 : f32
    %422 = vector.broadcast %cst_128 : f32 to vector<8x128xf32>
    %423 = arith.addf %421, %422 : vector<8x128xf32>
    %424 = arith.select %10, %419, %423 : vector<8x128xi1>, vector<8x128xf32>
    %425 = vector.extract_strided_slice %424 {offsets = [0, 0], sizes = [8, 32], strides = [1, 1]} : vector<8x128xf32> to vector<8x32xf32>
    %426 = vector.extract_strided_slice %424 {offsets = [0, 32], sizes = [8, 32], strides = [1, 1]} : vector<8x128xf32> to vector<8x32xf32>
    %427 = vector.extract_strided_slice %424 {offsets = [0, 64], sizes = [8, 32], strides = [1, 1]} : vector<8x128xf32> to vector<8x32xf32>
    %428 = vector.extract_strided_slice %424 {offsets = [0, 96], sizes = [8, 32], strides = [1, 1]} : vector<8x128xf32> to vector<8x32xf32>
    %429 = arith.mulf %426, %374 : vector<8x32xf32>
    %430 = arith.mulf %425, %427 : vector<8x32xf32>
    %431 = arith.addf %429, %430 : vector<8x32xf32>
    %432 = math.tanh %431 : vector<8x32xf32>
    %433 = arith.mulf %428, %432 : vector<8x32xf32>
    %cst_129 = arith.constant dense<0.000000e+00> : vector<8x128xf32>
    %434 = tpu.matmul %376, %3, %cst_129 {dimension_numbers = #tpu.dot_dimension_numbers<[1], [0], [0], [1], [0, 0, 1, 1], [], []>, precision = #tpu.contract_precision<fp32>} : vector<8x32xf32>, vector<32x128xf32>, vector<8x128xf32> -> vector<8x128xf32>
    %435 = vector.broadcast %4 : vector<1x128xf32> to vector<8x128xf32>
    %436 = arith.addf %434, %435 : vector<8x128xf32>
    %cst_130 = arith.constant dense<0.000000e+00> : vector<8x128xf32>
    %437 = tpu.matmul %397, %2, %cst_130 {dimension_numbers = #tpu.dot_dimension_numbers<[1], [0], [0], [1], [0, 0, 1, 1], [], []>, precision = #tpu.contract_precision<fp32>} : vector<8x32xf32>, vector<32x128xf32>, vector<8x128xf32> -> vector<8x128xf32>
    %438 = arith.addf %436, %437 : vector<8x128xf32>
    %439 = arith.mulf %438, %13 : vector<8x128xf32>
    %440 = math.tanh %439 : vector<8x128xf32>
    %cst_131 = arith.constant 5.000000e-01 : f32
    %441 = vector.broadcast %cst_131 : f32 to vector<8x128xf32>
    %442 = arith.mulf %441, %440 : vector<8x128xf32>
    %cst_132 = arith.constant 5.000000e-01 : f32
    %443 = vector.broadcast %cst_132 : f32 to vector<8x128xf32>
    %444 = arith.addf %442, %443 : vector<8x128xf32>
    %445 = arith.select %10, %440, %444 : vector<8x128xi1>, vector<8x128xf32>
    %446 = vector.extract_strided_slice %445 {offsets = [0, 0], sizes = [8, 32], strides = [1, 1]} : vector<8x128xf32> to vector<8x32xf32>
    %447 = vector.extract_strided_slice %445 {offsets = [0, 32], sizes = [8, 32], strides = [1, 1]} : vector<8x128xf32> to vector<8x32xf32>
    %448 = vector.extract_strided_slice %445 {offsets = [0, 64], sizes = [8, 32], strides = [1, 1]} : vector<8x128xf32> to vector<8x32xf32>
    %449 = vector.extract_strided_slice %445 {offsets = [0, 96], sizes = [8, 32], strides = [1, 1]} : vector<8x128xf32> to vector<8x32xf32>
    %450 = arith.mulf %447, %395 : vector<8x32xf32>
    %451 = arith.mulf %446, %448 : vector<8x32xf32>
    %452 = arith.addf %450, %451 : vector<8x32xf32>
    %453 = math.tanh %452 : vector<8x32xf32>
    %454 = arith.mulf %449, %453 : vector<8x32xf32>
    %cst_133 = arith.constant dense<0.000000e+00> : vector<8x128xf32>
    %455 = tpu.matmul %433, %3, %cst_133 {dimension_numbers = #tpu.dot_dimension_numbers<[1], [0], [0], [1], [0, 0, 1, 1], [], []>, precision = #tpu.contract_precision<fp32>} : vector<8x32xf32>, vector<32x128xf32>, vector<8x128xf32> -> vector<8x128xf32>
    %456 = vector.broadcast %4 : vector<1x128xf32> to vector<8x128xf32>
    %457 = arith.addf %455, %456 : vector<8x128xf32>
    %cst_134 = arith.constant dense<0.000000e+00> : vector<8x128xf32>
    %458 = tpu.matmul %454, %2, %cst_134 {dimension_numbers = #tpu.dot_dimension_numbers<[1], [0], [0], [1], [0, 0, 1, 1], [], []>, precision = #tpu.contract_precision<fp32>} : vector<8x32xf32>, vector<32x128xf32>, vector<8x128xf32> -> vector<8x128xf32>
    %459 = arith.addf %457, %458 : vector<8x128xf32>
    %460 = arith.mulf %459, %13 : vector<8x128xf32>
    %461 = math.tanh %460 : vector<8x128xf32>
    %cst_135 = arith.constant 5.000000e-01 : f32
    %462 = vector.broadcast %cst_135 : f32 to vector<8x128xf32>
    %463 = arith.mulf %462, %461 : vector<8x128xf32>
    %cst_136 = arith.constant 5.000000e-01 : f32
    %464 = vector.broadcast %cst_136 : f32 to vector<8x128xf32>
    %465 = arith.addf %463, %464 : vector<8x128xf32>
    %466 = arith.select %10, %461, %465 : vector<8x128xi1>, vector<8x128xf32>
    %467 = vector.extract_strided_slice %466 {offsets = [0, 0], sizes = [8, 32], strides = [1, 1]} : vector<8x128xf32> to vector<8x32xf32>
    %468 = vector.extract_strided_slice %466 {offsets = [0, 32], sizes = [8, 32], strides = [1, 1]} : vector<8x128xf32> to vector<8x32xf32>
    %469 = vector.extract_strided_slice %466 {offsets = [0, 64], sizes = [8, 32], strides = [1, 1]} : vector<8x128xf32> to vector<8x32xf32>
    %470 = vector.extract_strided_slice %466 {offsets = [0, 96], sizes = [8, 32], strides = [1, 1]} : vector<8x128xf32> to vector<8x32xf32>
    %471 = arith.mulf %468, %452 : vector<8x32xf32>
    %472 = arith.mulf %467, %469 : vector<8x32xf32>
    %473 = arith.addf %471, %472 : vector<8x32xf32>
    %474 = math.tanh %473 : vector<8x32xf32>
    %475 = arith.mulf %470, %474 : vector<8x32xf32>
    %476 = tpu.concatenate %433, %431, %475, %473 in 1 : vector<8x32xf32>, vector<8x32xf32>, vector<8x32xf32>, vector<8x32xf32> -> vector<8x128xf32>
    %477 = math.tanh %476 : vector<8x128xf32>
    %c0_137 = arith.constant 0 : index
    %c0_138 = arith.constant 0 : index
    %478 = vector.load %arg2[%c0_137, %c0_138] : memref<129x32xf32, #tpu.memory_space<vmem>>, vector<128x32xf32>
    %c128 = arith.constant 128 : index
    %c0_139 = arith.constant 0 : index
    %479 = vector.load %arg2[%c128, %c0_139] : memref<129x32xf32, #tpu.memory_space<vmem>>, vector<1x32xf32>
    %cst_140 = arith.constant dense<0.000000e+00> : vector<8x32xf32>
    %480 = tpu.matmul %477, %478, %cst_140 {dimension_numbers = #tpu.dot_dimension_numbers<[1], [0], [0], [1], [0, 0, 1, 1], [], []>, precision = #tpu.contract_precision<fp32>} : vector<8x128xf32>, vector<128x32xf32>, vector<8x32xf32> -> vector<8x32xf32>
    %481 = vector.broadcast %479 : vector<1x32xf32> to vector<8x32xf32>
    %482 = arith.addf %480, %481 : vector<8x32xf32>
    %483 = vector.extract_strided_slice %482 {offsets = [0, 0], sizes = [2, 32], strides = [1, 1]} : vector<8x32xf32> to vector<2x32xf32>
    %c0_141 = arith.constant 0 : index
    %c0_142 = arith.constant 0 : index
    %484 = vector.load %arg3[%c0_141, %c0_142] : memref<2x32xf32, #tpu.memory_space<vmem>>, vector<2x32xf32>
    tpu.vector_store %arg3[%c0_141, %c0_142], %483 {strides = array<i32>} : memref<2x32xf32, #tpu.memory_space<vmem>>, vector<2x32xf32>,
    return
  }
}

</mosaic_0001>

<bundles_post_ra>
// kernel: qst_encoder_forward.1
= control target key start
LH: loop header
LB: loop body
LE: loop exit
PB: predicated region body
PF: predicated region fallthrough
CT: control target
= control target key end

     0   :  { %8 = vsyncpa [#allocation4], 0  ;;  %s23191_s0 = inlined_call_operand.vmem [shape: s32[2,8], index: 0, kind: input, shape index: {}]   ;;  %s23192_s1 = inlined_call_operand.vmem [shape: f32[128,128], index: 1, kind: input, shape index: {}]   ;;  %s23193_s2 = inlined_call_operand.vmem [shape: f32[129,32], index: 2, kind: input, shape index: {}]   ;;  %s23194_s3 = inlined_call_operand.hbm [shape: f32[2,32], index: 3, kind: output, shape index: {}]  }
   0x1   :  { %9 = vsyncpa [#allocation3], 0  ;;  %s16_s14 = sshll.u32 %s23191_s0, 4  ;;  %s17_s14 = int_to_ptr.vmem [resolvable:$true] %s16_s14 }
   0x2   :  { %s20070_s15 = scalar_lea.vmem %s17_s14, 32  ;;  %p20075_p1 = scmp.lt.s32.totalorder %s17_s14, %s17_s14 }
   0x3   :  { %p20071_p0 = scmp.ne.s32.totalorder %s17_s14, %s20070_s15  ;;  %p20076_p2 = scmp.lt.s32.totalorder %s20070_s15, %s20070_s15 }
   0x5   :  { %p20077_p3 = por %p20076_p2, %p20075_p1 }
   0x7   :  { %p20078_p4 = pnand %p20077_p3, %p20071_p0 }
   0x9   :  { %20081 = shalt.err (!%p20078_p4)
}
   0xa   :  { %s20106_s16 = smov [#allocation2]  }
   0xb   :  { %19 = dma.vmem_to_smem %s17_s14, 32, %s20106_s16, [#allocation4]  }
   0xc   :  { %20102 = dma.done.wait [#allocation4], 32  }
   0xd   :  { %20103 = vsyncadd [#allocation4], 4294967264 }
   0xe   :  { %27 = sfence }
   0xf   :  { %v34_v0 = vld [vmem:[%s23192_s1 + $0x30] sm:$0xff]  ;;  %v33_v1 = vld [vmem:[%s23192_s1 + $0x28] sm:$0xff]  ;;  %v32_v2 = vld [vmem:[%s23192_s1 + $0x20] sm:$0xff]  ;;  %v44_v3 = vlaneseq  ;;  %v23237_v4 = vmov 0.0   ;;  %vm20108_vm0 = vmmov 0   ;;  %s52_s24 = sld [smem:[#allocation2]] }
  0x10   :  { %17767 = vmatprep.subr.mxu0 %v23237_v4  ;;  %v20147_v5 = vand.u32 4294901760, %v34_v0  ;;  %v20149_v6 = vand.u32 4294901760, %v33_v1  ;;  %v20151_v7 = vand.u32 4294901760, %v32_v2  ;;  %17778 = vmatprep.subr.mxu1 %v23237_v4  ;;  %v31_v8 = vld [vmem:[%s23192_s1 + $0x18] sm:$0xff]  ;;  %s16712_s25 = sld [smem:[#allocation2 + $0x80]]  ;;  %v30_v31 = vld [vmem:[%s23192_s1 + $0x10] sm:$0xff] }
  0x11   :  { %v20157_v9 = vand.u32 4294901760, %v31_v8  ;;  %17775 = vmatprep.mubr.msk.f32.mxu0 %vm20108_vm0, %v23237_v4  ;;  %17786 = vmatprep.mubr.msk.f32.mxu1 %vm20108_vm0, %v23237_v4  ;;  %v20177_v14 = vshrl.u32 %v44_v3, 7  ;;  %v20193_v19 = vand.u32 127, %v44_v3  ;;  %v29_v32 = vld [vmem:[%s23192_s1 + $0x8] sm:$0xff]  ;;  %vm553_vm7 = vcmask 195584   ;;  %v28_v35 = vld [vmem:[%s23192_s1] sm:$0xff] }
  0x12   :  { %17768 = vmatpush3.msra.mxu0 %v20147_v5  ;;  %v20165_v10 = vsub.f32 %v34_v0, %v20147_v5  ;;  %v20168_v11 = vsub.f32 %v33_v1, %v20149_v6  ;;  %v20171_v12 = vsub.f32 %v32_v2, %v20151_v7  ;;  %v20249_v34 = vand.u32 4294901760, %v30_v31  ;;  %s20110_s5 = smov 64   ;;  %s20111_s6 = smov 32  }
  0x13   :  { %17769 = vmatprep.subr.mxu0 %v23237_v4  ;;  %v20175_v13 = vsub.f32 %v31_v8, %v20157_v9  ;;  %vm53_vm1 = vcmp.eq.s32.totalorder %v20177_v14, 0  ;;  %vm59_vm4 = vcmp.eq.s32.totalorder %v20177_v14, 1  ;;  %v20259_v36 = vand.u32 4294901760, %v29_v32  ;;  %s16716_s7 = sld [smem:[#allocation2 + $0x1]]  ;;  %s20112_s0 = smov 96  }
  0x14   :  { %17770 = vmatpush3.msra.mxu0 %v20149_v6  ;;  %v20181_v15 = vand.u32 4294901760, %v20165_v10  ;;  %v20184_v16 = vand.u32 4294901760, %v20168_v11  ;;  %v20187_v17 = vand.u32 4294901760, %v20171_v12  ;;  %v20267_v38 = vand.u32 4294901760, %v28_v35  ;;  %s16717_s8 = sld [smem:[#allocation2 + $0x81]] }
  0x15   :  { %17771 = vmatprep.subr.mxu0 %v23237_v4  ;;  %v20191_v18 = vand.u32 4294901760, %v20175_v13  ;;  %v54_v26 = vstv %s52_s24  ;;  %v20270_v39 = vsub.f32 %v30_v31, %v20249_v34  ;;  %v20279_v41 = vsub.f32 %v29_v32, %v20259_v36  ;;  %s16722_s26 = sld [smem:[#allocation2 + $0x2]] }
  0x16   :  { %17772 = vmatpush3.msra.mxu0 %v20151_v7  ;;  %v175_v20 = vsub.f32 %v20165_v10, %v20181_v15  ;;  %v182_v21 = vsub.f32 %v20168_v11, %v20184_v16  ;;  %v189_v22 = vsub.f32 %v20171_v12, %v20187_v17  ;;  %vm55_vm2 = vcmp.eq.s32.totalorder %v20193_v19, %v54_v26  ;;  %s16723_s27 = sld [smem:[#allocation2 + $0x82]] }
  0x17   :  { %17773 = vmatprep.subr.mxu0 %v23237_v4  ;;  %v196_v25 = vsub.f32 %v20175_v13, %v20191_v18  ;;  %v60_v27 = vstv %s16712_s25  ;;  %vm56_vm3 = vmand %vm53_vm1, %vm55_vm2  ;;  %v20287_v42 = vand.u32 4294901760, %v20270_v39  ;;  %v20290_v43 = vsub.f32 %v28_v35, %v20267_v38  ;;  %s16727_s28 = sld [smem:[#allocation2 + $0x3]] }
  0x18   :  { %17774 = vmatpush3.msra.mxu0 %v20157_v9  ;;  %v20205_v23 = vand.u32 4294901760, %v175_v20  ;;  %v20207_v24 = vand.u32 4294901760, %v182_v21  ;;  %v20216_v28 = vand.u32 4294901760, %v189_v22  ;;  %vm61_vm5 = vcmp.eq.s32.totalorder %v20193_v19, %v60_v27  ;;  %s16728_s29 = sld [smem:[#allocation2 + $0x83]] }
  0x19   :  { %17789 = vmatprep.subr.mxu0 %v23237_v4  ;;  %17776 = vmatmul.mubr.f32.vlgmr.msra.gmra.mxu0 %v23237_v4  ;;  %v20226_v29 = vand.u32 4294901760, %v196_v25  ;;  %v57_v30 = vsel %vm56_vm3, 1.0, %v23237_v4  ;;  %vm62_vm6 = vmand %vm59_vm4, %vm61_vm5  ;;  %v20298_v45 = vand.u32 4294901760, %v20279_v41  ;;  %v665_v46 = vsub.f32 %v20270_v39, %v20287_v42  ;;  %s16737_s9 = sld [smem:[#allocation2 + $0x5]] }
  0x1a   :  { %23298 = vst [vmem:[#allocation8_spill] sm:$0xff] %v20205_v23  ;;  %23299 = vst [vmem:[#allocation9_spill] sm:$0xff] %v20207_v24  ;;  %17779 = vmatpush3.msra.mxu1 %v20205_v23  ;;  %17790 = vmatpush3.msra.mxu0 %v20165_v10  ;;  %v20245_v33 = vsel %vm62_vm6, 1.0, %v57_v30  ;;  %v20308_v47 = vand.u32 4294901760, %v20290_v43  ;;  %vm46_vm8 = vcmp.ge.s32.totalorder %v20193_v19, 64  ;;  %vm47_vm9 = vcmp.lt.s32.totalorder %v20193_v19, 96 }
  0x1b   :  { %23300 = vst [vmem:[#allocation10_spill] sm:$0xff] %v20216_v28  ;;  %17780 = vmatprep.subr.mxu1 %v23237_v4  ;;  %17791 = vmatprep.subr.mxu0 %v23237_v4  ;;  %23301 = vst [vmem:[#allocation11_spill] sm:$0xff] %v20226_v29  ;;  %v555_v37 = vsel %vm553_vm7, %v20245_v33, 0  ;;  %v672_v49 = vsub.f32 %v20279_v41, %v20298_v45  ;;  %v20322_v50 = vand.u32 4294901760, %v665_v46  ;;  %vm64_vm11 = vcmask 261120   ;;  %s16738_s10 = sld [smem:[#allocation2 + $0x85]] }
  0x1c   :  { %17781 = vmatpush3.msra.mxu1 %v20207_v24  ;;  %17792 = vmatpush3.msra.mxu0 %v20168_v11  ;;  %v20274_v40 = vsub.f32 %v555_v37, %v555_v37  ;;  %v679_v51 = vsub.f32 %v20290_v43, %v20308_v47  ;;  %vm20408_vm10 = vmand %vm46_vm8, %vm47_vm9  ;;  %s16742_s13 = sld [smem:[#allocation2 + $0x6]] }
  0x1d   :  { %17782 = vmatprep.subr.mxu1 %v23237_v4  ;;  %17793 = vmatprep.subr.mxu0 %v23237_v4  ;;  %v20330_v53 = vand.u32 4294901760, %v672_v49  ;;  %s16743_s14 = sld [smem:[#allocation2 + $0x86]]  ;;  %v16048_v49 = vld [vmem:[%s23193_s2 + $0x78] sm:$0xff] }
  0x1e   :  { %17783 = vmatpush3.msra.mxu1 %v20216_v28  ;;  %17794 = vmatpush3.msra.mxu0 %v20171_v12  ;;  %v627_v44 = vand.u32 4294901760, %v20274_v40  ;;  %v20337_v54 = vand.u32 4294901760, %v679_v51  ;;  %s16747_s15 = sld [smem:[#allocation2 + $0x7]] }
  0x1f   :  { %17784 = vmatprep.subr.mxu1 %v23237_v4  ;;  %17795 = vmatprep.subr.mxu0 %v23237_v4  ;;  %s16748_s16 = sld [smem:[#allocation2 + $0x87]] }
  0x20   :  { %17785 = vmatpush3.msra.mxu1 %v20226_v29  ;;  %17796 = vmatpush3.msra.mxu0 %v20175_v13  ;;  %v628_v48 = vsub.f32 %v20274_v40, %v627_v44 }
  0x21   :  { %17787 = vmatmul.mubr.f32.vlgmr.msra.gmra.mxu1 %v23237_v4  ;;  %17800 = vmatprep.subr.mxu1 %v23237_v4 }
  0x22   :  { %17797 = vmatprep.mubr.msk.f32.mxu0 %vm20108_vm0, %v23237_v4  ;;  %17801 = vmatpush3.msra.mxu1 %v20147_v5  ;;  %v629_v52 = vand.u32 4294901760, %v628_v48 }
  0x23   :  { %17798 = vmatmul.mubr.f32.vlgmr.msra.gmra.mxu0 %v23237_v4  ;;  %17802 = vmatprep.subr.mxu1 %v23237_v4 }
  0x24   :  { %17811 = vmatprep.subr.mxu0 %v23237_v4  ;;  %17803 = vmatpush3.msra.mxu1 %v20149_v6 }
  0x25   :  { %17812 = vmatpush3.msra.mxu0 %v20181_v15  ;;  %17804 = vmatprep.subr.mxu1 %v23237_v4 }
  0x26   :  { %17813 = vmatprep.subr.mxu0 %v23237_v4  ;;  %17805 = vmatpush3.msra.mxu1 %v20151_v7 }
  0x27   :  { %17814 = vmatpush3.msra.mxu0 %v20184_v16  ;;  %17806 = vmatprep.subr.mxu1 %v23237_v4 }
  0x28   :  { %17815 = vmatprep.subr.mxu0 %v23237_v4  ;;  %17807 = vmatpush3.msra.mxu1 %v20157_v9 }
  0x29   :  { %17808 = vmatprep.mubr.msk.f32.mxu1 %vm20108_vm0, %v23237_v4  ;;  %17816 = vmatpush3.msra.mxu0 %v20187_v17 }
  0x2a   :  { %17809 = vmatmul.mubr.f32.vlgmr.msra.gmra.mxu1 %v23237_v4  ;;  %17817 = vmatprep.subr.mxu0 %v23237_v4 }
  0x2b   :  { %17822 = vmatprep.subr.mxu1 %v23237_v4  ;;  %17818 = vmatpush3.msra.mxu0 %v20191_v18 }
  0x2c   :  { %17819 = vmatprep.mubr.msk.f32.mxu0 %vm20108_vm0, %v23237_v4  ;;  %17823 = vmatpush3.msra.mxu1 %v20147_v5 }
  0x2d   :  { %17820 = vmatmul.mubr.f32.vlgmr.msra.gmra.mxu0 %v23237_v4  ;;  %17824 = vmatprep.subr.mxu1 %v23237_v4 }
  0x2e   :  { %17825 = vmatpush3.msra.mxu1 %v20149_v6  ;;  %17833 = vmatprep.subr.mxu0 %v23237_v4 }
  0x2f   :  { %17826 = vmatprep.subr.mxu1 %v23237_v4  ;;  %17834 = vmatpush3.msra.mxu0 %v20249_v34 }
  0x30   :  { %17827 = vmatpush3.msra.mxu1 %v20151_v7  ;;  %17835 = vmatprep.subr.mxu0 %v23237_v4 }
  0x31   :  { %17828 = vmatprep.subr.mxu1 %v23237_v4  ;;  %17830 = vmatprep.mubr.msk.f32.mxu1 %vm20108_vm0, %v23237_v4 }
  0x32   :  { %17829 = vmatpush3.msra.mxu1 %v20157_v9  ;;  %17836 = vmatpush3.msra.mxu0 %v20259_v36 }
  0x33   :  { %17831 = vmatmul.mubr.f32.vlgmr.msra.gmra.mxu1 %v23237_v4  ;;  %17837 = vmatprep.subr.mxu0 %v23237_v4 }
  0x34   :  { %17842 = vmatprep.subr.mxu1 %v23237_v4  ;;  %17838 = vmatpush3.msra.mxu0 %v20267_v38 }
  0x35   :  { %17839 = vmatprep.mubr.msk.f32.mxu0 %vm20108_vm0, %v23237_v4  ;;  %17843 = vmatpush3.msra.mxu1 %v20322_v50 }
  0x36   :  { %17840 = vmatmul.mubr.f32.vlgmr.msra.gmra.mxu0 %v629_v52  ;;  %17844 = vmatprep.subr.mxu1 %v23237_v4 }
  0x37   :  { %17851 = vmatprep.subr.mxu0 %v23237_v4  ;;  %17845 = vmatpush3.msra.mxu1 %v20330_v53 }
  0x38   :  { %17852 = vmatpush3.msra.mxu0 %v20270_v39  ;;  %17846 = vmatprep.subr.mxu1 %v23237_v4 }
  0x39   :  { %17853 = vmatprep.subr.mxu0 %v23237_v4  ;;  %17847 = vmatpush3.msra.mxu1 %v20337_v54 }
  0x3a   :  { %17848 = vmatprep.mubr.msk.f32.mxu1 %vm20108_vm0, %v23237_v4  ;;  %17854 = vmatpush3.msra.mxu0 %v20279_v41 }
  0x3b   :  { %17849 = vmatmul.mubr.msk.f32.vlgmr.msra.gmra.mxu1 %vm553_vm7, %v20245_v33  ;;  %17855 = vmatprep.subr.mxu0 %v23237_v4 }
  0x3c   :  { %17860 = vmatprep.subr.mxu1 %v23237_v4  ;;  %17856 = vmatpush3.msra.mxu0 %v20290_v43 }
  0x3d   :  { %17857 = vmatprep.mubr.msk.f32.mxu0 %vm20108_vm0, %v23237_v4  ;;  %17861 = vmatpush3.msra.mxu1 %v20249_v34 }
  0x3e   :  { %17858 = vmatmul.mubr.f32.vlgmr.msra.gmra.mxu0 %v20274_v40  ;;  %17862 = vmatprep.subr.mxu1 %v23237_v4 }
  0x3f   :  { %17869 = vmatprep.subr.mxu0 %v23237_v4  ;;  %17863 = vmatpush3.msra.mxu1 %v20259_v36 }
  0x40   :  { %17870 = vmatpush3.msra.mxu0 %v20287_v42  ;;  %17864 = vmatprep.subr.mxu1 %v23237_v4 }
  0x41   :  { %17871 = vmatprep.subr.mxu0 %v23237_v4  ;;  %17865 = vmatpush3.msra.mxu1 %v20267_v38 }
  0x42   :  { %17866 = vmatprep.mubr.msk.f32.mxu1 %vm20108_vm0, %v23237_v4  ;;  %17872 = vmatpush3.msra.mxu0 %v20298_v45 }
  0x43   :  { %17867 = vmatmul.mubr.f32.vlgmr.msra.gmra.mxu1 %v627_v44  ;;  %17873 = vmatprep.subr.mxu0 %v23237_v4 }
  0x44   :  { %17878 = vmatprep.subr.mxu1 %v23237_v4  ;;  %17874 = vmatpush3.msra.mxu0 %v20308_v47 }
  0x45   :  { %17875 = vmatprep.mubr.msk.f32.mxu0 %vm20108_vm0, %v23237_v4  ;;  %17879 = vmatpush3.msra.mxu1 %v20249_v34 }
  0x46   :  { %17876 = vmatmul.mubr.msk.f32.vlgmr.msra.gmra.mxu0 %vm553_vm7, %v20245_v33  ;;  %17880 = vmatprep.subr.mxu1 %v23237_v4 }
  0x47   :  { %17881 = vmatpush3.msra.mxu1 %v20259_v36  ;;  %17884 = vmatprep.mubr.msk.f32.mxu1 %vm20108_vm0, %v23237_v4 }
  0x48   :  { %17882 = vmatprep.subr.mxu1 %v23237_v4  ;;  %17887 = vmatprep.subr.mxu0 %v23237_v4 }
  0x49   :  { %17883 = vmatpush3.msra.mxu1 %v20267_v38  ;;  %17888 = vmatpush3.msra.mxu0 %v20147_v5 }
  0x4a   :  { %17885 = vmatmul.mubr.msk.f32.vlgmr.msra.gmra.mxu1 %vm553_vm7, %v20245_v33  ;;  %17898 = vmatprep.subr.mxu1 %v23237_v4 }
  0x4b   :  { %17899 = vmatpush3.msra.mxu1 %v20205_v23  ;;  %17906 = vmatprep.mubr.msk.f32.mxu1 %vm20108_vm0, %v23237_v4 }
  0x4c   :  { %17900 = vmatprep.subr.mxu1 %v23237_v4  ;;  %17889 = vmatprep.subr.mxu0 %v23237_v4 }
  0x4d   :  { %17901 = vmatpush3.msra.mxu1 %v20207_v24  ;;  %17890 = vmatpush3.msra.mxu0 %v20149_v6 }
  0x4e   :  { %17902 = vmatprep.subr.mxu1 %v23237_v4  ;;  %17891 = vmatprep.subr.mxu0 %v23237_v4 }
  0x4f   :  { %17903 = vmatpush3.msra.mxu1 %v20216_v28  ;;  %17892 = vmatpush3.msra.mxu0 %v20151_v7 }
  0x50   :  { %17904 = vmatprep.subr.mxu1 %v23237_v4  ;;  %17893 = vmatprep.subr.mxu0 %v23237_v4 }
  0x51   :  { %17905 = vmatpush3.msra.mxu1 %v20226_v29  ;;  %17894 = vmatpush3.msra.mxu0 %v20157_v9 }
  0x52   :  { %17920 = vmatprep.subr.mxu1 %v23237_v4  ;;  %17895 = vmatprep.mubr.msk.f32.mxu0 %vm20108_vm0, %v23237_v4 }
  0x53   :  { %17909 = vmatprep.subr.mxu0 %v23237_v4 }
  0xd9   :  { %v143_v55 = vpop.f32.mrf.mxu0 }
  0xdb   :  { %v17777_v56 = vpop.f32.mrf.mxu0 }
  0xe1   :  { %v234_v57 = vpop.f32.mrf.mxu1 }
  0xe2   :  { %v235_v63 = vadd.f32 %v234_v57, %v143_v55  ;;  %v20109_v55 = vmov 0.5  }
  0xe3   :  { %v17788_v58 = vpop.f32.mrf.mxu1  ;;  %v314_v59 = vpop.f32.mrf.mxu0  ;;  %v20414_v56 = vsel %vm20408_vm10, 1.0, %v20109_v55 }
  0xe4   :  { %v315_v2 = vadd.f32 %v314_v59, %v235_v63 }
  0xe5   :  { %v17799_v60 = vpop.f32.mrf.mxu0 }
  0xea   :  { %v391_v61 = vpop.f32.mrf.mxu1 }
  0xeb   :  { %v392_v3 = vadd.f32 %v391_v61, %v315_v2 }
  0xec   :  { %v17810_v62 = vpop.f32.mrf.mxu1 }
  0xed   :  { %v474_v0 = vpop.f32.mrf.mxu0 }
  0xee   :  { %v475_v22 = vadd.f32 %v474_v0, %v392_v3 }
  0xef   :  { %v17821_v1 = vpop.f32.mrf.mxu0 }
  0xf3   :  { %v549_v8 = vpop.f32.mrf.mxu1 }
  0xf4   :  { %v550_v26 = vadd.f32 %v549_v8, %v475_v22 }
  0xf5   :  { %v17832_v20 = vpop.f32.mrf.mxu1 }
  0xf6   :  { %v631_v21 = vpop.f32.mrf.mxu0 }
  0xf7   :  { %v632_v30 = vadd.f32 %v631_v21, %v550_v26 }
  0xf8   :  { %v17841_v25 = vpop.f32.mrf.mxu0 }
  0xfb   :  { %v717_v27 = vpop.f32.mrf.mxu1 }
  0xfc   :  { %v718_v33 = vadd.f32 %v717_v27, %v632_v30 }
  0xfd   :  { %v17850_v31 = vpop.f32.mrf.mxu1 }
  0xfe   :  { %v795_v32 = vpop.f32.mrf.mxu0 }
  0xff   :  { %v796_v37 = vadd.f32 %v795_v32, %v718_v33  ;;  %v1052_v32 = vstv %s16716_s7  ;;  %s16732_s7 = sld [smem:[#allocation2 + $0x4]] }
 0x100   :  { %v17859_v35 = vpop.f32.mrf.mxu0  ;;  %vm1053_vm12 = vcmp.eq.s32.totalorder %v20193_v19, %v1052_v32 }
 0x101   :  { %vm1054_vm13 = vmand %vm53_vm1, %vm1053_vm12 }
 0x103   :  { %v871_v40 = vpop.f32.mrf.mxu1 }
 0x104   :  { %v872_v44 = vadd.f32 %v871_v40, %v796_v37  ;;  %v1057_v37 = vstv %s16717_s8  ;;  %s16733_s8 = sld [smem:[#allocation2 + $0x84]] }
 0x105   :  { %v17868_v46 = vpop.f32.mrf.mxu1  ;;  %vm1058_vm14 = vcmp.eq.s32.totalorder %v20193_v19, %v1057_v37 }
 0x106   :  { %v951_v48 = vpop.f32.mrf.mxu0  ;;  %vm1059_vm15 = vmand %vm59_vm4, %vm1058_vm14 }
 0x107   :  { %v952_v52 = vadd.f32 %v951_v48, %v872_v44  ;;  %v1055_v44 = vsel %vm1054_vm13, 1.0, %v23237_v4 }
 0x108   :  { %v17877_v51 = vpop.f32.mrf.mxu0  ;;  %v20468_v46 = vsel %vm1059_vm15, 1.0, %v1055_v44 }
 0x109   :  { %v1552_v48 = vsel %vm553_vm7, %v20468_v46, 0 }
 0x10a   :  { %v1025_v57 = vpop.f32.mrf.mxu1  ;;  %v20486_v51 = vsub.f32 %v1552_v48, %v1552_v48 }
 0x10b   :  { %v1026_v58 = vadd.f32 %v1025_v57, %v952_v52  ;;  %v42_v52 = vld [vmem:[%s23192_s1 + $0x70] sm:$0xff]  ;;  %v41_v57 = vld [vmem:[%s23192_s1 + $0x68] sm:$0xff] }
 0x10c   :  { %v17886_v59 = vpop.f32.mrf.mxu1  ;;  %v1624_v55 = vand.u32 4294901760, %v20486_v51 }
 0x10d   :  { %v1029_v60 = vmul.f32 %v1026_v58, %v20414_v56  ;;  %v20505_v58 = vand.u32 4294901760, %v42_v52  ;;  %v40_v59 = vld [vmem:[%s23192_s1 + $0x60] sm:$0xff] }
 0x10f   :  { %20001 = vtanh.f32 %v1029_v60  ;;  %23304 = vst [vmem:[#allocation12_spill] sm:$0xff] %v20505_v58  ;;  %v20516_v60 = vand.u32 4294901760, %v41_v57 }
 0x111   :  { %23305 = vst [vmem:[#allocation13_spill] sm:$0xff] %v20516_v60 }
 0x118   :  { %v23492_v14 = vld [vmem:[#allocation13_spill] sm:$0xff] }
 0x11c   :  { %v20002_v61 = vpop.eup %20001 }
 0x11d   :  { %v1031_v62 = vmul.f32 0.5, %v20002_v61 }
 0x11f   :  { %v1032_v63 = vadd.f32 0.5, %v1031_v62  ;;  %v39_v62 = vld [vmem:[%s23192_s1 + $0x58] sm:$0xff] }
 0x121   :  { %v1033_v0 = vsel %vm20408_vm10, %v20002_v61, %v1032_v63  ;;  %v1625_v61 = vsub.f32 %v20486_v51, %v1624_v55  ;;  %v20528_v63 = vsub.f32 %v42_v52, %v20505_v58 }
 0x122   :  { %1036 = vrot.lane.b32.xlu0 %v1033_v0, %s20110_s5  ;;  %v1034_v3 = vmul.f32 0.0, %v1033_v0 }
 0x123   :  { %23306 = vst [vmem:[#allocation14_spill] sm:$0xff] %v20528_v63 }
 0x194   :  { %v1037_v1 = vpop.permute.xlu0 %1036 }
 0x195   :  { %v1039_v2 = vmul.f32 %v1037_v1, %v1033_v0  ;;  %v20537_v1 = vsub.f32 %v41_v57, %v20516_v60 }
 0x197   :  { %1041 = vrot.lane.b32.xlu0 %v1039_v2, %s20111_s6  ;;  %23308 = vst [vmem:[#allocation16_spill] sm:$0xff] %v20537_v1  ;;  %v20539_v2 = vand.u32 4294901760, %v39_v62 }
 0x199   :  { %23309 = vst [vmem:[#allocation17_spill] sm:$0xff] %v20539_v2 }
 0x209   :  { %v1042_v8 = vpop.permute.xlu0 %1041 }
 0x20a   :  { %v20421_v20 = vadd.f32 %v1042_v8, %v1034_v3  ;;  %v1626_v3 = vand.u32 4294901760, %v1625_v61  ;;  %v20546_v8 = vand.u32 4294901760, %v20528_v63  ;;  %v36_v61 = vld [vmem:[%s23192_s1 + $0x40] sm:$0xff] }
 0x20c   :  { %20003 = vtanh.f32 %v20421_v20  ;;  %23310 = vst [vmem:[#allocation18_spill] sm:$0xff] %v20546_v8 }
 0x219   :  { %v20004_v21 = vpop.eup %20003 }
 0x21a   :  { %1047 = vrot.lane.b32.xlu1 %v20004_v21, %s20110_s5 }
 0x28c   :  { %v1048_v22 = vpop.permute.xlu1 %1047 }
 0x28d   :  { %v1050_v25 = vmul.f32 %v1048_v22, %v1033_v0  ;;  %v20530_v0 = vand.u32 4294901760, %v40_v59  ;;  %v20558_v22 = vand.u32 4294901760, %v20537_v1 }
 0x28f   :  { %1062 = vrot.lane.b32.xlu1 %v1050_v25, %s20111_s6  ;;  %23307 = vst [vmem:[#allocation15_spill] sm:$0xff] %v20530_v0  ;;  %v20549_v21 = vsub.f32 %v40_v59, %v20530_v0  ;;  %23312 = vst [vmem:[#allocation20_spill] sm:$0xff] %v20558_v22  ;;  %v20561_v25 = vsub.f32 %v39_v62, %v20539_v2  ;;  %v2166_v32 = vsub.f32 %v20537_v1, %v20558_v22 }
 0x291   :  { %23311 = vst [vmem:[#allocation19_spill] sm:$0xff] %v20549_v21  ;;  %23313 = vst [vmem:[#allocation21_spill] sm:$0xff] %v20561_v25  ;;  %v20593_v48 = vand.u32 4294901760, %v2166_v32  ;;  %v35_v32 = vld [vmem:[%s23192_s1 + $0x38] sm:$0xff] }
 0x301   :  { %v1063_v26 = vpop.permute.xlu1 %1062 }
 0x302   :  { %v1064_v27 = vsel %vm64_vm11, %v1063_v26, 0  ;;  %v2159_v26 = vsub.f32 %v20528_v63, %v20546_v8 }
 0x303   :  { %v20427_v30 = vand.u32 4294901760, %v1064_v27 }
 0x304   :  { %v20583_v37 = vand.u32 4294901760, %v2159_v26  ;;  %v20655_v26 = vand.u32 4294901760, %v36_v61 }
 0x305   :  { %v20430_v31 = vsub.f32 %v1064_v27, %v20427_v30  ;;  %17907 = vmatmul.mubr.f32.vlgmr.msra.gmra.mxu1 %v20427_v30  ;;  %v20568_v27 = vand.u32 4294901760, %v20549_v21 }
 0x306   :  { %17921 = vmatpush3.msra.mxu1 %v20147_v5  ;;  %17928 = vmatprep.mubr.msk.f32.mxu1 %vm20108_vm0, %v23237_v4  ;;  %23320 = vst [vmem:[#allocation28_spill] sm:$0xff] %v20655_v26 }
 0x307   :  { %17922 = vmatprep.subr.mxu1 %v23237_v4  ;;  %v20438_v33 = vand.u32 4294901760, %v20430_v31  ;;  %23314 = vst [vmem:[#allocation22_spill] sm:$0xff] %v20568_v27  ;;  %v2173_v44 = vsub.f32 %v20549_v21, %v20568_v27 }
 0x308   :  { %17923 = vmatpush3.msra.mxu1 %v20149_v6 }
 0x309   :  { %17924 = vmatprep.subr.mxu1 %v23237_v4  ;;  %v1138_v35 = vsub.f32 %v20430_v31, %v20438_v33 }
 0x30a   :  { %17925 = vmatpush3.msra.mxu1 %v20151_v7 }
 0x30b   :  { %17926 = vmatprep.subr.mxu1 %v23237_v4  ;;  %v20447_v40 = vand.u32 4294901760, %v1138_v35  ;;  %v20577_v35 = vand.u32 4294901760, %v20561_v25 }
 0x30c   :  { %17927 = vmatpush3.msra.mxu1 %v20157_v9 }
 0x30d   :  { %17929 = vmatmul.mubr.f32.vlgmr.msra.gmra.mxu1 %v20438_v33  ;;  %17942 = vmatprep.subr.mxu1 %v23237_v4  ;;  %23315 = vst [vmem:[#allocation23_spill] sm:$0xff] %v20577_v35  ;;  %v2180_v52 = vsub.f32 %v20561_v25, %v20577_v35 }
 0x30e   :  { %17896 = vmatmul.mubr.f32.vlgmr.msra.gmra.mxu0 %v20447_v40  ;;  %17943 = vmatpush3.msra.mxu1 %v20147_v5 }
 0x30f   :  { %17910 = vmatpush3.msra.mxu0 %v20165_v10  ;;  %17944 = vmatprep.subr.mxu1 %v23237_v4  ;;  %v20608_v57 = vand.u32 4294901760, %v2180_v52 }
 0x310   :  { %17911 = vmatprep.subr.mxu0 %v23237_v4  ;;  %17945 = vmatpush3.msra.mxu1 %v20149_v6 }
 0x311   :  { %17912 = vmatpush3.msra.mxu0 %v20168_v11  ;;  %17946 = vmatprep.subr.mxu1 %v23237_v4  ;;  %23316 = vst [vmem:[#allocation24_spill] sm:$0xff] %v20608_v57 }
 0x312   :  { %17913 = vmatprep.subr.mxu0 %v23237_v4  ;;  %17947 = vmatpush3.msra.mxu1 %v20151_v7 }
 0x313   :  { %17914 = vmatpush3.msra.mxu0 %v20171_v12  ;;  %17948 = vmatprep.subr.mxu1 %v23237_v4 }
 0x314   :  { %17915 = vmatprep.subr.mxu0 %v23237_v4  ;;  %17917 = vmatprep.mubr.msk.f32.mxu0 %vm20108_vm0, %v23237_v4 }
 0x315   :  { %17916 = vmatpush3.msra.mxu0 %v20175_v13  ;;  %17949 = vmatpush3.msra.mxu1 %v20157_v9 }
 0x316   :  { %17950 = vmatprep.mubr.msk.f32.mxu1 %vm20108_vm0, %v23237_v4  ;;  %17918 = vmatmul.mubr.f32.vlgmr.msra.gmra.mxu0 %v20430_v31 }
 0x317   :  { %17931 = vmatprep.subr.mxu0 %v23237_v4  ;;  %17951 = vmatmul.mubr.f32.vlgmr.msra.gmra.mxu1 %v20427_v30 }
 0x318   :  { %17962 = vmatprep.subr.mxu1 %v23237_v4  ;;  %17932 = vmatpush3.msra.mxu0 %v20181_v15 }
 0x319   :  { %17963 = vmatpush3.msra.mxu1 %v20322_v50  ;;  %17933 = vmatprep.subr.mxu0 %v23237_v4 }
 0x31a   :  { %17964 = vmatprep.subr.mxu1 %v23237_v4  ;;  %17934 = vmatpush3.msra.mxu0 %v20184_v16 }
 0x31b   :  { %17965 = vmatpush3.msra.mxu1 %v20330_v53  ;;  %17935 = vmatprep.subr.mxu0 %v23237_v4 }
 0x31c   :  { %17966 = vmatprep.subr.mxu1 %v23237_v4  ;;  %17936 = vmatpush3.msra.mxu0 %v20187_v17 }
 0x31d   :  { %17967 = vmatpush3.msra.mxu1 %v20337_v54  ;;  %17937 = vmatprep.subr.mxu0 %v23237_v4 }
 0x31e   :  { %17968 = vmatprep.mubr.msk.f32.mxu1 %vm20108_vm0, %v23237_v4  ;;  %17980 = vmatprep.subr.mxu1 %v23237_v4 }
 0x31f   :  { %17938 = vmatpush3.msra.mxu0 %v20191_v18  ;;  %17939 = vmatprep.mubr.msk.f32.mxu0 %vm20108_vm0, %v23237_v4 }
 0x320   :  { %17969 = vmatmul.mubr.msk.f32.vlgmr.msra.gmra.mxu1 %vm553_vm7, %v20468_v46  ;;  %17940 = vmatmul.mubr.f32.vlgmr.msra.gmra.mxu0 %v20427_v30 }
 0x321   :  { %17981 = vmatpush3.msra.mxu1 %v20249_v34  ;;  %17953 = vmatprep.subr.mxu0 %v23237_v4 }
 0x322   :  { %17982 = vmatprep.subr.mxu1 %v23237_v4  ;;  %17954 = vmatpush3.msra.mxu0 %v20249_v34 }
 0x323   :  { %17983 = vmatpush3.msra.mxu1 %v20259_v36  ;;  %17955 = vmatprep.subr.mxu0 %v23237_v4 }
 0x324   :  { %17984 = vmatprep.subr.mxu1 %v23237_v4  ;;  %17956 = vmatpush3.msra.mxu0 %v20259_v36 }
 0x325   :  { %17985 = vmatpush3.msra.mxu1 %v20267_v38  ;;  %17957 = vmatprep.subr.mxu0 %v23237_v4 }
 0x326   :  { %17986 = vmatprep.mubr.msk.f32.mxu1 %vm20108_vm0, %v23237_v4  ;;  %17998 = vmatprep.subr.mxu1 %v23237_v4 }
 0x327   :  { %17958 = vmatpush3.msra.mxu0 %v20267_v38  ;;  %17959 = vmatprep.mubr.msk.f32.mxu0 %vm20108_vm0, %v23237_v4 }
 0x328   :  { %17987 = vmatmul.mubr.f32.vlgmr.msra.gmra.mxu1 %v1624_v55  ;;  %17960 = vmatmul.mubr.f32.vlgmr.msra.gmra.mxu0 %v1626_v3  ;;  %v20602_v55 = vand.u32 4294901760, %v2173_v44 }
 0x329   :  { %17999 = vmatpush3.msra.mxu1 %v20249_v34  ;;  %17971 = vmatprep.subr.mxu0 %v23237_v4 }
 0x32a   :  { %18000 = vmatprep.subr.mxu1 %v23237_v4  ;;  %17972 = vmatpush3.msra.mxu0 %v20270_v39 }
 0x32b   :  { %18001 = vmatpush3.msra.mxu1 %v20259_v36  ;;  %17973 = vmatprep.subr.mxu0 %v23237_v4 }
 0x32c   :  { %18002 = vmatprep.subr.mxu1 %v23237_v4  ;;  %17974 = vmatpush3.msra.mxu0 %v20279_v41 }
 0x32d   :  { %18003 = vmatpush3.msra.mxu1 %v20267_v38  ;;  %17975 = vmatprep.subr.mxu0 %v23237_v4 }
 0x32e   :  { %18004 = vmatprep.mubr.msk.f32.mxu1 %vm20108_vm0, %v23237_v4  ;;  %18018 = vmatprep.subr.mxu1 %v23237_v4 }
 0x32f   :  { %17976 = vmatpush3.msra.mxu0 %v20290_v43  ;;  %17977 = vmatprep.mubr.msk.f32.mxu0 %vm20108_vm0, %v23237_v4 }
 0x330   :  { %18005 = vmatmul.mubr.msk.f32.vlgmr.msra.gmra.mxu1 %vm553_vm7, %v20468_v46  ;;  %17978 = vmatmul.mubr.f32.vlgmr.msra.gmra.mxu0 %v20486_v51  ;;  %v38_v51 = vld [vmem:[%s23192_s1 + $0x50] sm:$0xff] }
 0x331   :  { %18019 = vmatpush3.msra.mxu1 %v20583_v37  ;;  %17989 = vmatprep.subr.mxu0 %v23237_v4  ;;  %v20637_v59 = vand.u32 4294901760, %v38_v51 }
 0x332   :  { %18020 = vmatprep.subr.mxu1 %v23237_v4  ;;  %17990 = vmatpush3.msra.mxu0 %v20287_v42 }
 0x333   :  { %18021 = vmatpush3.msra.mxu1 %v20593_v48  ;;  %17991 = vmatprep.subr.mxu0 %v23237_v4  ;;  %23317 = vst [vmem:[#allocation25_spill] sm:$0xff] %v20637_v59  ;;  %v20653_v3 = vsub.f32 %v38_v51, %v20637_v59  ;;  %v20676_v51 = vand.u32 4294901760, %v35_v32 }
 0x334   :  { %18022 = vmatprep.subr.mxu1 %v23237_v4  ;;  %17992 = vmatpush3.msra.mxu0 %v20298_v45 }
 0x335   :  { %18023 = vmatpush3.msra.mxu1 %v20602_v55  ;;  %17993 = vmatprep.subr.mxu0 %v23237_v4  ;;  %23319 = vst [vmem:[#allocation27_spill] sm:$0xff] %v20653_v3  ;;  %v20674_v52 = vand.u32 4294901760, %v20653_v3  ;;  %23323 = vst [vmem:[#allocation31_spill] sm:$0xff] %v20676_v51 }
 0x336   :  { %18024 = vmatprep.subr.mxu1 %v23237_v4  ;;  %17994 = vmatpush3.msra.mxu0 %v20308_v47 }
 0x337   :  { %17995 = vmatprep.mubr.msk.f32.mxu0 %vm20108_vm0, %v23237_v4  ;;  %18025 = vmatpush3.msra.mxu1 %v20608_v57  ;;  %23322 = vst [vmem:[#allocation30_spill] sm:$0xff] %v20674_v52  ;;  %v20679_v57 = vsub.f32 %v36_v61, %v20655_v26  ;;  %v20698_v61 = vsub.f32 %v35_v32, %v20676_v51 }
 0x338   :  { %18026 = vmatprep.mubr.msk.f32.mxu1 %vm20108_vm0, %v23237_v4  ;;  %17996 = vmatmul.mubr.msk.f32.vlgmr.msra.gmra.mxu0 %vm553_vm7, %v20468_v46  ;;  %v37_v46 = vld [vmem:[%s23192_s1 + $0x48] sm:$0xff] }
 0x339   :  { %18007 = vmatprep.subr.mxu0 %v23237_v4  ;;  %18027 = vmatmul.mubr.f32.vlgmr.msra.gmra.mxu1 %v20427_v30  ;;  %v20646_v62 = vand.u32 4294901760, %v37_v46  ;;  %23324 = vst [vmem:[#allocation32_spill] sm:$0xff] %v20679_v57  ;;  %23327 = vst [vmem:[#allocation35_spill] sm:$0xff] %v20698_v61 }
 0x33a   :  { %18040 = vmatprep.subr.mxu1 %v23237_v4  ;;  %18008 = vmatpush3.msra.mxu0 %v20505_v58 }
 0x33b   :  { %18041 = vmatpush3.msra.mxu1 %v20505_v58  ;;  %18009 = vmatprep.subr.mxu0 %v23237_v4  ;;  %23318 = vst [vmem:[#allocation26_spill] sm:$0xff] %v20646_v62  ;;  %v20667_v44 = vsub.f32 %v37_v46, %v20646_v62  ;;  %v20695_v46 = vand.u32 4294901760, %v20679_v57 }
 0x33c   :  { %18042 = vmatprep.subr.mxu1 %v23237_v4  ;;  %18010 = vmatpush3.msra.mxu0 %v20516_v60 }
 0x33d   :  { %18043 = vmatpush3.msra.mxu1 %v20516_v60  ;;  %18011 = vmatprep.subr.mxu0 %v23237_v4  ;;  %23321 = vst [vmem:[#allocation29_spill] sm:$0xff] %v20667_v44  ;;  %23326 = vst [vmem:[#allocation34_spill] sm:$0xff] %v20695_v46 }
 0x33e   :  { %18044 = vmatprep.subr.mxu1 %v23237_v4  ;;  %18012 = vmatpush3.msra.mxu0 %v20530_v0 }
 0x33f   :  { %18045 = vmatpush3.msra.mxu1 %v20530_v0  ;;  %18013 = vmatprep.subr.mxu0 %v23237_v4 }
 0x340   :  { %18046 = vmatprep.subr.mxu1 %v23237_v4  ;;  %18014 = vmatpush3.msra.mxu0 %v20539_v2 }
 0x341   :  { %18015 = vmatprep.mubr.msk.f32.mxu0 %vm20108_vm0, %v23237_v4  ;;  %18047 = vmatpush3.msra.mxu1 %v20539_v2 }
 0x342   :  { %18048 = vmatprep.mubr.msk.f32.mxu1 %vm20108_vm0, %v23237_v4  ;;  %18016 = vmatmul.mubr.f32.vlgmr.msra.gmra.mxu0 %v20447_v40  ;;  %v2644_v40 = vsub.f32 %v20653_v3, %v20674_v52 }
 0x343   :  { %18029 = vmatprep.subr.mxu0 %v23237_v4  ;;  %18049 = vmatmul.mubr.f32.vlgmr.msra.gmra.mxu1 %v20438_v33  ;;  %v20686_v33 = vand.u32 4294901760, %v20667_v44 }
 0x344   :  { %18062 = vmatprep.subr.mxu1 %v23237_v4  ;;  %18030 = vmatpush3.msra.mxu0 %v20528_v63  ;;  %v20712_v32 = vand.u32 4294901760, %v2644_v40 }
 0x345   :  { %18063 = vmatpush3.msra.mxu1 %v20505_v58  ;;  %18031 = vmatprep.subr.mxu0 %v23237_v4  ;;  %23325 = vst [vmem:[#allocation33_spill] sm:$0xff] %v20686_v33 }
 0x346   :  { %18064 = vmatprep.subr.mxu1 %v23237_v4  ;;  %18032 = vmatpush3.msra.mxu0 %v20537_v1  ;;  %23328 = vst [vmem:[#allocation36_spill] sm:$0xff] %v20712_v32  ;;  %v2658_v1 = vsub.f32 %v20679_v57, %v20695_v46 }
 0x347   :  { %18065 = vmatpush3.msra.mxu1 %v20516_v60  ;;  %18033 = vmatprep.subr.mxu0 %v23237_v4 }
 0x348   :  { %18066 = vmatprep.subr.mxu1 %v23237_v4  ;;  %18034 = vmatpush3.msra.mxu0 %v20549_v21  ;;  %v2651_v21 = vsub.f32 %v20667_v44, %v20686_v33 }
 0x349   :  { %18067 = vmatpush3.msra.mxu1 %v20530_v0  ;;  %18035 = vmatprep.subr.mxu0 %v23237_v4 }
 0x34a   :  { %18068 = vmatprep.subr.mxu1 %v23237_v4  ;;  %18036 = vmatpush3.msra.mxu0 %v20561_v25  ;;  %v20717_v25 = vand.u32 4294901760, %v20698_v61  ;;  %v20724_v63 = vand.u32 4294901760, %v2651_v21 }
 0x34b   :  { %18037 = vmatprep.mubr.msk.f32.mxu0 %vm20108_vm0, %v23237_v4  ;;  %18069 = vmatpush3.msra.mxu1 %v20539_v2 }
 0x34c   :  { %18070 = vmatprep.mubr.msk.f32.mxu1 %vm20108_vm0, %v23237_v4  ;;  %18038 = vmatmul.mubr.f32.vlgmr.msra.gmra.mxu0 %v20430_v31  ;;  %23329 = vst [vmem:[#allocation37_spill] sm:$0xff] %v20717_v25  ;;  %23330 = vst [vmem:[#allocation38_spill] sm:$0xff] %v20724_v63  ;;  %v20730_v31 = vand.u32 4294901760, %v2658_v1  ;;  %v2665_v40 = vsub.f32 %v20698_v61, %v20717_v25 }
 0x34d   :  { %18051 = vmatprep.subr.mxu0 %v23237_v4  ;;  %18071 = vmatmul.mubr.f32.vlgmr.msra.gmra.mxu1 %v20427_v30 }
 0x34e   :  { %18052 = vmatpush3.msra.mxu0 %v20546_v8  ;;  %18059 = vmatprep.mubr.msk.f32.mxu0 %vm20108_vm0, %v23237_v4  ;;  %23331 = vst [vmem:[#allocation39_spill] sm:$0xff] %v20730_v31  ;;  %v20742_v1 = vand.u32 4294901760, %v2665_v40 }
 0x34f   :  { %18053 = vmatprep.subr.mxu0 %v23237_v4  ;;  %18084 = vmatprep.subr.mxu1 %v23237_v4 }
 0x350   :  { %18054 = vmatpush3.msra.mxu0 %v20558_v22  ;;  %18085 = vmatpush3.msra.mxu1 %v20712_v32  ;;  %23332 = vst [vmem:[#allocation40_spill] sm:$0xff] %v20742_v1 }
 0x351   :  { %18055 = vmatprep.subr.mxu0 %v23237_v4  ;;  %18086 = vmatprep.subr.mxu1 %v23237_v4 }
 0x352   :  { %18056 = vmatpush3.msra.mxu0 %v20568_v27  ;;  %18087 = vmatpush3.msra.mxu1 %v20724_v63 }
 0x353   :  { %18057 = vmatprep.subr.mxu0 %v23237_v4  ;;  %18088 = vmatprep.subr.mxu1 %v23237_v4 }
 0x354   :  { %18058 = vmatpush3.msra.mxu0 %v20577_v35  ;;  %18089 = vmatpush3.msra.mxu1 %v20730_v31 }
 0x355   :  { %18060 = vmatmul.mubr.f32.vlgmr.msra.gmra.mxu0 %v20427_v30  ;;  %18073 = vmatprep.subr.mxu0 %v23237_v4 }
 0x356   :  { %18074 = vmatpush3.msra.mxu0 %v20637_v59  ;;  %18081 = vmatprep.mubr.msk.f32.mxu0 %vm20108_vm0, %v23237_v4 }
 0x357   :  { %18075 = vmatprep.subr.mxu0 %v23237_v4  ;;  %18090 = vmatprep.subr.mxu1 %v23237_v4 }
 0x358   :  { %18076 = vmatpush3.msra.mxu0 %v20646_v62  ;;  %18091 = vmatpush3.msra.mxu1 %v20742_v1 }
 0x359   :  { %18077 = vmatprep.subr.mxu0 %v23237_v4  ;;  %18092 = vmatprep.mubr.msk.f32.mxu1 %vm20108_vm0, %v23237_v4 }
 0x35a   :  { %18078 = vmatpush3.msra.mxu0 %v20655_v26  ;;  %18106 = vmatprep.subr.mxu1 %v23237_v4 }
 0x35b   :  { %18079 = vmatprep.subr.mxu0 %v23237_v4  ;;  %18093 = vmatmul.mubr.f32.vlgmr.msra.gmra.mxu1 %v23237_v4 }
 0x35c   :  { %18080 = vmatpush3.msra.mxu0 %v20676_v51  ;;  %18107 = vmatpush3.msra.mxu1 %v20637_v59 }
 0x35d   :  { %18095 = vmatprep.subr.mxu0 %v23237_v4  ;;  %18082 = vmatmul.mubr.f32.vlgmr.msra.gmra.mxu0 %v23237_v4 }
 0x35e   :  { %18096 = vmatpush3.msra.mxu0 %v20653_v3  ;;  %18108 = vmatprep.subr.mxu1 %v23237_v4 }
 0x35f   :  { %18097 = vmatprep.subr.mxu0 %v23237_v4  ;;  %18109 = vmatpush3.msra.mxu1 %v20646_v62 }
 0x360   :  { %18098 = vmatpush3.msra.mxu0 %v20667_v44  ;;  %18110 = vmatprep.subr.mxu1 %v23237_v4 }
 0x361   :  { %18099 = vmatprep.subr.mxu0 %v23237_v4  ;;  %18111 = vmatpush3.msra.mxu1 %v20655_v26 }
 0x362   :  { %18100 = vmatpush3.msra.mxu0 %v20679_v57  ;;  %18103 = vmatprep.mubr.msk.f32.mxu0 %vm20108_vm0, %v23237_v4 }
 0x363   :  { %18101 = vmatprep.subr.mxu0 %v23237_v4  ;;  %18112 = vmatprep.subr.mxu1 %v23237_v4 }
 0x364   :  { %18102 = vmatpush3.msra.mxu0 %v20698_v61  ;;  %18113 = vmatpush3.msra.mxu1 %v20676_v51 }
 0x365   :  { %18117 = vmatprep.subr.mxu0 %v23237_v4  ;;  %18104 = vmatmul.mubr.f32.vlgmr.msra.gmra.mxu0 %v23237_v4 }
 0x366   :  { %18118 = vmatpush3.msra.mxu0 %v20674_v52  ;;  %18114 = vmatprep.mubr.msk.f32.mxu1 %vm20108_vm0, %v23237_v4 }
 0x367   :  { %18119 = vmatprep.subr.mxu0 %v23237_v4  ;;  %18128 = vmatprep.subr.mxu1 %v23237_v4 }
 0x368   :  { %18115 = vmatmul.mubr.f32.vlgmr.msra.gmra.mxu1 %v23237_v4  ;;  %18120 = vmatpush3.msra.mxu0 %v20686_v33 }
 0x369   :  { %18129 = vmatpush3.msra.mxu1 %v20637_v59  ;;  %18121 = vmatprep.subr.mxu0 %v23237_v4 }
 0x36a   :  { %18130 = vmatprep.subr.mxu1 %v23237_v4  ;;  %18122 = vmatpush3.msra.mxu0 %v20695_v46 }
 0x36b   :  { %18131 = vmatpush3.msra.mxu1 %v20646_v62  ;;  %18123 = vmatprep.subr.mxu0 %v23237_v4 }
 0x36c   :  { %18132 = vmatprep.subr.mxu1 %v23237_v4  ;;  %18124 = vmatpush3.msra.mxu0 %v20717_v25 }
 0x36d   :  { %18125 = vmatprep.mubr.msk.f32.mxu0 %vm20108_vm0, %v23237_v4  ;;  %18133 = vmatpush3.msra.mxu1 %v20655_v26 }
 0x36e   :  { %18126 = vmatmul.mubr.f32.vlgmr.msra.gmra.mxu0 %v23237_v4  ;;  %18134 = vmatprep.subr.mxu1 %v23237_v4 }
 0x36f   :  { %18135 = vmatpush3.msra.mxu1 %v20676_v51  ;;  %18136 = vmatprep.mubr.msk.f32.mxu1 %vm20108_vm0, %v23237_v4 }
 0x370   :  { %18137 = vmatmul.mubr.f32.vlgmr.msra.gmra.mxu1 %v23237_v4  ;;  %18150 = vmatprep.subr.mxu1 %v23237_v4 }
 0x371   :  { %18151 = vmatpush3.msra.mxu1 %v20205_v23  ;;  %18139 = vmatprep.subr.mxu0 %v23237_v4 }
 0x372   :  { %18152 = vmatprep.subr.mxu1 %v23237_v4  ;;  %18158 = vmatprep.mubr.msk.f32.mxu1 %vm20108_vm0, %v23237_v4 }
 0x373   :  { %18153 = vmatpush3.msra.mxu1 %v20207_v24  ;;  %18140 = vmatpush3.msra.mxu0 %v20147_v5 }
 0x374   :  { %18154 = vmatprep.subr.mxu1 %v23237_v4  ;;  %18141 = vmatprep.subr.mxu0 %v23237_v4 }
 0x375   :  { %18155 = vmatpush3.msra.mxu1 %v20216_v28  ;;  %18142 = vmatpush3.msra.mxu0 %v20149_v6 }
 0x376   :  { %18156 = vmatprep.subr.mxu1 %v23237_v4  ;;  %18143 = vmatprep.subr.mxu0 %v23237_v4 }
 0x377   :  { %18157 = vmatpush3.msra.mxu1 %v20226_v29  ;;  %18144 = vmatpush3.msra.mxu0 %v20151_v7 }
 0x378   :  { %18172 = vmatprep.subr.mxu1 %v23237_v4  ;;  %18145 = vmatprep.subr.mxu0 %v23237_v4 }
 0x379   :  { %18146 = vmatpush3.msra.mxu0 %v20157_v9  ;;  %18147 = vmatprep.mubr.msk.f32.mxu0 %vm20108_vm0, %v23237_v4 }
 0x37a   :  { %18161 = vmatprep.subr.mxu0 %v23237_v4 }
 0x3c5   :  { %v1232_v30 = vpop.f32.mrf.mxu1 }
 0x3c7   :  { %v17908_v21 = vpop.f32.mrf.mxu1 }
 0x3cd   :  { %v1389_v40 = vpop.f32.mrf.mxu1 }
 0x3ce   :  { %v1141_v28 = vpop.f32.mrf.mxu0 }
 0x3cf   :  { %v17930_v25 = vpop.f32.mrf.mxu1  ;;  %v1233_v52 = vadd.f32 %v1232_v30, %v1141_v28 }
 0x3d0   :  { %v17897_v24 = vpop.f32.mrf.mxu0 }
 0x3d6   :  { %v1312_v29 = vpop.f32.mrf.mxu0 }
 0x3d7   :  { %v1547_v46 = vpop.f32.mrf.mxu1  ;;  %v1313_v44 = vadd.f32 %v1312_v29, %v1233_v52 }
 0x3d8   :  { %v17919_v23 = vpop.f32.mrf.mxu0 }
 0x3d9   :  { %v17952_v33 = vpop.f32.mrf.mxu1  ;;  %v1390_v26 = vadd.f32 %v1389_v40, %v1313_v44 }
 0x3e0   :  { %v1472_v61 = vpop.f32.mrf.mxu0  ;;  %v1714_v57 = vpop.f32.mrf.mxu1 }
 0x3e1   :  { %v1473_v62 = vadd.f32 %v1472_v61, %v1390_v26 }
 0x3e2   :  { %v17941_v3 = vpop.f32.mrf.mxu0  ;;  %v17970_v51 = vpop.f32.mrf.mxu1 }
 0x3e3   :  { %v1548_v31 = vadd.f32 %v1547_v46, %v1473_v62 }
 0x3e8   :  { %v1628_v59 = vpop.f32.mrf.mxu0  ;;  %v1868_v4 = vpop.f32.mrf.mxu1 }
 0x3e9   :  { %v1629_v35 = vadd.f32 %v1628_v59, %v1548_v31  ;;  %v20831_v59 = vld [vmem:[%s23192_s1 + $0x78] ss:$0 sm:$0xff] }
 0x3ea   :  { %v17961_v1 = vpop.f32.mrf.mxu0  ;;  %v17988_v21 = vpop.f32.mrf.mxu1 }
 0x3eb   :  { %v1715_v63 = vadd.f32 %v1714_v57, %v1629_v35 }
 0x3f0   :  { %v1792_v25 = vpop.f32.mrf.mxu0  ;;  %v2022_v24 = vpop.f32.mrf.mxu1 }
 0x3f1   :  { %v1793_v33 = vadd.f32 %v1792_v25, %v1715_v63 }
 0x3f2   :  { %v17979_v27 = vpop.f32.mrf.mxu0  ;;  %v18006_v23 = vpop.f32.mrf.mxu1 }
 0x3f3   :  { %v1869_v28 = vadd.f32 %v1868_v4, %v1793_v33 }
 0x3f8   :  { %v1948_v30 = vpop.f32.mrf.mxu0 }
 0x3f9   :  { %v1949_v32 = vadd.f32 %v1948_v30, %v1869_v28  ;;  %v2218_v29 = vpop.f32.mrf.mxu1 }
 0x3fa   :  { %v17997_v3 = vpop.f32.mrf.mxu0 }
 0x3fb   :  { %v2023_v52 = vadd.f32 %v2022_v24, %v1949_v32  ;;  %v18028_v44 = vpop.f32.mrf.mxu1 }
 0x3fd   :  { %v2026_v26 = vmul.f32 %v2023_v52, %v20414_v56 }
 0x3ff   :  { %20005 = vtanh.f32 %v2026_v26 }
 0x402   :  { %v2127_v62 = vpop.f32.mrf.mxu0 }
 0x403   :  { %v2128_v27 = vadd.f32 %v20831_v59, %v2127_v62  ;;  %v2375_v35 = vpop.f32.mrf.mxu1 }
 0x404   :  { %v18017_v63 = vpop.f32.mrf.mxu0 }
 0x405   :  { %v18050_v4 = vpop.f32.mrf.mxu1  ;;  %v2219_v57 = vadd.f32 %v2218_v29, %v2128_v27 }
 0x40c   :  { %v20006_v51 = vpop.eup %20005  ;;  %v2298_v46 = vpop.f32.mrf.mxu0 }
 0x40d   :  { %v2299_v61 = vadd.f32 %v2298_v46, %v2219_v57  ;;  %v2533_v32 = vpop.f32.mrf.mxu1  ;;  %v2028_v31 = vmul.f32 0.5, %v20006_v51 }
 0x40e   :  { %v18039_v1 = vpop.f32.mrf.mxu0 }
 0x40f   :  { %v18072_v40 = vpop.f32.mrf.mxu1  ;;  %v2376_v21 = vadd.f32 %v2375_v35, %v2299_v61  ;;  %v2029_v25 = vadd.f32 0.5, %v2028_v31 }
 0x411   :  { %v2030_v24 = vsel %vm20408_vm10, %v20006_v51, %v2029_v25 }
 0x412   :  { %2033 = vrot.lane.b32.xlu0 %v2030_v24, %s20110_s5 }
 0x415   :  { %v2458_v23 = vpop.f32.mrf.mxu0 }
 0x416   :  { %v2459_v33 = vadd.f32 %v2458_v23, %v2376_v21 }
 0x417   :  { %v18061_v28 = vpop.f32.mrf.mxu0 }
 0x418   :  { %v2534_v30 = vadd.f32 %v2533_v32, %v2459_v33 }
 0x41b   :  { %v2703_v3 = vpop.f32.mrf.mxu1 }
 0x41d   :  { %v2612_v29 = vpop.f32.mrf.mxu0  ;;  %v18094_v52 = vpop.f32.mrf.mxu1 }
 0x41e   :  { %v2704_v44 = vadd.f32 %v2703_v3, %v2612_v29  ;;  %v2031_v52 = vmul.f32 %v2030_v24, %v20421_v20 }
 0x41f   :  { %v18083_v26 = vpop.f32.mrf.mxu0 }
 0x425   :  { %v2783_v62 = vpop.f32.mrf.mxu0 }
 0x426   :  { %v2784_v27 = vadd.f32 %v2783_v62, %v2704_v44 }
 0x427   :  { %v18105_v63 = vpop.f32.mrf.mxu0 }
 0x428   :  { %v2860_v4 = vpop.f32.mrf.mxu1 }
 0x429   :  { %v2861_v35 = vadd.f32 %v2860_v4, %v2784_v27 }
 0x42a   :  { %v18116_v57 = vpop.f32.mrf.mxu1 }
 0x42e   :  { %v2943_v46 = vpop.f32.mrf.mxu0 }
 0x42f   :  { %v2944_v61 = vadd.f32 %v2943_v46, %v2861_v35 }
 0x430   :  { %v3018_v51 = vpop.f32.mrf.mxu1  ;;  %v18127_v31 = vpop.f32.mrf.mxu0 }
 0x431   :  { %v3019_v1 = vadd.f32 %v3018_v51, %v2944_v61 }
 0x432   :  { %v18138_v40 = vpop.f32.mrf.mxu1 }
 0x433   :  { %v3022_v21 = vadd.f32 %v3019_v1, %v2534_v30 }
 0x435   :  { %v3023_v32 = vmul.f32 %v3022_v21, %v20414_v56  ;;  %v23333_v21 = vmov 0.0  }
 0x437   :  { %20007 = vtanh.f32 %v3023_v32  ;;  %v3046_v32 = vstv %s16722_s26 }
 0x438   :  { %vm3047_vm2 = vcmp.eq.s32.totalorder %v20193_v19, %v3046_v32  ;;  %v23344_v32 = vld [vmem:[#allocation40_spill] sm:$0xff] }
 0x439   :  { %vm3048_vm3 = vmand %vm53_vm1, %vm3047_vm2 }
 0x444   :  { %v20008_v25 = vpop.eup %20007 }
 0x445   :  { %v3025_v23 = vmul.f32 0.5, %v20008_v25 }
 0x447   :  { %v3026_v3 = vadd.f32 0.5, %v3025_v23 }
 0x449   :  { %v3027_v29 = vsel %vm20408_vm10, %v20008_v25, %v3026_v3  ;;  %v3049_v3 = vsel %vm3048_vm3, 1.0, %v23333_v21 }
 0x44a   :  { %v3028_v63 = vmul.f32 0.0, %v3027_v29 }
 0x484   :  { %v2034_v33 = vpop.permute.xlu0 %2033 }
 0x485   :  { %v2036_v28 = vmul.f32 %v2034_v33, %v2030_v24  ;;  %v3051_v33 = vstv %s16723_s27 }
 0x486   :  { %vm3052_vm5 = vcmp.eq.s32.totalorder %v20193_v19, %v3051_v33  ;;  %v23348_v33 = vld [vmem:[#allocation31_spill] sm:$0xff] }
 0x487   :  { %2038 = vrot.lane.b32.xlu1 %v2036_v28, %s20111_s6  ;;  %vm3053_vm6 = vmand %vm59_vm4, %vm3052_vm5 }
 0x48b   :  { %3030 = vrot.lane.b32.xlu1 %v3027_v29, %s20110_s5 }
 0x4f9   :  { %v2039_v44 = vpop.permute.xlu1 %2038 }
 0x4fa   :  { %v20843_v26 = vadd.f32 %v2039_v44, %v2031_v52 }
 0x4fc   :  { %20009 = vtanh.f32 %v20843_v26 }
 0x4fd   :  { %v3031_v30 = vpop.permute.xlu1 %3030 }
 0x4fe   :  { %v3033_v62 = vmul.f32 %v3031_v30, %v3027_v29 }
 0x500   :  { %3035 = vrot.lane.b32.xlu1 %v3033_v62, %s20111_s6 }
 0x509   :  { %v20010_v27 = vpop.eup %20009 }
 0x50a   :  { %2044 = vrot.lane.b32.xlu0 %v20010_v27, %s20110_s5 }
 0x572   :  { %v3036_v4 = vpop.permute.xlu1 %3035 }
 0x573   :  { %v20848_v35 = vadd.f32 %v3036_v4, %v3028_v63  ;;  %v23334_v63 = vld [vmem:[#allocation24_spill] sm:$0xff]  ;;  %v23335_v4 = vld [vmem:[#allocation14_spill] sm:$0xff] }
 0x575   :  { %20011 = vtanh.f32 %v20848_v35 }
 0x57c   :  { %v2045_v57 = vpop.permute.xlu0 %2044 }
 0x57d   :  { %v2047_v20 = vmul.f32 %v2045_v57, %v2030_v24  ;;  %v23336_v57 = vld [vmem:[#allocation16_spill] sm:$0xff] }
 0x57f   :  { %3056 = vrot.lane.b32.xlu0 %v2047_v20, %s20111_s6  ;;  %v23337_v20 = vld [vmem:[#allocation19_spill] sm:$0xff] }
 0x582   :  { %v20012_v46 = vpop.eup %20011 }
 0x583   :  { %3041 = vrot.lane.b32.xlu0 %v20012_v46, %s20110_s5  ;;  %v23338_v46 = vld [vmem:[#allocation21_spill] sm:$0xff] }
 0x5f1   :  { %v3057_v61 = vpop.permute.xlu0 %3056 }
 0x5f2   :  { %v3058_v51 = vsel %vm64_vm11, %v3057_v61, 0  ;;  %v23339_v61 = vld [vmem:[#allocation36_spill] sm:$0xff] }
 0x5f3   :  { %v20854_v31 = vand.u32 4294901760, %v3058_v51 }
 0x5f5   :  { %v20857_v1 = vsub.f32 %v3058_v51, %v20854_v31  ;;  %18159 = vmatmul.mubr.f32.vlgmr.msra.gmra.mxu1 %v20854_v31  ;;  %v3042_v40 = vpop.permute.xlu0 %3041  ;;  %v23340_v51 = vld [vmem:[#allocation22_spill] sm:$0xff] }
 0x5f6   :  { %18173 = vmatpush3.msra.mxu1 %v20147_v5  ;;  %v3044_v24 = vmul.f32 %v3042_v40, %v3027_v29  ;;  %18180 = vmatprep.mubr.msk.f32.mxu1 %vm20108_vm0, %v23333_v21  ;;  %v20896_v29 = vsel %vm3053_vm6, 1.0, %v3049_v3  ;;  %v23342_v40 = vld [vmem:[#allocation23_spill] sm:$0xff] }
 0x5f7   :  { %18174 = vmatprep.subr.mxu1 %v23333_v21  ;;  %v20865_v25 = vand.u32 4294901760, %v20857_v1  ;;  %v3546_v52 = vsel %vm553_vm7, %v20896_v29, 0 }
 0x5f8   :  { %18175 = vmatpush3.msra.mxu1 %v20149_v6  ;;  %4528 = vrot.lane.b32.xlu1 %v3044_v24, %s20111_s6  ;;  %v3617_v44 = vsub.f32 %v3546_v52, %v3546_v52  ;;  %v23343_v24 = vld [vmem:[#allocation39_spill] sm:$0xff] }
 0x5f9   :  { %18176 = vmatprep.subr.mxu1 %v23333_v21  ;;  %v3132_v23 = vsub.f32 %v20857_v1, %v20865_v25 }
 0x5fa   :  { %18177 = vmatpush3.msra.mxu1 %v20151_v7  ;;  %v3618_v30 = vand.u32 4294901760, %v3617_v44 }
 0x5fb   :  { %18178 = vmatprep.subr.mxu1 %v23333_v21  ;;  %v20875_v28 = vand.u32 4294901760, %v3132_v23  ;;  %v23346_v23 = vld [vmem:[#allocation26_spill] sm:$0xff] }
 0x5fc   :  { %18179 = vmatpush3.msra.mxu1 %v20157_v9  ;;  %v3619_v62 = vsub.f32 %v3617_v44, %v3618_v30 }
 0x5fd   :  { %18181 = vmatmul.mubr.f32.vlgmr.msra.gmra.mxu1 %v20865_v25  ;;  %18194 = vmatprep.subr.mxu1 %v23333_v21 }
 0x5fe   :  { %18148 = vmatmul.mubr.f32.vlgmr.msra.gmra.mxu0 %v20875_v28  ;;  %18195 = vmatpush3.msra.mxu1 %v20147_v5  ;;  %v3620_v27 = vand.u32 4294901760, %v3619_v62 }
 0x5ff   :  { %18162 = vmatpush3.msra.mxu0 %v20165_v10  ;;  %18196 = vmatprep.subr.mxu1 %v23333_v21 }
 0x600   :  { %18163 = vmatprep.subr.mxu0 %v23333_v21  ;;  %18197 = vmatpush3.msra.mxu1 %v20149_v6 }
 0x601   :  { %18164 = vmatpush3.msra.mxu0 %v20168_v11  ;;  %18198 = vmatprep.subr.mxu1 %v23333_v21 }
 0x602   :  { %18165 = vmatprep.subr.mxu0 %v23333_v21  ;;  %18199 = vmatpush3.msra.mxu1 %v20151_v7 }
 0x603   :  { %18166 = vmatpush3.msra.mxu0 %v20171_v12  ;;  %18200 = vmatprep.subr.mxu1 %v23333_v21 }
 0x604   :  { %18167 = vmatprep.subr.mxu0 %v23333_v21  ;;  %18169 = vmatprep.mubr.msk.f32.mxu0 %vm20108_vm0, %v23333_v21 }
 0x605   :  { %18168 = vmatpush3.msra.mxu0 %v20175_v13  ;;  %18201 = vmatpush3.msra.mxu1 %v20157_v9 }
 0x606   :  { %18202 = vmatprep.mubr.msk.f32.mxu1 %vm20108_vm0, %v23333_v21  ;;  %18170 = vmatmul.mubr.f32.vlgmr.msra.gmra.mxu0 %v20857_v1 }
 0x607   :  { %18183 = vmatprep.subr.mxu0 %v23333_v21  ;;  %18203 = vmatmul.mubr.f32.vlgmr.msra.gmra.mxu1 %v20854_v31 }
 0x608   :  { %18214 = vmatprep.subr.mxu1 %v23333_v21  ;;  %18184 = vmatpush3.msra.mxu0 %v20181_v15 }
 0x609   :  { %18215 = vmatpush3.msra.mxu1 %v20322_v50  ;;  %18185 = vmatprep.subr.mxu0 %v23333_v21 }
 0x60a   :  { %18216 = vmatprep.subr.mxu1 %v23333_v21  ;;  %18186 = vmatpush3.msra.mxu0 %v20184_v16 }
 0x60b   :  { %18217 = vmatpush3.msra.mxu1 %v20330_v53  ;;  %18187 = vmatprep.subr.mxu0 %v23333_v21 }
 0x60c   :  { %18218 = vmatprep.subr.mxu1 %v23333_v21  ;;  %18188 = vmatpush3.msra.mxu0 %v20187_v17 }
 0x60d   :  { %18219 = vmatpush3.msra.mxu1 %v20337_v54  ;;  %18189 = vmatprep.subr.mxu0 %v23333_v21 }
 0x60e   :  { %18220 = vmatprep.mubr.msk.f32.mxu1 %vm20108_vm0, %v23333_v21  ;;  %18232 = vmatprep.subr.mxu1 %v23333_v21 }
 0x60f   :  { %18190 = vmatpush3.msra.mxu0 %v20191_v18  ;;  %18191 = vmatprep.mubr.msk.f32.mxu0 %vm20108_vm0, %v23333_v21 }
 0x610   :  { %18221 = vmatmul.mubr.msk.f32.vlgmr.msra.gmra.mxu1 %vm553_vm7, %v20896_v29  ;;  %18192 = vmatmul.mubr.f32.vlgmr.msra.gmra.mxu0 %v20854_v31 }
 0x611   :  { %18233 = vmatpush3.msra.mxu1 %v20249_v34  ;;  %18205 = vmatprep.subr.mxu0 %v23333_v21 }
 0x612   :  { %18234 = vmatprep.subr.mxu1 %v23333_v21  ;;  %18206 = vmatpush3.msra.mxu0 %v20249_v34 }
 0x613   :  { %18235 = vmatpush3.msra.mxu1 %v20259_v36  ;;  %18207 = vmatprep.subr.mxu0 %v23333_v21 }
 0x614   :  { %18236 = vmatprep.subr.mxu1 %v23333_v21  ;;  %18208 = vmatpush3.msra.mxu0 %v20259_v36 }
 0x615   :  { %18237 = vmatpush3.msra.mxu1 %v20267_v38  ;;  %18209 = vmatprep.subr.mxu0 %v23333_v21 }
 0x616   :  { %18238 = vmatprep.mubr.msk.f32.mxu1 %vm20108_vm0, %v23333_v21  ;;  %18250 = vmatprep.subr.mxu1 %v23333_v21 }
 0x617   :  { %18210 = vmatpush3.msra.mxu0 %v20267_v38  ;;  %18211 = vmatprep.mubr.msk.f32.mxu0 %vm20108_vm0, %v23333_v21 }
 0x618   :  { %18239 = vmatmul.mubr.f32.vlgmr.msra.gmra.mxu1 %v3618_v30  ;;  %18212 = vmatmul.mubr.f32.vlgmr.msra.gmra.mxu0 %v3620_v27  ;;  %v23349_v27 = vld [vmem:[#allocation27_spill] sm:$0xff] }
 0x619   :  { %18251 = vmatpush3.msra.mxu1 %v20249_v34  ;;  %18223 = vmatprep.subr.mxu0 %v23333_v21 }
 0x61a   :  { %18252 = vmatprep.subr.mxu1 %v23333_v21  ;;  %18224 = vmatpush3.msra.mxu0 %v20270_v39 }
 0x61b   :  { %18253 = vmatpush3.msra.mxu1 %v20259_v36  ;;  %18225 = vmatprep.subr.mxu0 %v23333_v21 }
 0x61c   :  { %18254 = vmatprep.subr.mxu1 %v23333_v21  ;;  %18226 = vmatpush3.msra.mxu0 %v20279_v41 }
 0x61d   :  { %18255 = vmatpush3.msra.mxu1 %v20267_v38  ;;  %18227 = vmatprep.subr.mxu0 %v23333_v21 }
 0x61e   :  { %18256 = vmatprep.mubr.msk.f32.mxu1 %vm20108_vm0, %v23333_v21  ;;  %18270 = vmatprep.subr.mxu1 %v23333_v21 }
 0x61f   :  { %18228 = vmatpush3.msra.mxu0 %v20290_v43  ;;  %18229 = vmatprep.mubr.msk.f32.mxu0 %vm20108_vm0, %v23333_v21 }
 0x620   :  { %18257 = vmatmul.mubr.msk.f32.vlgmr.msra.gmra.mxu1 %vm553_vm7, %v20896_v29  ;;  %18230 = vmatmul.mubr.f32.vlgmr.msra.gmra.mxu0 %v3617_v44 }
 0x621   :  { %18271 = vmatpush3.msra.mxu1 %v20583_v37  ;;  %18241 = vmatprep.subr.mxu0 %v23333_v21 }
 0x622   :  { %18272 = vmatprep.subr.mxu1 %v23333_v21  ;;  %18242 = vmatpush3.msra.mxu0 %v20287_v42 }
 0x623   :  { %18273 = vmatpush3.msra.mxu1 %v20593_v48  ;;  %18243 = vmatprep.subr.mxu0 %v23333_v21 }
 0x624   :  { %18274 = vmatprep.subr.mxu1 %v23333_v21  ;;  %18244 = vmatpush3.msra.mxu0 %v20298_v45 }
 0x625   :  { %18275 = vmatpush3.msra.mxu1 %v20602_v55  ;;  %18245 = vmatprep.subr.mxu0 %v23333_v21 }
 0x626   :  { %18276 = vmatprep.subr.mxu1 %v23333_v21  ;;  %18246 = vmatpush3.msra.mxu0 %v20308_v47 }
 0x627   :  { %18247 = vmatprep.mubr.msk.f32.mxu0 %vm20108_vm0, %v23333_v21  ;;  %18277 = vmatpush3.msra.mxu1 %v23334_v63 }
 0x628   :  { %18278 = vmatprep.mubr.msk.f32.mxu1 %vm20108_vm0, %v23333_v21  ;;  %18248 = vmatmul.mubr.msk.f32.vlgmr.msra.gmra.mxu0 %vm553_vm7, %v20896_v29 }
 0x629   :  { %18259 = vmatprep.subr.mxu0 %v23333_v21  ;;  %18279 = vmatmul.mubr.f32.vlgmr.msra.gmra.mxu1 %v20854_v31 }
 0x62a   :  { %18292 = vmatprep.subr.mxu1 %v23333_v21  ;;  %18260 = vmatpush3.msra.mxu0 %v20505_v58 }
 0x62b   :  { %18293 = vmatpush3.msra.mxu1 %v20505_v58  ;;  %18261 = vmatprep.subr.mxu0 %v23333_v21 }
 0x62c   :  { %18294 = vmatprep.subr.mxu1 %v23333_v21  ;;  %18262 = vmatpush3.msra.mxu0 %v20516_v60 }
 0x62d   :  { %18295 = vmatpush3.msra.mxu1 %v20516_v60  ;;  %18263 = vmatprep.subr.mxu0 %v23333_v21 }
 0x62e   :  { %18296 = vmatprep.subr.mxu1 %v23333_v21  ;;  %18264 = vmatpush3.msra.mxu0 %v20530_v0 }
 0x62f   :  { %18297 = vmatpush3.msra.mxu1 %v20530_v0  ;;  %18265 = vmatprep.subr.mxu0 %v23333_v21 }
 0x630   :  { %18298 = vmatprep.subr.mxu1 %v23333_v21  ;;  %18266 = vmatpush3.msra.mxu0 %v20539_v2 }
 0x631   :  { %18267 = vmatprep.mubr.msk.f32.mxu0 %vm20108_vm0, %v23333_v21  ;;  %18299 = vmatpush3.msra.mxu1 %v20539_v2 }
 0x632   :  { %18300 = vmatprep.mubr.msk.f32.mxu1 %vm20108_vm0, %v23333_v21  ;;  %18268 = vmatmul.mubr.f32.vlgmr.msra.gmra.mxu0 %v20875_v28 }
 0x633   :  { %18281 = vmatprep.subr.mxu0 %v23333_v21  ;;  %18301 = vmatmul.mubr.f32.vlgmr.msra.gmra.mxu1 %v20865_v25  ;;  %v23345_v25 = vld [vmem:[#allocation25_spill] sm:$0xff] }
 0x634   :  { %18314 = vmatprep.subr.mxu1 %v23333_v21  ;;  %18282 = vmatpush3.msra.mxu0 %v23335_v4 }
 0x635   :  { %18315 = vmatpush3.msra.mxu1 %v20505_v58  ;;  %18283 = vmatprep.subr.mxu0 %v23333_v21 }
 0x636   :  { %18316 = vmatprep.subr.mxu1 %v23333_v21  ;;  %18284 = vmatpush3.msra.mxu0 %v23336_v57 }
 0x637   :  { %18317 = vmatpush3.msra.mxu1 %v20516_v60  ;;  %18285 = vmatprep.subr.mxu0 %v23333_v21 }
 0x638   :  { %18318 = vmatprep.subr.mxu1 %v23333_v21  ;;  %18286 = vmatpush3.msra.mxu0 %v23337_v20 }
 0x639   :  { %18319 = vmatpush3.msra.mxu1 %v20530_v0  ;;  %18287 = vmatprep.subr.mxu0 %v23333_v21 }
 0x63a   :  { %18320 = vmatprep.subr.mxu1 %v23333_v21  ;;  %18288 = vmatpush3.msra.mxu0 %v23338_v46 }
 0x63b   :  { %18289 = vmatprep.mubr.msk.f32.mxu0 %vm20108_vm0, %v23333_v21  ;;  %18321 = vmatpush3.msra.mxu1 %v20539_v2 }
 0x63c   :  { %18322 = vmatprep.mubr.msk.f32.mxu1 %vm20108_vm0, %v23333_v21  ;;  %18290 = vmatmul.mubr.f32.vlgmr.msra.gmra.mxu0 %v20857_v1  ;;  %v23341_v1 = vld [vmem:[#allocation38_spill] sm:$0xff] }
 0x63d   :  { %18303 = vmatprep.subr.mxu0 %v23333_v21  ;;  %18323 = vmatmul.mubr.f32.vlgmr.msra.gmra.mxu1 %v20854_v31 }
 0x63e   :  { %18304 = vmatpush3.msra.mxu0 %v20546_v8  ;;  %18311 = vmatprep.mubr.msk.f32.mxu0 %vm20108_vm0, %v23333_v21 }
 0x63f   :  { %18305 = vmatprep.subr.mxu0 %v23333_v21  ;;  %18336 = vmatprep.subr.mxu1 %v23333_v21 }
 0x640   :  { %18306 = vmatpush3.msra.mxu0 %v20558_v22  ;;  %18337 = vmatpush3.msra.mxu1 %v23339_v61 }
 0x641   :  { %18307 = vmatprep.subr.mxu0 %v23333_v21  ;;  %18338 = vmatprep.subr.mxu1 %v23333_v21 }
 0x642   :  { %18308 = vmatpush3.msra.mxu0 %v23340_v51  ;;  %18339 = vmatpush3.msra.mxu1 %v23341_v1 }
 0x643   :  { %18309 = vmatprep.subr.mxu0 %v23333_v21  ;;  %18340 = vmatprep.subr.mxu1 %v23333_v21 }
 0x644   :  { %18310 = vmatpush3.msra.mxu0 %v23342_v40  ;;  %18341 = vmatpush3.msra.mxu1 %v23343_v24 }
 0x645   :  { %18312 = vmatmul.mubr.f32.vlgmr.msra.gmra.mxu0 %v20854_v31  ;;  %18342 = vmatprep.subr.mxu1 %v23333_v21  ;;  %v23347_v31 = vld [vmem:[#allocation28_spill] sm:$0xff] }
 0x646   :  { %18343 = vmatpush3.msra.mxu1 %v23344_v32  ;;  %18325 = vmatprep.subr.mxu0 %v23333_v21 }
 0x647   :  { %18344 = vmatprep.mubr.msk.f32.mxu1 %vm20108_vm0, %v23333_v21  ;;  %18358 = vmatprep.subr.mxu1 %v23333_v21 }
 0x648   :  { %18326 = vmatpush3.msra.mxu0 %v23345_v25  ;;  %18333 = vmatprep.mubr.msk.f32.mxu0 %vm20108_vm0, %v23333_v21 }
 0x649   :  { %18327 = vmatprep.subr.mxu0 %v23333_v21 }
 0x64a   :  { %18328 = vmatpush3.msra.mxu0 %v23346_v23 }
 0x64b   :  { %18329 = vmatprep.subr.mxu0 %v23333_v21 }
 0x64c   :  { %18330 = vmatpush3.msra.mxu0 %v23347_v31 }
 0x64d   :  { %18331 = vmatprep.subr.mxu0 %v23333_v21 }
 0x64e   :  { %18332 = vmatpush3.msra.mxu0 %v23348_v33 }
 0x64f   :  { %18347 = vmatprep.subr.mxu0 %v23333_v21 }
 0x66a   :  { %v4529_v28 = vpop.permute.xlu1 %4528 }
 0x66b   :  { %v4530_v3 = vsel %vm64_vm11, %v4529_v28, 0  ;;  %v23350_v28 = vld [vmem:[#allocation29_spill] sm:$0xff] }
 0x66c   :  { %v4601_v29 = vand.u32 4294901760, %v4530_v3 }
 0x66e   :  { %v4602_v52 = vsub.f32 %v4530_v3, %v4601_v29  ;;  %18345 = vmatmul.mubr.f32.vlgmr.msra.gmra.mxu1 %v4601_v29  ;;  %v23351_v3 = vld [vmem:[#allocation32_spill] sm:$0xff] }
 0x66f   :  { %18359 = vmatpush3.msra.mxu1 %v23345_v25  ;;  %18366 = vmatprep.mubr.msk.f32.mxu1 %vm20108_vm0, %v23333_v21 }
 0x670   :  { %v4603_v44 = vand.u32 4294901760, %v4602_v52  ;;  %18360 = vmatprep.subr.mxu1 %v23333_v21 }
 0x671   :  { %18361 = vmatpush3.msra.mxu1 %v23346_v23 }
 0x672   :  { %v4604_v30 = vsub.f32 %v4602_v52, %v4603_v44  ;;  %18362 = vmatprep.subr.mxu1 %v23333_v21 }
 0x673   :  { %18363 = vmatpush3.msra.mxu1 %v23347_v31 }
 0x674   :  { %v4605_v62 = vand.u32 4294901760, %v4604_v30  ;;  %18364 = vmatprep.subr.mxu1 %v23333_v21  ;;  %v23353_v30 = vld [vmem:[#allocation30_spill] sm:$0xff] }
 0x675   :  { %18365 = vmatpush3.msra.mxu1 %v23348_v33 }
 0x676   :  { %18367 = vmatmul.mubr.f32.vlgmr.msra.gmra.mxu1 %v4603_v44  ;;  %18380 = vmatprep.subr.mxu1 %v23333_v21  ;;  %v23352_v44 = vld [vmem:[#allocation35_spill] sm:$0xff] }
 0x677   :  { %18334 = vmatmul.mubr.f32.vlgmr.msra.gmra.mxu0 %v4605_v62  ;;  %18381 = vmatpush3.msra.mxu1 %v23345_v25  ;;  %v23354_v62 = vld [vmem:[#allocation33_spill] sm:$0xff] }
 0x678   :  { %18348 = vmatpush3.msra.mxu0 %v23349_v27  ;;  %18382 = vmatprep.subr.mxu1 %v23333_v21 }
 0x679   :  { %18349 = vmatprep.subr.mxu0 %v23333_v21  ;;  %18383 = vmatpush3.msra.mxu1 %v23346_v23 }
 0x67a   :  { %18350 = vmatpush3.msra.mxu0 %v23350_v28  ;;  %18384 = vmatprep.subr.mxu1 %v23333_v21  ;;  %v23359_v28 = vld [vmem:[#allocation10_spill] sm:$0xff] }
 0x67b   :  { %18351 = vmatprep.subr.mxu0 %v23333_v21  ;;  %18385 = vmatpush3.msra.mxu1 %v23347_v31 }
 0x67c   :  { %18352 = vmatpush3.msra.mxu0 %v23351_v3  ;;  %18386 = vmatprep.subr.mxu1 %v23333_v21  ;;  %v23357_v3 = vld [vmem:[#allocation9_spill] sm:$0xff] }
 0x67d   :  { %18353 = vmatprep.subr.mxu0 %v23333_v21  ;;  %18355 = vmatprep.mubr.msk.f32.mxu0 %vm20108_vm0, %v23333_v21 }
 0x67e   :  { %18354 = vmatpush3.msra.mxu0 %v23352_v44  ;;  %18387 = vmatpush3.msra.mxu1 %v23348_v33  ;;  %v23355_v44 = vld [vmem:[#allocation8_spill] sm:$0xff] }
 0x67f   :  { %18388 = vmatprep.mubr.msk.f32.mxu1 %vm20108_vm0, %v23333_v21  ;;  %18356 = vmatmul.mubr.f32.vlgmr.msra.gmra.mxu0 %v4602_v52  ;;  %v23356_v52 = vld [vmem:[#allocation34_spill] sm:$0xff] }
 0x680   :  { %18369 = vmatprep.subr.mxu0 %v23333_v21  ;;  %18389 = vmatmul.mubr.f32.vlgmr.msra.gmra.mxu1 %v4601_v29 }
 0x681   :  { %18370 = vmatpush3.msra.mxu0 %v23353_v30  ;;  %18377 = vmatprep.mubr.msk.f32.mxu0 %vm20108_vm0, %v23333_v21  ;;  %v23358_v30 = vld [vmem:[#allocation37_spill] sm:$0xff] }
 0x682   :  { %18371 = vmatprep.subr.mxu0 %v23333_v21  ;;  %18402 = vmatprep.subr.mxu1 %v23333_v21 }
 0x683   :  { %18372 = vmatpush3.msra.mxu0 %v23354_v62  ;;  %18403 = vmatpush3.msra.mxu1 %v23355_v44  ;;  %v23360_v44 = vld [vmem:[#allocation11_spill] sm:$0xff] }
 0x684   :  { %18373 = vmatprep.subr.mxu0 %v23333_v21  ;;  %18404 = vmatprep.subr.mxu1 %v23333_v21 }
 0x685   :  { %18374 = vmatpush3.msra.mxu0 %v23356_v52  ;;  %18405 = vmatpush3.msra.mxu1 %v23357_v3 }
 0x686   :  { %18375 = vmatprep.subr.mxu0 %v23333_v21  ;;  %18406 = vmatprep.subr.mxu1 %v23333_v21 }
 0x687   :  { %18376 = vmatpush3.msra.mxu0 %v23358_v30  ;;  %18407 = vmatpush3.msra.mxu1 %v23359_v28 }
 0x688   :  { %18378 = vmatmul.mubr.f32.vlgmr.msra.gmra.mxu0 %v4601_v29  ;;  %18408 = vmatprep.subr.mxu1 %v23333_v21 }
 0x689   :  { %18409 = vmatpush3.msra.mxu1 %v23360_v44  ;;  %18391 = vmatprep.subr.mxu0 %v23333_v21 }
 0x68a   :  { %18410 = vmatprep.mubr.msk.f32.mxu1 %vm20108_vm0, %v23333_v21  ;;  %18424 = vmatprep.subr.mxu1 %v23333_v21 }
 0x68b   :  { %18392 = vmatpush3.msra.mxu0 %v20147_v5  ;;  %18399 = vmatprep.mubr.msk.f32.mxu0 %vm20108_vm0, %v23333_v21 }
 0x68c   :  { %18393 = vmatprep.subr.mxu0 %v23333_v21 }
 0x68d   :  { %18394 = vmatpush3.msra.mxu0 %v20149_v6 }
 0x68e   :  { %18395 = vmatprep.subr.mxu0 %v23333_v21 }
 0x68f   :  { %18396 = vmatpush3.msra.mxu0 %v20151_v7 }
 0x690   :  { %18397 = vmatprep.subr.mxu0 %v23333_v21 }
 0x691   :  { %18398 = vmatpush3.msra.mxu0 %v20157_v9 }
 0x692   :  { %18413 = vmatprep.subr.mxu0 %v23333_v21 }
 0x6b5   :  { %v3226_v29 = vpop.f32.mrf.mxu1 }
 0x6b7   :  { %v18160_v44 = vpop.f32.mrf.mxu1 }
 0x6bd   :  { %v3383_v28 = vpop.f32.mrf.mxu1 }
 0x6be   :  { %v3135_v30 = vpop.f32.mrf.mxu0 }
 0x6bf   :  { %v18182_v3 = vpop.f32.mrf.mxu1  ;;  %v3227_v23 = vadd.f32 %v3226_v29, %v3135_v30 }
 0x6c0   :  { %v18149_v52 = vpop.f32.mrf.mxu0 }
 0x6c6   :  { %v3306_v62 = vpop.f32.mrf.mxu0 }
 0x6c7   :  { %v3541_v27 = vpop.f32.mrf.mxu1  ;;  %v3307_v24 = vadd.f32 %v3306_v62, %v3227_v23 }
 0x6c8   :  { %v18171_v33 = vpop.f32.mrf.mxu0 }
 0x6c9   :  { %v18204_v31 = vpop.f32.mrf.mxu1  ;;  %v3384_v51 = vadd.f32 %v3383_v28, %v3307_v24 }
 0x6d0   :  { %v3466_v25 = vpop.f32.mrf.mxu0  ;;  %v3708_v32 = vpop.f32.mrf.mxu1 }
 0x6d1   :  { %v3467_v61 = vadd.f32 %v3466_v25, %v3384_v51 }
 0x6d2   :  { %v18193_v40 = vpop.f32.mrf.mxu0  ;;  %v18222_v1 = vpop.f32.mrf.mxu1 }
 0x6d3   :  { %v3542_v20 = vadd.f32 %v3541_v27, %v3467_v61 }
 0x6d8   :  { %v3622_v22 = vpop.f32.mrf.mxu0  ;;  %v3862_v8 = vpop.f32.mrf.mxu1 }
 0x6d9   :  { %v3623_v57 = vadd.f32 %v3622_v22, %v3542_v20 }
 0x6da   :  { %v18213_v46 = vpop.f32.mrf.mxu0  ;;  %v18240_v44 = vpop.f32.mrf.mxu1 }
 0x6db   :  { %v3709_v4 = vadd.f32 %v3708_v32, %v3623_v57 }
 0x6e0   :  { %v3786_v3 = vpop.f32.mrf.mxu0  ;;  %v4016_v52 = vpop.f32.mrf.mxu1 }
 0x6e1   :  { %v3787_v31 = vadd.f32 %v3786_v3, %v3709_v4 }
 0x6e2   :  { %v18231_v2 = vpop.f32.mrf.mxu0  ;;  %v18258_v33 = vpop.f32.mrf.mxu1 }
 0x6e3   :  { %v3863_v30 = vadd.f32 %v3862_v8, %v3787_v31 }
 0x6e8   :  { %v3942_v29 = vpop.f32.mrf.mxu0 }
 0x6e9   :  { %v3943_v0 = vadd.f32 %v3942_v29, %v3863_v30  ;;  %v4208_v23 = vpop.f32.mrf.mxu1 }
 0x6ea   :  { %v18249_v40 = vpop.f32.mrf.mxu0 }
 0x6eb   :  { %v4017_v1 = vadd.f32 %v4016_v52, %v3943_v0  ;;  %v18280_v24 = vpop.f32.mrf.mxu1 }
 0x6ed   :  { %v4020_v51 = vmul.f32 %v4017_v1, %v20414_v56 }
 0x6ef   :  { %20013 = vtanh.f32 %v4020_v51 }
 0x6f2   :  { %v4117_v46 = vpop.f32.mrf.mxu0 }
 0x6f3   :  { %v4118_v61 = vadd.f32 %v20831_v59, %v4117_v46  ;;  %v4365_v22 = vpop.f32.mrf.mxu1 }
 0x6f4   :  { %v18269_v20 = vpop.f32.mrf.mxu0 }
 0x6f5   :  { %v18302_v25 = vpop.f32.mrf.mxu1  ;;  %v4209_v57 = vadd.f32 %v4208_v23, %v4118_v61 }
 0x6fc   :  { %v20014_v2 = vpop.eup %20013  ;;  %v4288_v32 = vpop.f32.mrf.mxu0 }
 0x6fd   :  { %v4289_v4 = vadd.f32 %v4288_v32, %v4209_v57  ;;  %v4523_v8 = vpop.f32.mrf.mxu1  ;;  %v4022_v27 = vmul.f32 0.5, %v20014_v2 }
 0x6fe   :  { %v18291_v28 = vpop.f32.mrf.mxu0 }
 0x6ff   :  { %v18324_v62 = vpop.f32.mrf.mxu1  ;;  %v4366_v44 = vadd.f32 %v4365_v22, %v4289_v4  ;;  %v4023_v0 = vadd.f32 0.5, %v4022_v27 }
 0x701   :  { %v4024_v3 = vsel %vm20408_vm10, %v20014_v2, %v4023_v0 }
 0x702   :  { %4027 = vrot.lane.b32.xlu0 %v4024_v3, %s20110_s5 }
 0x705   :  { %v4448_v52 = vpop.f32.mrf.mxu0 }
 0x706   :  { %v4449_v59 = vadd.f32 %v4448_v52, %v4366_v44 }
 0x707   :  { %v18313_v33 = vpop.f32.mrf.mxu0 }
 0x708   :  { %v4524_v31 = vadd.f32 %v4523_v8, %v4449_v59 }
 0x72e   :  { %v4698_v30 = vpop.f32.mrf.mxu1 }
 0x730   :  { %v18346_v29 = vpop.f32.mrf.mxu1 }
 0x736   :  { %v4855_v23 = vpop.f32.mrf.mxu1 }
 0x737   :  { %v4607_v40 = vpop.f32.mrf.mxu0 }
 0x738   :  { %v18368_v1 = vpop.f32.mrf.mxu1  ;;  %v4699_v61 = vadd.f32 %v4698_v30, %v4607_v40 }
 0x739   :  { %v18335_v24 = vpop.f32.mrf.mxu0 }
 0x73f   :  { %v4778_v51 = vpop.f32.mrf.mxu0 }
 0x740   :  { %v5013_v46 = vpop.f32.mrf.mxu1  ;;  %v4779_v25 = vadd.f32 %v4778_v51, %v4699_v61 }
 0x741   :  { %v18357_v22 = vpop.f32.mrf.mxu0 }
 0x742   :  { %v18390_v20 = vpop.f32.mrf.mxu1  ;;  %v4856_v57 = vadd.f32 %v4855_v23, %v4779_v25 }
 0x748   :  { %v4938_v2 = vpop.f32.mrf.mxu0 }
 0x749   :  { %v4939_v32 = vadd.f32 %v4938_v2, %v4856_v57 }
 0x74a   :  { %v18379_v4 = vpop.f32.mrf.mxu0 }
 0x74b   :  { %v5014_v27 = vadd.f32 %v5013_v46, %v4939_v32 }
 0x74d   :  { %v5017_v28 = vadd.f32 %v5014_v27, %v4524_v31  ;;  %v4025_v31 = vmul.f32 %v4024_v3, %v20843_v26 }
 0x74f   :  { %v5018_v8 = vmul.f32 %v5017_v28, %v20414_v56  ;;  %v5046_v28 = vstv %s16728_s29 }
 0x750   :  { %vm5047_vm12 = vcmp.eq.s32.totalorder %v20193_v19, %v5046_v28 }
 0x751   :  { %20015 = vtanh.f32 %v5018_v8  ;;  %vm5048_vm13 = vmand %vm59_vm4, %vm5047_vm12 }
 0x75e   :  { %v20016_v62 = vpop.eup %20015 }
 0x75f   :  { %v5020_v44 = vmul.f32 0.5, %v20016_v62 }
 0x761   :  { %v5021_v0 = vadd.f32 0.5, %v5020_v44 }
 0x763   :  { %v5022_v52 = vsel %vm20408_vm10, %v20016_v62, %v5021_v0 }
 0x764   :  { %5025 = vrot.lane.b32.xlu0 %v5022_v52, %s20110_s5  ;;  %v5023_v24 = vmul.f32 %v5022_v52, %v20848_v35 }
 0x774   :  { %v4028_v59 = vpop.permute.xlu0 %4027 }
 0x775   :  { %v4030_v33 = vmul.f32 %v4028_v59, %v4024_v3 }
 0x777   :  { %4032 = vrot.lane.b32.xlu1 %v4030_v33, %s20111_s6 }
 0x7d6   :  { %v5026_v30 = vpop.permute.xlu0 %5025 }
 0x7d7   :  { %v5028_v29 = vmul.f32 %v5026_v30, %v5022_v52 }
 0x7d9   :  { %5030 = vrot.lane.b32.xlu0 %v5028_v29, %s20111_s6  ;;  %v23361_v29 = vld [vmem:[#allocation15_spill] sm:$0xff] }
 0x7e9   :  { %v4033_v23 = vpop.permute.xlu1 %4032 }
 0x7ea   :  { %v21137_v40 = vadd.f32 %v4033_v23, %v4025_v31  ;;  %v23362_v31 = vld [vmem:[#allocation17_spill] sm:$0xff]  ;;  %v23363_v23 = vld [vmem:[#allocation14_spill] sm:$0xff] }
 0x7ec   :  { %20017 = vtanh.f32 %v21137_v40 }
 0x7f9   :  { %v20018_v1 = vpop.eup %20017 }
 0x7fa   :  { %4038 = vrot.lane.b32.xlu1 %v20018_v1, %s20110_s5  ;;  %v23364_v1 = vld [vmem:[#allocation16_spill] sm:$0xff] }
 0x84b   :  { %v5031_v51 = vpop.permute.xlu0 %5030 }
 0x84c   :  { %v21142_v46 = vadd.f32 %v5031_v51, %v5023_v24  ;;  %v23365_v24 = vld [vmem:[#allocation19_spill] sm:$0xff]  ;;  %v23366_v51 = vld [vmem:[#allocation21_spill] sm:$0xff] }
 0x84e   :  { %20019 = vtanh.f32 %v21142_v46 }
 0x85b   :  { %v20020_v61 = vpop.eup %20019 }
 0x85c   :  { %5036 = vrot.lane.b32.xlu0 %v20020_v61, %s20110_s5  ;;  %v23367_v61 = vld [vmem:[#allocation18_spill] sm:$0xff] }
 0x86c   :  { %v4039_v22 = vpop.permute.xlu1 %4038 }
 0x86d   :  { %v4041_v26 = vmul.f32 %v4039_v22, %v4024_v3  ;;  %v5041_v3 = vstv %s16727_s28  ;;  %v23368_v22 = vld [vmem:[#allocation20_spill] sm:$0xff] }
 0x86e   :  { %vm5042_vm8 = vcmp.eq.s32.totalorder %v20193_v19, %v5041_v3  ;;  %v23375_v3 = vld [vmem:[#allocation25_spill] sm:$0xff] }
 0x86f   :  { %5051 = vrot.lane.b32.xlu1 %v4041_v26, %s20111_s6  ;;  %vm5043_vm9 = vmand %vm53_vm1, %vm5042_vm8  ;;  %v23369_v26 = vld [vmem:[#allocation36_spill] sm:$0xff] }
 0x870   :  { %v5044_v62 = vsel %vm5043_vm9, 1.0, %v23333_v21 }
 0x871   :  { %v21190_v44 = vsel %vm5048_vm13, 1.0, %v5044_v62 }
 0x872   :  { %v5541_v0 = vsel %vm553_vm7, %v21190_v44, 0 }
 0x8ce   :  { %v5037_v20 = vpop.permute.xlu0 %5036 }
 0x8cf   :  { %v5039_v25 = vmul.f32 %v5037_v20, %v5022_v52  ;;  %v5612_v52 = vsub.f32 %v5541_v0, %v5541_v0  ;;  %v23370_v20 = vld [vmem:[#allocation22_spill] sm:$0xff] }
 0x8d1   :  { %6523 = vrot.lane.b32.xlu1 %v5039_v25, %s20111_s6  ;;  %v5613_v59 = vand.u32 4294901760, %v5612_v52  ;;  %v23371_v25 = vld [vmem:[#allocation38_spill] sm:$0xff] }
 0x8d3   :  { %v5614_v33 = vsub.f32 %v5612_v52, %v5613_v59 }
 0x8d5   :  { %v5615_v30 = vand.u32 4294901760, %v5614_v33  ;;  %v23379_v33 = vld [vmem:[#allocation27_spill] sm:$0xff] }
 0x8e1   :  { %v5052_v57 = vpop.permute.xlu1 %5051 }
 0x8e2   :  { %v5053_v35 = vsel %vm64_vm11, %v5052_v57, 0  ;;  %v23372_v57 = vld [vmem:[#allocation23_spill] sm:$0xff] }
 0x8e3   :  { %v21149_v2 = vand.u32 4294901760, %v5053_v35 }
 0x8e5   :  { %v21152_v32 = vsub.f32 %v5053_v35, %v21149_v2  ;;  %18411 = vmatmul.mubr.f32.vlgmr.msra.gmra.mxu1 %v21149_v2  ;;  %v23373_v35 = vld [vmem:[#allocation39_spill] sm:$0xff] }
 0x8e6   :  { %18425 = vmatpush3.msra.mxu1 %v20147_v5  ;;  %18432 = vmatprep.mubr.msk.f32.mxu1 %vm20108_vm0, %v23333_v21 }
 0x8e7   :  { %18426 = vmatprep.subr.mxu1 %v23333_v21  ;;  %v21160_v4 = vand.u32 4294901760, %v21152_v32 }
 0x8e8   :  { %18427 = vmatpush3.msra.mxu1 %v20149_v6 }
 0x8e9   :  { %18428 = vmatprep.subr.mxu1 %v23333_v21  ;;  %v5127_v27 = vsub.f32 %v21152_v32, %v21160_v4 }
 0x8ea   :  { %18429 = vmatpush3.msra.mxu1 %v20151_v7 }
 0x8eb   :  { %18430 = vmatprep.subr.mxu1 %v23333_v21  ;;  %v21169_v8 = vand.u32 4294901760, %v5127_v27  ;;  %v23378_v27 = vld [vmem:[#allocation31_spill] sm:$0xff] }
 0x8ec   :  { %18431 = vmatpush3.msra.mxu1 %v20157_v9 }
 0x8ed   :  { %18433 = vmatmul.mubr.f32.vlgmr.msra.gmra.mxu1 %v21160_v4  ;;  %18446 = vmatprep.subr.mxu1 %v23333_v21 }
 0x8ee   :  { %18400 = vmatmul.mubr.f32.vlgmr.msra.gmra.mxu0 %v21169_v8  ;;  %18447 = vmatpush3.msra.mxu1 %v20147_v5 }
 0x8ef   :  { %18414 = vmatpush3.msra.mxu0 %v20165_v10  ;;  %18448 = vmatprep.subr.mxu1 %v23333_v21 }
 0x8f0   :  { %18415 = vmatprep.subr.mxu0 %v23333_v21  ;;  %18449 = vmatpush3.msra.mxu1 %v20149_v6 }
 0x8f1   :  { %18416 = vmatpush3.msra.mxu0 %v20168_v11  ;;  %18450 = vmatprep.subr.mxu1 %v23333_v21 }
 0x8f2   :  { %18417 = vmatprep.subr.mxu0 %v23333_v21  ;;  %18451 = vmatpush3.msra.mxu1 %v20151_v7 }
 0x8f3   :  { %18418 = vmatpush3.msra.mxu0 %v20171_v12  ;;  %18452 = vmatprep.subr.mxu1 %v23333_v21 }
 0x8f4   :  { %18419 = vmatprep.subr.mxu0 %v23333_v21  ;;  %18421 = vmatprep.mubr.msk.f32.mxu0 %vm20108_vm0, %v23333_v21 }
 0x8f5   :  { %18420 = vmatpush3.msra.mxu0 %v20175_v13  ;;  %18453 = vmatpush3.msra.mxu1 %v20157_v9 }
 0x8f6   :  { %18454 = vmatprep.mubr.msk.f32.mxu1 %vm20108_vm0, %v23333_v21  ;;  %18422 = vmatmul.mubr.f32.vlgmr.msra.gmra.mxu0 %v21152_v32 }
 0x8f7   :  { %18435 = vmatprep.subr.mxu0 %v23333_v21  ;;  %18455 = vmatmul.mubr.f32.vlgmr.msra.gmra.mxu1 %v21149_v2 }
 0x8f8   :  { %18466 = vmatprep.subr.mxu1 %v23333_v21  ;;  %18436 = vmatpush3.msra.mxu0 %v20181_v15 }
 0x8f9   :  { %18467 = vmatpush3.msra.mxu1 %v20322_v50  ;;  %18437 = vmatprep.subr.mxu0 %v23333_v21 }
 0x8fa   :  { %18468 = vmatprep.subr.mxu1 %v23333_v21  ;;  %18438 = vmatpush3.msra.mxu0 %v20184_v16 }
 0x8fb   :  { %18469 = vmatpush3.msra.mxu1 %v20330_v53  ;;  %18439 = vmatprep.subr.mxu0 %v23333_v21 }
 0x8fc   :  { %18470 = vmatprep.subr.mxu1 %v23333_v21  ;;  %18440 = vmatpush3.msra.mxu0 %v20187_v17 }
 0x8fd   :  { %18471 = vmatpush3.msra.mxu1 %v20337_v54  ;;  %18441 = vmatprep.subr.mxu0 %v23333_v21 }
 0x8fe   :  { %18472 = vmatprep.mubr.msk.f32.mxu1 %vm20108_vm0, %v23333_v21  ;;  %18484 = vmatprep.subr.mxu1 %v23333_v21 }
 0x8ff   :  { %18442 = vmatpush3.msra.mxu0 %v20191_v18  ;;  %18443 = vmatprep.mubr.msk.f32.mxu0 %vm20108_vm0, %v23333_v21 }
 0x900   :  { %18473 = vmatmul.mubr.msk.f32.vlgmr.msra.gmra.mxu1 %vm553_vm7, %v21190_v44  ;;  %18444 = vmatmul.mubr.f32.vlgmr.msra.gmra.mxu0 %v21149_v2 }
 0x901   :  { %18485 = vmatpush3.msra.mxu1 %v20249_v34  ;;  %18457 = vmatprep.subr.mxu0 %v23333_v21 }
 0x902   :  { %18486 = vmatprep.subr.mxu1 %v23333_v21  ;;  %18458 = vmatpush3.msra.mxu0 %v20249_v34 }
 0x903   :  { %18487 = vmatpush3.msra.mxu1 %v20259_v36  ;;  %18459 = vmatprep.subr.mxu0 %v23333_v21 }
 0x904   :  { %18488 = vmatprep.subr.mxu1 %v23333_v21  ;;  %18460 = vmatpush3.msra.mxu0 %v20259_v36 }
 0x905   :  { %18489 = vmatpush3.msra.mxu1 %v20267_v38  ;;  %18461 = vmatprep.subr.mxu0 %v23333_v21 }
 0x906   :  { %18490 = vmatprep.mubr.msk.f32.mxu1 %vm20108_vm0, %v23333_v21  ;;  %18502 = vmatprep.subr.mxu1 %v23333_v21 }
 0x907   :  { %18462 = vmatpush3.msra.mxu0 %v20267_v38  ;;  %18463 = vmatprep.mubr.msk.f32.mxu0 %vm20108_vm0, %v23333_v21 }
 0x908   :  { %18491 = vmatmul.mubr.f32.vlgmr.msra.gmra.mxu1 %v5613_v59  ;;  %18464 = vmatmul.mubr.f32.vlgmr.msra.gmra.mxu0 %v5615_v30  ;;  %v23380_v30 = vld [vmem:[#allocation29_spill] sm:$0xff] }
 0x909   :  { %18503 = vmatpush3.msra.mxu1 %v20249_v34  ;;  %18475 = vmatprep.subr.mxu0 %v23333_v21 }
 0x90a   :  { %18504 = vmatprep.subr.mxu1 %v23333_v21  ;;  %18476 = vmatpush3.msra.mxu0 %v20270_v39 }
 0x90b   :  { %18505 = vmatpush3.msra.mxu1 %v20259_v36  ;;  %18477 = vmatprep.subr.mxu0 %v23333_v21 }
 0x90c   :  { %18506 = vmatprep.subr.mxu1 %v23333_v21  ;;  %18478 = vmatpush3.msra.mxu0 %v20279_v41 }
 0x90d   :  { %18507 = vmatpush3.msra.mxu1 %v20267_v38  ;;  %18479 = vmatprep.subr.mxu0 %v23333_v21 }
 0x90e   :  { %18508 = vmatprep.mubr.msk.f32.mxu1 %vm20108_vm0, %v23333_v21  ;;  %18522 = vmatprep.subr.mxu1 %v23333_v21 }
 0x90f   :  { %18480 = vmatpush3.msra.mxu0 %v20290_v43  ;;  %18481 = vmatprep.mubr.msk.f32.mxu0 %vm20108_vm0, %v23333_v21 }
 0x910   :  { %18509 = vmatmul.mubr.msk.f32.vlgmr.msra.gmra.mxu1 %vm553_vm7, %v21190_v44  ;;  %18482 = vmatmul.mubr.f32.vlgmr.msra.gmra.mxu0 %v5612_v52 }
 0x911   :  { %18523 = vmatpush3.msra.mxu1 %v20583_v37  ;;  %18493 = vmatprep.subr.mxu0 %v23333_v21 }
 0x912   :  { %18524 = vmatprep.subr.mxu1 %v23333_v21  ;;  %18494 = vmatpush3.msra.mxu0 %v20287_v42 }
 0x913   :  { %18525 = vmatpush3.msra.mxu1 %v20593_v48  ;;  %18495 = vmatprep.subr.mxu0 %v23333_v21 }
 0x914   :  { %18526 = vmatprep.subr.mxu1 %v23333_v21  ;;  %18496 = vmatpush3.msra.mxu0 %v20298_v45 }
 0x915   :  { %18527 = vmatpush3.msra.mxu1 %v20602_v55  ;;  %18497 = vmatprep.subr.mxu0 %v23333_v21 }
 0x916   :  { %18528 = vmatprep.subr.mxu1 %v23333_v21  ;;  %18498 = vmatpush3.msra.mxu0 %v20308_v47 }
 0x917   :  { %18499 = vmatprep.mubr.msk.f32.mxu0 %vm20108_vm0, %v23333_v21  ;;  %18529 = vmatpush3.msra.mxu1 %v23334_v63 }
 0x918   :  { %18530 = vmatprep.mubr.msk.f32.mxu1 %vm20108_vm0, %v23333_v21  ;;  %18500 = vmatmul.mubr.msk.f32.vlgmr.msra.gmra.mxu0 %vm553_vm7, %v21190_v44 }
 0x919   :  { %18511 = vmatprep.subr.mxu0 %v23333_v21  ;;  %18531 = vmatmul.mubr.f32.vlgmr.msra.gmra.mxu1 %v21149_v2 }
 0x91a   :  { %18544 = vmatprep.subr.mxu1 %v23333_v21  ;;  %18512 = vmatpush3.msra.mxu0 %v20505_v58 }
 0x91b   :  { %18545 = vmatpush3.msra.mxu1 %v20505_v58  ;;  %18513 = vmatprep.subr.mxu0 %v23333_v21 }
 0x91c   :  { %18546 = vmatprep.subr.mxu1 %v23333_v21  ;;  %18514 = vmatpush3.msra.mxu0 %v20516_v60 }
 0x91d   :  { %18547 = vmatpush3.msra.mxu1 %v20516_v60  ;;  %18515 = vmatprep.subr.mxu0 %v23333_v21 }
 0x91e   :  { %18548 = vmatprep.subr.mxu1 %v23333_v21  ;;  %18516 = vmatpush3.msra.mxu0 %v23361_v29 }
 0x91f   :  { %18549 = vmatpush3.msra.mxu1 %v23361_v29  ;;  %18517 = vmatprep.subr.mxu0 %v23333_v21 }
 0x920   :  { %18550 = vmatprep.subr.mxu1 %v23333_v21  ;;  %18518 = vmatpush3.msra.mxu0 %v23362_v31 }
 0x921   :  { %18519 = vmatprep.mubr.msk.f32.mxu0 %vm20108_vm0, %v23333_v21  ;;  %18551 = vmatpush3.msra.mxu1 %v23362_v31 }
 0x922   :  { %18552 = vmatprep.mubr.msk.f32.mxu1 %vm20108_vm0, %v23333_v21  ;;  %18520 = vmatmul.mubr.f32.vlgmr.msra.gmra.mxu0 %v21169_v8 }
 0x923   :  { %18533 = vmatprep.subr.mxu0 %v23333_v21  ;;  %18553 = vmatmul.mubr.f32.vlgmr.msra.gmra.mxu1 %v21160_v4  ;;  %v23376_v4 = vld [vmem:[#allocation26_spill] sm:$0xff] }
 0x924   :  { %18566 = vmatprep.subr.mxu1 %v23333_v21  ;;  %18534 = vmatpush3.msra.mxu0 %v23363_v23 }
 0x925   :  { %18567 = vmatpush3.msra.mxu1 %v20505_v58  ;;  %18535 = vmatprep.subr.mxu0 %v23333_v21 }
 0x926   :  { %18568 = vmatprep.subr.mxu1 %v23333_v21  ;;  %18536 = vmatpush3.msra.mxu0 %v23364_v1 }
 0x927   :  { %18569 = vmatpush3.msra.mxu1 %v20516_v60  ;;  %18537 = vmatprep.subr.mxu0 %v23333_v21 }
 0x928   :  { %18570 = vmatprep.subr.mxu1 %v23333_v21  ;;  %18538 = vmatpush3.msra.mxu0 %v23365_v24 }
 0x929   :  { %18571 = vmatpush3.msra.mxu1 %v23361_v29  ;;  %18539 = vmatprep.subr.mxu0 %v23333_v21 }
 0x92a   :  { %18572 = vmatprep.subr.mxu1 %v23333_v21  ;;  %18540 = vmatpush3.msra.mxu0 %v23366_v51 }
 0x92b   :  { %18541 = vmatprep.mubr.msk.f32.mxu0 %vm20108_vm0, %v23333_v21  ;;  %18573 = vmatpush3.msra.mxu1 %v23362_v31 }
 0x92c   :  { %18574 = vmatprep.mubr.msk.f32.mxu1 %vm20108_vm0, %v23333_v21  ;;  %18542 = vmatmul.mubr.f32.vlgmr.msra.gmra.mxu0 %v21152_v32  ;;  %v23374_v32 = vld [vmem:[#allocation40_spill] sm:$0xff] }
 0x92d   :  { %18555 = vmatprep.subr.mxu0 %v23333_v21  ;;  %18575 = vmatmul.mubr.f32.vlgmr.msra.gmra.mxu1 %v21149_v2 }
 0x92e   :  { %18556 = vmatpush3.msra.mxu0 %v23367_v61  ;;  %18563 = vmatprep.mubr.msk.f32.mxu0 %vm20108_vm0, %v23333_v21 }
 0x92f   :  { %18557 = vmatprep.subr.mxu0 %v23333_v21  ;;  %18588 = vmatprep.subr.mxu1 %v23333_v21 }
 0x930   :  { %18558 = vmatpush3.msra.mxu0 %v23368_v22  ;;  %18589 = vmatpush3.msra.mxu1 %v23369_v26 }
 0x931   :  { %18559 = vmatprep.subr.mxu0 %v23333_v21  ;;  %18590 = vmatprep.subr.mxu1 %v23333_v21 }
 0x932   :  { %18560 = vmatpush3.msra.mxu0 %v23370_v20  ;;  %18591 = vmatpush3.msra.mxu1 %v23371_v25 }
 0x933   :  { %18561 = vmatprep.subr.mxu0 %v23333_v21  ;;  %18592 = vmatprep.subr.mxu1 %v23333_v21 }
 0x934   :  { %18562 = vmatpush3.msra.mxu0 %v23372_v57  ;;  %18593 = vmatpush3.msra.mxu1 %v23373_v35 }
 0x935   :  { %18564 = vmatmul.mubr.f32.vlgmr.msra.gmra.mxu0 %v21149_v2  ;;  %18594 = vmatprep.subr.mxu1 %v23333_v21  ;;  %v23377_v2 = vld [vmem:[#allocation28_spill] sm:$0xff] }
 0x936   :  { %18595 = vmatpush3.msra.mxu1 %v23374_v32  ;;  %18577 = vmatprep.subr.mxu0 %v23333_v21 }
 0x937   :  { %18596 = vmatprep.mubr.msk.f32.mxu1 %vm20108_vm0, %v23333_v21  ;;  %18610 = vmatprep.subr.mxu1 %v23333_v21 }
 0x938   :  { %18578 = vmatpush3.msra.mxu0 %v23375_v3  ;;  %18585 = vmatprep.mubr.msk.f32.mxu0 %vm20108_vm0, %v23333_v21 }
 0x939   :  { %18579 = vmatprep.subr.mxu0 %v23333_v21 }
 0x93a   :  { %18580 = vmatpush3.msra.mxu0 %v23376_v4 }
 0x93b   :  { %18581 = vmatprep.subr.mxu0 %v23333_v21 }
 0x93c   :  { %18582 = vmatpush3.msra.mxu0 %v23377_v2 }
 0x93d   :  { %18583 = vmatprep.subr.mxu0 %v23333_v21 }
 0x93e   :  { %18584 = vmatpush3.msra.mxu0 %v23378_v27 }
 0x93f   :  { %18599 = vmatprep.subr.mxu0 %v23333_v21 }
 0x943   :  { %v6524_v28 = vpop.permute.xlu1 %6523 }
 0x944   :  { %v6525_v8 = vsel %vm64_vm11, %v6524_v28, 0  ;;  %v23381_v28 = vld [vmem:[#allocation32_spill] sm:$0xff] }
 0x945   :  { %v6596_v62 = vand.u32 4294901760, %v6525_v8 }
 0x947   :  { %v6597_v44 = vsub.f32 %v6525_v8, %v6596_v62  ;;  %18597 = vmatmul.mubr.f32.vlgmr.msra.gmra.mxu1 %v6596_v62  ;;  %v23382_v8 = vld [vmem:[#allocation35_spill] sm:$0xff] }
 0x948   :  { %18611 = vmatpush3.msra.mxu1 %v23375_v3  ;;  %18618 = vmatprep.mubr.msk.f32.mxu1 %vm20108_vm0, %v23333_v21 }
 0x949   :  { %v6598_v0 = vand.u32 4294901760, %v6597_v44  ;;  %18612 = vmatprep.subr.mxu1 %v23333_v21 }
 0x94a   :  { %18613 = vmatpush3.msra.mxu1 %v23376_v4 }
 0x94b   :  { %v6599_v52 = vsub.f32 %v6597_v44, %v6598_v0  ;;  %18614 = vmatprep.subr.mxu1 %v23333_v21 }
 0x94c   :  { %18615 = vmatpush3.msra.mxu1 %v23377_v2 }
 0x94d   :  { %v6600_v59 = vand.u32 4294901760, %v6599_v52  ;;  %18616 = vmatprep.subr.mxu1 %v23333_v21  ;;  %v23384_v52 = vld [vmem:[#allocation33_spill] sm:$0xff] }
 0x94e   :  { %18617 = vmatpush3.msra.mxu1 %v23378_v27 }
 0x94f   :  { %18619 = vmatmul.mubr.f32.vlgmr.msra.gmra.mxu1 %v6598_v0  ;;  %18632 = vmatprep.subr.mxu1 %v23333_v21  ;;  %v23383_v0 = vld [vmem:[#allocation30_spill] sm:$0xff] }
 0x950   :  { %18586 = vmatmul.mubr.f32.vlgmr.msra.gmra.mxu0 %v6600_v59  ;;  %18633 = vmatpush3.msra.mxu1 %v23375_v3  ;;  %v23385_v59 = vld [vmem:[#allocation8_spill] sm:$0xff] }
 0x951   :  { %18600 = vmatpush3.msra.mxu0 %v23379_v33  ;;  %18634 = vmatprep.subr.mxu1 %v23333_v21 }
 0x952   :  { %18601 = vmatprep.subr.mxu0 %v23333_v21  ;;  %18635 = vmatpush3.msra.mxu1 %v23376_v4 }
 0x953   :  { %18602 = vmatpush3.msra.mxu0 %v23380_v30  ;;  %18636 = vmatprep.subr.mxu1 %v23333_v21 }
 0x954   :  { %18603 = vmatprep.subr.mxu0 %v23333_v21  ;;  %18637 = vmatpush3.msra.mxu1 %v23377_v2 }
 0x955   :  { %18604 = vmatpush3.msra.mxu0 %v23381_v28  ;;  %18638 = vmatprep.subr.mxu1 %v23333_v21  ;;  %v23389_v28 = vld [vmem:[#allocation10_spill] sm:$0xff] }
 0x956   :  { %18605 = vmatprep.subr.mxu0 %v23333_v21  ;;  %18607 = vmatprep.mubr.msk.f32.mxu0 %vm20108_vm0, %v23333_v21 }
 0x957   :  { %18606 = vmatpush3.msra.mxu0 %v23382_v8  ;;  %18639 = vmatpush3.msra.mxu1 %v23378_v27  ;;  %v23387_v8 = vld [vmem:[#allocation9_spill] sm:$0xff] }
 0x958   :  { %18640 = vmatprep.mubr.msk.f32.mxu1 %vm20108_vm0, %v23333_v21  ;;  %18608 = vmatmul.mubr.f32.vlgmr.msra.gmra.mxu0 %v6597_v44  ;;  %v23386_v44 = vld [vmem:[#allocation34_spill] sm:$0xff] }
 0x959   :  { %18621 = vmatprep.subr.mxu0 %v23333_v21  ;;  %18641 = vmatmul.mubr.f32.vlgmr.msra.gmra.mxu1 %v6596_v62 }
 0x95a   :  { %18622 = vmatpush3.msra.mxu0 %v23383_v0  ;;  %18629 = vmatprep.mubr.msk.f32.mxu0 %vm20108_vm0, %v23333_v21  ;;  %v23388_v0 = vld [vmem:[#allocation37_spill] sm:$0xff] }
 0x95b   :  { %18623 = vmatprep.subr.mxu0 %v23333_v21  ;;  %18654 = vmatprep.subr.mxu1 %v23333_v21 }
 0x95c   :  { %18624 = vmatpush3.msra.mxu0 %v23384_v52  ;;  %18655 = vmatpush3.msra.mxu1 %v23385_v59  ;;  %v23390_v59 = vld [vmem:[#allocation11_spill] sm:$0xff] }
 0x95d   :  { %18625 = vmatprep.subr.mxu0 %v23333_v21  ;;  %18656 = vmatprep.subr.mxu1 %v23333_v21 }
 0x95e   :  { %18626 = vmatpush3.msra.mxu0 %v23386_v44  ;;  %18657 = vmatpush3.msra.mxu1 %v23387_v8 }
 0x95f   :  { %18627 = vmatprep.subr.mxu0 %v23333_v21  ;;  %18658 = vmatprep.subr.mxu1 %v23333_v21 }
 0x960   :  { %18628 = vmatpush3.msra.mxu0 %v23388_v0  ;;  %18659 = vmatpush3.msra.mxu1 %v23389_v28 }
 0x961   :  { %18630 = vmatmul.mubr.f32.vlgmr.msra.gmra.mxu0 %v6596_v62  ;;  %18660 = vmatprep.subr.mxu1 %v23333_v21 }
 0x962   :  { %18661 = vmatpush3.msra.mxu1 %v23390_v59  ;;  %18643 = vmatprep.subr.mxu0 %v23333_v21 }
 0x963   :  { %18662 = vmatprep.mubr.msk.f32.mxu1 %vm20108_vm0, %v23333_v21  ;;  %18676 = vmatprep.subr.mxu1 %v23333_v21 }
 0x964   :  { %18644 = vmatpush3.msra.mxu0 %v20147_v5  ;;  %18651 = vmatprep.mubr.msk.f32.mxu0 %vm20108_vm0, %v23333_v21 }
 0x965   :  { %18645 = vmatprep.subr.mxu0 %v23333_v21 }
 0x966   :  { %18646 = vmatpush3.msra.mxu0 %v20149_v6 }
 0x967   :  { %18647 = vmatprep.subr.mxu0 %v23333_v21 }
 0x968   :  { %18648 = vmatpush3.msra.mxu0 %v20151_v7 }
 0x969   :  { %18649 = vmatprep.subr.mxu0 %v23333_v21 }
 0x96a   :  { %18650 = vmatpush3.msra.mxu0 %v20157_v9 }
 0x96b   :  { %18665 = vmatprep.subr.mxu0 %v23333_v21 }
 0x9a5   :  { %v5221_v62 = vpop.f32.mrf.mxu1 }
 0x9a7   :  { %v18412_v59 = vpop.f32.mrf.mxu1 }
 0x9ad   :  { %v5378_v28 = vpop.f32.mrf.mxu1 }
 0x9ae   :  { %v5130_v0 = vpop.f32.mrf.mxu0 }
 0x9af   :  { %v18434_v8 = vpop.f32.mrf.mxu1  ;;  %v5222_v2 = vadd.f32 %v5221_v62, %v5130_v0 }
 0x9b0   :  { %v18401_v44 = vpop.f32.mrf.mxu0 }
 0x9b6   :  { %v5301_v52 = vpop.f32.mrf.mxu0 }
 0x9b7   :  { %v5536_v30 = vpop.f32.mrf.mxu1  ;;  %v5302_v32 = vadd.f32 %v5301_v52, %v5222_v2 }
 0x9b8   :  { %v18423_v33 = vpop.f32.mrf.mxu0 }
 0x9b9   :  { %v18456_v27 = vpop.f32.mrf.mxu1  ;;  %v5379_v25 = vadd.f32 %v5378_v28, %v5302_v32 }
 0x9c0   :  { %v5461_v4 = vpop.f32.mrf.mxu0  ;;  %v5703_v3 = vpop.f32.mrf.mxu1 }
 0x9c1   :  { %v5462_v20 = vadd.f32 %v5461_v4, %v5379_v25 }
 0x9c2   :  { %v18445_v35 = vpop.f32.mrf.mxu0  ;;  %v18474_v57 = vpop.f32.mrf.mxu1 }
 0x9c3   :  { %v5537_v51 = vadd.f32 %v5536_v30, %v5462_v20 }
 0x9c8   :  { %v5617_v26 = vpop.f32.mrf.mxu0  ;;  %v5857_v22 = vpop.f32.mrf.mxu1 }
 0x9c9   :  { %v5618_v24 = vadd.f32 %v5617_v26, %v5537_v51 }
 0x9ca   :  { %v18465_v61 = vpop.f32.mrf.mxu0  ;;  %v18492_v59 = vpop.f32.mrf.mxu1 }
 0x9cb   :  { %v5704_v1 = vadd.f32 %v5703_v3, %v5618_v24 }
 0x9d0   :  { %v5781_v8 = vpop.f32.mrf.mxu0  ;;  %v6011_v44 = vpop.f32.mrf.mxu1 }
 0x9d1   :  { %v5782_v27 = vadd.f32 %v5781_v8, %v5704_v1 }
 0x9d2   :  { %v18483_v23 = vpop.f32.mrf.mxu0  ;;  %v18510_v33 = vpop.f32.mrf.mxu1 }
 0x9d3   :  { %v5858_v0 = vadd.f32 %v5857_v22, %v5782_v27 }
 0x9d8   :  { %v5937_v62 = vpop.f32.mrf.mxu0 }
 0x9d9   :  { %v5938_v31 = vadd.f32 %v5937_v62, %v5858_v0  ;;  %v6203_v2 = vpop.f32.mrf.mxu1  ;;  %v21426_v62 = vld [vmem:[%s23192_s1 + $0x78] ss:$0 sm:$0xff] }
 0x9da   :  { %v18501_v35 = vpop.f32.mrf.mxu0 }
 0x9db   :  { %v6012_v57 = vadd.f32 %v6011_v44, %v5938_v31  ;;  %v18532_v32 = vpop.f32.mrf.mxu1 }
 0x9dd   :  { %v6015_v25 = vmul.f32 %v6012_v57, %v20414_v56 }
 0x9df   :  { %20021 = vtanh.f32 %v6015_v25 }
 0x9e2   :  { %v6112_v61 = vpop.f32.mrf.mxu0 }
 0x9e3   :  { %v6360_v4 = vpop.f32.mrf.mxu1  ;;  %v6113_v35 = vadd.f32 %v21426_v62, %v6112_v61 }
 0x9e4   :  { %v18521_v20 = vpop.f32.mrf.mxu0 }
 0x9e5   :  { %v18554_v51 = vpop.f32.mrf.mxu1  ;;  %v6204_v57 = vadd.f32 %v6203_v2, %v6113_v35 }
 0x9ec   :  { %v20022_v26 = vpop.eup %20021  ;;  %v6283_v30 = vpop.f32.mrf.mxu0 }
 0x9ed   :  { %v6518_v24 = vpop.f32.mrf.mxu1  ;;  %v6017_v23 = vmul.f32 0.5, %v20022_v26  ;;  %v6284_v20 = vadd.f32 %v6283_v30, %v6204_v57 }
 0x9ee   :  { %v18543_v3 = vpop.f32.mrf.mxu0 }
 0x9ef   :  { %v18576_v1 = vpop.f32.mrf.mxu1  ;;  %v6018_v22 = vadd.f32 0.5, %v6017_v23 }
 0x9f0   :  { %v6361_v1 = vadd.f32 %v6360_v4, %v6284_v20 }
 0x9f1   :  { %v6019_v28 = vsel %vm20408_vm10, %v20022_v26, %v6018_v22 }
 0x9f2   :  { %6022 = vrot.lane.b32.xlu0 %v6019_v28, %s20110_s5 }
 0x9f5   :  { %v6443_v31 = vpop.f32.mrf.mxu0 }
 0x9f6   :  { %v6444_v22 = vadd.f32 %v6443_v31, %v6361_v1 }
 0x9f7   :  { %v18565_v52 = vpop.f32.mrf.mxu0 }
 0x9f8   :  { %v6519_v29 = vadd.f32 %v6518_v24, %v6444_v22 }
 0xa07   :  { %v6693_v59 = vpop.f32.mrf.mxu1 }
 0xa09   :  { %v18598_v8 = vpop.f32.mrf.mxu1 }
 0xa0f   :  { %v6850_v44 = vpop.f32.mrf.mxu1 }
 0xa10   :  { %v6602_v33 = vpop.f32.mrf.mxu0 }
 0xa11   :  { %v18620_v27 = vpop.f32.mrf.mxu1  ;;  %v6694_v51 = vadd.f32 %v6693_v59, %v6602_v33 }
 0xa12   :  { %v18587_v0 = vpop.f32.mrf.mxu0 }
 0xa18   :  { %v6773_v32 = vpop.f32.mrf.mxu0 }
 0xa19   :  { %v7008_v25 = vpop.f32.mrf.mxu1  ;;  %v6774_v3 = vadd.f32 %v6773_v32, %v6694_v51 }
 0xa1a   :  { %v18609_v26 = vpop.f32.mrf.mxu0 }
 0xa1b   :  { %v18642_v23 = vpop.f32.mrf.mxu1  ;;  %v6851_v52 = vadd.f32 %v6850_v44, %v6774_v3 }
 0xa21   :  { %v6933_v8 = vpop.f32.mrf.mxu0 }
 0xa22   :  { %v6934_v27 = vadd.f32 %v6933_v8, %v6851_v52  ;;  %v7041_v52 = vstv %s16733_s8 }
 0xa23   :  { %v18631_v0 = vpop.f32.mrf.mxu0  ;;  %vm7042_vm2 = vcmp.eq.s32.totalorder %v20193_v19, %v7041_v52  ;;  %v23406_v52 = vld [vmem:[#allocation39_spill] sm:$0xff] }
 0xa24   :  { %v7009_v60 = vadd.f32 %v7008_v25, %v6934_v27  ;;  %vm7043_vm3 = vmand %vm59_vm4, %vm7042_vm2 }
 0xa26   :  { %v7012_v58 = vadd.f32 %v7009_v60, %v6519_v29  ;;  %v6020_v60 = vmul.f32 %v6019_v28, %v21137_v40 }
 0xa28   :  { %v7013_v63 = vmul.f32 %v7012_v58, %v20414_v56 }
 0xa2a   :  { %20023 = vtanh.f32 %v7013_v63 }
 0xa37   :  { %v20024_v2 = vpop.eup %20023 }
 0xa38   :  { %v7015_v61 = vmul.f32 0.5, %v20024_v2 }
 0xa3a   :  { %v7016_v35 = vadd.f32 0.5, %v7015_v61 }
 0xa3c   :  { %v7017_v30 = vsel %vm20408_vm10, %v20024_v2, %v7016_v35 }
 0xa3d   :  { %7020 = vrot.lane.b32.xlu0 %v7017_v30, %s20110_s5  ;;  %v7018_v24 = vmul.f32 %v7017_v30, %v21142_v46 }
 0xa64   :  { %v6023_v4 = vpop.permute.xlu0 %6022 }
 0xa65   :  { %v6025_v31 = vmul.f32 %v6023_v4, %v6019_v28 }
 0xa67   :  { %6027 = vrot.lane.b32.xlu1 %v6025_v31, %s20111_s6  ;;  %v23391_v31 = vld [vmem:[#allocation24_spill] sm:$0xff] }
 0xaaf   :  { %v7021_v59 = vpop.permute.xlu0 %7020 }
 0xab0   :  { %v7023_v44 = vmul.f32 %v7021_v59, %v7017_v30  ;;  %v23392_v59 = vld [vmem:[#allocation12_spill] sm:$0xff] }
 0xab2   :  { %7025 = vrot.lane.b32.xlu0 %v7023_v44, %s20111_s6  ;;  %v23393_v44 = vld [vmem:[#allocation13_spill] sm:$0xff] }
 0xad9   :  { %v6028_v58 = vpop.permute.xlu1 %6027 }
 0xada   :  { %v21436_v63 = vadd.f32 %v6028_v58, %v6020_v60  ;;  %v23394_v60 = vld [vmem:[#allocation15_spill] sm:$0xff]  ;;  %v23395_v58 = vld [vmem:[#allocation17_spill] sm:$0xff] }
 0xadc   :  { %20025 = vtanh.f32 %v21436_v63 }
 0xae9   :  { %v20026_v29 = vpop.eup %20025 }
 0xaea   :  { %6033 = vrot.lane.b32.xlu1 %v20026_v29, %s20110_s5  ;;  %v23396_v29 = vld [vmem:[#allocation14_spill] sm:$0xff] }
 0xb24   :  { %v7026_v33 = vpop.permute.xlu0 %7025 }
 0xb25   :  { %v21441_v57 = vadd.f32 %v7026_v33, %v7018_v24  ;;  %v23397_v24 = vld [vmem:[#allocation16_spill] sm:$0xff]  ;;  %v23398_v33 = vld [vmem:[#allocation19_spill] sm:$0xff] }
 0xb27   :  { %20027 = vtanh.f32 %v21441_v57 }
 0xb34   :  { %v20028_v32 = vpop.eup %20027 }
 0xb35   :  { %7031 = vrot.lane.b32.xlu0 %v20028_v32, %s20110_s5  ;;  %v23399_v32 = vld [vmem:[#allocation21_spill] sm:$0xff] }
 0xb5c   :  { %v6034_v25 = vpop.permute.xlu1 %6033 }
 0xb5d   :  { %v6036_v40 = vmul.f32 %v6034_v25, %v6019_v28  ;;  %v7036_v28 = vstv %s16732_s7 }
 0xb5e   :  { %vm7037_vm14 = vcmp.eq.s32.totalorder %v20193_v19, %v7036_v28  ;;  %v23404_v28 = vld [vmem:[#allocation38_spill] sm:$0xff] }
 0xb5f   :  { %7046 = vrot.lane.b32.xlu1 %v6036_v40, %s20111_s6  ;;  %vm7038_vm15 = vmand %vm53_vm1, %vm7037_vm14 }
 0xb60   :  { %v7039_v27 = vsel %vm7038_vm15, 1.0, %v23333_v21 }
 0xb61   :  { %v21489_v0 = vsel %vm7043_vm3, 1.0, %v7039_v27  ;;  %v23407_v27 = vld [vmem:[#allocation40_spill] sm:$0xff] }
 0xb62   :  { %v7536_v2 = vsel %vm553_vm7, %v21489_v0, 0 }
 0xb63   :  { %v7607_v61 = vsub.f32 %v7536_v2, %v7536_v2  ;;  %v23409_v2 = vld [vmem:[#allocation26_spill] sm:$0xff] }
 0xb65   :  { %v7608_v35 = vand.u32 4294901760, %v7607_v61 }
 0xba7   :  { %v7032_v20 = vpop.permute.xlu0 %7031 }
 0xba8   :  { %v7034_v51 = vmul.f32 %v7032_v20, %v7017_v30  ;;  %v7609_v30 = vsub.f32 %v7607_v61, %v7608_v35  ;;  %v23400_v20 = vld [vmem:[#allocation18_spill] sm:$0xff] }
 0xbaa   :  { %8518 = vrot.lane.b32.xlu1 %v7034_v51, %s20111_s6  ;;  %v7610_v4 = vand.u32 4294901760, %v7609_v30  ;;  %v23411_v30 = vld [vmem:[#allocation31_spill] sm:$0xff] }
 0xbd1   :  { %v7047_v26 = vpop.permute.xlu1 %7046 }
 0xbd2   :  { %v7048_v46 = vsel %vm64_vm11, %v7047_v26, 0  ;;  %v23401_v26 = vld [vmem:[#allocation20_spill] sm:$0xff] }
 0xbd3   :  { %v21448_v23 = vand.u32 4294901760, %v7048_v46 }
 0xbd5   :  { %v21451_v3 = vsub.f32 %v7048_v46, %v21448_v23  ;;  %18663 = vmatmul.mubr.f32.vlgmr.msra.gmra.mxu1 %v21448_v23  ;;  %v23402_v46 = vld [vmem:[#allocation36_spill] sm:$0xff] }
 0xbd6   :  { %18677 = vmatpush3.msra.mxu1 %v20147_v5  ;;  %18684 = vmatprep.mubr.msk.f32.mxu1 %vm20108_vm0, %v23333_v21 }
 0xbd7   :  { %18678 = vmatprep.subr.mxu1 %v23333_v21  ;;  %v21459_v1 = vand.u32 4294901760, %v21451_v3 }
 0xbd8   :  { %18679 = vmatpush3.msra.mxu1 %v20149_v6 }
 0xbd9   :  { %18680 = vmatprep.subr.mxu1 %v23333_v21  ;;  %v7122_v22 = vsub.f32 %v21451_v3, %v21459_v1 }
 0xbda   :  { %18681 = vmatpush3.msra.mxu1 %v20151_v7 }
 0xbdb   :  { %18682 = vmatprep.subr.mxu1 %v23333_v21  ;;  %v21468_v8 = vand.u32 4294901760, %v7122_v22  ;;  %v23405_v22 = vld [vmem:[#allocation23_spill] sm:$0xff] }
 0xbdc   :  { %18683 = vmatpush3.msra.mxu1 %v20157_v9 }
 0xbdd   :  { %18685 = vmatmul.mubr.f32.vlgmr.msra.gmra.mxu1 %v21459_v1  ;;  %18698 = vmatprep.subr.mxu1 %v23333_v21 }
 0xbde   :  { %18652 = vmatmul.mubr.f32.vlgmr.msra.gmra.mxu0 %v21468_v8  ;;  %18699 = vmatpush3.msra.mxu1 %v20147_v5 }
 0xbdf   :  { %18666 = vmatpush3.msra.mxu0 %v20165_v10  ;;  %18700 = vmatprep.subr.mxu1 %v23333_v21 }
 0xbe0   :  { %18667 = vmatprep.subr.mxu0 %v23333_v21  ;;  %18701 = vmatpush3.msra.mxu1 %v20149_v6 }
 0xbe1   :  { %18668 = vmatpush3.msra.mxu0 %v20168_v11  ;;  %18702 = vmatprep.subr.mxu1 %v23333_v21 }
 0xbe2   :  { %18669 = vmatprep.subr.mxu0 %v23333_v21  ;;  %18703 = vmatpush3.msra.mxu1 %v20151_v7 }
 0xbe3   :  { %18670 = vmatpush3.msra.mxu0 %v20171_v12  ;;  %18704 = vmatprep.subr.mxu1 %v23333_v21 }
 0xbe4   :  { %18671 = vmatprep.subr.mxu0 %v23333_v21  ;;  %18673 = vmatprep.mubr.msk.f32.mxu0 %vm20108_vm0, %v23333_v21 }
 0xbe5   :  { %18672 = vmatpush3.msra.mxu0 %v20175_v13  ;;  %18705 = vmatpush3.msra.mxu1 %v20157_v9 }
 0xbe6   :  { %18706 = vmatprep.mubr.msk.f32.mxu1 %vm20108_vm0, %v23333_v21  ;;  %18674 = vmatmul.mubr.f32.vlgmr.msra.gmra.mxu0 %v21451_v3 }
 0xbe7   :  { %18687 = vmatprep.subr.mxu0 %v23333_v21  ;;  %18707 = vmatmul.mubr.f32.vlgmr.msra.gmra.mxu1 %v21448_v23 }
 0xbe8   :  { %18718 = vmatprep.subr.mxu1 %v23333_v21  ;;  %18688 = vmatpush3.msra.mxu0 %v20181_v15 }
 0xbe9   :  { %18719 = vmatpush3.msra.mxu1 %v20322_v50  ;;  %18689 = vmatprep.subr.mxu0 %v23333_v21 }
 0xbea   :  { %18720 = vmatprep.subr.mxu1 %v23333_v21  ;;  %18690 = vmatpush3.msra.mxu0 %v20184_v16 }
 0xbeb   :  { %18721 = vmatpush3.msra.mxu1 %v20330_v53  ;;  %18691 = vmatprep.subr.mxu0 %v23333_v21 }
 0xbec   :  { %18722 = vmatprep.subr.mxu1 %v23333_v21  ;;  %18692 = vmatpush3.msra.mxu0 %v20187_v17 }
 0xbed   :  { %18723 = vmatpush3.msra.mxu1 %v20337_v54  ;;  %18693 = vmatprep.subr.mxu0 %v23333_v21 }
 0xbee   :  { %18724 = vmatprep.mubr.msk.f32.mxu1 %vm20108_vm0, %v23333_v21  ;;  %18736 = vmatprep.subr.mxu1 %v23333_v21 }
 0xbef   :  { %18694 = vmatpush3.msra.mxu0 %v20191_v18  ;;  %18695 = vmatprep.mubr.msk.f32.mxu0 %vm20108_vm0, %v23333_v21 }
 0xbf0   :  { %18725 = vmatmul.mubr.msk.f32.vlgmr.msra.gmra.mxu1 %vm553_vm7, %v21489_v0  ;;  %18696 = vmatmul.mubr.f32.vlgmr.msra.gmra.mxu0 %v21448_v23 }
 0xbf1   :  { %18737 = vmatpush3.msra.mxu1 %v20249_v34  ;;  %18709 = vmatprep.subr.mxu0 %v23333_v21 }
 0xbf2   :  { %18738 = vmatprep.subr.mxu1 %v23333_v21  ;;  %18710 = vmatpush3.msra.mxu0 %v20249_v34 }
 0xbf3   :  { %18739 = vmatpush3.msra.mxu1 %v20259_v36  ;;  %18711 = vmatprep.subr.mxu0 %v23333_v21 }
 0xbf4   :  { %18740 = vmatprep.subr.mxu1 %v23333_v21  ;;  %18712 = vmatpush3.msra.mxu0 %v20259_v36 }
 0xbf5   :  { %18741 = vmatpush3.msra.mxu1 %v20267_v38  ;;  %18713 = vmatprep.subr.mxu0 %v23333_v21 }
 0xbf6   :  { %18742 = vmatprep.mubr.msk.f32.mxu1 %vm20108_vm0, %v23333_v21  ;;  %18754 = vmatprep.subr.mxu1 %v23333_v21 }
 0xbf7   :  { %18714 = vmatpush3.msra.mxu0 %v20267_v38  ;;  %18715 = vmatprep.mubr.msk.f32.mxu0 %vm20108_vm0, %v23333_v21 }
 0xbf8   :  { %18743 = vmatmul.mubr.f32.vlgmr.msra.gmra.mxu1 %v7608_v35  ;;  %18716 = vmatmul.mubr.f32.vlgmr.msra.gmra.mxu0 %v7610_v4  ;;  %v23412_v4 = vld [vmem:[#allocation27_spill] sm:$0xff] }
 0xbf9   :  { %18755 = vmatpush3.msra.mxu1 %v20249_v34  ;;  %18727 = vmatprep.subr.mxu0 %v23333_v21 }
 0xbfa   :  { %18756 = vmatprep.subr.mxu1 %v23333_v21  ;;  %18728 = vmatpush3.msra.mxu0 %v20270_v39 }
 0xbfb   :  { %18757 = vmatpush3.msra.mxu1 %v20259_v36  ;;  %18729 = vmatprep.subr.mxu0 %v23333_v21 }
 0xbfc   :  { %18758 = vmatprep.subr.mxu1 %v23333_v21  ;;  %18730 = vmatpush3.msra.mxu0 %v20279_v41 }
 0xbfd   :  { %18759 = vmatpush3.msra.mxu1 %v20267_v38  ;;  %18731 = vmatprep.subr.mxu0 %v23333_v21 }
 0xbfe   :  { %18760 = vmatprep.mubr.msk.f32.mxu1 %vm20108_vm0, %v23333_v21  ;;  %18774 = vmatprep.subr.mxu1 %v23333_v21 }
 0xbff   :  { %18732 = vmatpush3.msra.mxu0 %v20290_v43  ;;  %18733 = vmatprep.mubr.msk.f32.mxu0 %vm20108_vm0, %v23333_v21 }
 0xc00   :  { %18761 = vmatmul.mubr.msk.f32.vlgmr.msra.gmra.mxu1 %vm553_vm7, %v21489_v0  ;;  %18734 = vmatmul.mubr.f32.vlgmr.msra.gmra.mxu0 %v7607_v61  ;;  %v23410_v61 = vld [vmem:[#allocation28_spill] sm:$0xff] }
 0xc01   :  { %18775 = vmatpush3.msra.mxu1 %v20583_v37  ;;  %18745 = vmatprep.subr.mxu0 %v23333_v21 }
 0xc02   :  { %18776 = vmatprep.subr.mxu1 %v23333_v21  ;;  %18746 = vmatpush3.msra.mxu0 %v20287_v42 }
 0xc03   :  { %18777 = vmatpush3.msra.mxu1 %v20593_v48  ;;  %18747 = vmatprep.subr.mxu0 %v23333_v21 }
 0xc04   :  { %18778 = vmatprep.subr.mxu1 %v23333_v21  ;;  %18748 = vmatpush3.msra.mxu0 %v20298_v45 }
 0xc05   :  { %18779 = vmatpush3.msra.mxu1 %v20602_v55  ;;  %18749 = vmatprep.subr.mxu0 %v23333_v21 }
 0xc06   :  { %18780 = vmatprep.subr.mxu1 %v23333_v21  ;;  %18750 = vmatpush3.msra.mxu0 %v20308_v47 }
 0xc07   :  { %18751 = vmatprep.mubr.msk.f32.mxu0 %vm20108_vm0, %v23333_v21  ;;  %18781 = vmatpush3.msra.mxu1 %v23391_v31 }
 0xc08   :  { %18782 = vmatprep.mubr.msk.f32.mxu1 %vm20108_vm0, %v23333_v21  ;;  %18752 = vmatmul.mubr.msk.f32.vlgmr.msra.gmra.mxu0 %vm553_vm7, %v21489_v0  ;;  %v23408_v0 = vld [vmem:[#allocation25_spill] sm:$0xff] }
 0xc09   :  { %18763 = vmatprep.subr.mxu0 %v23333_v21  ;;  %18783 = vmatmul.mubr.f32.vlgmr.msra.gmra.mxu1 %v21448_v23 }
 0xc0a   :  { %18796 = vmatprep.subr.mxu1 %v23333_v21  ;;  %18764 = vmatpush3.msra.mxu0 %v23392_v59 }
 0xc0b   :  { %18797 = vmatpush3.msra.mxu1 %v23392_v59  ;;  %18765 = vmatprep.subr.mxu0 %v23333_v21 }
 0xc0c   :  { %18798 = vmatprep.subr.mxu1 %v23333_v21  ;;  %18766 = vmatpush3.msra.mxu0 %v23393_v44 }
 0xc0d   :  { %18799 = vmatpush3.msra.mxu1 %v23393_v44  ;;  %18767 = vmatprep.subr.mxu0 %v23333_v21 }
 0xc0e   :  { %18800 = vmatprep.subr.mxu1 %v23333_v21  ;;  %18768 = vmatpush3.msra.mxu0 %v23394_v60 }
 0xc0f   :  { %18801 = vmatpush3.msra.mxu1 %v23394_v60  ;;  %18769 = vmatprep.subr.mxu0 %v23333_v21 }
 0xc10   :  { %18802 = vmatprep.subr.mxu1 %v23333_v21  ;;  %18770 = vmatpush3.msra.mxu0 %v23395_v58 }
 0xc11   :  { %18771 = vmatprep.mubr.msk.f32.mxu0 %vm20108_vm0, %v23333_v21  ;;  %18803 = vmatpush3.msra.mxu1 %v23395_v58 }
 0xc12   :  { %18804 = vmatprep.mubr.msk.f32.mxu1 %vm20108_vm0, %v23333_v21  ;;  %18772 = vmatmul.mubr.f32.vlgmr.msra.gmra.mxu0 %v21468_v8 }
 0xc13   :  { %18785 = vmatprep.subr.mxu0 %v23333_v21  ;;  %18805 = vmatmul.mubr.f32.vlgmr.msra.gmra.mxu1 %v21459_v1 }
 0xc14   :  { %18818 = vmatprep.subr.mxu1 %v23333_v21  ;;  %18786 = vmatpush3.msra.mxu0 %v23396_v29 }
 0xc15   :  { %18819 = vmatpush3.msra.mxu1 %v23392_v59  ;;  %18787 = vmatprep.subr.mxu0 %v23333_v21 }
 0xc16   :  { %18820 = vmatprep.subr.mxu1 %v23333_v21  ;;  %18788 = vmatpush3.msra.mxu0 %v23397_v24 }
 0xc17   :  { %18821 = vmatpush3.msra.mxu1 %v23393_v44  ;;  %18789 = vmatprep.subr.mxu0 %v23333_v21 }
 0xc18   :  { %18822 = vmatprep.subr.mxu1 %v23333_v21  ;;  %18790 = vmatpush3.msra.mxu0 %v23398_v33 }
 0xc19   :  { %18823 = vmatpush3.msra.mxu1 %v23394_v60  ;;  %18791 = vmatprep.subr.mxu0 %v23333_v21 }
 0xc1a   :  { %18824 = vmatprep.subr.mxu1 %v23333_v21  ;;  %18792 = vmatpush3.msra.mxu0 %v23399_v32 }
 0xc1b   :  { %18793 = vmatprep.mubr.msk.f32.mxu0 %vm20108_vm0, %v23333_v21  ;;  %18825 = vmatpush3.msra.mxu1 %v23395_v58 }
 0xc1c   :  { %18826 = vmatprep.mubr.msk.f32.mxu1 %vm20108_vm0, %v23333_v21  ;;  %18794 = vmatmul.mubr.f32.vlgmr.msra.gmra.mxu0 %v21451_v3  ;;  %v8519_v25 = vpop.permute.xlu1 %8518  ;;  %v23403_v3 = vld [vmem:[#allocation22_spill] sm:$0xff] }
 0xc1d   :  { %18807 = vmatprep.subr.mxu0 %v23333_v21  ;;  %18827 = vmatmul.mubr.f32.vlgmr.msra.gmra.mxu1 %v21448_v23  ;;  %v8520_v40 = vsel %vm64_vm11, %v8519_v25, 0  ;;  %v23413_v25 = vld [vmem:[#allocation29_spill] sm:$0xff] }
 0xc1e   :  { %18808 = vmatpush3.msra.mxu0 %v23400_v20  ;;  %18815 = vmatprep.mubr.msk.f32.mxu0 %vm20108_vm0, %v23333_v21  ;;  %v21629_v51 = vand.u32 4294901760, %v8520_v40 }
 0xc1f   :  { %18809 = vmatprep.subr.mxu0 %v23333_v21  ;;  %18840 = vmatprep.subr.mxu1 %v23333_v21 }
 0xc20   :  { %18810 = vmatpush3.msra.mxu0 %v23401_v26  ;;  %18841 = vmatpush3.msra.mxu1 %v23402_v46  ;;  %v8592_v1 = vsub.f32 %v8520_v40, %v21629_v51  ;;  %v23414_v40 = vld [vmem:[#allocation32_spill] sm:$0xff] }
 0xc21   :  { %18811 = vmatprep.subr.mxu0 %v23333_v21  ;;  %18842 = vmatprep.subr.mxu1 %v23333_v21 }
 0xc22   :  { %18812 = vmatpush3.msra.mxu0 %v23403_v3  ;;  %18843 = vmatpush3.msra.mxu1 %v23404_v28  ;;  %v8593_v8 = vand.u32 4294901760, %v8592_v1 }
 0xc23   :  { %18813 = vmatprep.subr.mxu0 %v23333_v21  ;;  %18844 = vmatprep.subr.mxu1 %v23333_v21 }
 0xc24   :  { %18814 = vmatpush3.msra.mxu0 %v23405_v22  ;;  %18845 = vmatpush3.msra.mxu1 %v23406_v52 }
 0xc25   :  { %18816 = vmatmul.mubr.f32.vlgmr.msra.gmra.mxu0 %v21448_v23  ;;  %18846 = vmatprep.subr.mxu1 %v23333_v21  ;;  %v8594_v23 = vsub.f32 %v8592_v1, %v8593_v8 }
 0xc26   :  { %18847 = vmatpush3.msra.mxu1 %v23407_v27  ;;  %18829 = vmatprep.subr.mxu0 %v23333_v21 }
 0xc27   :  { %18848 = vmatprep.mubr.msk.f32.mxu1 %vm20108_vm0, %v23333_v21  ;;  %18862 = vmatprep.subr.mxu1 %v23333_v21  ;;  %v8595_v35 = vand.u32 4294901760, %v8594_v23  ;;  %v23416_v23 = vld [vmem:[#allocation30_spill] sm:$0xff] }
 0xc28   :  { %18830 = vmatpush3.msra.mxu0 %v23408_v0  ;;  %18849 = vmatmul.mubr.f32.vlgmr.msra.gmra.mxu1 %v21629_v51 }
 0xc29   :  { %18863 = vmatpush3.msra.mxu1 %v23408_v0  ;;  %18831 = vmatprep.subr.mxu0 %v23333_v21 }
 0xc2a   :  { %18864 = vmatprep.subr.mxu1 %v23333_v21  ;;  %18832 = vmatpush3.msra.mxu0 %v23409_v2 }
 0xc2b   :  { %18865 = vmatpush3.msra.mxu1 %v23409_v2  ;;  %18833 = vmatprep.subr.mxu0 %v23333_v21 }
 0xc2c   :  { %18866 = vmatprep.subr.mxu1 %v23333_v21  ;;  %18834 = vmatpush3.msra.mxu0 %v23410_v61 }
 0xc2d   :  { %18867 = vmatpush3.msra.mxu1 %v23410_v61  ;;  %18835 = vmatprep.subr.mxu0 %v23333_v21 }
 0xc2e   :  { %18868 = vmatprep.subr.mxu1 %v23333_v21  ;;  %18836 = vmatpush3.msra.mxu0 %v23411_v30 }
 0xc2f   :  { %18869 = vmatpush3.msra.mxu1 %v23411_v30  ;;  %18870 = vmatprep.mubr.msk.f32.mxu1 %vm20108_vm0, %v23333_v21 }
 0xc30   :  { %18837 = vmatprep.mubr.msk.f32.mxu0 %vm20108_vm0, %v23333_v21  ;;  %18851 = vmatprep.subr.mxu0 %v23333_v21 }
 0xc31   :  { %18871 = vmatmul.mubr.f32.vlgmr.msra.gmra.mxu1 %v8593_v8  ;;  %18884 = vmatprep.subr.mxu1 %v23333_v21  ;;  %v23415_v8 = vld [vmem:[#allocation35_spill] sm:$0xff] }
 0xc32   :  { %18838 = vmatmul.mubr.f32.vlgmr.msra.gmra.mxu0 %v8595_v35  ;;  %18885 = vmatpush3.msra.mxu1 %v23408_v0  ;;  %v23417_v35 = vld [vmem:[#allocation33_spill] sm:$0xff] }
 0xc33   :  { %18852 = vmatpush3.msra.mxu0 %v23412_v4  ;;  %18886 = vmatprep.subr.mxu1 %v23333_v21 }
 0xc34   :  { %18853 = vmatprep.subr.mxu0 %v23333_v21  ;;  %18887 = vmatpush3.msra.mxu1 %v23409_v2 }
 0xc35   :  { %18854 = vmatpush3.msra.mxu0 %v23413_v25  ;;  %18888 = vmatprep.subr.mxu1 %v23333_v21  ;;  %v23422_v25 = vld [vmem:[#allocation10_spill] sm:$0xff] }
 0xc36   :  { %18855 = vmatprep.subr.mxu0 %v23333_v21  ;;  %18889 = vmatpush3.msra.mxu1 %v23410_v61 }
 0xc37   :  { %18856 = vmatpush3.msra.mxu0 %v23414_v40  ;;  %18890 = vmatprep.subr.mxu1 %v23333_v21  ;;  %v23420_v40 = vld [vmem:[#allocation9_spill] sm:$0xff] }
 0xc38   :  { %18857 = vmatprep.subr.mxu0 %v23333_v21  ;;  %18859 = vmatprep.mubr.msk.f32.mxu0 %vm20108_vm0, %v23333_v21 }
 0xc39   :  { %18858 = vmatpush3.msra.mxu0 %v23415_v8  ;;  %18891 = vmatpush3.msra.mxu1 %v23411_v30  ;;  %v23418_v8 = vld [vmem:[#allocation8_spill] sm:$0xff] }
 0xc3a   :  { %18892 = vmatprep.mubr.msk.f32.mxu1 %vm20108_vm0, %v23333_v21  ;;  %18860 = vmatmul.mubr.f32.vlgmr.msra.gmra.mxu0 %v8592_v1  ;;  %v23419_v1 = vld [vmem:[#allocation34_spill] sm:$0xff] }
 0xc3b   :  { %18873 = vmatprep.subr.mxu0 %v23333_v21  ;;  %18893 = vmatmul.mubr.f32.vlgmr.msra.gmra.mxu1 %v21629_v51 }
 0xc3c   :  { %18874 = vmatpush3.msra.mxu0 %v23416_v23  ;;  %18881 = vmatprep.mubr.msk.f32.mxu0 %vm20108_vm0, %v23333_v21  ;;  %v23421_v23 = vld [vmem:[#allocation37_spill] sm:$0xff] }
 0xc3d   :  { %18875 = vmatprep.subr.mxu0 %v23333_v21  ;;  %18906 = vmatprep.subr.mxu1 %v23333_v21 }
 0xc3e   :  { %18876 = vmatpush3.msra.mxu0 %v23417_v35  ;;  %18907 = vmatpush3.msra.mxu1 %v23418_v8  ;;  %v23423_v8 = vld [vmem:[#allocation11_spill] sm:$0xff] }
 0xc3f   :  { %18877 = vmatprep.subr.mxu0 %v23333_v21  ;;  %18908 = vmatprep.subr.mxu1 %v23333_v21 }
 0xc40   :  { %18878 = vmatpush3.msra.mxu0 %v23419_v1  ;;  %18909 = vmatpush3.msra.mxu1 %v23420_v40 }
 0xc41   :  { %18879 = vmatprep.subr.mxu0 %v23333_v21  ;;  %18910 = vmatprep.subr.mxu1 %v23333_v21 }
 0xc42   :  { %18880 = vmatpush3.msra.mxu0 %v23421_v23  ;;  %18911 = vmatpush3.msra.mxu1 %v23422_v25 }
 0xc43   :  { %18882 = vmatmul.mubr.f32.vlgmr.msra.gmra.mxu0 %v21629_v51  ;;  %18912 = vmatprep.subr.mxu1 %v23333_v21 }
 0xc44   :  { %18913 = vmatpush3.msra.mxu1 %v23423_v8  ;;  %18895 = vmatprep.subr.mxu0 %v23333_v21 }
 0xc45   :  { %18914 = vmatprep.mubr.msk.f32.mxu1 %vm20108_vm0, %v23333_v21  ;;  %18928 = vmatprep.subr.mxu1 %v23333_v21 }
 0xc46   :  { %18896 = vmatpush3.msra.mxu0 %v20147_v5  ;;  %18903 = vmatprep.mubr.msk.f32.mxu0 %vm20108_vm0, %v23333_v21 }
 0xc47   :  { %18897 = vmatprep.subr.mxu0 %v23333_v21 }
 0xc48   :  { %18898 = vmatpush3.msra.mxu0 %v20149_v6 }
 0xc49   :  { %18899 = vmatprep.subr.mxu0 %v23333_v21 }
 0xc4a   :  { %18900 = vmatpush3.msra.mxu0 %v20151_v7 }
 0xc4b   :  { %18901 = vmatprep.subr.mxu0 %v23333_v21 }
 0xc4c   :  { %18902 = vmatpush3.msra.mxu0 %v20157_v9 }
 0xc4d   :  { %18917 = vmatprep.subr.mxu0 %v23333_v21 }
 0xc95   :  { %v7216_v51 = vpop.f32.mrf.mxu1 }
 0xc97   :  { %v18664_v8 = vpop.f32.mrf.mxu1 }
 0xc9d   :  { %v7373_v25 = vpop.f32.mrf.mxu1 }
 0xc9e   :  { %v7125_v23 = vpop.f32.mrf.mxu0 }
 0xc9f   :  { %v18686_v40 = vpop.f32.mrf.mxu1  ;;  %v7217_v2 = vadd.f32 %v7216_v51, %v7125_v23 }
 0xca0   :  { %v18653_v1 = vpop.f32.mrf.mxu0 }
 0xca6   :  { %v7296_v35 = vpop.f32.mrf.mxu0 }
 0xca7   :  { %v7531_v4 = vpop.f32.mrf.mxu1  ;;  %v7297_v52 = vadd.f32 %v7296_v35, %v7217_v2 }
 0xca8   :  { %v18675_v30 = vpop.f32.mrf.mxu0 }
 0xca9   :  { %v18708_v61 = vpop.f32.mrf.mxu1  ;;  %v7374_v3 = vadd.f32 %v7373_v25, %v7297_v52 }
 0xcb0   :  { %v7456_v0 = vpop.f32.mrf.mxu0  ;;  %v7698_v27 = vpop.f32.mrf.mxu1 }
 0xcb1   :  { %v7457_v46 = vadd.f32 %v7456_v0, %v7374_v3 }
 0xcb2   :  { %v18697_v22 = vpop.f32.mrf.mxu0  ;;  %v18726_v28 = vpop.f32.mrf.mxu1 }
 0xcb3   :  { %v7532_v33 = vadd.f32 %v7531_v4, %v7457_v46 }
 0xcb8   :  { %v7612_v26 = vpop.f32.mrf.mxu0  ;;  %v7852_v20 = vpop.f32.mrf.mxu1 }
 0xcb9   :  { %v7613_v24 = vadd.f32 %v7612_v26, %v7532_v33 }
 0xcba   :  { %v18717_v32 = vpop.f32.mrf.mxu0  ;;  %v18744_v8 = vpop.f32.mrf.mxu1 }
 0xcbb   :  { %v7699_v29 = vadd.f32 %v7698_v27, %v7613_v24 }
 0xcc0   :  { %v7776_v40 = vpop.f32.mrf.mxu0  ;;  %v8006_v1 = vpop.f32.mrf.mxu1 }
 0xcc1   :  { %v7777_v61 = vadd.f32 %v7776_v40, %v7699_v29 }
 0xcc2   :  { %v18735_v58 = vpop.f32.mrf.mxu0  ;;  %v18762_v30 = vpop.f32.mrf.mxu1 }
 0xcc3   :  { %v7853_v23 = vadd.f32 %v7852_v20, %v7777_v61 }
 0xcc8   :  { %v7932_v51 = vpop.f32.mrf.mxu0 }
 0xcc9   :  { %v7933_v60 = vadd.f32 %v7932_v51, %v7853_v23  ;;  %v8198_v2 = vpop.f32.mrf.mxu1 }
 0xcca   :  { %v18753_v22 = vpop.f32.mrf.mxu0 }
 0xccb   :  { %v8007_v28 = vadd.f32 %v8006_v1, %v7933_v60  ;;  %v18784_v52 = vpop.f32.mrf.mxu1 }
 0xccd   :  { %v8010_v3 = vmul.f32 %v8007_v28, %v20414_v56 }
 0xccf   :  { %20029 = vtanh.f32 %v8010_v3 }
 0xcd2   :  { %v8107_v32 = vpop.f32.mrf.mxu0 }
 0xcd3   :  { %v8355_v0 = vpop.f32.mrf.mxu1  ;;  %v8108_v51 = vadd.f32 %v21426_v62, %v8107_v32 }
 0xcd4   :  { %v18773_v46 = vpop.f32.mrf.mxu0 }
 0xcd5   :  { %v18806_v33 = vpop.f32.mrf.mxu1  ;;  %v8199_v22 = vadd.f32 %v8198_v2, %v8108_v51 }
 0xcdc   :  { %v20030_v26 = vpop.eup %20029  ;;  %v8278_v4 = vpop.f32.mrf.mxu0 }
 0xcdd   :  { %v8513_v24 = vpop.f32.mrf.mxu1  ;;  %v8012_v58 = vmul.f32 0.5, %v20030_v26  ;;  %v8279_v3 = vadd.f32 %v8278_v4, %v8199_v22 }
 0xcde   :  { %v18795_v27 = vpop.f32.mrf.mxu0 }
 0xcdf   :  { %v18828_v29 = vpop.f32.mrf.mxu1  ;;  %v8013_v20 = vadd.f32 0.5, %v8012_v58  ;;  %v8356_v27 = vadd.f32 %v8355_v0, %v8279_v3 }
 0xce1   :  { %v8014_v25 = vsel %vm20408_vm10, %v20030_v26, %v8013_v20 }
 0xce2   :  { %8017 = vrot.lane.b32.xlu0 %v8014_v25, %s20110_s5 }
 0xce5   :  { %v8438_v60 = vpop.f32.mrf.mxu0 }
 0xce6   :  { %v8439_v29 = vadd.f32 %v8438_v60, %v8356_v27 }
 0xce7   :  { %v18817_v35 = vpop.f32.mrf.mxu0 }
 0xce8   :  { %v8688_v8 = vpop.f32.mrf.mxu1  ;;  %v8514_v59 = vadd.f32 %v8513_v24, %v8439_v29 }
 0xcea   :  { %v18850_v40 = vpop.f32.mrf.mxu1 }
 0xcf1   :  { %v8845_v1 = vpop.f32.mrf.mxu1 }
 0xcf2   :  { %v8597_v30 = vpop.f32.mrf.mxu0 }
 0xcf3   :  { %v18872_v61 = vpop.f32.mrf.mxu1  ;;  %v8689_v46 = vadd.f32 %v8688_v8, %v8597_v30 }
 0xcf4   :  { %v18839_v23 = vpop.f32.mrf.mxu0 }
 0xcfa   :  { %v8768_v28 = vpop.f32.mrf.mxu0 }
 0xcfb   :  { %v9003_v52 = vpop.f32.mrf.mxu1  ;;  %v8769_v26 = vadd.f32 %v8768_v28, %v8689_v46 }
 0xcfc   :  { %v18861_v33 = vpop.f32.mrf.mxu0 }
 0xcfd   :  { %v18894_v58 = vpop.f32.mrf.mxu1  ;;  %v8846_v20 = vadd.f32 %v8845_v1, %v8769_v26 }
 0xd03   :  { %v8928_v35 = vpop.f32.mrf.mxu0 }
 0xd04   :  { %v8929_v44 = vadd.f32 %v8928_v35, %v8846_v20  ;;  %v9036_v20 = vstv %s16738_s10 }
 0xd05   :  { %v18883_v40 = vpop.f32.mrf.mxu0  ;;  %vm9037_vm8 = vcmp.eq.s32.totalorder %v20193_v19, %v9036_v20 }
 0xd06   :  { %v9004_v31 = vadd.f32 %v9003_v52, %v8929_v44  ;;  %vm9038_vm9 = vmand %vm59_vm4, %vm9037_vm8 }
 0xd08   :  { %v9007_v61 = vadd.f32 %v9004_v31, %v8514_v59  ;;  %v8015_v31 = vmul.f32 %v8014_v25, %v21436_v63 }
 0xd0a   :  { %v9008_v23 = vmul.f32 %v9007_v61, %v20414_v56 }
 0xd0c   :  { %20031 = vtanh.f32 %v9008_v23 }
 0xd19   :  { %v20032_v62 = vpop.eup %20031 }
 0xd1a   :  { %v9010_v2 = vmul.f32 0.5, %v20032_v62 }
 0xd1c   :  { %v9011_v32 = vadd.f32 0.5, %v9010_v2 }
 0xd1e   :  { %v9012_v4 = vsel %vm20408_vm10, %v20032_v62, %v9011_v32 }
 0xd1f   :  { %9015 = vrot.lane.b32.xlu0 %v9012_v4, %s20110_s5  ;;  %v9013_v30 = vmul.f32 %v9012_v4, %v21441_v57 }
 0xd54   :  { %v8018_v0 = vpop.permute.xlu0 %8017 }
 0xd55   :  { %v8020_v60 = vmul.f32 %v8018_v0, %v8014_v25  ;;  %v23424_v0 = vld [vmem:[#allocation24_spill] sm:$0xff] }
 0xd57   :  { %8022 = vrot.lane.b32.xlu1 %v8020_v60, %s20111_s6  ;;  %v23425_v60 = vld [vmem:[#allocation12_spill] sm:$0xff] }
 0xd91   :  { %v9016_v8 = vpop.permute.xlu0 %9015 }
 0xd92   :  { %v9018_v1 = vmul.f32 %v9016_v8, %v9012_v4  ;;  %v23426_v8 = vld [vmem:[#allocation13_spill] sm:$0xff] }
 0xd94   :  { %9020 = vrot.lane.b32.xlu0 %v9018_v1, %s20111_s6  ;;  %v23427_v1 = vld [vmem:[#allocation15_spill] sm:$0xff] }
 0xdc9   :  { %v8023_v59 = vpop.permute.xlu1 %8022 }
 0xdca   :  { %v21736_v44 = vadd.f32 %v8023_v59, %v8015_v31  ;;  %v23428_v31 = vld [vmem:[#allocation17_spill] sm:$0xff]  ;;  %v23429_v59 = vld [vmem:[#allocation14_spill] sm:$0xff] }
 0xdcc   :  { %20033 = vtanh.f32 %v21736_v44 }
 0xdd9   :  { %v20034_v24 = vpop.eup %20033 }
 0xdda   :  { %8028 = vrot.lane.b32.xlu1 %v20034_v24, %s20110_s5  ;;  %v23430_v24 = vld [vmem:[#allocation16_spill] sm:$0xff] }
 0xe06   :  { %v9021_v51 = vpop.permute.xlu0 %9020 }
 0xe07   :  { %v21741_v22 = vadd.f32 %v9021_v51, %v9013_v30  ;;  %v23431_v30 = vld [vmem:[#allocation19_spill] sm:$0xff] }
 0xe09   :  { %20035 = vtanh.f32 %v21741_v22 }
 0xe16   :  { %v20036_v28 = vpop.eup %20035 }
 0xe17   :  { %9026 = vrot.lane.b32.xlu0 %v20036_v28, %s20110_s5  ;;  %v23432_v28 = vld [vmem:[#allocation21_spill] sm:$0xff] }
 0xe4c   :  { %v8029_v52 = vpop.permute.xlu1 %8028 }
 0xe4d   :  { %v8031_v63 = vmul.f32 %v8029_v52, %v8014_v25  ;;  %v9031_v25 = vstv %s16737_s9 }
 0xe4e   :  { %vm9032_vm5 = vcmp.eq.s32.totalorder %v20193_v19, %v9031_v25 }
 0xe4f   :  { %9041 = vrot.lane.b32.xlu1 %v8031_v63, %s20111_s6  ;;  %vm9033_vm6 = vmand %vm53_vm1, %vm9032_vm5  ;;  %v23433_v63 = vld [vmem:[#allocation18_spill] sm:$0xff] }
 0xe50   :  { %v9034_v40 = vsel %vm9033_vm6, 1.0, %v23333_v21 }
 0xe51   :  { %v21789_v61 = vsel %vm9038_vm9, 1.0, %v9034_v40  ;;  %v23441_v40 = vld [vmem:[#allocation25_spill] sm:$0xff] }
 0xe52   :  { %v9531_v23 = vsel %vm553_vm7, %v21789_v61, 0 }
 0xe53   :  { %v9602_v62 = vsub.f32 %v9531_v23, %v9531_v23  ;;  %v23443_v23 = vld [vmem:[#allocation28_spill] sm:$0xff] }
 0xe55   :  { %v9603_v2 = vand.u32 4294901760, %v9602_v62 }
 0xe57   :  { %v9604_v32 = vsub.f32 %v9602_v62, %v9603_v2 }
 0xe89   :  { %v9027_v3 = vpop.permute.xlu0 %9026 }
 0xe8a   :  { %v9029_v46 = vmul.f32 %v9027_v3, %v9012_v4  ;;  %v9605_v4 = vand.u32 4294901760, %v9604_v32  ;;  %v23445_v32 = vld [vmem:[#allocation27_spill] sm:$0xff] }
 0xe8c   :  { %10513 = vrot.lane.b32.xlu1 %v9029_v46, %s20111_s6  ;;  %v23434_v46 = vld [vmem:[#allocation20_spill] sm:$0xff] }
 0xec1   :  { %v9042_v33 = vpop.permute.xlu1 %9041 }
 0xec2   :  { %v9043_v57 = vsel %vm64_vm11, %v9042_v33, 0  ;;  %v23435_v33 = vld [vmem:[#allocation36_spill] sm:$0xff] }
 0xec3   :  { %v21748_v58 = vand.u32 4294901760, %v9043_v57 }
 0xec5   :  { %v21751_v26 = vsub.f32 %v9043_v57, %v21748_v58  ;;  %18915 = vmatmul.mubr.f32.vlgmr.msra.gmra.mxu1 %v21748_v58  ;;  %v23436_v57 = vld [vmem:[#allocation22_spill] sm:$0xff] }
 0xec6   :  { %18929 = vmatpush3.msra.mxu1 %v20147_v5  ;;  %18936 = vmatprep.mubr.msk.f32.mxu1 %vm20108_vm0, %v23333_v21 }
 0xec7   :  { %18930 = vmatprep.subr.mxu1 %v23333_v21  ;;  %v21759_v27 = vand.u32 4294901760, %v21751_v26 }
 0xec8   :  { %18931 = vmatpush3.msra.mxu1 %v20149_v6 }
 0xec9   :  { %18932 = vmatprep.subr.mxu1 %v23333_v21  ;;  %v9117_v29 = vsub.f32 %v21751_v26, %v21759_v27 }
 0xeca   :  { %18933 = vmatpush3.msra.mxu1 %v20151_v7 }
 0xecb   :  { %18934 = vmatprep.subr.mxu1 %v23333_v21  ;;  %v21768_v35 = vand.u32 4294901760, %v9117_v29  ;;  %v23439_v29 = vld [vmem:[#allocation39_spill] sm:$0xff] }
 0xecc   :  { %18935 = vmatpush3.msra.mxu1 %v20157_v9 }
 0xecd   :  { %18937 = vmatmul.mubr.f32.vlgmr.msra.gmra.mxu1 %v21759_v27  ;;  %18950 = vmatprep.subr.mxu1 %v23333_v21 }
 0xece   :  { %18904 = vmatmul.mubr.f32.vlgmr.msra.gmra.mxu0 %v21768_v35  ;;  %18951 = vmatpush3.msra.mxu1 %v20147_v5 }
 0xecf   :  { %18918 = vmatpush3.msra.mxu0 %v20165_v10  ;;  %18952 = vmatprep.subr.mxu1 %v23333_v21 }
 0xed0   :  { %18919 = vmatprep.subr.mxu0 %v23333_v21  ;;  %18953 = vmatpush3.msra.mxu1 %v20149_v6 }
 0xed1   :  { %18920 = vmatpush3.msra.mxu0 %v20168_v11  ;;  %18954 = vmatprep.subr.mxu1 %v23333_v21 }
 0xed2   :  { %18921 = vmatprep.subr.mxu0 %v23333_v21  ;;  %18955 = vmatpush3.msra.mxu1 %v20151_v7 }
 0xed3   :  { %18922 = vmatpush3.msra.mxu0 %v20171_v12  ;;  %18956 = vmatprep.subr.mxu1 %v23333_v21 }
 0xed4   :  { %18923 = vmatprep.subr.mxu0 %v23333_v21  ;;  %18925 = vmatprep.mubr.msk.f32.mxu0 %vm20108_vm0, %v23333_v21 }
 0xed5   :  { %18924 = vmatpush3.msra.mxu0 %v20175_v13  ;;  %18957 = vmatpush3.msra.mxu1 %v20157_v9 }
 0xed6   :  { %18958 = vmatprep.mubr.msk.f32.mxu1 %vm20108_vm0, %v23333_v21  ;;  %18926 = vmatmul.mubr.f32.vlgmr.msra.gmra.mxu0 %v21751_v26 }
 0xed7   :  { %18939 = vmatprep.subr.mxu0 %v23333_v21  ;;  %18959 = vmatmul.mubr.f32.vlgmr.msra.gmra.mxu1 %v21748_v58 }
 0xed8   :  { %18970 = vmatprep.subr.mxu1 %v23333_v21  ;;  %18940 = vmatpush3.msra.mxu0 %v20181_v15 }
 0xed9   :  { %18971 = vmatpush3.msra.mxu1 %v20322_v50  ;;  %18941 = vmatprep.subr.mxu0 %v23333_v21 }
 0xeda   :  { %18972 = vmatprep.subr.mxu1 %v23333_v21  ;;  %18942 = vmatpush3.msra.mxu0 %v20184_v16 }
 0xedb   :  { %18973 = vmatpush3.msra.mxu1 %v20330_v53  ;;  %18943 = vmatprep.subr.mxu0 %v23333_v21 }
 0xedc   :  { %18974 = vmatprep.subr.mxu1 %v23333_v21  ;;  %18944 = vmatpush3.msra.mxu0 %v20187_v17 }
 0xedd   :  { %18975 = vmatpush3.msra.mxu1 %v20337_v54  ;;  %18945 = vmatprep.subr.mxu0 %v23333_v21 }
 0xede   :  { %18976 = vmatprep.mubr.msk.f32.mxu1 %vm20108_vm0, %v23333_v21  ;;  %18988 = vmatprep.subr.mxu1 %v23333_v21 }
 0xedf   :  { %18946 = vmatpush3.msra.mxu0 %v20191_v18  ;;  %18947 = vmatprep.mubr.msk.f32.mxu0 %vm20108_vm0, %v23333_v21 }
 0xee0   :  { %18977 = vmatmul.mubr.msk.f32.vlgmr.msra.gmra.mxu1 %vm553_vm7, %v21789_v61  ;;  %18948 = vmatmul.mubr.f32.vlgmr.msra.gmra.mxu0 %v21748_v58 }
 0xee1   :  { %18989 = vmatpush3.msra.mxu1 %v20249_v34  ;;  %18961 = vmatprep.subr.mxu0 %v23333_v21 }
 0xee2   :  { %18990 = vmatprep.subr.mxu1 %v23333_v21  ;;  %18962 = vmatpush3.msra.mxu0 %v20249_v34 }
 0xee3   :  { %18991 = vmatpush3.msra.mxu1 %v20259_v36  ;;  %18963 = vmatprep.subr.mxu0 %v23333_v21 }
 0xee4   :  { %18992 = vmatprep.subr.mxu1 %v23333_v21  ;;  %18964 = vmatpush3.msra.mxu0 %v20259_v36 }
 0xee5   :  { %18993 = vmatpush3.msra.mxu1 %v20267_v38  ;;  %18965 = vmatprep.subr.mxu0 %v23333_v21 }
 0xee6   :  { %18994 = vmatprep.mubr.msk.f32.mxu1 %vm20108_vm0, %v23333_v21  ;;  %19006 = vmatprep.subr.mxu1 %v23333_v21 }
 0xee7   :  { %18966 = vmatpush3.msra.mxu0 %v20267_v38  ;;  %18967 = vmatprep.mubr.msk.f32.mxu0 %vm20108_vm0, %v23333_v21 }
 0xee8   :  { %18995 = vmatmul.mubr.f32.vlgmr.msra.gmra.mxu1 %v9603_v2  ;;  %18968 = vmatmul.mubr.f32.vlgmr.msra.gmra.mxu0 %v9605_v4  ;;  %v23444_v2 = vld [vmem:[#allocation31_spill] sm:$0xff]  ;;  %v23446_v4 = vld [vmem:[#allocation29_spill] sm:$0xff] }
 0xee9   :  { %19007 = vmatpush3.msra.mxu1 %v20249_v34  ;;  %18979 = vmatprep.subr.mxu0 %v23333_v21 }
 0xeea   :  { %19008 = vmatprep.subr.mxu1 %v23333_v21  ;;  %18980 = vmatpush3.msra.mxu0 %v20270_v39 }
 0xeeb   :  { %19009 = vmatpush3.msra.mxu1 %v20259_v36  ;;  %18981 = vmatprep.subr.mxu0 %v23333_v21 }
 0xeec   :  { %19010 = vmatprep.subr.mxu1 %v23333_v21  ;;  %18982 = vmatpush3.msra.mxu0 %v20279_v41 }
 0xeed   :  { %19011 = vmatpush3.msra.mxu1 %v20267_v38  ;;  %18983 = vmatprep.subr.mxu0 %v23333_v21 }
 0xeee   :  { %19012 = vmatprep.mubr.msk.f32.mxu1 %vm20108_vm0, %v23333_v21  ;;  %19026 = vmatprep.subr.mxu1 %v23333_v21 }
 0xeef   :  { %18984 = vmatpush3.msra.mxu0 %v20290_v43  ;;  %18985 = vmatprep.mubr.msk.f32.mxu0 %vm20108_vm0, %v23333_v21 }
 0xef0   :  { %19013 = vmatmul.mubr.msk.f32.vlgmr.msra.gmra.mxu1 %vm553_vm7, %v21789_v61  ;;  %18986 = vmatmul.mubr.f32.vlgmr.msra.gmra.mxu0 %v9602_v62 }
 0xef1   :  { %19027 = vmatpush3.msra.mxu1 %v20583_v37  ;;  %18997 = vmatprep.subr.mxu0 %v23333_v21 }
 0xef2   :  { %19028 = vmatprep.subr.mxu1 %v23333_v21  ;;  %18998 = vmatpush3.msra.mxu0 %v20287_v42 }
 0xef3   :  { %19029 = vmatpush3.msra.mxu1 %v20593_v48  ;;  %18999 = vmatprep.subr.mxu0 %v23333_v21 }
 0xef4   :  { %19030 = vmatprep.subr.mxu1 %v23333_v21  ;;  %19000 = vmatpush3.msra.mxu0 %v20298_v45 }
 0xef5   :  { %19031 = vmatpush3.msra.mxu1 %v20602_v55  ;;  %19001 = vmatprep.subr.mxu0 %v23333_v21 }
 0xef6   :  { %19032 = vmatprep.subr.mxu1 %v23333_v21  ;;  %19002 = vmatpush3.msra.mxu0 %v20308_v47 }
 0xef7   :  { %19003 = vmatprep.mubr.msk.f32.mxu0 %vm20108_vm0, %v23333_v21  ;;  %19033 = vmatpush3.msra.mxu1 %v23424_v0 }
 0xef8   :  { %19034 = vmatprep.mubr.msk.f32.mxu1 %vm20108_vm0, %v23333_v21  ;;  %19004 = vmatmul.mubr.msk.f32.vlgmr.msra.gmra.mxu0 %vm553_vm7, %v21789_v61  ;;  %v23442_v61 = vld [vmem:[#allocation26_spill] sm:$0xff] }
 0xef9   :  { %19015 = vmatprep.subr.mxu0 %v23333_v21  ;;  %19035 = vmatmul.mubr.f32.vlgmr.msra.gmra.mxu1 %v21748_v58 }
 0xefa   :  { %19048 = vmatprep.subr.mxu1 %v23333_v21  ;;  %19016 = vmatpush3.msra.mxu0 %v23425_v60 }
 0xefb   :  { %19049 = vmatpush3.msra.mxu1 %v23425_v60  ;;  %19017 = vmatprep.subr.mxu0 %v23333_v21 }
 0xefc   :  { %19050 = vmatprep.subr.mxu1 %v23333_v21  ;;  %19018 = vmatpush3.msra.mxu0 %v23426_v8 }
 0xefd   :  { %19051 = vmatpush3.msra.mxu1 %v23426_v8  ;;  %19019 = vmatprep.subr.mxu0 %v23333_v21 }
 0xefe   :  { %19052 = vmatprep.subr.mxu1 %v23333_v21  ;;  %19020 = vmatpush3.msra.mxu0 %v23427_v1  ;;  %v10514_v51 = vpop.permute.xlu1 %10513 }
 0xeff   :  { %19053 = vmatpush3.msra.mxu1 %v23427_v1  ;;  %19021 = vmatprep.subr.mxu0 %v23333_v21  ;;  %v10515_v52 = vsel %vm64_vm11, %v10514_v51, 0  ;;  %v23447_v51 = vld [vmem:[#allocation32_spill] sm:$0xff] }
 0xf00   :  { %19054 = vmatprep.subr.mxu1 %v23333_v21  ;;  %19022 = vmatpush3.msra.mxu0 %v23428_v31  ;;  %v21929_v3 = vand.u32 4294901760, %v10515_v52 }
 0xf01   :  { %19023 = vmatprep.mubr.msk.f32.mxu0 %vm20108_vm0, %v23333_v21  ;;  %19055 = vmatpush3.msra.mxu1 %v23428_v31 }
 0xf02   :  { %19056 = vmatprep.mubr.msk.f32.mxu1 %vm20108_vm0, %v23333_v21  ;;  %19024 = vmatmul.mubr.f32.vlgmr.msra.gmra.mxu0 %v21768_v35  ;;  %v10587_v25 = vsub.f32 %v10515_v52, %v21929_v3  ;;  %v23440_v35 = vld [vmem:[#allocation40_spill] sm:$0xff]  ;;  %v23448_v52 = vld [vmem:[#allocation35_spill] sm:$0xff] }
 0xf03   :  { %19037 = vmatprep.subr.mxu0 %v23333_v21  ;;  %19057 = vmatmul.mubr.f32.vlgmr.msra.gmra.mxu1 %v21759_v27  ;;  %v23438_v27 = vld [vmem:[#allocation23_spill] sm:$0xff] }
 0xf04   :  { %19070 = vmatprep.subr.mxu1 %v23333_v21  ;;  %19038 = vmatpush3.msra.mxu0 %v23429_v59  ;;  %v10588_v20 = vand.u32 4294901760, %v10587_v25 }
 0xf05   :  { %19071 = vmatpush3.msra.mxu1 %v23425_v60  ;;  %19039 = vmatprep.subr.mxu0 %v23333_v21 }
 0xf06   :  { %19072 = vmatprep.subr.mxu1 %v23333_v21  ;;  %19040 = vmatpush3.msra.mxu0 %v23430_v24 }
 0xf07   :  { %19073 = vmatpush3.msra.mxu1 %v23426_v8  ;;  %19041 = vmatprep.subr.mxu0 %v23333_v21 }
 0xf08   :  { %19074 = vmatprep.subr.mxu1 %v23333_v21  ;;  %19042 = vmatpush3.msra.mxu0 %v23431_v30 }
 0xf09   :  { %19075 = vmatpush3.msra.mxu1 %v23427_v1  ;;  %19043 = vmatprep.subr.mxu0 %v23333_v21 }
 0xf0a   :  { %19076 = vmatprep.subr.mxu1 %v23333_v21  ;;  %19044 = vmatpush3.msra.mxu0 %v23432_v28 }
 0xf0b   :  { %19045 = vmatprep.mubr.msk.f32.mxu0 %vm20108_vm0, %v23333_v21  ;;  %19077 = vmatpush3.msra.mxu1 %v23428_v31 }
 0xf0c   :  { %19078 = vmatprep.mubr.msk.f32.mxu1 %vm20108_vm0, %v23333_v21  ;;  %19046 = vmatmul.mubr.f32.vlgmr.msra.gmra.mxu0 %v21751_v26  ;;  %v23437_v26 = vld [vmem:[#allocation38_spill] sm:$0xff] }
 0xf0d   :  { %19059 = vmatprep.subr.mxu0 %v23333_v21  ;;  %19079 = vmatmul.mubr.f32.vlgmr.msra.gmra.mxu1 %v21748_v58 }
 0xf0e   :  { %19060 = vmatpush3.msra.mxu0 %v23433_v63  ;;  %19067 = vmatprep.mubr.msk.f32.mxu0 %vm20108_vm0, %v23333_v21 }
 0xf0f   :  { %19061 = vmatprep.subr.mxu0 %v23333_v21  ;;  %19092 = vmatprep.subr.mxu1 %v23333_v21 }
 0xf10   :  { %19062 = vmatpush3.msra.mxu0 %v23434_v46  ;;  %19093 = vmatpush3.msra.mxu1 %v23435_v33 }
 0xf11   :  { %19063 = vmatprep.subr.mxu0 %v23333_v21  ;;  %19094 = vmatprep.subr.mxu1 %v23333_v21 }
 0xf12   :  { %19064 = vmatpush3.msra.mxu0 %v23436_v57  ;;  %19095 = vmatpush3.msra.mxu1 %v23437_v26 }
 0xf13   :  { %19065 = vmatprep.subr.mxu0 %v23333_v21  ;;  %19096 = vmatprep.subr.mxu1 %v23333_v21 }
 0xf14   :  { %19066 = vmatpush3.msra.mxu0 %v23438_v27  ;;  %19097 = vmatpush3.msra.mxu1 %v23439_v29 }
 0xf15   :  { %19068 = vmatmul.mubr.f32.vlgmr.msra.gmra.mxu0 %v21748_v58  ;;  %19098 = vmatprep.subr.mxu1 %v23333_v21  ;;  %v10589_v58 = vsub.f32 %v10587_v25, %v10588_v20 }
 0xf16   :  { %19099 = vmatpush3.msra.mxu1 %v23440_v35  ;;  %19081 = vmatprep.subr.mxu0 %v23333_v21 }
 0xf17   :  { %19100 = vmatprep.mubr.msk.f32.mxu1 %vm20108_vm0, %v23333_v21  ;;  %19114 = vmatprep.subr.mxu1 %v23333_v21  ;;  %v10590_v62 = vand.u32 4294901760, %v10589_v58  ;;  %v23450_v58 = vld [vmem:[#allocation33_spill] sm:$0xff] }
 0xf18   :  { %19082 = vmatpush3.msra.mxu0 %v23441_v40  ;;  %19101 = vmatmul.mubr.f32.vlgmr.msra.gmra.mxu1 %v21929_v3 }
 0xf19   :  { %19115 = vmatpush3.msra.mxu1 %v23441_v40  ;;  %19083 = vmatprep.subr.mxu0 %v23333_v21 }
 0xf1a   :  { %19116 = vmatprep.subr.mxu1 %v23333_v21  ;;  %19084 = vmatpush3.msra.mxu0 %v23442_v61 }
 0xf1b   :  { %19117 = vmatpush3.msra.mxu1 %v23442_v61  ;;  %19085 = vmatprep.subr.mxu0 %v23333_v21 }
 0xf1c   :  { %19118 = vmatprep.subr.mxu1 %v23333_v21  ;;  %19086 = vmatpush3.msra.mxu0 %v23443_v23 }
 0xf1d   :  { %19119 = vmatpush3.msra.mxu1 %v23443_v23  ;;  %19087 = vmatprep.subr.mxu0 %v23333_v21 }
 0xf1e   :  { %19120 = vmatprep.subr.mxu1 %v23333_v21  ;;  %19088 = vmatpush3.msra.mxu0 %v23444_v2 }
 0xf1f   :  { %19121 = vmatpush3.msra.mxu1 %v23444_v2  ;;  %19122 = vmatprep.mubr.msk.f32.mxu1 %vm20108_vm0, %v23333_v21 }
 0xf20   :  { %19089 = vmatprep.mubr.msk.f32.mxu0 %vm20108_vm0, %v23333_v21  ;;  %19103 = vmatprep.subr.mxu0 %v23333_v21 }
 0xf21   :  { %19123 = vmatmul.mubr.f32.vlgmr.msra.gmra.mxu1 %v10588_v20  ;;  %19136 = vmatprep.subr.mxu1 %v23333_v21  ;;  %v23449_v20 = vld [vmem:[#allocation30_spill] sm:$0xff] }
 0xf22   :  { %19090 = vmatmul.mubr.f32.vlgmr.msra.gmra.mxu0 %v10590_v62  ;;  %19137 = vmatpush3.msra.mxu1 %v23441_v40  ;;  %v23451_v62 = vld [vmem:[#allocation8_spill] sm:$0xff] }
 0xf23   :  { %19104 = vmatpush3.msra.mxu0 %v23445_v32  ;;  %19138 = vmatprep.subr.mxu1 %v23333_v21 }
 0xf24   :  { %19105 = vmatprep.subr.mxu0 %v23333_v21  ;;  %19139 = vmatpush3.msra.mxu1 %v23442_v61 }
 0xf25   :  { %19106 = vmatpush3.msra.mxu0 %v23446_v4  ;;  %19140 = vmatprep.subr.mxu1 %v23333_v21 }
 0xf26   :  { %19107 = vmatprep.subr.mxu0 %v23333_v21  ;;  %19141 = vmatpush3.msra.mxu1 %v23443_v23 }
 0xf27   :  { %19108 = vmatpush3.msra.mxu0 %v23447_v51  ;;  %19142 = vmatprep.subr.mxu1 %v23333_v21  ;;  %v23455_v51 = vld [vmem:[#allocation10_spill] sm:$0xff] }
 0xf28   :  { %19109 = vmatprep.subr.mxu0 %v23333_v21  ;;  %19111 = vmatprep.mubr.msk.f32.mxu0 %vm20108_vm0, %v23333_v21 }
 0xf29   :  { %19110 = vmatpush3.msra.mxu0 %v23448_v52  ;;  %19143 = vmatpush3.msra.mxu1 %v23444_v2  ;;  %v23453_v52 = vld [vmem:[#allocation9_spill] sm:$0xff] }
 0xf2a   :  { %19144 = vmatprep.mubr.msk.f32.mxu1 %vm20108_vm0, %v23333_v21  ;;  %19112 = vmatmul.mubr.f32.vlgmr.msra.gmra.mxu0 %v10587_v25  ;;  %v23452_v25 = vld [vmem:[#allocation34_spill] sm:$0xff] }
 0xf2b   :  { %19125 = vmatprep.subr.mxu0 %v23333_v21  ;;  %19145 = vmatmul.mubr.f32.vlgmr.msra.gmra.mxu1 %v21929_v3 }
 0xf2c   :  { %19126 = vmatpush3.msra.mxu0 %v23449_v20  ;;  %19133 = vmatprep.mubr.msk.f32.mxu0 %vm20108_vm0, %v23333_v21  ;;  %v23454_v20 = vld [vmem:[#allocation37_spill] sm:$0xff] }
 0xf2d   :  { %19127 = vmatprep.subr.mxu0 %v23333_v21  ;;  %19158 = vmatprep.subr.mxu1 %v23333_v21 }
 0xf2e   :  { %19128 = vmatpush3.msra.mxu0 %v23450_v58  ;;  %19159 = vmatpush3.msra.mxu1 %v23451_v62  ;;  %v23456_v62 = vld [vmem:[#allocation11_spill] sm:$0xff] }
 0xf2f   :  { %19129 = vmatprep.subr.mxu0 %v23333_v21  ;;  %19160 = vmatprep.subr.mxu1 %v23333_v21 }
 0xf30   :  { %19130 = vmatpush3.msra.mxu0 %v23452_v25  ;;  %19161 = vmatpush3.msra.mxu1 %v23453_v52 }
 0xf31   :  { %19131 = vmatprep.subr.mxu0 %v23333_v21  ;;  %19162 = vmatprep.subr.mxu1 %v23333_v21 }
 0xf32   :  { %19132 = vmatpush3.msra.mxu0 %v23454_v20  ;;  %19163 = vmatpush3.msra.mxu1 %v23455_v51 }
 0xf33   :  { %19134 = vmatmul.mubr.f32.vlgmr.msra.gmra.mxu0 %v21929_v3  ;;  %19164 = vmatprep.subr.mxu1 %v23333_v21 }
 0xf34   :  { %19165 = vmatpush3.msra.mxu1 %v23456_v62  ;;  %19147 = vmatprep.subr.mxu0 %v23333_v21 }
 0xf35   :  { %19166 = vmatprep.mubr.msk.f32.mxu1 %vm20108_vm0, %v23333_v21  ;;  %19180 = vmatprep.subr.mxu1 %v23333_v21 }
 0xf36   :  { %19148 = vmatpush3.msra.mxu0 %v20147_v5  ;;  %19155 = vmatprep.mubr.msk.f32.mxu0 %vm20108_vm0, %v23333_v21 }
 0xf37   :  { %19149 = vmatprep.subr.mxu0 %v23333_v21 }
 0xf38   :  { %19150 = vmatpush3.msra.mxu0 %v20149_v6 }
 0xf39   :  { %19151 = vmatprep.subr.mxu0 %v23333_v21 }
 0xf3a   :  { %19152 = vmatpush3.msra.mxu0 %v20151_v7 }
 0xf3b   :  { %19153 = vmatprep.subr.mxu0 %v23333_v21 }
 0xf3c   :  { %19154 = vmatpush3.msra.mxu0 %v20157_v9 }
 0xf3d   :  { %19169 = vmatprep.subr.mxu0 %v23333_v21 }
 0xf85   :  { %v9211_v3 = vpop.f32.mrf.mxu1 }
 0xf87   :  { %v18916_v62 = vpop.f32.mrf.mxu1 }
 0xf8d   :  { %v9368_v51 = vpop.f32.mrf.mxu1 }
 0xf8e   :  { %v9120_v20 = vpop.f32.mrf.mxu0 }
 0xf8f   :  { %v18938_v52 = vpop.f32.mrf.mxu1  ;;  %v9212_v23 = vadd.f32 %v9211_v3, %v9120_v20 }
 0xf90   :  { %v18905_v25 = vpop.f32.mrf.mxu0 }
 0xf96   :  { %v9291_v58 = vpop.f32.mrf.mxu0 }
 0xf97   :  { %v9526_v4 = vpop.f32.mrf.mxu1  ;;  %v9292_v35 = vadd.f32 %v9291_v58, %v9212_v23 }
 0xf98   :  { %v18927_v32 = vpop.f32.mrf.mxu0 }
 0xf99   :  { %v18960_v2 = vpop.f32.mrf.mxu1  ;;  %v9369_v57 = vadd.f32 %v9368_v51, %v9292_v35 }
 0xfa0   :  { %v9451_v61 = vpop.f32.mrf.mxu0  ;;  %v9693_v40 = vpop.f32.mrf.mxu1 }
 0xfa1   :  { %v9452_v26 = vadd.f32 %v9451_v61, %v9369_v57 }
 0xfa2   :  { %v18949_v27 = vpop.f32.mrf.mxu0  ;;  %v18978_v29 = vpop.f32.mrf.mxu1 }
 0xfa3   :  { %v9527_v28 = vadd.f32 %v9526_v4, %v9452_v26 }
 0xfa8   :  { %v9607_v46 = vpop.f32.mrf.mxu0  ;;  %v9847_v33 = vpop.f32.mrf.mxu1 }
 0xfa9   :  { %v9608_v30 = vadd.f32 %v9607_v46, %v9527_v28 }
 0xfaa   :  { %v18969_v63 = vpop.f32.mrf.mxu0  ;;  %v18996_v62 = vpop.f32.mrf.mxu1 }
 0xfab   :  { %v9694_v24 = vadd.f32 %v9693_v40, %v9608_v30 }
 0xfb0   :  { %v9771_v52 = vpop.f32.mrf.mxu0  ;;  %v10001_v25 = vpop.f32.mrf.mxu1 }
 0xfb1   :  { %v9772_v2 = vadd.f32 %v9771_v52, %v9694_v24 }
 0xfb2   :  { %v18987_v59 = vpop.f32.mrf.mxu0  ;;  %v19014_v32 = vpop.f32.mrf.mxu1 }
 0xfb3   :  { %v9848_v20 = vadd.f32 %v9847_v33, %v9772_v2 }
 0xfb8   :  { %v9927_v3 = vpop.f32.mrf.mxu0 }
 0xfb9   :  { %v9928_v31 = vadd.f32 %v9927_v3, %v9848_v20  ;;  %v10193_v23 = vpop.f32.mrf.mxu1  ;;  %v22031_v3 = vld [vmem:[%s23192_s1 + $0x78] ss:$0 sm:$0xff] }
 0xfba   :  { %v19005_v27 = vpop.f32.mrf.mxu0 }
 0xfbb   :  { %v10002_v29 = vadd.f32 %v10001_v25, %v9928_v31  ;;  %v19036_v35 = vpop.f32.mrf.mxu1 }
 0xfbd   :  { %v10005_v57 = vmul.f32 %v10002_v29, %v20414_v56 }
 0xfbf   :  { %20037 = vtanh.f32 %v10005_v57 }
 0xfc2   :  { %v10102_v63 = vpop.f32.mrf.mxu0 }
 0xfc3   :  { %v10350_v61 = vpop.f32.mrf.mxu1  ;;  %v10103_v27 = vadd.f32 %v22031_v3, %v10102_v63 }
 0xfc4   :  { %v19025_v26 = vpop.f32.mrf.mxu0 }
 0xfc5   :  { %v19058_v28 = vpop.f32.mrf.mxu1  ;;  %v10194_v29 = vadd.f32 %v10193_v23, %v10103_v27 }
 0xfcc   :  { %v20038_v46 = vpop.eup %20037  ;;  %v10273_v4 = vpop.f32.mrf.mxu0 }
 0xfcd   :  { %v10508_v30 = vpop.f32.mrf.mxu1  ;;  %v10007_v59 = vmul.f32 0.5, %v20038_v46  ;;  %v10274_v26 = vadd.f32 %v10273_v4, %v10194_v29 }
 0xfce   :  { %v19047_v40 = vpop.f32.mrf.mxu0 }
 0xfcf   :  { %v19080_v24 = vpop.f32.mrf.mxu1  ;;  %v10008_v33 = vadd.f32 0.5, %v10007_v59 }
 0xfd0   :  { %v10351_v24 = vadd.f32 %v10350_v61, %v10274_v26 }
 0xfd1   :  { %v10009_v51 = vsel %vm20408_vm10, %v20038_v46, %v10008_v33 }
 0xfd2   :  { %10012 = vrot.lane.b32.xlu0 %v10009_v51, %s20110_s5 }
 0xfd5   :  { %v10433_v31 = vpop.f32.mrf.mxu0 }
 0xfd6   :  { %v10434_v33 = vadd.f32 %v10433_v31, %v10351_v24 }
 0xfd7   :  { %v19069_v58 = vpop.f32.mrf.mxu0 }
 0xfd8   :  { %v10683_v62 = vpop.f32.mrf.mxu1  ;;  %v10509_v1 = vadd.f32 %v10508_v30, %v10434_v33 }
 0xfda   :  { %v19102_v52 = vpop.f32.mrf.mxu1 }
 0xfe1   :  { %v10840_v25 = vpop.f32.mrf.mxu1 }
 0xfe2   :  { %v10592_v32 = vpop.f32.mrf.mxu0 }
 0xfe3   :  { %v19124_v2 = vpop.f32.mrf.mxu1  ;;  %v10684_v28 = vadd.f32 %v10683_v62, %v10592_v32 }
 0xfe4   :  { %v19091_v20 = vpop.f32.mrf.mxu0 }
 0xfea   :  { %v10763_v35 = vpop.f32.mrf.mxu0 }
 0xfeb   :  { %v10998_v57 = vpop.f32.mrf.mxu1  ;;  %v10764_v40 = vadd.f32 %v10763_v35, %v10684_v28 }
 0xfec   :  { %v19113_v46 = vpop.f32.mrf.mxu0 }
 0xfed   :  { %v19146_v59 = vpop.f32.mrf.mxu1  ;;  %v10841_v58 = vadd.f32 %v10840_v25, %v10764_v40 }
 0xff3   :  { %v10923_v52 = vpop.f32.mrf.mxu0 }
 0xff4   :  { %v10924_v2 = vadd.f32 %v10923_v52, %v10841_v58  ;;  %v11031_v58 = vstv %s16743_s14 }
 0xff5   :  { %v19135_v20 = vpop.f32.mrf.mxu0  ;;  %vm11032_vm14 = vcmp.eq.s32.totalorder %v20193_v19, %v11031_v58  ;;  %v23472_v58 = vld [vmem:[#allocation23_spill] sm:$0xff] }
 0xff6   :  { %v10999_v8 = vadd.f32 %v10998_v57, %v10924_v2  ;;  %vm11033_vm15 = vmand %vm59_vm4, %vm11032_vm14 }
 0xff8   :  { %v11002_v60 = vadd.f32 %v10999_v8, %v10509_v1  ;;  %v10010_v8 = vmul.f32 %v10009_v51, %v21736_v44 }
 0xffa   :  { %v11003_v0 = vmul.f32 %v11002_v60, %v20414_v56 }
 0xffc   :  { %20039 = vtanh.f32 %v11003_v0 }
0x1009   :  { %v20040_v23 = vpop.eup %20039 }
0x100a   :  { %v11005_v63 = vmul.f32 0.5, %v20040_v23 }
0x100c   :  { %v11006_v27 = vadd.f32 0.5, %v11005_v63 }
0x100e   :  { %v11007_v4 = vsel %vm20408_vm10, %v20040_v23, %v11006_v27 }
0x100f   :  { %11010 = vrot.lane.b32.xlu0 %v11007_v4, %s20110_s5  ;;  %v11008_v30 = vmul.f32 %v11007_v4, %v21741_v22 }
0x1044   :  { %v10013_v61 = vpop.permute.xlu0 %10012 }
0x1045   :  { %v10015_v31 = vmul.f32 %v10013_v61, %v10009_v51 }
0x1047   :  { %10017 = vrot.lane.b32.xlu1 %v10015_v31, %s20111_s6  ;;  %v23457_v31 = vld [vmem:[#allocation24_spill] sm:$0xff] }
0x1081   :  { %v11011_v62 = vpop.permute.xlu0 %11010 }
0x1082   :  { %v11013_v25 = vmul.f32 %v11011_v62, %v11007_v4  ;;  %v23458_v62 = vld [vmem:[#allocation12_spill] sm:$0xff] }
0x1084   :  { %11015 = vrot.lane.b32.xlu0 %v11013_v25, %s20111_s6  ;;  %v23459_v25 = vld [vmem:[#allocation13_spill] sm:$0xff] }
0x10b9   :  { %v10018_v60 = vpop.permute.xlu1 %10017 }
0x10ba   :  { %v22041_v0 = vadd.f32 %v10018_v60, %v10010_v8  ;;  %v23460_v8 = vld [vmem:[#allocation15_spill] sm:$0xff]  ;;  %v23461_v60 = vld [vmem:[#allocation17_spill] sm:$0xff] }
0x10bc   :  { %20041 = vtanh.f32 %v22041_v0 }
0x10c9   :  { %v20042_v1 = vpop.eup %20041 }
0x10ca   :  { %10023 = vrot.lane.b32.xlu1 %v20042_v1, %s20110_s5  ;;  %v23462_v1 = vld [vmem:[#allocation14_spill] sm:$0xff] }
0x10f6   :  { %v11016_v32 = vpop.permute.xlu0 %11015 }
0x10f7   :  { %v22046_v29 = vadd.f32 %v11016_v32, %v11008_v30  ;;  %v23463_v30 = vld [vmem:[#allocation16_spill] sm:$0xff] }
0x10f9   :  { %20043 = vtanh.f32 %v22046_v29 }
0x1106   :  { %v20044_v35 = vpop.eup %20043 }
0x1107   :  { %11021 = vrot.lane.b32.xlu0 %v20044_v35, %s20110_s5  ;;  %v23464_v35 = vld [vmem:[#allocation19_spill] sm:$0xff] }
0x113c   :  { %v10024_v57 = vpop.permute.xlu1 %10023 }
0x113d   :  { %v10026_v44 = vmul.f32 %v10024_v57, %v10009_v51  ;;  %v11026_v51 = vstv %s16742_s13  ;;  %v23465_v57 = vld [vmem:[#allocation21_spill] sm:$0xff] }
0x113e   :  { %vm11027_vm12 = vcmp.eq.s32.totalorder %v20193_v19, %v11026_v51  ;;  %v23469_v51 = vld [vmem:[#allocation38_spill] sm:$0xff] }
0x113f   :  { %11036 = vrot.lane.b32.xlu1 %v10026_v44, %s20111_s6  ;;  %vm11028_vm13 = vmand %vm53_vm1, %vm11027_vm12 }
0x1140   :  { %v11029_v2 = vsel %vm11028_vm13, 1.0, %v23333_v21 }
0x1141   :  { %v22094_v20 = vsel %vm11033_vm15, 1.0, %v11029_v2 }
0x1142   :  { %v11526_v23 = vsel %vm553_vm7, %v22094_v20, 0 }
0x1143   :  { %v11597_v63 = vsub.f32 %v11526_v23, %v11526_v23 }
0x1145   :  { %v11598_v27 = vand.u32 4294901760, %v11597_v63 }
0x1179   :  { %v11022_v26 = vpop.permute.xlu0 %11021 }
0x117a   :  { %v11024_v28 = vmul.f32 %v11022_v26, %v11007_v4  ;;  %v11599_v4 = vsub.f32 %v11597_v63, %v11598_v27 }
0x117c   :  { %12508 = vrot.lane.b32.xlu1 %v11024_v28, %s20111_s6  ;;  %v11600_v61 = vand.u32 4294901760, %v11599_v4  ;;  %v23466_v28 = vld [vmem:[#allocation18_spill] sm:$0xff]  ;;  %v23477_v4 = vld [vmem:[#allocation31_spill] sm:$0xff] }
0x11b1   :  { %v11037_v46 = vpop.permute.xlu1 %11036 }
0x11b2   :  { %v11038_v22 = vsel %vm64_vm11, %v11037_v46, 0  ;;  %v23467_v46 = vld [vmem:[#allocation36_spill] sm:$0xff] }
0x11b3   :  { %v22053_v59 = vand.u32 4294901760, %v11038_v22 }
0x11b5   :  { %v22056_v40 = vsub.f32 %v11038_v22, %v22053_v59  ;;  %19167 = vmatmul.mubr.f32.vlgmr.msra.gmra.mxu1 %v22053_v59  ;;  %v23468_v22 = vld [vmem:[#allocation20_spill] sm:$0xff] }
0x11b6   :  { %19181 = vmatpush3.msra.mxu1 %v20147_v5  ;;  %19188 = vmatprep.mubr.msk.f32.mxu1 %vm20108_vm0, %v23333_v21 }
0x11b7   :  { %v22063_v24 = vand.u32 4294901760, %v22056_v40  ;;  %19182 = vmatprep.subr.mxu1 %v23333_v21 }
0x11b8   :  { %19183 = vmatpush3.msra.mxu1 %v20149_v6 }
0x11b9   :  { %v11112_v33 = vsub.f32 %v22056_v40, %v22063_v24  ;;  %19184 = vmatprep.subr.mxu1 %v23333_v21 }
0x11ba   :  { %19185 = vmatpush3.msra.mxu1 %v20151_v7 }
0x11bb   :  { %v22072_v52 = vand.u32 4294901760, %v11112_v33  ;;  %19186 = vmatprep.subr.mxu1 %v23333_v21  ;;  %v23471_v33 = vld [vmem:[#allocation39_spill] sm:$0xff] }
0x11bc   :  { %19187 = vmatpush3.msra.mxu1 %v20157_v9 }
0x11bd   :  { %19189 = vmatmul.mubr.f32.vlgmr.msra.gmra.mxu1 %v22063_v24  ;;  %19202 = vmatprep.subr.mxu1 %v23333_v21 }
0x11be   :  { %19156 = vmatmul.mubr.f32.vlgmr.msra.gmra.mxu0 %v22072_v52  ;;  %19203 = vmatpush3.msra.mxu1 %v20147_v5 }
0x11bf   :  { %19170 = vmatpush3.msra.mxu0 %v20165_v10  ;;  %19204 = vmatprep.subr.mxu1 %v23333_v21 }
0x11c0   :  { %19171 = vmatprep.subr.mxu0 %v23333_v21  ;;  %19205 = vmatpush3.msra.mxu1 %v20149_v6 }
0x11c1   :  { %19172 = vmatpush3.msra.mxu0 %v20168_v11  ;;  %19206 = vmatprep.subr.mxu1 %v23333_v21 }
0x11c2   :  { %19173 = vmatprep.subr.mxu0 %v23333_v21  ;;  %19207 = vmatpush3.msra.mxu1 %v20151_v7 }
0x11c3   :  { %19174 = vmatpush3.msra.mxu0 %v20171_v12  ;;  %19208 = vmatprep.subr.mxu1 %v23333_v21 }
0x11c4   :  { %19175 = vmatprep.subr.mxu0 %v23333_v21  ;;  %19177 = vmatprep.mubr.msk.f32.mxu0 %vm20108_vm0, %v23333_v21 }
0x11c5   :  { %19176 = vmatpush3.msra.mxu0 %v20175_v13  ;;  %19209 = vmatpush3.msra.mxu1 %v20157_v9 }
0x11c6   :  { %19210 = vmatprep.mubr.msk.f32.mxu1 %vm20108_vm0, %v23333_v21  ;;  %19178 = vmatmul.mubr.f32.vlgmr.msra.gmra.mxu0 %v22056_v40 }
0x11c7   :  { %19191 = vmatprep.subr.mxu0 %v23333_v21  ;;  %19211 = vmatmul.mubr.f32.vlgmr.msra.gmra.mxu1 %v22053_v59 }
0x11c8   :  { %19222 = vmatprep.subr.mxu1 %v23333_v21  ;;  %19192 = vmatpush3.msra.mxu0 %v20181_v15 }
0x11c9   :  { %19223 = vmatpush3.msra.mxu1 %v20322_v50  ;;  %19193 = vmatprep.subr.mxu0 %v23333_v21 }
0x11ca   :  { %19224 = vmatprep.subr.mxu1 %v23333_v21  ;;  %19194 = vmatpush3.msra.mxu0 %v20184_v16 }
0x11cb   :  { %19225 = vmatpush3.msra.mxu1 %v20330_v53  ;;  %19195 = vmatprep.subr.mxu0 %v23333_v21 }
0x11cc   :  { %19226 = vmatprep.subr.mxu1 %v23333_v21  ;;  %19196 = vmatpush3.msra.mxu0 %v20187_v17 }
0x11cd   :  { %19227 = vmatpush3.msra.mxu1 %v20337_v54  ;;  %19197 = vmatprep.subr.mxu0 %v23333_v21 }
0x11ce   :  { %19228 = vmatprep.mubr.msk.f32.mxu1 %vm20108_vm0, %v23333_v21  ;;  %19240 = vmatprep.subr.mxu1 %v23333_v21 }
0x11cf   :  { %19198 = vmatpush3.msra.mxu0 %v20191_v18  ;;  %19199 = vmatprep.mubr.msk.f32.mxu0 %vm20108_vm0, %v23333_v21 }
0x11d0   :  { %19229 = vmatmul.mubr.msk.f32.vlgmr.msra.gmra.mxu1 %vm553_vm7, %v22094_v20  ;;  %19200 = vmatmul.mubr.f32.vlgmr.msra.gmra.mxu0 %v22053_v59 }
0x11d1   :  { %19241 = vmatpush3.msra.mxu1 %v20249_v34  ;;  %19213 = vmatprep.subr.mxu0 %v23333_v21 }
0x11d2   :  { %19242 = vmatprep.subr.mxu1 %v23333_v21  ;;  %19214 = vmatpush3.msra.mxu0 %v20249_v34 }
0x11d3   :  { %19243 = vmatpush3.msra.mxu1 %v20259_v36  ;;  %19215 = vmatprep.subr.mxu0 %v23333_v21 }
0x11d4   :  { %19244 = vmatprep.subr.mxu1 %v23333_v21  ;;  %19216 = vmatpush3.msra.mxu0 %v20259_v36 }
0x11d5   :  { %19245 = vmatpush3.msra.mxu1 %v20267_v38  ;;  %19217 = vmatprep.subr.mxu0 %v23333_v21 }
0x11d6   :  { %19246 = vmatprep.mubr.msk.f32.mxu1 %vm20108_vm0, %v23333_v21  ;;  %19258 = vmatprep.subr.mxu1 %v23333_v21 }
0x11d7   :  { %19218 = vmatpush3.msra.mxu0 %v20267_v38  ;;  %19219 = vmatprep.mubr.msk.f32.mxu0 %vm20108_vm0, %v23333_v21 }
0x11d8   :  { %19247 = vmatmul.mubr.f32.vlgmr.msra.gmra.mxu1 %v11598_v27  ;;  %19220 = vmatmul.mubr.f32.vlgmr.msra.gmra.mxu0 %v11600_v61  ;;  %v23478_v61 = vld [vmem:[#allocation27_spill] sm:$0xff] }
0x11d9   :  { %19259 = vmatpush3.msra.mxu1 %v20249_v34  ;;  %19231 = vmatprep.subr.mxu0 %v23333_v21 }
0x11da   :  { %19260 = vmatprep.subr.mxu1 %v23333_v21  ;;  %19232 = vmatpush3.msra.mxu0 %v20270_v39 }
0x11db   :  { %19261 = vmatpush3.msra.mxu1 %v20259_v36  ;;  %19233 = vmatprep.subr.mxu0 %v23333_v21 }
0x11dc   :  { %19262 = vmatprep.subr.mxu1 %v23333_v21  ;;  %19234 = vmatpush3.msra.mxu0 %v20279_v41 }
0x11dd   :  { %19263 = vmatpush3.msra.mxu1 %v20267_v38  ;;  %19235 = vmatprep.subr.mxu0 %v23333_v21 }
0x11de   :  { %19264 = vmatprep.mubr.msk.f32.mxu1 %vm20108_vm0, %v23333_v21  ;;  %19278 = vmatprep.subr.mxu1 %v23333_v21 }
0x11df   :  { %19236 = vmatpush3.msra.mxu0 %v20290_v43  ;;  %19237 = vmatprep.mubr.msk.f32.mxu0 %vm20108_vm0, %v23333_v21 }
0x11e0   :  { %19265 = vmatmul.mubr.msk.f32.vlgmr.msra.gmra.mxu1 %vm553_vm7, %v22094_v20  ;;  %19238 = vmatmul.mubr.f32.vlgmr.msra.gmra.mxu0 %v11597_v63  ;;  %v23475_v63 = vld [vmem:[#allocation26_spill] sm:$0xff] }
0x11e1   :  { %19279 = vmatpush3.msra.mxu1 %v20583_v37  ;;  %19249 = vmatprep.subr.mxu0 %v23333_v21 }
0x11e2   :  { %19280 = vmatprep.subr.mxu1 %v23333_v21  ;;  %19250 = vmatpush3.msra.mxu0 %v20287_v42 }
0x11e3   :  { %19281 = vmatpush3.msra.mxu1 %v20593_v48  ;;  %19251 = vmatprep.subr.mxu0 %v23333_v21 }
0x11e4   :  { %19282 = vmatprep.subr.mxu1 %v23333_v21  ;;  %19252 = vmatpush3.msra.mxu0 %v20298_v45 }
0x11e5   :  { %19283 = vmatpush3.msra.mxu1 %v20602_v55  ;;  %19253 = vmatprep.subr.mxu0 %v23333_v21 }
0x11e6   :  { %19284 = vmatprep.subr.mxu1 %v23333_v21  ;;  %19254 = vmatpush3.msra.mxu0 %v20308_v47 }
0x11e7   :  { %19255 = vmatprep.mubr.msk.f32.mxu0 %vm20108_vm0, %v23333_v21  ;;  %19285 = vmatpush3.msra.mxu1 %v23457_v31 }
0x11e8   :  { %19286 = vmatprep.mubr.msk.f32.mxu1 %vm20108_vm0, %v23333_v21  ;;  %19256 = vmatmul.mubr.msk.f32.vlgmr.msra.gmra.mxu0 %vm553_vm7, %v22094_v20  ;;  %v23474_v20 = vld [vmem:[#allocation25_spill] sm:$0xff] }
0x11e9   :  { %19267 = vmatprep.subr.mxu0 %v23333_v21  ;;  %19287 = vmatmul.mubr.f32.vlgmr.msra.gmra.mxu1 %v22053_v59 }
0x11ea   :  { %19300 = vmatprep.subr.mxu1 %v23333_v21  ;;  %19268 = vmatpush3.msra.mxu0 %v23458_v62 }
0x11eb   :  { %19301 = vmatpush3.msra.mxu1 %v23458_v62  ;;  %19269 = vmatprep.subr.mxu0 %v23333_v21 }
0x11ec   :  { %19302 = vmatprep.subr.mxu1 %v23333_v21  ;;  %19270 = vmatpush3.msra.mxu0 %v23459_v25 }
0x11ed   :  { %19303 = vmatpush3.msra.mxu1 %v23459_v25  ;;  %19271 = vmatprep.subr.mxu0 %v23333_v21 }
0x11ee   :  { %19304 = vmatprep.subr.mxu1 %v23333_v21  ;;  %19272 = vmatpush3.msra.mxu0 %v23460_v8  ;;  %v12509_v32 = vpop.permute.xlu1 %12508 }
0x11ef   :  { %19305 = vmatpush3.msra.mxu1 %v23460_v8  ;;  %19273 = vmatprep.subr.mxu0 %v23333_v21  ;;  %v12510_v44 = vsel %vm64_vm11, %v12509_v32, 0  ;;  %v23479_v32 = vld [vmem:[#allocation29_spill] sm:$0xff] }
0x11f0   :  { %19306 = vmatprep.subr.mxu1 %v23333_v21  ;;  %19274 = vmatpush3.msra.mxu0 %v23461_v60  ;;  %v22231_v26 = vand.u32 4294901760, %v12510_v44 }
0x11f1   :  { %19275 = vmatprep.mubr.msk.f32.mxu0 %vm20108_vm0, %v23333_v21  ;;  %19307 = vmatpush3.msra.mxu1 %v23461_v60 }
0x11f2   :  { %19308 = vmatprep.mubr.msk.f32.mxu1 %vm20108_vm0, %v23333_v21  ;;  %19276 = vmatmul.mubr.f32.vlgmr.msra.gmra.mxu0 %v22072_v52  ;;  %v23473_v52 = vld [vmem:[#allocation40_spill] sm:$0xff] }
0x11f3   :  { %19289 = vmatprep.subr.mxu0 %v23333_v21  ;;  %19309 = vmatmul.mubr.f32.vlgmr.msra.gmra.mxu1 %v22063_v24  ;;  %v23470_v24 = vld [vmem:[#allocation22_spill] sm:$0xff] }
0x11f4   :  { %19322 = vmatprep.subr.mxu1 %v23333_v21  ;;  %19290 = vmatpush3.msra.mxu0 %v23462_v1 }
0x11f5   :  { %19323 = vmatpush3.msra.mxu1 %v23458_v62  ;;  %19291 = vmatprep.subr.mxu0 %v23333_v21 }
0x11f6   :  { %19324 = vmatprep.subr.mxu1 %v23333_v21  ;;  %19292 = vmatpush3.msra.mxu0 %v23463_v30 }
0x11f7   :  { %19325 = vmatpush3.msra.mxu1 %v23459_v25  ;;  %19293 = vmatprep.subr.mxu0 %v23333_v21 }
0x11f8   :  { %19326 = vmatprep.subr.mxu1 %v23333_v21  ;;  %19294 = vmatpush3.msra.mxu0 %v23464_v35 }
0x11f9   :  { %19327 = vmatpush3.msra.mxu1 %v23460_v8  ;;  %19295 = vmatprep.subr.mxu0 %v23333_v21 }
0x11fa   :  { %19328 = vmatprep.subr.mxu1 %v23333_v21  ;;  %19296 = vmatpush3.msra.mxu0 %v23465_v57 }
0x11fb   :  { %19297 = vmatprep.mubr.msk.f32.mxu0 %vm20108_vm0, %v23333_v21  ;;  %19329 = vmatpush3.msra.mxu1 %v23461_v60 }
0x11fc   :  { %19330 = vmatprep.mubr.msk.f32.mxu1 %vm20108_vm0, %v23333_v21  ;;  %19298 = vmatmul.mubr.f32.vlgmr.msra.gmra.mxu0 %v22056_v40  ;;  %v12582_v40 = vsub.f32 %v12510_v44, %v22231_v26  ;;  %v23480_v44 = vld [vmem:[#allocation32_spill] sm:$0xff] }
0x11fd   :  { %19311 = vmatprep.subr.mxu0 %v23333_v21  ;;  %19331 = vmatmul.mubr.f32.vlgmr.msra.gmra.mxu1 %v22053_v59 }
0x11fe   :  { %19344 = vmatprep.subr.mxu1 %v23333_v21  ;;  %19312 = vmatpush3.msra.mxu0 %v23466_v28  ;;  %v12583_v2 = vand.u32 4294901760, %v12582_v40 }
0x11ff   :  { %19345 = vmatpush3.msra.mxu1 %v23467_v46  ;;  %19313 = vmatprep.subr.mxu0 %v23333_v21 }
0x1200   :  { %19346 = vmatprep.subr.mxu1 %v23333_v21  ;;  %19314 = vmatpush3.msra.mxu0 %v23468_v22  ;;  %v12584_v23 = vsub.f32 %v12582_v40, %v12583_v2 }
0x1201   :  { %19347 = vmatpush3.msra.mxu1 %v23469_v51  ;;  %19315 = vmatprep.subr.mxu0 %v23333_v21 }
0x1202   :  { %19348 = vmatprep.subr.mxu1 %v23333_v21  ;;  %19316 = vmatpush3.msra.mxu0 %v23470_v24  ;;  %v12585_v27 = vand.u32 4294901760, %v12584_v23  ;;  %v23482_v23 = vld [vmem:[#allocation30_spill] sm:$0xff] }
0x1203   :  { %19349 = vmatpush3.msra.mxu1 %v23471_v33  ;;  %19317 = vmatprep.subr.mxu0 %v23333_v21 }
0x1204   :  { %19350 = vmatprep.subr.mxu1 %v23333_v21  ;;  %19318 = vmatpush3.msra.mxu0 %v23472_v58 }
0x1205   :  { %19319 = vmatprep.mubr.msk.f32.mxu0 %vm20108_vm0, %v23333_v21  ;;  %19351 = vmatpush3.msra.mxu1 %v23473_v52 }
0x1206   :  { %19352 = vmatprep.mubr.msk.f32.mxu1 %vm20108_vm0, %v23333_v21  ;;  %19320 = vmatmul.mubr.f32.vlgmr.msra.gmra.mxu0 %v22053_v59  ;;  %v23476_v59 = vld [vmem:[#allocation28_spill] sm:$0xff] }
0x1207   :  { %19333 = vmatprep.subr.mxu0 %v23333_v21  ;;  %19353 = vmatmul.mubr.f32.vlgmr.msra.gmra.mxu1 %v22231_v26 }
0x1208   :  { %19366 = vmatprep.subr.mxu1 %v23333_v21  ;;  %19334 = vmatpush3.msra.mxu0 %v23474_v20 }
0x1209   :  { %19367 = vmatpush3.msra.mxu1 %v23474_v20  ;;  %19335 = vmatprep.subr.mxu0 %v23333_v21 }
0x120a   :  { %19368 = vmatprep.subr.mxu1 %v23333_v21  ;;  %19336 = vmatpush3.msra.mxu0 %v23475_v63 }
0x120b   :  { %19369 = vmatpush3.msra.mxu1 %v23475_v63  ;;  %19337 = vmatprep.subr.mxu0 %v23333_v21 }
0x120c   :  { %19370 = vmatprep.subr.mxu1 %v23333_v21  ;;  %19338 = vmatpush3.msra.mxu0 %v23476_v59 }
0x120d   :  { %19371 = vmatpush3.msra.mxu1 %v23476_v59  ;;  %19339 = vmatprep.subr.mxu0 %v23333_v21 }
0x120e   :  { %19372 = vmatprep.subr.mxu1 %v23333_v21  ;;  %19340 = vmatpush3.msra.mxu0 %v23477_v4 }
0x120f   :  { %19341 = vmatprep.mubr.msk.f32.mxu0 %vm20108_vm0, %v23333_v21  ;;  %19373 = vmatpush3.msra.mxu1 %v23477_v4 }
0x1210   :  { %19374 = vmatprep.mubr.msk.f32.mxu1 %vm20108_vm0, %v23333_v21  ;;  %19342 = vmatmul.mubr.f32.vlgmr.msra.gmra.mxu0 %v12585_v27  ;;  %v23483_v27 = vld [vmem:[#allocation33_spill] sm:$0xff] }
0x1211   :  { %19355 = vmatprep.subr.mxu0 %v23333_v21  ;;  %19375 = vmatmul.mubr.f32.vlgmr.msra.gmra.mxu1 %v12583_v2  ;;  %v23481_v2 = vld [vmem:[#allocation35_spill] sm:$0xff] }
0x1212   :  { %19388 = vmatprep.subr.mxu1 %v23333_v21  ;;  %19356 = vmatpush3.msra.mxu0 %v23478_v61 }
0x1213   :  { %19389 = vmatpush3.msra.mxu1 %v23474_v20  ;;  %19357 = vmatprep.subr.mxu0 %v23333_v21 }
0x1214   :  { %19390 = vmatprep.subr.mxu1 %v23333_v21  ;;  %19358 = vmatpush3.msra.mxu0 %v23479_v32  ;;  %v23488_v32 = vld [vmem:[#allocation10_spill] sm:$0xff] }
0x1215   :  { %19391 = vmatpush3.msra.mxu1 %v23475_v63  ;;  %19359 = vmatprep.subr.mxu0 %v23333_v21 }
0x1216   :  { %19392 = vmatprep.subr.mxu1 %v23333_v21  ;;  %19360 = vmatpush3.msra.mxu0 %v23480_v44  ;;  %v23486_v44 = vld [vmem:[#allocation9_spill] sm:$0xff] }
0x1217   :  { %19393 = vmatpush3.msra.mxu1 %v23476_v59  ;;  %19361 = vmatprep.subr.mxu0 %v23333_v21 }
0x1218   :  { %19394 = vmatprep.subr.mxu1 %v23333_v21  ;;  %19362 = vmatpush3.msra.mxu0 %v23481_v2  ;;  %v23484_v2 = vld [vmem:[#allocation8_spill] sm:$0xff] }
0x1219   :  { %19363 = vmatprep.mubr.msk.f32.mxu0 %vm20108_vm0, %v23333_v21  ;;  %19395 = vmatpush3.msra.mxu1 %v23477_v4 }
0x121a   :  { %19396 = vmatprep.mubr.msk.f32.mxu1 %vm20108_vm0, %v23333_v21  ;;  %19364 = vmatmul.mubr.f32.vlgmr.msra.gmra.mxu0 %v12582_v40  ;;  %v23485_v40 = vld [vmem:[#allocation34_spill] sm:$0xff] }
0x121b   :  { %19377 = vmatprep.subr.mxu0 %v23333_v21  ;;  %19397 = vmatmul.mubr.f32.vlgmr.msra.gmra.mxu1 %v22231_v26 }
0x121c   :  { %19378 = vmatpush3.msra.mxu0 %v23482_v23  ;;  %19385 = vmatprep.mubr.msk.f32.mxu0 %vm20108_vm0, %v23333_v21  ;;  %v23487_v23 = vld [vmem:[#allocation37_spill] sm:$0xff] }
0x121d   :  { %19379 = vmatprep.subr.mxu0 %v23333_v21  ;;  %19410 = vmatprep.subr.mxu1 %v23333_v21 }
0x121e   :  { %19380 = vmatpush3.msra.mxu0 %v23483_v27  ;;  %19411 = vmatpush3.msra.mxu1 %v23484_v2  ;;  %v23489_v2 = vld [vmem:[#allocation11_spill] sm:$0xff] }
0x121f   :  { %19381 = vmatprep.subr.mxu0 %v23333_v21  ;;  %19412 = vmatprep.subr.mxu1 %v23333_v21 }
0x1220   :  { %19382 = vmatpush3.msra.mxu0 %v23485_v40  ;;  %19413 = vmatpush3.msra.mxu1 %v23486_v44 }
0x1221   :  { %19383 = vmatprep.subr.mxu0 %v23333_v21  ;;  %19414 = vmatprep.subr.mxu1 %v23333_v21 }
0x1222   :  { %19384 = vmatpush3.msra.mxu0 %v23487_v23  ;;  %19415 = vmatpush3.msra.mxu1 %v23488_v32 }
0x1223   :  { %19386 = vmatmul.mubr.f32.vlgmr.msra.gmra.mxu0 %v22231_v26  ;;  %19416 = vmatprep.subr.mxu1 %v23333_v21 }
0x1224   :  { %19417 = vmatpush3.msra.mxu1 %v23489_v2  ;;  %19399 = vmatprep.subr.mxu0 %v23333_v21 }
0x1225   :  { %19418 = vmatprep.mubr.msk.f32.mxu1 %vm20108_vm0, %v23333_v21  ;;  %19432 = vmatprep.subr.mxu1 %v23333_v21 }
0x1226   :  { %19400 = vmatpush3.msra.mxu0 %v20147_v5  ;;  %19407 = vmatprep.mubr.msk.f32.mxu0 %vm20108_vm0, %v23333_v21 }
0x1227   :  { %19401 = vmatprep.subr.mxu0 %v23333_v21 }
0x1228   :  { %19402 = vmatpush3.msra.mxu0 %v20149_v6 }
0x1229   :  { %19403 = vmatprep.subr.mxu0 %v23333_v21 }
0x122a   :  { %19404 = vmatpush3.msra.mxu0 %v20151_v7 }
0x122b   :  { %19405 = vmatprep.subr.mxu0 %v23333_v21 }
0x122c   :  { %19406 = vmatpush3.msra.mxu0 %v20157_v9 }
0x122d   :  { %19421 = vmatprep.subr.mxu0 %v23333_v21 }
0x1275   :  { %v11206_v26 = vpop.f32.mrf.mxu1 }
0x1277   :  { %v19168_v32 = vpop.f32.mrf.mxu1 }
0x127d   :  { %v11363_v44 = vpop.f32.mrf.mxu1 }
0x127e   :  { %v11115_v2 = vpop.f32.mrf.mxu0 }
0x127f   :  { %v19190_v23 = vpop.f32.mrf.mxu1  ;;  %v11207_v63 = vadd.f32 %v11206_v26, %v11115_v2 }
0x1280   :  { %v19157_v40 = vpop.f32.mrf.mxu0 }
0x1286   :  { %v11286_v27 = vpop.f32.mrf.mxu0 }
0x1287   :  { %v11521_v61 = vpop.f32.mrf.mxu1  ;;  %v11287_v58 = vadd.f32 %v11286_v27, %v11207_v63 }
0x1288   :  { %v19179_v4 = vpop.f32.mrf.mxu0 }
0x1289   :  { %v19212_v59 = vpop.f32.mrf.mxu1  ;;  %v11364_v51 = vadd.f32 %v11363_v44, %v11287_v58 }
0x1290   :  { %v11446_v20 = vpop.f32.mrf.mxu0  ;;  %v11688_v52 = vpop.f32.mrf.mxu1 }
0x1291   :  { %v11447_v22 = vadd.f32 %v11446_v20, %v11364_v51 }
0x1292   :  { %v19201_v33 = vpop.f32.mrf.mxu0  ;;  %v19230_v24 = vpop.f32.mrf.mxu1 }
0x1293   :  { %v11522_v35 = vadd.f32 %v11521_v61, %v11447_v22 }
0x1298   :  { %v11602_v46 = vpop.f32.mrf.mxu0  ;;  %v11842_v28 = vpop.f32.mrf.mxu1 }
0x1299   :  { %v11603_v30 = vadd.f32 %v11602_v46, %v11522_v35 }
0x129a   :  { %v19221_v57 = vpop.f32.mrf.mxu0  ;;  %v19248_v32 = vpop.f32.mrf.mxu1 }
0x129b   :  { %v11689_v1 = vadd.f32 %v11688_v52, %v11603_v30 }
0x12a0   :  { %v11766_v23 = vpop.f32.mrf.mxu0  ;;  %v11996_v40 = vpop.f32.mrf.mxu1 }
0x12a1   :  { %v11767_v59 = vadd.f32 %v11766_v23, %v11689_v1 }
0x12a2   :  { %v19239_v60 = vpop.f32.mrf.mxu0  ;;  %v19266_v4 = vpop.f32.mrf.mxu1 }
0x12a3   :  { %v11843_v26 = vadd.f32 %v11842_v28, %v11767_v59 }
0x12a8   :  { %v11922_v2 = vpop.f32.mrf.mxu0 }
0x12a9   :  { %v11923_v8 = vadd.f32 %v11922_v2, %v11843_v26  ;;  %v12188_v63 = vpop.f32.mrf.mxu1 }
0x12aa   :  { %v19257_v33 = vpop.f32.mrf.mxu0 }
0x12ab   :  { %v11997_v24 = vadd.f32 %v11996_v40, %v11923_v8  ;;  %v19288_v58 = vpop.f32.mrf.mxu1 }
0x12ad   :  { %v12000_v51 = vmul.f32 %v11997_v24, %v20414_v56 }
0x12af   :  { %20045 = vtanh.f32 %v12000_v51 }
0x12b2   :  { %v12097_v57 = vpop.f32.mrf.mxu0 }
0x12b3   :  { %v12345_v20 = vpop.f32.mrf.mxu1  ;;  %v12098_v2 = vadd.f32 %v22031_v3, %v12097_v57 }
0x12b4   :  { %v19277_v22 = vpop.f32.mrf.mxu0 }
0x12b5   :  { %v19310_v35 = vpop.f32.mrf.mxu1  ;;  %v12189_v33 = vadd.f32 %v12188_v63, %v12098_v2 }
0x12bc   :  { %v20046_v46 = vpop.eup %20045  ;;  %v12268_v61 = vpop.f32.mrf.mxu0 }
0x12bd   :  { %v12503_v30 = vpop.f32.mrf.mxu1  ;;  %v12002_v60 = vmul.f32 0.5, %v20046_v46  ;;  %v12269_v51 = vadd.f32 %v12268_v61, %v12189_v33 }
0x12be   :  { %v19299_v52 = vpop.f32.mrf.mxu0 }
0x12bf   :  { %v19332_v1 = vpop.f32.mrf.mxu1  ;;  %v12003_v28 = vadd.f32 0.5, %v12002_v60  ;;  %v12346_v52 = vadd.f32 %v12345_v20, %v12269_v51 }
0x12c1   :  { %v12004_v27 = vsel %vm20408_vm10, %v20046_v46, %v12003_v28 }
0x12c2   :  { %12007 = vrot.lane.b32.xlu0 %v12004_v27, %s20110_s5 }
0x12c6   :  { %v12428_v8 = vpop.f32.mrf.mxu0 }
0x12c7   :  { %v12678_v44 = vpop.f32.mrf.mxu1  ;;  %v12429_v1 = vadd.f32 %v12428_v8, %v12346_v52 }
0x12c8   :  { %v19321_v32 = vpop.f32.mrf.mxu0 }
0x12c9   :  { %v19354_v23 = vpop.f32.mrf.mxu1  ;;  %v12504_v62 = vadd.f32 %v12503_v30, %v12429_v1 }
0x12d0   :  { %v12587_v40 = vpop.f32.mrf.mxu0 }
0x12d1   :  { %v12835_v4 = vpop.f32.mrf.mxu1  ;;  %v12679_v22 = vadd.f32 %v12678_v44, %v12587_v40 }
0x12d2   :  { %v19343_v59 = vpop.f32.mrf.mxu0 }
0x12d3   :  { %v19376_v26 = vpop.f32.mrf.mxu1 }
0x12da   :  { %v12758_v24 = vpop.f32.mrf.mxu0 }
0x12db   :  { %v12993_v58 = vpop.f32.mrf.mxu1  ;;  %v12759_v46 = vadd.f32 %v12758_v24, %v12679_v22 }
0x12dc   :  { %v19365_v35 = vpop.f32.mrf.mxu0 }
0x12dd   :  { %v19398_v60 = vpop.f32.mrf.mxu1  ;;  %v12836_v28 = vadd.f32 %v12835_v4, %v12759_v46 }
0x12e3   :  { %v12918_v25 = vpop.f32.mrf.mxu0 }
0x12e4   :  { %v12919_v32 = vadd.f32 %v12918_v25, %v12836_v28  ;;  %v13026_v28 = vstv %s16748_s16 }
0x12e5   :  { %v19387_v23 = vpop.f32.mrf.mxu0  ;;  %vm13027_vm5 = vcmp.eq.s32.totalorder %v20193_v19, %v13026_v28 }
0x12e6   :  { %v12994_v31 = vadd.f32 %v12993_v58, %v12919_v32  ;;  %vm13028_vm6 = vmand %vm59_vm4, %vm13027_vm5  ;;  %vm16030_vm4 = vcmask 785408  }
0x12e8   :  { %v12997_v59 = vadd.f32 %v12994_v31, %v12504_v62  ;;  %v12005_v31 = vmul.f32 %v12004_v27, %v22041_v0 }
0x12ea   :  { %v12998_v26 = vmul.f32 %v12997_v59, %v20414_v56  ;;  %v23506_v59 = vld [vmem:[#allocation40_spill] sm:$0xff] }
0x12ec   :  { %20047 = vtanh.f32 %v12998_v26 }
0x12f9   :  { %v20048_v3 = vpop.eup %20047 }
0x12fa   :  { %v13000_v63 = vmul.f32 0.5, %v20048_v3 }
0x12fc   :  { %v13001_v57 = vadd.f32 0.5, %v13000_v63 }
0x12fe   :  { %v13002_v61 = vsel %vm20408_vm10, %v20048_v3, %v13001_v57  ;;  %v23507_v3 = vld [vmem:[#allocation25_spill] sm:$0xff]  ;;  %v23508_v57 = vld [vmem:[#allocation26_spill] sm:$0xff] }
0x12ff   :  { %13005 = vrot.lane.b32.xlu0 %v13002_v61, %s20110_s5  ;;  %v13003_v4 = vmul.f32 %v13002_v61, %v22046_v29 }
0x1334   :  { %v12008_v20 = vpop.permute.xlu0 %12007 }
0x1335   :  { %v12010_v8 = vmul.f32 %v12008_v20, %v12004_v27 }
0x1337   :  { %12012 = vrot.lane.b32.xlu1 %v12010_v8, %s20111_s6  ;;  %v23510_v8 = vld [vmem:[#allocation31_spill] sm:$0xff] }
0x1371   :  { %v13006_v25 = vpop.permute.xlu0 %13005 }
0x1372   :  { %v13008_v44 = vmul.f32 %v13006_v25, %v13002_v61  ;;  %v23511_v25 = vld [vmem:[#allocation27_spill] sm:$0xff] }
0x1374   :  { %13010 = vrot.lane.b32.xlu1 %v13008_v44, %s20111_s6  ;;  %v23512_v44 = vld [vmem:[#allocation29_spill] sm:$0xff] }
0x13a9   :  { %v12013_v62 = vpop.permute.xlu1 %12012 }
0x13aa   :  { %v22341_v30 = vadd.f32 %v12013_v62, %v12005_v31  ;;  %v23513_v31 = vld [vmem:[#allocation32_spill] sm:$0xff]  ;;  %v23514_v62 = vld [vmem:[#allocation35_spill] sm:$0xff] }
0x13ac   :  { %20049 = vtanh.f32 %v22341_v30 }
0x13b9   :  { %v20050_v40 = vpop.eup %20049 }
0x13ba   :  { %12018 = vrot.lane.b32.xlu0 %v20050_v40, %s20110_s5  ;;  %v23515_v40 = vld [vmem:[#allocation30_spill] sm:$0xff] }
0x13e6   :  { %v13011_v2 = vpop.permute.xlu1 %13010 }
0x13e7   :  { %v22346_v33 = vadd.f32 %v13011_v2, %v13003_v4  ;;  %v23516_v4 = vld [vmem:[#allocation33_spill] sm:$0xff]  ;;  %v23517_v2 = vld [vmem:[#allocation34_spill] sm:$0xff] }
0x13e9   :  { %20051 = vtanh.f32 %v22346_v33 }
0x13f6   :  { %v20052_v24 = vpop.eup %20051 }
0x13f7   :  { %13016 = vrot.lane.b32.xlu0 %v20052_v24, %s20110_s5  ;;  %v23518_v24 = vld [vmem:[#allocation37_spill] sm:$0xff] }
0x142c   :  { %v12019_v58 = vpop.permute.xlu0 %12018 }
0x142d   :  { %v12021_v0 = vmul.f32 %v12019_v58, %v12004_v27  ;;  %v13021_v27 = vstv %s16747_s15 }
0x142e   :  { %vm13022_vm2 = vcmp.eq.s32.totalorder %v20193_v19, %v13021_v27 }
0x142f   :  { %13031 = vrot.lane.b32.xlu1 %v12021_v0, %s20111_s6  ;;  %vm13023_vm3 = vmand %vm53_vm1, %vm13022_vm2  ;;  %vm16028_vm1 = vcmask 523264  }
0x1430   :  { %v13024_v23 = vsel %vm13023_vm3, 1.0, %v23333_v21 }
0x1469   :  { %v13017_v51 = vpop.permute.xlu0 %13016 }
0x146a   :  { %v13019_v22 = vmul.f32 %v13017_v51, %v13002_v61  ;;  %v23509_v61 = vld [vmem:[#allocation28_spill] sm:$0xff] }
0x146c   :  { %14503 = vrot.lane.b32.xlu1 %v13019_v22, %s20111_s6 }
0x14a1   :  { %v13032_v35 = vpop.permute.xlu1 %13031 }
0x14a2   :  { %v13033_v29 = vsel %vm64_vm11, %v13032_v35, 0 }
0x14a3   :  { %v22353_v60 = vand.u32 4294901760, %v13033_v29 }
0x14a5   :  { %v22356_v46 = vsub.f32 %v13033_v29, %v22353_v60  ;;  %19419 = vmatmul.mubr.f32.vlgmr.msra.gmra.mxu1 %v22353_v60 }
0x14a6   :  { %19433 = vmatpush3.msra.mxu1 %v20147_v5  ;;  %19440 = vmatprep.mubr.msk.f32.mxu1 %vm20108_vm0, %v23333_v21 }
0x14a7   :  { %v22363_v52 = vand.u32 4294901760, %v22356_v46  ;;  %19434 = vmatprep.subr.mxu1 %v23333_v21 }
0x14a8   :  { %19435 = vmatpush3.msra.mxu1 %v20149_v6 }
0x14a9   :  { %v13107_v1 = vsub.f32 %v22356_v46, %v22363_v52  ;;  %19436 = vmatprep.subr.mxu1 %v23333_v21 }
0x14aa   :  { %19437 = vmatpush3.msra.mxu1 %v20151_v7 }
0x14ab   :  { %v22372_v32 = vand.u32 4294901760, %v13107_v1  ;;  %19438 = vmatprep.subr.mxu1 %v23333_v21 }
0x14ac   :  { %19439 = vmatpush3.msra.mxu1 %v20157_v9 }
0x14ad   :  { %19441 = vmatmul.mubr.f32.vlgmr.msra.gmra.mxu1 %v22363_v52  ;;  %19454 = vmatprep.subr.mxu1 %v23333_v21 }
0x14ae   :  { %19408 = vmatmul.mubr.f32.vlgmr.msra.gmra.mxu0 %v22372_v32  ;;  %19455 = vmatpush3.msra.mxu1 %v20147_v5  ;;  %v22394_v5 = vsel %vm13028_vm6, 1.0, %v13024_v23 }
0x14af   :  { %19422 = vmatpush3.msra.mxu0 %v20165_v10  ;;  %19456 = vmatprep.subr.mxu1 %v23333_v21 }
0x14b0   :  { %19423 = vmatprep.subr.mxu0 %v23333_v21  ;;  %19457 = vmatpush3.msra.mxu1 %v20149_v6  ;;  %v13521_v6 = vsel %vm553_vm7, %v22394_v5, 0 }
0x14b1   :  { %19424 = vmatpush3.msra.mxu0 %v20168_v11  ;;  %19458 = vmatprep.subr.mxu1 %v23333_v21 }
0x14b2   :  { %19425 = vmatprep.subr.mxu0 %v23333_v21  ;;  %19459 = vmatpush3.msra.mxu1 %v20151_v7  ;;  %v13592_v7 = vsub.f32 %v13521_v6, %v13521_v6 }
0x14b3   :  { %19426 = vmatpush3.msra.mxu0 %v20171_v12  ;;  %19460 = vmatprep.subr.mxu1 %v23333_v21  ;;  %v23490_v12 = vld [vmem:[#allocation24_spill] sm:$0xff] }
0x14b4   :  { %19427 = vmatprep.subr.mxu0 %v23333_v21  ;;  %19429 = vmatprep.mubr.msk.f32.mxu0 %vm20108_vm0, %v23333_v21 }
0x14b5   :  { %19428 = vmatpush3.msra.mxu0 %v20175_v13  ;;  %19461 = vmatpush3.msra.mxu1 %v20157_v9  ;;  %v13593_v9 = vand.u32 4294901760, %v13592_v7  ;;  %v23491_v13 = vld [vmem:[#allocation12_spill] sm:$0xff] }
0x14b6   :  { %19462 = vmatprep.mubr.msk.f32.mxu1 %vm20108_vm0, %v23333_v21  ;;  %19430 = vmatmul.mubr.f32.vlgmr.msra.gmra.mxu0 %v22356_v46 }
0x14b7   :  { %19443 = vmatprep.subr.mxu0 %v23333_v21  ;;  %19463 = vmatmul.mubr.f32.vlgmr.msra.gmra.mxu1 %v22353_v60  ;;  %v13594_v10 = vsub.f32 %v13592_v7, %v13593_v9 }
0x14b8   :  { %19474 = vmatprep.subr.mxu1 %v23333_v21  ;;  %19444 = vmatpush3.msra.mxu0 %v20181_v15  ;;  %v23493_v15 = vld [vmem:[#allocation15_spill] sm:$0xff] }
0x14b9   :  { %19475 = vmatpush3.msra.mxu1 %v20322_v50  ;;  %19445 = vmatprep.subr.mxu0 %v23333_v21  ;;  %v13595_v11 = vand.u32 4294901760, %v13594_v10  ;;  %v23503_v50 = vld [vmem:[#allocation22_spill] sm:$0xff] }
0x14ba   :  { %19476 = vmatprep.subr.mxu1 %v23333_v21  ;;  %19446 = vmatpush3.msra.mxu0 %v20184_v16  ;;  %v23494_v16 = vld [vmem:[#allocation17_spill] sm:$0xff] }
0x14bb   :  { %19477 = vmatpush3.msra.mxu1 %v20330_v53  ;;  %19447 = vmatprep.subr.mxu0 %v23333_v21  ;;  %v23504_v53 = vld [vmem:[#allocation39_spill] sm:$0xff] }
0x14bc   :  { %19478 = vmatprep.subr.mxu1 %v23333_v21  ;;  %19448 = vmatpush3.msra.mxu0 %v20187_v17  ;;  %v23495_v17 = vld [vmem:[#allocation14_spill] sm:$0xff] }
0x14bd   :  { %19479 = vmatpush3.msra.mxu1 %v20337_v54  ;;  %19449 = vmatprep.subr.mxu0 %v23333_v21  ;;  %v23505_v54 = vld [vmem:[#allocation23_spill] sm:$0xff] }
0x14be   :  { %19480 = vmatprep.mubr.msk.f32.mxu1 %vm20108_vm0, %v23333_v21  ;;  %19492 = vmatprep.subr.mxu1 %v23333_v21 }
0x14bf   :  { %19450 = vmatpush3.msra.mxu0 %v20191_v18  ;;  %19451 = vmatprep.mubr.msk.f32.mxu0 %vm20108_vm0, %v23333_v21  ;;  %v23496_v18 = vld [vmem:[#allocation16_spill] sm:$0xff] }
0x14c0   :  { %19481 = vmatmul.mubr.msk.f32.vlgmr.msra.gmra.mxu1 %vm553_vm7, %v22394_v5  ;;  %19452 = vmatmul.mubr.f32.vlgmr.msra.gmra.mxu0 %v22353_v60 }
0x14c1   :  { %19493 = vmatpush3.msra.mxu1 %v20249_v34  ;;  %19465 = vmatprep.subr.mxu0 %v23333_v21 }
0x14c2   :  { %19494 = vmatprep.subr.mxu1 %v23333_v21  ;;  %19466 = vmatpush3.msra.mxu0 %v20249_v34 }
0x14c3   :  { %19495 = vmatpush3.msra.mxu1 %v20259_v36  ;;  %19467 = vmatprep.subr.mxu0 %v23333_v21 }
0x14c4   :  { %19496 = vmatprep.subr.mxu1 %v23333_v21  ;;  %19468 = vmatpush3.msra.mxu0 %v20259_v36 }
0x14c5   :  { %19497 = vmatpush3.msra.mxu1 %v20267_v38  ;;  %19469 = vmatprep.subr.mxu0 %v23333_v21 }
0x14c6   :  { %19498 = vmatprep.mubr.msk.f32.mxu1 %vm20108_vm0, %v23333_v21  ;;  %19510 = vmatprep.subr.mxu1 %v23333_v21 }
0x14c7   :  { %19470 = vmatpush3.msra.mxu0 %v20267_v38  ;;  %19471 = vmatprep.mubr.msk.f32.mxu0 %vm20108_vm0, %v23333_v21 }
0x14c8   :  { %19499 = vmatmul.mubr.f32.vlgmr.msra.gmra.mxu1 %v13593_v9  ;;  %19472 = vmatmul.mubr.f32.vlgmr.msra.gmra.mxu0 %v13595_v11 }
0x14c9   :  { %19511 = vmatpush3.msra.mxu1 %v20249_v34  ;;  %19483 = vmatprep.subr.mxu0 %v23333_v21  ;;  %v23497_v34 = vld [vmem:[#allocation19_spill] sm:$0xff] }
0x14ca   :  { %19512 = vmatprep.subr.mxu1 %v23333_v21  ;;  %19484 = vmatpush3.msra.mxu0 %v20270_v39 }
0x14cb   :  { %19513 = vmatpush3.msra.mxu1 %v20259_v36  ;;  %19485 = vmatprep.subr.mxu0 %v23333_v21  ;;  %v23498_v36 = vld [vmem:[#allocation21_spill] sm:$0xff] }
0x14cc   :  { %19514 = vmatprep.subr.mxu1 %v23333_v21  ;;  %19486 = vmatpush3.msra.mxu0 %v20279_v41  ;;  %v23499_v41 = vld [vmem:[#allocation18_spill] sm:$0xff] }
0x14cd   :  { %19515 = vmatpush3.msra.mxu1 %v20267_v38  ;;  %19487 = vmatprep.subr.mxu0 %v23333_v21 }
0x14ce   :  { %19516 = vmatprep.mubr.msk.f32.mxu1 %vm20108_vm0, %v23333_v21  ;;  %19530 = vmatprep.subr.mxu1 %v23333_v21 }
0x14cf   :  { %19488 = vmatpush3.msra.mxu0 %v20290_v43  ;;  %19489 = vmatprep.mubr.msk.f32.mxu0 %vm20108_vm0, %v23333_v21  ;;  %v23501_v43 = vld [vmem:[#allocation20_spill] sm:$0xff] }
0x14d0   :  { %19517 = vmatmul.mubr.msk.f32.vlgmr.msra.gmra.mxu1 %vm553_vm7, %v22394_v5  ;;  %19490 = vmatmul.mubr.f32.vlgmr.msra.gmra.mxu0 %v13592_v7 }
0x14d1   :  { %19531 = vmatpush3.msra.mxu1 %v20583_v37  ;;  %19501 = vmatprep.subr.mxu0 %v23333_v21 }
0x14d2   :  { %19532 = vmatprep.subr.mxu1 %v23333_v21  ;;  %19502 = vmatpush3.msra.mxu0 %v20287_v42  ;;  %v23500_v42 = vld [vmem:[#allocation36_spill] sm:$0xff] }
0x14d3   :  { %19533 = vmatpush3.msra.mxu1 %v20593_v48  ;;  %19503 = vmatprep.subr.mxu0 %v23333_v21 }
0x14d4   :  { %19534 = vmatprep.subr.mxu1 %v23333_v21  ;;  %19504 = vmatpush3.msra.mxu0 %v20298_v45  ;;  %v23502_v45 = vld [vmem:[#allocation38_spill] sm:$0xff] }
0x14d5   :  { %19535 = vmatpush3.msra.mxu1 %v20602_v55  ;;  %19505 = vmatprep.subr.mxu0 %v23333_v21 }
0x14d6   :  { %19536 = vmatprep.subr.mxu1 %v23333_v21  ;;  %19506 = vmatpush3.msra.mxu0 %v20308_v47 }
0x14d7   :  { %19507 = vmatprep.mubr.msk.f32.mxu0 %vm20108_vm0, %v23333_v21  ;;  %19537 = vmatpush3.msra.mxu1 %v23490_v12 }
0x14d8   :  { %19538 = vmatprep.mubr.msk.f32.mxu1 %vm20108_vm0, %v23333_v21  ;;  %19508 = vmatmul.mubr.msk.f32.vlgmr.msra.gmra.mxu0 %vm553_vm7, %v22394_v5 }
0x14d9   :  { %19519 = vmatprep.subr.mxu0 %v23333_v21  ;;  %19539 = vmatmul.mubr.f32.vlgmr.msra.gmra.mxu1 %v22353_v60 }
0x14da   :  { %19552 = vmatprep.subr.mxu1 %v23333_v21  ;;  %19520 = vmatpush3.msra.mxu0 %v23491_v13 }
0x14db   :  { %19553 = vmatpush3.msra.mxu1 %v23491_v13  ;;  %19521 = vmatprep.subr.mxu0 %v23333_v21 }
0x14dc   :  { %19554 = vmatprep.subr.mxu1 %v23333_v21  ;;  %19522 = vmatpush3.msra.mxu0 %v23492_v14 }
0x14dd   :  { %19555 = vmatpush3.msra.mxu1 %v23492_v14  ;;  %19523 = vmatprep.subr.mxu0 %v23333_v21 }
0x14de   :  { %19556 = vmatprep.subr.mxu1 %v23333_v21  ;;  %19524 = vmatpush3.msra.mxu0 %v23493_v15  ;;  %v14504_v19 = vpop.permute.xlu1 %14503 }
0x14df   :  { %19557 = vmatpush3.msra.mxu1 %v23493_v15  ;;  %19525 = vmatprep.subr.mxu0 %v23333_v21  ;;  %v14505_v38 = vsel %vm64_vm11, %v14504_v19, 0 }
0x14e0   :  { %19558 = vmatprep.subr.mxu1 %v23333_v21  ;;  %19526 = vmatpush3.msra.mxu0 %v23494_v16  ;;  %v22531_v39 = vand.u32 4294901760, %v14505_v38 }
0x14e1   :  { %19527 = vmatprep.mubr.msk.f32.mxu0 %vm20108_vm0, %v23333_v21  ;;  %19559 = vmatpush3.msra.mxu1 %v23494_v16 }
0x14e2   :  { %19560 = vmatprep.mubr.msk.f32.mxu1 %vm20108_vm0, %v23333_v21  ;;  %19528 = vmatmul.mubr.f32.vlgmr.msra.gmra.mxu0 %v22372_v32  ;;  %v14577_v47 = vsub.f32 %v14505_v38, %v22531_v39 }
0x14e3   :  { %19541 = vmatprep.subr.mxu0 %v23333_v21  ;;  %19561 = vmatmul.mubr.f32.vlgmr.msra.gmra.mxu1 %v22363_v52 }
0x14e4   :  { %19574 = vmatprep.subr.mxu1 %v23333_v21  ;;  %19542 = vmatpush3.msra.mxu0 %v23495_v17  ;;  %v14578_v26 = vand.u32 4294901760, %v14577_v47 }
0x14e5   :  { %19575 = vmatpush3.msra.mxu1 %v23491_v13  ;;  %19543 = vmatprep.subr.mxu0 %v23333_v21 }
0x14e6   :  { %19576 = vmatprep.subr.mxu1 %v23333_v21  ;;  %19544 = vmatpush3.msra.mxu0 %v23496_v18  ;;  %v14579_v63 = vsub.f32 %v14577_v47, %v14578_v26 }
0x14e7   :  { %19577 = vmatpush3.msra.mxu1 %v23492_v14  ;;  %19545 = vmatprep.subr.mxu0 %v23333_v21 }
0x14e8   :  { %19578 = vmatprep.subr.mxu1 %v23333_v21  ;;  %19546 = vmatpush3.msra.mxu0 %v23497_v34  ;;  %v14580_v20 = vand.u32 4294901760, %v14579_v63 }
0x14e9   :  { %19579 = vmatpush3.msra.mxu1 %v23493_v15  ;;  %19547 = vmatprep.subr.mxu0 %v23333_v21 }
0x14ea   :  { %19580 = vmatprep.subr.mxu1 %v23333_v21  ;;  %19548 = vmatpush3.msra.mxu0 %v23498_v36 }
0x14eb   :  { %19549 = vmatprep.mubr.msk.f32.mxu0 %vm20108_vm0, %v23333_v21  ;;  %19581 = vmatpush3.msra.mxu1 %v23494_v16 }
0x14ec   :  { %19582 = vmatprep.mubr.msk.f32.mxu1 %vm20108_vm0, %v23333_v21  ;;  %19550 = vmatmul.mubr.f32.vlgmr.msra.gmra.mxu0 %v22356_v46 }
0x14ed   :  { %19563 = vmatprep.subr.mxu0 %v23333_v21  ;;  %19583 = vmatmul.mubr.f32.vlgmr.msra.gmra.mxu1 %v22353_v60 }
0x14ee   :  { %19596 = vmatprep.subr.mxu1 %v23333_v21  ;;  %19564 = vmatpush3.msra.mxu0 %v23499_v41 }
0x14ef   :  { %19597 = vmatpush3.msra.mxu1 %v23500_v42  ;;  %19565 = vmatprep.subr.mxu0 %v23333_v21 }
0x14f0   :  { %19598 = vmatprep.subr.mxu1 %v23333_v21  ;;  %19566 = vmatpush3.msra.mxu0 %v23501_v43 }
0x14f1   :  { %19599 = vmatpush3.msra.mxu1 %v23502_v45  ;;  %19567 = vmatprep.subr.mxu0 %v23333_v21 }
0x14f2   :  { %19600 = vmatprep.subr.mxu1 %v23333_v21  ;;  %19568 = vmatpush3.msra.mxu0 %v23503_v50 }
0x14f3   :  { %19601 = vmatpush3.msra.mxu1 %v23504_v53  ;;  %19569 = vmatprep.subr.mxu0 %v23333_v21 }
0x14f4   :  { %19602 = vmatprep.subr.mxu1 %v23333_v21  ;;  %19570 = vmatpush3.msra.mxu0 %v23505_v54 }
0x14f5   :  { %19571 = vmatprep.mubr.msk.f32.mxu0 %vm20108_vm0, %v23333_v21  ;;  %19603 = vmatpush3.msra.mxu1 %v23506_v59 }
0x14f6   :  { %19604 = vmatprep.mubr.msk.f32.mxu1 %vm20108_vm0, %v23333_v21  ;;  %19572 = vmatmul.mubr.f32.vlgmr.msra.gmra.mxu0 %v22353_v60 }
0x14f7   :  { %19585 = vmatprep.subr.mxu0 %v23333_v21  ;;  %19605 = vmatmul.mubr.f32.vlgmr.msra.gmra.mxu1 %v22531_v39 }
0x14f8   :  { %19618 = vmatprep.subr.mxu1 %v23333_v21  ;;  %19586 = vmatpush3.msra.mxu0 %v23507_v3 }
0x14f9   :  { %19619 = vmatpush3.msra.mxu1 %v23507_v3  ;;  %19587 = vmatprep.subr.mxu0 %v23333_v21 }
0x14fa   :  { %19620 = vmatprep.subr.mxu1 %v23333_v21  ;;  %19588 = vmatpush3.msra.mxu0 %v23508_v57 }
0x14fb   :  { %19621 = vmatpush3.msra.mxu1 %v23508_v57  ;;  %19589 = vmatprep.subr.mxu0 %v23333_v21 }
0x14fc   :  { %19622 = vmatprep.subr.mxu1 %v23333_v21  ;;  %19590 = vmatpush3.msra.mxu0 %v23509_v61 }
0x14fd   :  { %19623 = vmatpush3.msra.mxu1 %v23509_v61  ;;  %19591 = vmatprep.subr.mxu0 %v23333_v21 }
0x14fe   :  { %19624 = vmatprep.subr.mxu1 %v23333_v21  ;;  %19592 = vmatpush3.msra.mxu0 %v23510_v8 }
0x14ff   :  { %19593 = vmatprep.mubr.msk.f32.mxu0 %vm20108_vm0, %v23333_v21  ;;  %19625 = vmatpush3.msra.mxu1 %v23510_v8 }
0x1500   :  { %19626 = vmatprep.mubr.msk.f32.mxu1 %vm20108_vm0, %v23333_v21  ;;  %19594 = vmatmul.mubr.f32.vlgmr.msra.gmra.mxu0 %v14580_v20 }
0x1501   :  { %19607 = vmatprep.subr.mxu0 %v23333_v21  ;;  %19627 = vmatmul.mubr.f32.vlgmr.msra.gmra.mxu1 %v14578_v26 }
0x1502   :  { %19640 = vmatprep.subr.mxu1 %v23333_v21  ;;  %19608 = vmatpush3.msra.mxu0 %v23511_v25 }
0x1503   :  { %19641 = vmatpush3.msra.mxu1 %v23507_v3  ;;  %19609 = vmatprep.subr.mxu0 %v23333_v21 }
0x1504   :  { %19642 = vmatprep.subr.mxu1 %v23333_v21  ;;  %19610 = vmatpush3.msra.mxu0 %v23512_v44 }
0x1505   :  { %19643 = vmatpush3.msra.mxu1 %v23508_v57  ;;  %19611 = vmatprep.subr.mxu0 %v23333_v21 }
0x1506   :  { %19644 = vmatprep.subr.mxu1 %v23333_v21  ;;  %19612 = vmatpush3.msra.mxu0 %v23513_v31 }
0x1507   :  { %19645 = vmatpush3.msra.mxu1 %v23509_v61  ;;  %19613 = vmatprep.subr.mxu0 %v23333_v21 }
0x1508   :  { %19646 = vmatprep.subr.mxu1 %v23333_v21  ;;  %19614 = vmatpush3.msra.mxu0 %v23514_v62 }
0x1509   :  { %19615 = vmatprep.mubr.msk.f32.mxu0 %vm20108_vm0, %v23333_v21  ;;  %19647 = vmatpush3.msra.mxu1 %v23510_v8 }
0x150a   :  { %19648 = vmatprep.mubr.msk.f32.mxu1 %vm20108_vm0, %v23333_v21  ;;  %19616 = vmatmul.mubr.f32.vlgmr.msra.gmra.mxu0 %v14577_v47 }
0x150b   :  { %19629 = vmatprep.subr.mxu0 %v23333_v21  ;;  %19649 = vmatmul.mubr.f32.vlgmr.msra.gmra.mxu1 %v22531_v39 }
0x150c   :  { %19630 = vmatpush3.msra.mxu0 %v23515_v40  ;;  %19637 = vmatprep.mubr.msk.f32.mxu0 %vm20108_vm0, %v23333_v21 }
0x150d   :  { %19631 = vmatprep.subr.mxu0 %v23333_v21  ;;  %19662 = vmatprep.subr.mxu1 %v23333_v21 }
0x150e   :  { %19632 = vmatpush3.msra.mxu0 %v23516_v4  ;;  %19663 = vmatpush3.msra.mxu1 %v20583_v37 }
0x150f   :  { %19633 = vmatprep.subr.mxu0 %v23333_v21  ;;  %19664 = vmatprep.subr.mxu1 %v23333_v21 }
0x1510   :  { %19634 = vmatpush3.msra.mxu0 %v23517_v2  ;;  %19665 = vmatpush3.msra.mxu1 %v20593_v48 }
0x1511   :  { %19635 = vmatprep.subr.mxu0 %v23333_v21  ;;  %19666 = vmatprep.subr.mxu1 %v23333_v21 }
0x1512   :  { %19636 = vmatpush3.msra.mxu0 %v23518_v24  ;;  %19667 = vmatpush3.msra.mxu1 %v20602_v55 }
0x1513   :  { %19638 = vmatmul.mubr.f32.vlgmr.msra.gmra.mxu0 %v22531_v39  ;;  %19668 = vmatprep.subr.mxu1 %v23333_v21 }
0x1514   :  { %19669 = vmatpush3.msra.mxu1 %v23490_v12  ;;  %19651 = vmatprep.subr.mxu0 %v23333_v21 }
0x1515   :  { %19670 = vmatprep.mubr.msk.f32.mxu1 %vm20108_vm0, %v23333_v21  ;;  %19684 = vmatprep.subr.mxu1 %v23333_v21 }
0x1516   :  { %19652 = vmatpush3.msra.mxu0 %v23491_v13  ;;  %19659 = vmatprep.mubr.msk.f32.mxu0 %vm20108_vm0, %v23333_v21 }
0x1517   :  { %19653 = vmatprep.subr.mxu0 %v23333_v21 }
0x1518   :  { %19654 = vmatpush3.msra.mxu0 %v23492_v14 }
0x1519   :  { %19655 = vmatprep.subr.mxu0 %v23333_v21 }
0x151a   :  { %19656 = vmatpush3.msra.mxu0 %v23493_v15 }
0x151b   :  { %19657 = vmatprep.subr.mxu0 %v23333_v21 }
0x151c   :  { %19658 = vmatpush3.msra.mxu0 %v23494_v16 }
0x151d   :  { %19673 = vmatprep.subr.mxu0 %v23333_v21 }
0x1565   :  { %v13201_v37 = vpop.f32.mrf.mxu1 }
0x1567   :  { %v19420_v48 = vpop.f32.mrf.mxu1 }
0x156d   :  { %v13358_v55 = vpop.f32.mrf.mxu1 }
0x156e   :  { %v13110_v58 = vpop.f32.mrf.mxu0 }
0x156f   :  { %v19442_v0 = vpop.f32.mrf.mxu1  ;;  %v13202_v46 = vadd.f32 %v13201_v37, %v13110_v58 }
0x1570   :  { %v19409_v51 = vpop.f32.mrf.mxu0 }
0x1576   :  { %v13281_v22 = vpop.f32.mrf.mxu0 }
0x1577   :  { %v13516_v35 = vpop.f32.mrf.mxu1  ;;  %v13282_v1 = vadd.f32 %v13281_v22, %v13202_v46 }
0x1578   :  { %v19431_v29 = vpop.f32.mrf.mxu0 }
0x1579   :  { %v19464_v60 = vpop.f32.mrf.mxu1  ;;  %v13359_v23 = vadd.f32 %v13358_v55, %v13282_v1 }
0x1580   :  { %v13441_v27 = vpop.f32.mrf.mxu0  ;;  %v13683_v52 = vpop.f32.mrf.mxu1 }
0x1581   :  { %v13442_v5 = vadd.f32 %v13441_v27, %v13359_v23 }
0x1582   :  { %v19453_v28 = vpop.f32.mrf.mxu0  ;;  %v19482_v32 = vpop.f32.mrf.mxu1 }
0x1583   :  { %v13517_v11 = vadd.f32 %v13516_v35, %v13442_v5 }
0x1588   :  { %v13597_v6 = vpop.f32.mrf.mxu0  ;;  %v13837_v7 = vpop.f32.mrf.mxu1 }
0x1589   :  { %v13598_v12 = vadd.f32 %v13597_v6, %v13517_v11 }
0x158a   :  { %v19473_v9 = vpop.f32.mrf.mxu0  ;;  %v19500_v10 = vpop.f32.mrf.mxu1 }
0x158b   :  { %v13684_v39 = vadd.f32 %v13683_v52, %v13598_v12 }
0x1590   :  { %v13761_v19 = vpop.f32.mrf.mxu0  ;;  %v13991_v38 = vpop.f32.mrf.mxu1 }
0x1591   :  { %v13762_v63 = vadd.f32 %v13761_v19, %v13684_v39 }
0x1592   :  { %v19491_v47 = vpop.f32.mrf.mxu0  ;;  %v19518_v26 = vpop.f32.mrf.mxu1 }
0x1593   :  { %v13838_v20 = vadd.f32 %v13837_v7, %v13762_v63  ;;  %v22636_v47 = vld [vmem:[%s23192_s1 + $0x78] ss:$0 sm:$0xff] }
0x1598   :  { %v13917_v37 = vpop.f32.mrf.mxu0 }
0x1599   :  { %v13918_v48 = vadd.f32 %v13917_v37, %v13838_v20  ;;  %v14183_v58 = vpop.f32.mrf.mxu1 }
0x159a   :  { %v19509_v0 = vpop.f32.mrf.mxu0 }
0x159b   :  { %v13992_v51 = vadd.f32 %v13991_v38, %v13918_v48  ;;  %v19540_v55 = vpop.f32.mrf.mxu1 }
0x159d   :  { %v13995_v22 = vmul.f32 %v13992_v51, %v20414_v56 }
0x159f   :  { %20053 = vtanh.f32 %v13995_v22 }
0x15a2   :  { %v14092_v29 = vpop.f32.mrf.mxu0 }
0x15a3   :  { %v14340_v60 = vpop.f32.mrf.mxu1  ;;  %v14093_v26 = vadd.f32 %v22636_v47, %v14092_v29 }
0x15a4   :  { %v19529_v35 = vpop.f32.mrf.mxu0 }
0x15a5   :  { %v19562_v46 = vpop.f32.mrf.mxu1  ;;  %v14184_v63 = vadd.f32 %v14183_v58, %v14093_v26 }
0x15ac   :  { %v20054_v27 = vpop.eup %20053  ;;  %v14263_v1 = vpop.f32.mrf.mxu0 }
0x15ad   :  { %v14498_v52 = vpop.f32.mrf.mxu1  ;;  %v13997_v28 = vmul.f32 0.5, %v20054_v27  ;;  %v14264_v48 = vadd.f32 %v14263_v1, %v14184_v63 }
0x15ae   :  { %v19551_v32 = vpop.f32.mrf.mxu0 }
0x15af   :  { %v19584_v23 = vpop.f32.mrf.mxu1  ;;  %v13998_v5 = vadd.f32 0.5, %v13997_v28  ;;  %v14341_v35 = vadd.f32 %v14340_v60, %v14264_v48 }
0x15b1   :  { %v13999_v6 = vsel %vm20408_vm10, %v20054_v27, %v13998_v5 }
0x15b2   :  { %14002 = vrot.lane.b32.xlu0 %v13999_v6, %s20110_s5 }
0x15b6   :  { %v14423_v7 = vpop.f32.mrf.mxu0 }
0x15b7   :  { %v14673_v9 = vpop.f32.mrf.mxu1  ;;  %v14424_v46 = vadd.f32 %v14423_v7, %v14341_v35 }
0x15b8   :  { %v19573_v10 = vpop.f32.mrf.mxu0 }
0x15b9   :  { %v19606_v11 = vpop.f32.mrf.mxu1  ;;  %v14499_v5 = vadd.f32 %v14498_v52, %v14424_v46  ;;  %v14000_v52 = vmul.f32 %v13999_v6, %v22341_v30 }
0x15c0   :  { %v14582_v12 = vpop.f32.mrf.mxu0 }
0x15c1   :  { %v14830_v19 = vpop.f32.mrf.mxu1  ;;  %v14674_v0 = vadd.f32 %v14673_v9, %v14582_v12 }
0x15c2   :  { %v19595_v38 = vpop.f32.mrf.mxu0 }
0x15c3   :  { %v19628_v39 = vpop.f32.mrf.mxu1 }
0x15ca   :  { %v14753_v20 = vpop.f32.mrf.mxu0 }
0x15cb   :  { %v14988_v37 = vpop.f32.mrf.mxu1  ;;  %v14754_v22 = vadd.f32 %v14753_v20, %v14674_v0 }
0x15cc   :  { %v19617_v51 = vpop.f32.mrf.mxu0 }
0x15cd   :  { %v19650_v55 = vpop.f32.mrf.mxu1  ;;  %v14831_v27 = vadd.f32 %v14830_v19, %v14754_v22 }
0x15d3   :  { %v14913_v28 = vpop.f32.mrf.mxu0 }
0x15d4   :  { %v14914_v32 = vadd.f32 %v14913_v28, %v14831_v27 }
0x15d5   :  { %v19639_v23 = vpop.f32.mrf.mxu0 }
0x15d6   :  { %v14989_v10 = vadd.f32 %v14988_v37, %v14914_v32 }
0x15d8   :  { %v14992_v11 = vadd.f32 %v14989_v10, %v14499_v5 }
0x15da   :  { %v14993_v38 = vmul.f32 %v14992_v11, %v20414_v56 }
0x15dc   :  { %20055 = vtanh.f32 %v14993_v38 }
0x15e9   :  { %v20056_v58 = vpop.eup %20055 }
0x15ea   :  { %v14995_v29 = vmul.f32 0.5, %v20056_v58 }
0x15ec   :  { %v14996_v39 = vadd.f32 0.5, %v14995_v29 }
0x15ee   :  { %v14997_v1 = vsel %vm20408_vm10, %v20056_v58, %v14996_v39 }
0x15ef   :  { %15000 = vrot.lane.b32.xlu1 %v14997_v1, %s20110_s5  ;;  %v14998_v20 = vmul.f32 %v14997_v1, %v22346_v33 }
0x1624   :  { %v14003_v60 = vpop.permute.xlu0 %14002 }
0x1625   :  { %v14005_v7 = vmul.f32 %v14003_v60, %v13999_v6 }
0x1627   :  { %14007 = vrot.lane.b32.xlu0 %v14005_v7, %s20111_s6 }
0x1661   :  { %v15001_v9 = vpop.permute.xlu1 %15000 }
0x1662   :  { %v15003_v12 = vmul.f32 %v15001_v9, %v14997_v1 }
0x1664   :  { %15005 = vrot.lane.b32.xlu1 %v15003_v12, %s20111_s6 }
0x1699   :  { %v14008_v19 = vpop.permute.xlu0 %14007 }
0x169a   :  { %v22646_v26 = vadd.f32 %v14008_v19, %v14000_v52 }
0x169c   :  { %20057 = vtanh.f32 %v22646_v26 }
0x16a9   :  { %v20058_v63 = vpop.eup %20057 }
0x16aa   :  { %14013 = vrot.lane.b32.xlu0 %v20058_v63, %s20110_s5 }
0x16d6   :  { %v15006_v37 = vpop.permute.xlu1 %15005 }
0x16d7   :  { %v22651_v48 = vadd.f32 %v15006_v37, %v14998_v20 }
0x16d9   :  { %20059 = vtanh.f32 %v22651_v48 }
0x16e6   :  { %v20060_v0 = vpop.eup %20059 }
0x16e7   :  { %15011 = vrot.lane.b32.xlu1 %v20060_v0, %s20110_s5 }
0x171c   :  { %v14014_v51 = vpop.permute.xlu0 %14013 }
0x171d   :  { %v14016_v30 = vmul.f32 %v14014_v51, %v13999_v6 }
0x171f   :  { %15016 = vrot.lane.b32.xlu0 %v14016_v30, %s20111_s6 }
0x1759   :  { %v15012_v55 = vpop.permute.xlu1 %15011 }
0x175a   :  { %v15014_v22 = vmul.f32 %v15012_v55, %v14997_v1 }
0x175c   :  { %15506 = vrot.lane.b32.xlu1 %v15014_v22, %s20111_s6 }
0x1791   :  { %v22657_v35 = vpop.permute.xlu0 %15016 }
0x1792   :  { %v15018_v33 = vsel %vm64_vm11, %v22657_v35, 0 }
0x1793   :  { %v15089_v46 = vand.u32 4294901760, %v15018_v33 }
0x1795   :  { %v15090_v27 = vsub.f32 %v15018_v33, %v15089_v46  ;;  %19671 = vmatmul.mubr.f32.vlgmr.msra.gmra.mxu1 %v15089_v46  ;;  %v16047_v33 = vld [vmem:[%s23193_s2 + $0x70] sm:$0xff] }
0x1796   :  { %19685 = vmatpush3.msra.mxu1 %v23491_v13  ;;  %19692 = vmatprep.mubr.msk.f32.mxu1 %vm20108_vm0, %v23333_v21 }
0x1797   :  { %v15091_v6 = vand.u32 4294901760, %v15090_v27  ;;  %19686 = vmatprep.subr.mxu1 %v23333_v21 }
0x1798   :  { %19687 = vmatpush3.msra.mxu1 %v23492_v14 }
0x1799   :  { %v15092_v28 = vsub.f32 %v15090_v27, %v15091_v6  ;;  %19688 = vmatprep.subr.mxu1 %v23333_v21 }
0x179a   :  { %19689 = vmatpush3.msra.mxu1 %v23493_v15 }
0x179b   :  { %v15093_v32 = vand.u32 4294901760, %v15092_v28  ;;  %19690 = vmatprep.subr.mxu1 %v23333_v21  ;;  %v16045_v28 = vld [vmem:[%s23193_s2 + $0x60] sm:$0xff] }
0x179c   :  { %19691 = vmatpush3.msra.mxu1 %v23494_v16 }
0x179d   :  { %19693 = vmatmul.mubr.f32.vlgmr.msra.gmra.mxu1 %v15091_v6  ;;  %19706 = vmatprep.subr.mxu1 %v23333_v21  ;;  %v22789_v6 = vand.u32 4294901760, %v16047_v33 }
0x179e   :  { %19660 = vmatmul.mubr.f32.vlgmr.msra.gmra.mxu0 %v15093_v32  ;;  %19707 = vmatpush3.msra.mxu1 %v23491_v13  ;;  %v16044_v32 = vld [vmem:[%s23193_s2 + $0x58] sm:$0xff] }
0x179f   :  { %19674 = vmatpush3.msra.mxu0 %v23495_v17  ;;  %19708 = vmatprep.subr.mxu1 %v23333_v21 }
0x17a0   :  { %19675 = vmatprep.subr.mxu0 %v23333_v21  ;;  %19709 = vmatpush3.msra.mxu1 %v23492_v14 }
0x17a1   :  { %19676 = vmatpush3.msra.mxu0 %v23496_v18  ;;  %19710 = vmatprep.subr.mxu1 %v23333_v21 }
0x17a2   :  { %19677 = vmatprep.subr.mxu0 %v23333_v21  ;;  %19711 = vmatpush3.msra.mxu1 %v23493_v15 }
0x17a3   :  { %19678 = vmatpush3.msra.mxu0 %v23497_v34  ;;  %19712 = vmatprep.subr.mxu1 %v23333_v21 }
0x17a4   :  { %19679 = vmatprep.subr.mxu0 %v23333_v21  ;;  %19681 = vmatprep.mubr.msk.f32.mxu0 %vm20108_vm0, %v23333_v21 }
0x17a5   :  { %19680 = vmatpush3.msra.mxu0 %v23498_v36  ;;  %19713 = vmatpush3.msra.mxu1 %v23494_v16 }
0x17a6   :  { %19714 = vmatprep.mubr.msk.f32.mxu1 %vm20108_vm0, %v23333_v21  ;;  %19682 = vmatmul.mubr.f32.vlgmr.msra.gmra.mxu0 %v15090_v27  ;;  %v22787_v27 = vand.u32 4294901760, %v16048_v49 }
0x17a7   :  { %19695 = vmatprep.subr.mxu0 %v23333_v21  ;;  %19715 = vmatmul.mubr.f32.vlgmr.msra.gmra.mxu1 %v15089_v46 }
0x17a8   :  { %19696 = vmatpush3.msra.mxu0 %v23499_v41  ;;  %19703 = vmatprep.mubr.msk.f32.mxu0 %vm20108_vm0, %v23333_v21 }
0x17a9   :  { %19697 = vmatprep.subr.mxu0 %v23333_v21  ;;  %19728 = vmatprep.subr.mxu1 %v23333_v21 }
0x17aa   :  { %19698 = vmatpush3.msra.mxu0 %v23501_v43  ;;  %19729 = vmatpush3.msra.mxu1 %v23500_v42 }
0x17ab   :  { %19699 = vmatprep.subr.mxu0 %v23333_v21  ;;  %19730 = vmatprep.subr.mxu1 %v23333_v21 }
0x17ac   :  { %19700 = vmatpush3.msra.mxu0 %v23503_v50  ;;  %19731 = vmatpush3.msra.mxu1 %v23502_v45 }
0x17ad   :  { %19701 = vmatprep.subr.mxu0 %v23333_v21  ;;  %19732 = vmatprep.subr.mxu1 %v23333_v21 }
0x17ae   :  { %19702 = vmatpush3.msra.mxu0 %v23505_v54  ;;  %19733 = vmatpush3.msra.mxu1 %v23504_v53 }
0x17af   :  { %19704 = vmatmul.mubr.f32.vlgmr.msra.gmra.mxu0 %v15089_v46  ;;  %19734 = vmatprep.subr.mxu1 %v23333_v21  ;;  %v16046_v46 = vld [vmem:[%s23193_s2 + $0x68] sm:$0xff] }
0x17b0   :  { %19735 = vmatpush3.msra.mxu1 %v23506_v59  ;;  %19717 = vmatprep.subr.mxu0 %v23333_v21 }
0x17b1   :  { %19736 = vmatprep.mubr.msk.f32.mxu1 %vm20108_vm0, %v23333_v21  ;;  %19750 = vmatprep.subr.mxu1 %v23333_v21 }
0x17b2   :  { %19718 = vmatpush3.msra.mxu0 %v23507_v3  ;;  %19725 = vmatprep.mubr.msk.f32.mxu0 %vm20108_vm0, %v23333_v21 }
0x17b3   :  { %19719 = vmatprep.subr.mxu0 %v23333_v21 }
0x17b4   :  { %19720 = vmatpush3.msra.mxu0 %v23508_v57 }
0x17b5   :  { %19721 = vmatprep.subr.mxu0 %v23333_v21 }
0x17b6   :  { %19722 = vmatpush3.msra.mxu0 %v23509_v61 }
0x17b7   :  { %19723 = vmatprep.subr.mxu0 %v23333_v21 }
0x17b8   :  { %19724 = vmatpush3.msra.mxu0 %v23510_v8 }
0x17b9   :  { %19739 = vmatprep.subr.mxu0 %v23333_v21 }
0x17ce   :  { %v15507_v13 = vpop.permute.xlu1 %15506 }
0x17cf   :  { %v15508_v14 = vsel %vm64_vm11, %v15507_v13, 0  ;;  %v16043_v13 = vld [vmem:[%s23193_s2 + $0x50] sm:$0xff] }
0x17d0   :  { %v15579_v15 = vand.u32 4294901760, %v15508_v14 }
0x17d2   :  { %v15580_v16 = vsub.f32 %v15508_v14, %v15579_v15  ;;  %19737 = vmatmul.mubr.f32.vlgmr.msra.gmra.mxu1 %v15579_v15  ;;  %v22802_v14 = vand.u32 4294901760, %v16045_v28 }
0x17d3   :  { %19751 = vmatpush3.msra.mxu1 %v23507_v3  ;;  %19758 = vmatprep.mubr.msk.f32.mxu1 %vm20108_vm0, %v23333_v21 }
0x17d4   :  { %v15581_v17 = vand.u32 4294901760, %v15580_v16  ;;  %19752 = vmatprep.subr.mxu1 %v23333_v21 }
0x17d5   :  { %19753 = vmatpush3.msra.mxu1 %v23508_v57 }
0x17d6   :  { %v15582_v18 = vsub.f32 %v15580_v16, %v15581_v17  ;;  %19754 = vmatprep.subr.mxu1 %v23333_v21 }
0x17d7   :  { %19755 = vmatpush3.msra.mxu1 %v23509_v61 }
0x17d8   :  { %v15583_v34 = vand.u32 4294901760, %v15582_v18  ;;  %19756 = vmatprep.subr.mxu1 %v23333_v21  ;;  %v22812_v18 = vsub.f32 %v16048_v49, %v22787_v27 }
0x17d9   :  { %19757 = vmatpush3.msra.mxu1 %v23510_v8 }
0x17da   :  { %19759 = vmatmul.mubr.f32.vlgmr.msra.gmra.mxu1 %v15581_v17  ;;  %19772 = vmatprep.subr.mxu1 %v23333_v21  ;;  %v16042_v17 = vld [vmem:[%s23193_s2 + $0x48] sm:$0xff] }
0x17db   :  { %19726 = vmatmul.mubr.f32.vlgmr.msra.gmra.mxu0 %v15583_v34  ;;  %19773 = vmatpush3.msra.mxu1 %v23507_v3  ;;  %v22815_v34 = vsub.f32 %v16047_v33, %v22789_v6 }
0x17dc   :  { %19740 = vmatpush3.msra.mxu0 %v23511_v25  ;;  %19774 = vmatprep.subr.mxu1 %v23333_v21 }
0x17dd   :  { %19741 = vmatprep.subr.mxu0 %v23333_v21  ;;  %19775 = vmatpush3.msra.mxu1 %v23508_v57 }
0x17de   :  { %19742 = vmatpush3.msra.mxu0 %v23512_v44  ;;  %19776 = vmatprep.subr.mxu1 %v23333_v21 }
0x17df   :  { %19743 = vmatprep.subr.mxu0 %v23333_v21  ;;  %19777 = vmatpush3.msra.mxu1 %v23509_v61 }
0x17e0   :  { %19744 = vmatpush3.msra.mxu0 %v23513_v31  ;;  %19778 = vmatprep.subr.mxu1 %v23333_v21 }
0x17e1   :  { %19745 = vmatprep.subr.mxu0 %v23333_v21  ;;  %19747 = vmatprep.mubr.msk.f32.mxu0 %vm20108_vm0, %v23333_v21 }
0x17e2   :  { %19746 = vmatpush3.msra.mxu0 %v23514_v62  ;;  %19779 = vmatpush3.msra.mxu1 %v23510_v8 }
0x17e3   :  { %19780 = vmatprep.mubr.msk.f32.mxu1 %vm20108_vm0, %v23333_v21  ;;  %19748 = vmatmul.mubr.f32.vlgmr.msra.gmra.mxu0 %v15580_v16  ;;  %v22806_v16 = vand.u32 4294901760, %v16043_v13 }
0x17e4   :  { %19761 = vmatprep.subr.mxu0 %v23333_v21  ;;  %19781 = vmatmul.mubr.f32.vlgmr.msra.gmra.mxu1 %v15579_v15 }
0x17e5   :  { %19762 = vmatpush3.msra.mxu0 %v23515_v40  ;;  %19769 = vmatprep.mubr.msk.f32.mxu0 %vm20108_vm0, %v23333_v21 }
0x17e6   :  { %19763 = vmatprep.subr.mxu0 %v23333_v21  ;;  %19818 = vmatprep.subr.mxu1 %v23333_v21 }
0x17e7   :  { %19764 = vmatpush3.msra.mxu0 %v23516_v4  ;;  %19850 = vmatprep.mubr.msk.f32.mxu1 %vm20108_vm0, %v23333_v21 }
0x17e8   :  { %19765 = vmatprep.subr.mxu0 %v23333_v21 }
0x17e9   :  { %19766 = vmatpush3.msra.mxu0 %v23517_v2 }
0x17ea   :  { %19767 = vmatprep.subr.mxu0 %v23333_v21 }
0x17eb   :  { %19768 = vmatpush3.msra.mxu0 %v23518_v24 }
0x17ec   :  { %19770 = vmatmul.mubr.f32.vlgmr.msra.gmra.mxu0 %v15579_v15  ;;  %19783 = vmatprep.subr.mxu0 %v23333_v21  ;;  %v22804_v15 = vand.u32 4294901760, %v16044_v32 }
0x17ed   :  { %19815 = vmatprep.mubr.msk.f32.mxu0 %vm20108_vm0, %v23333_v21  ;;  %19784 = vmatpush3.msra.mxu0 %v22787_v27 }
0x17ee   :  { %19785 = vmatprep.subr.mxu0 %v23333_v21 }
0x17ef   :  { %19786 = vmatpush3.msra.mxu0 %v22789_v6 }
0x17f0   :  { %19787 = vmatprep.subr.mxu0 %v23333_v21 }
0x1855   :  { %v15186_v36 = vpop.f32.mrf.mxu1 }
0x1857   :  { %v19672_v41 = vpop.f32.mrf.mxu1 }
0x1858   :  { %v22821_v41 = vand.u32 4294901760, %v16042_v17 }
0x185d   :  { %v15343_v42 = vpop.f32.mrf.mxu1 }
0x185e   :  { %v15095_v43 = vpop.f32.mrf.mxu0 }
0x185f   :  { %v15096_v45 = vadd.f32 %v22636_v47, %v15095_v43  ;;  %v19694_v50 = vpop.f32.mrf.mxu1  ;;  %v22827_v43 = vsub.f32 %v16044_v32, %v22804_v15 }
0x1860   :  { %v19661_v53 = vpop.f32.mrf.mxu0  ;;  %v16155_v50 = vand.u32 4294901760, %v22815_v34 }
0x1861   :  { %v15187_v54 = vadd.f32 %v15186_v36, %v15096_v45  ;;  %v16148_v45 = vand.u32 4294901760, %v22812_v18 }
0x1866   :  { %v15266_v59 = vpop.f32.mrf.mxu0 }
0x1867   :  { %v15267_v3 = vadd.f32 %v15266_v59, %v15187_v54  ;;  %v15501_v57 = vpop.f32.mrf.mxu1  ;;  %v22835_v54 = vsub.f32 %v16043_v13, %v22806_v16 }
0x1868   :  { %v19683_v61 = vpop.f32.mrf.mxu0 }
0x1869   :  { %v19716_v8 = vpop.f32.mrf.mxu1  ;;  %v15344_v25 = vadd.f32 %v15343_v42, %v15267_v3  ;;  %v22824_v42 = vsub.f32 %v16045_v28, %v22802_v14  ;;  %v22840_v3 = vsub.f32 %v16042_v17, %v22821_v41  ;;  %v16156_v61 = vsub.f32 %v22815_v34, %v16155_v50  ;;  %v16036_v28 = vld [vmem:[%s23193_s2 + $0x18] sm:$0xff] }
0x186b   :  { %v16169_v59 = vand.u32 4294901760, %v22824_v42 }
0x186f   :  { %v15426_v44 = vpop.f32.mrf.mxu0 }
0x1870   :  { %v15427_v31 = vadd.f32 %v15426_v44, %v15344_v25  ;;  %v16176_v25 = vand.u32 4294901760, %v22827_v43 }
0x1871   :  { %v19705_v62 = vpop.f32.mrf.mxu0 }
0x1872   :  { %v15502_v40 = vadd.f32 %v15501_v57, %v15427_v31  ;;  %v16149_v57 = vsub.f32 %v22812_v18, %v16148_v45  ;;  %v16157_v62 = vand.u32 4294901760, %v16156_v61 }
0x1874   :  { %v16150_v31 = vand.u32 4294901760, %v16149_v57  ;;  %v22946_v57 = vand.u32 4294901760, %v16036_v28 }
0x1876   :  { %19819 = vmatpush3.msra.mxu1 %v16150_v31 }
0x1877   :  { %19820 = vmatprep.subr.mxu1 %v23333_v21 }
0x1878   :  { %19821 = vmatpush3.msra.mxu1 %v16157_v62  ;;  %v22960_v62 = vsub.f32 %v16036_v28, %v22946_v57 }
0x1879   :  { %19822 = vmatprep.subr.mxu1 %v23333_v21 }
0x1892   :  { %v15676_v4 = vpop.f32.mrf.mxu1 }
0x1894   :  { %v19738_v2 = vpop.f32.mrf.mxu1 }
0x189a   :  { %v15833_v24 = vpop.f32.mrf.mxu1 }
0x189b   :  { %v15585_v23 = vpop.f32.mrf.mxu0 }
0x189c   :  { %v19760_v5 = vpop.f32.mrf.mxu1  ;;  %v15677_v38 = vadd.f32 %v15676_v4, %v15585_v23  ;;  %v16183_v4 = vand.u32 4294901760, %v22835_v54  ;;  %v16190_v23 = vand.u32 4294901760, %v22840_v3 }
0x189d   :  { %v19727_v10 = vpop.f32.mrf.mxu0 }
0x189e   :  { %v16184_v10 = vsub.f32 %v22835_v54, %v16183_v4 }
0x18a3   :  { %v15756_v47 = vpop.f32.mrf.mxu0 }
0x18a4   :  { %v15991_v11 = vpop.f32.mrf.mxu1  ;;  %v15757_v39 = vadd.f32 %v15756_v47, %v15677_v38  ;;  %v16185_v38 = vand.u32 4294901760, %v16184_v10 }
0x18a5   :  { %v19749_v58 = vpop.f32.mrf.mxu0 }
0x18a6   :  { %v19782_v29 = vpop.f32.mrf.mxu1  ;;  %v15834_v1 = vadd.f32 %v15833_v24, %v15757_v39  ;;  %v16177_v24 = vsub.f32 %v22827_v43, %v16176_v25 }
0x18a7   :  { %v16041_v29 = vld [vmem:[%s23193_s2 + $0x40] sm:$0xff] }
0x18a8   :  { %v16178_v47 = vand.u32 4294901760, %v16177_v24  ;;  %v22888_v39 = vand.u32 4294901760, %v16041_v29  ;;  %v16033_v24 = vld [vmem:[%s23193_s2] sm:$0xff] }
0x18ac   :  { %v15916_v60 = vpop.f32.mrf.mxu0 }
0x18ad   :  { %v15917_v7 = vadd.f32 %v15916_v60, %v15834_v1  ;;  %v16040_v1 = vld [vmem:[%s23193_s2 + $0x38] sm:$0xff]  ;;  %v22894_v60 = vsub.f32 %v16041_v29, %v22888_v39 }
0x18ae   :  { %v19771_v9 = vpop.f32.mrf.mxu0 }
0x18af   :  { %v15992_v12 = vadd.f32 %v15991_v11, %v15917_v7  ;;  %v16191_v11 = vsub.f32 %v22840_v3, %v16190_v23  ;;  %v22896_v7 = vand.u32 4294901760, %v16040_v1  ;;  %v16039_v9 = vld [vmem:[%s23193_s2 + $0x30] sm:$0xff] }
0x18b1   :  { %v15995_v52 = vadd.f32 %v15992_v12, %v15502_v40  ;;  %v16170_v40 = vsub.f32 %v22824_v42, %v16169_v59  ;;  %v16192_v58 = vand.u32 4294901760, %v16191_v11  ;;  %v16197_v12 = vand.u32 4294901760, %v22894_v60 }
0x18b3   :  { %v15996_v19 = vmul.f32 %v15995_v52, %v20414_v56  ;;  %v16171_v5 = vand.u32 4294901760, %v16170_v40  ;;  %v22905_v52 = vsub.f32 %v16040_v1, %v22896_v7 }
0x18b5   :  { %20061 = vtanh.f32 %v15996_v19  ;;  %v22907_v19 = vand.u32 4294901760, %v16039_v9 }
0x18c2   :  { %v20062_v63 = vpop.eup %20061 }
0x18c3   :  { %v15998_v20 = vmul.f32 0.5, %v20062_v63 }
0x18c5   :  { %v15999_v37 = vadd.f32 0.5, %v15998_v20  ;;  %v16198_v20 = vsub.f32 %v22894_v60, %v16197_v12 }
0x18c7   :  { %v22770_v0 = vsel %vm20408_vm10, %v20062_v63, %v15999_v37  ;;  %v16038_v63 = vld [vmem:[%s23193_s2 + $0x28] sm:$0xff]  ;;  %v16204_v37 = vand.u32 4294901760, %v22905_v52 }
0x18c8   :  { %16003 = vrot.lane.b32.xlu0 %v22770_v0, %s20110_s5  ;;  %v16001_v55 = vmul.f32 %v22770_v0, %v22651_v48  ;;  %v22791_v48 = vand.u32 4294901760, %v16046_v46 }
0x18ca   :  { %v22818_v36 = vsub.f32 %v16046_v46, %v22791_v48  ;;  %19788 = vmatpush3.msra.mxu0 %v22791_v48 }
0x18cb   :  { %19789 = vmatprep.subr.mxu0 %v23333_v21 }
0x18cc   :  { %v16162_v53 = vand.u32 4294901760, %v22818_v36  ;;  %19790 = vmatpush3.msra.mxu0 %v22802_v14 }
0x18cd   :  { %19791 = vmatprep.subr.mxu0 %v23333_v21 }
0x18ce   :  { %v16163_v8 = vsub.f32 %v22818_v36, %v16162_v53  ;;  %19792 = vmatpush3.msra.mxu0 %v22804_v15 }
0x18cf   :  { %19793 = vmatprep.subr.mxu0 %v23333_v21 }
0x18d0   :  { %v16164_v2 = vand.u32 4294901760, %v16163_v8  ;;  %19794 = vmatpush3.msra.mxu0 %v22806_v16  ;;  %v16035_v8 = vld [vmem:[%s23193_s2 + $0x10] sm:$0xff] }
0x18d1   :  { %19795 = vmatprep.subr.mxu0 %v23333_v21  ;;  %v22962_v40 = vand.u32 4294901760, %v16035_v8 }
0x18d2   :  { %19823 = vmatpush3.msra.mxu1 %v16164_v2  ;;  %19796 = vmatpush3.msra.mxu0 %v22821_v41  ;;  %v16034_v2 = vld [vmem:[%s23193_s2 + $0x8] sm:$0xff] }
0x18d3   :  { %19824 = vmatprep.subr.mxu1 %v23333_v21  ;;  %19797 = vmatprep.subr.mxu0 %v23333_v21  ;;  %v22973_v10 = vand.u32 4294901760, %v16034_v2 }
0x18d4   :  { %19825 = vmatpush3.msra.mxu1 %v16171_v5  ;;  %19798 = vmatpush3.msra.mxu0 %v22888_v39 }
0x18d5   :  { %19826 = vmatprep.subr.mxu1 %v23333_v21  ;;  %19799 = vmatprep.subr.mxu0 %v23333_v21  ;;  %v22988_v1 = vsub.f32 %v16034_v2, %v22973_v10 }
0x18d6   :  { %19827 = vmatpush3.msra.mxu1 %v16178_v47  ;;  %19800 = vmatpush3.msra.mxu0 %v22896_v7  ;;  %v22975_v47 = vand.u32 4294901760, %v16033_v24 }
0x18d7   :  { %19828 = vmatprep.subr.mxu1 %v23333_v21  ;;  %19801 = vmatprep.subr.mxu0 %v23333_v21 }
0x18d8   :  { %19829 = vmatpush3.msra.mxu1 %v16185_v38  ;;  %19802 = vmatpush3.msra.mxu0 %v22907_v19  ;;  %v16232_v38 = vand.u32 4294901760, %v22960_v62 }
0x18d9   :  { %19830 = vmatprep.subr.mxu1 %v23333_v21  ;;  %19803 = vmatprep.subr.mxu0 %v23333_v21 }
0x18da   :  { %19831 = vmatpush3.msra.mxu1 %v16192_v58  ;;  %v22980_v58 = vsub.f32 %v16035_v8, %v22962_v40 }
0x18db   :  { %19832 = vmatprep.subr.mxu1 %v23333_v21 }
0x193a   :  { %v16004_v51 = vpop.permute.xlu0 %16003 }
0x193b   :  { %v16006_v30 = vmul.f32 %v16004_v51, %v22770_v0  ;;  %v22919_v51 = vsub.f32 %v16039_v9, %v22907_v19  ;;  %v22991_v9 = vsub.f32 %v16033_v24, %v22975_v47 }
0x193d   :  { %16008 = vrot.lane.b32.xlu1 %v16006_v30, %s20111_s6  ;;  %v22921_v30 = vand.u32 4294901760, %v16038_v63  ;;  %v16211_v49 = vand.u32 4294901760, %v22919_v51  ;;  %s20113_s6 = smov [#allocation5]  }
0x193e   :  { %s16703_s23 = sshll.u32 %s20113_s6, 4  ;;  %s16704_s23 = int_to_ptr.vmem [resolvable:$true] %s16703_s23 }
0x193f   :  { %v22933_v33 = vsub.f32 %v16038_v63, %v22921_v30  ;;  %19804 = vmatpush3.msra.mxu0 %v22921_v30  ;;  %v16212_v13 = vsub.f32 %v22919_v51, %v16211_v49  ;;  %v16233_v63 = vsub.f32 %v22960_v62, %v16232_v38  ;;  %s20082_s24 = scalar_lea.vmem %s16704_s23, 32  ;;  %p20087_p6 = scmp.lt.s32.totalorder %s16704_s23, %s16704_s23 }
0x1940   :  { %19805 = vmatprep.subr.mxu0 %v23333_v21  ;;  %p20083_p5 = scmp.ne.s32.totalorder %s16704_s23, %s20082_s24  ;;  %p20088_p7 = scmp.lt.s32.totalorder %s20082_s24, %s20082_s24 }
0x1941   :  { %v16218_v17 = vand.u32 4294901760, %v22933_v33  ;;  %v16234_v28 = vand.u32 4294901760, %v16233_v63 }
0x1942   :  { %p20089_p8 = por %p20088_p7, %p20087_p6 }
0x1943   :  { %v16219_v31 = vsub.f32 %v22933_v33, %v16218_v17 }
0x1944   :  { %p20090_p9 = pnand %p20089_p8, %p20083_p5 }
0x1945   :  { %v16220_v11 = vand.u32 4294901760, %v16219_v31 }
0x19af   :  { %v16009_v56 = vpop.permute.xlu1 %16008 }
0x19b0   :  { %v16011_v22 = vadd.f32 %v16009_v56, %v16001_v55  ;;  %v16037_v55 = vld [vmem:[%s23193_s2 + $0x20] sm:$0xff]  ;;  %v16199_v56 = vand.u32 4294901760, %v16198_v20  ;;  %v16239_v20 = vand.u32 4294901760, %v22980_v58 }
0x19b1   :  { %v22936_v46 = vand.u32 4294901760, %v16037_v55 }
0x19b2   :  { %20063 = vtanh.f32 %v16011_v22  ;;  %19833 = vmatpush3.msra.mxu1 %v16199_v56  ;;  %v16246_v56 = vand.u32 4294901760, %v22988_v1 }
0x19b3   :  { %19834 = vmatprep.subr.mxu1 %v23333_v21  ;;  %v22950_v61 = vsub.f32 %v16037_v55, %v22936_v46  ;;  %19806 = vmatpush3.msra.mxu0 %v22936_v46 }
0x19b4   :  { %19807 = vmatprep.subr.mxu0 %v23333_v21 }
0x19b5   :  { %v16225_v5 = vand.u32 4294901760, %v22950_v61  ;;  %19808 = vmatpush3.msra.mxu0 %v22946_v57 }
0x19b6   :  { %19809 = vmatprep.subr.mxu0 %v23333_v21 }
0x19b7   :  { %v16226_v29 = vsub.f32 %v22950_v61, %v16225_v5  ;;  %19810 = vmatpush3.msra.mxu0 %v22962_v40 }
0x19b8   :  { %19811 = vmatprep.subr.mxu0 %v23333_v21 }
0x19b9   :  { %v16227_v55 = vand.u32 4294901760, %v16226_v29  ;;  %19812 = vmatpush3.msra.mxu0 %v22973_v10 }
0x19ba   :  { %19813 = vmatprep.subr.mxu0 %v23333_v21 }
0x19bb   :  { %19814 = vmatpush3.msra.mxu0 %v22975_v47 }
0x19bc   :  { %19853 = vmatprep.subr.mxu0 %v23333_v21 }
0x19bf   :  { %v20064_v44 = vpop.eup %20063 }
0x19c0   :  { %16014 = vrot.lane.b32.xlu0 %v20064_v44, %s20110_s5  ;;  %v16213_v44 = vand.u32 4294901760, %v16212_v13  ;;  %v16247_v13 = vsub.f32 %v22988_v1, %v16246_v56 }
0x19c2   :  { %v16248_v24 = vand.u32 4294901760, %v16247_v13 }
0x19c4   :  { %16024 = vrot.lane.b32.xlu0 %v16011_v22, %s20110_s5  ;;  %v16205_v22 = vsub.f32 %v22905_v52, %v16204_v37 }
0x19c6   :  { %v16206_v32 = vand.u32 4294901760, %v16205_v22  ;;  %v16253_v22 = vand.u32 4294901760, %v22991_v9 }
0x19c8   :  { %19835 = vmatpush3.msra.mxu1 %v16206_v32  ;;  %v16240_v32 = vsub.f32 %v22980_v58, %v16239_v20  ;;  %v16254_v8 = vsub.f32 %v22991_v9, %v16253_v22 }
0x19c9   :  { %19836 = vmatprep.subr.mxu1 %v23333_v21 }
0x19ca   :  { %19837 = vmatpush3.msra.mxu1 %v16213_v44  ;;  %v16241_v31 = vand.u32 4294901760, %v16240_v32 }
0x19cb   :  { %19838 = vmatprep.subr.mxu1 %v23333_v21 }
0x19cc   :  { %19839 = vmatpush3.msra.mxu1 %v16220_v11  ;;  %v16255_v11 = vand.u32 4294901760, %v16254_v8 }
0x19cd   :  { %19840 = vmatprep.subr.mxu1 %v23333_v21 }
0x19ce   :  { %19841 = vmatpush3.msra.mxu1 %v16227_v55 }
0x19cf   :  { %19842 = vmatprep.subr.mxu1 %v23333_v21 }
0x19d0   :  { %19843 = vmatpush3.msra.mxu1 %v16234_v28 }
0x19d1   :  { %19844 = vmatprep.subr.mxu1 %v23333_v21 }
0x19d2   :  { %19845 = vmatpush3.msra.mxu1 %v16241_v31 }
0x19d3   :  { %19846 = vmatprep.subr.mxu1 %v23333_v21 }
0x19d4   :  { %19847 = vmatpush3.msra.mxu1 %v16248_v24 }
0x19d5   :  { %19848 = vmatprep.subr.mxu1 %v23333_v21 }
0x19d6   :  { %19849 = vmatpush3.msra.mxu1 %v16255_v11 }
0x19d7   :  { %19888 = vmatprep.subr.mxu1 %v23333_v21 }
0x1a32   :  { %v16015_v44 = vpop.permute.xlu0 %16014 }
0x1a33   :  { %v16017_v2 = vmul.f32 %v16015_v44, %v22770_v0  ;;  %v16027_v0 = vsel %vm64_vm11, %v22657_v35, %v22646_v26 }
0x1a35   :  { %16020 = vrot.lane.b32.xlu1 %v16017_v2, %s20112_s0 }
0x1a36   :  { %v16025_v63 = vpop.permute.xlu0 %16024 }
0x1aa7   :  { %v16021_v29 = vpop.permute.xlu1 %16020 }
0x1aa8   :  { %v16029_v55 = vsel %vm16028_vm1, %v16027_v0, %v16021_v29 }
0x1aa9   :  { %v16031_v28 = vsel %vm16030_vm4, %v16029_v55, %v16025_v63 }
0x1aaa   :  { %20065 = vtanh.f32 %v16031_v28 }
0x1ab7   :  { %v20066_v32 = vpop.eup %20065 }
0x1ab8   :  { %v23024_v13 = vand.u32 4294901760, %v20066_v32 }
0x1aba   :  { %19851 = vmatmul.mubr.f32.vlgmr.msra.gmra.mxu1 %v23024_v13  ;;  %v23028_v8 = vsub.f32 %v20066_v32, %v23024_v13 }
0x1abb   :  { %19889 = vmatpush3.msra.mxu1 %v22787_v27  ;;  %19920 = vmatprep.mubr.msk.f32.mxu1 %vm20108_vm0, %v23333_v21 }
0x1abc   :  { %19890 = vmatprep.subr.mxu1 %v23333_v21  ;;  %v16137_v26 = vand.u32 4294901760, %v23028_v8 }
0x1abd   :  { %19891 = vmatpush3.msra.mxu1 %v22789_v6 }
0x1abe   :  { %19892 = vmatprep.subr.mxu1 %v23333_v21  ;;  %v16138_v35 = vsub.f32 %v23028_v8, %v16137_v26 }
0x1abf   :  { %19893 = vmatpush3.msra.mxu1 %v22791_v48 }
0x1ac0   :  { %19894 = vmatprep.subr.mxu1 %v23333_v21  ;;  %v16139_v44 = vand.u32 4294901760, %v16138_v35 }
0x1ac1   :  { %19895 = vmatpush3.msra.mxu1 %v22802_v14 }
0x1ac2   :  { %19896 = vmatprep.subr.mxu1 %v23333_v21  ;;  %19816 = vmatmul.mubr.f32.vlgmr.msra.gmra.mxu0 %v16139_v44 }
0x1ac3   :  { %19854 = vmatpush3.msra.mxu0 %v22812_v18  ;;  %19897 = vmatpush3.msra.mxu1 %v22804_v15 }
0x1ac4   :  { %19855 = vmatprep.subr.mxu0 %v23333_v21  ;;  %19898 = vmatprep.subr.mxu1 %v23333_v21 }
0x1ac5   :  { %19856 = vmatpush3.msra.mxu0 %v22815_v34  ;;  %19899 = vmatpush3.msra.mxu1 %v22806_v16 }
0x1ac6   :  { %19857 = vmatprep.subr.mxu0 %v23333_v21  ;;  %19900 = vmatprep.subr.mxu1 %v23333_v21 }
0x1ac7   :  { %19858 = vmatpush3.msra.mxu0 %v22818_v36  ;;  %19901 = vmatpush3.msra.mxu1 %v22821_v41  ;;  %v16752_v36 = vld [vmem:[%s23193_s2 + $0x80] ss:$0 sm:$0xff] }
0x1ac8   :  { %19859 = vmatprep.subr.mxu0 %v23333_v21  ;;  %19902 = vmatprep.subr.mxu1 %v23333_v21 }
0x1ac9   :  { %19860 = vmatpush3.msra.mxu0 %v22824_v42  ;;  %19903 = vmatpush3.msra.mxu1 %v22888_v39 }
0x1aca   :  { %19861 = vmatprep.subr.mxu0 %v23333_v21  ;;  %19904 = vmatprep.subr.mxu1 %v23333_v21 }
0x1acb   :  { %19862 = vmatpush3.msra.mxu0 %v22827_v43  ;;  %19905 = vmatpush3.msra.mxu1 %v22896_v7 }
0x1acc   :  { %19863 = vmatprep.subr.mxu0 %v23333_v21  ;;  %19906 = vmatprep.subr.mxu1 %v23333_v21 }
0x1acd   :  { %19864 = vmatpush3.msra.mxu0 %v22835_v54  ;;  %19907 = vmatpush3.msra.mxu1 %v22907_v19 }
0x1ace   :  { %19865 = vmatprep.subr.mxu0 %v23333_v21  ;;  %19908 = vmatprep.subr.mxu1 %v23333_v21 }
0x1acf   :  { %19866 = vmatpush3.msra.mxu0 %v22840_v3  ;;  %19909 = vmatpush3.msra.mxu1 %v22921_v30 }
0x1ad0   :  { %19867 = vmatprep.subr.mxu0 %v23333_v21  ;;  %19910 = vmatprep.subr.mxu1 %v23333_v21 }
0x1ad1   :  { %19868 = vmatpush3.msra.mxu0 %v22894_v60  ;;  %19911 = vmatpush3.msra.mxu1 %v22936_v46 }
0x1ad2   :  { %19869 = vmatprep.subr.mxu0 %v23333_v21  ;;  %19912 = vmatprep.subr.mxu1 %v23333_v21 }
0x1ad3   :  { %19870 = vmatpush3.msra.mxu0 %v22905_v52  ;;  %19913 = vmatpush3.msra.mxu1 %v22946_v57 }
0x1ad4   :  { %19871 = vmatprep.subr.mxu0 %v23333_v21  ;;  %19914 = vmatprep.subr.mxu1 %v23333_v21 }
0x1ad5   :  { %19872 = vmatpush3.msra.mxu0 %v22919_v51  ;;  %19915 = vmatpush3.msra.mxu1 %v22962_v40 }
0x1ad6   :  { %19873 = vmatprep.subr.mxu0 %v23333_v21  ;;  %19916 = vmatprep.subr.mxu1 %v23333_v21 }
0x1ad7   :  { %19874 = vmatpush3.msra.mxu0 %v22933_v33  ;;  %19917 = vmatpush3.msra.mxu1 %v22973_v10 }
0x1ad8   :  { %19875 = vmatprep.subr.mxu0 %v23333_v21  ;;  %19918 = vmatprep.subr.mxu1 %v23333_v21 }
0x1ad9   :  { %19876 = vmatpush3.msra.mxu0 %v22950_v61  ;;  %19919 = vmatpush3.msra.mxu1 %v22975_v47 }
0x1ada   :  { %19877 = vmatprep.subr.mxu0 %v23333_v21  ;;  %19921 = vmatmul.mubr.f32.vlgmr.msra.gmra.mxu1 %v16137_v26 }
0x1adb   :  { %19958 = vmatprep.subr.mxu1 %v23333_v21  ;;  %19878 = vmatpush3.msra.mxu0 %v22960_v62 }
0x1adc   :  { %19959 = vmatpush3.msra.mxu1 %v22787_v27  ;;  %19879 = vmatprep.subr.mxu0 %v23333_v21 }
0x1add   :  { %19960 = vmatprep.subr.mxu1 %v23333_v21  ;;  %19880 = vmatpush3.msra.mxu0 %v22980_v58 }
0x1ade   :  { %19961 = vmatpush3.msra.mxu1 %v22789_v6  ;;  %19881 = vmatprep.subr.mxu0 %v23333_v21 }
0x1adf   :  { %19962 = vmatprep.subr.mxu1 %v23333_v21  ;;  %19882 = vmatpush3.msra.mxu0 %v22988_v1 }
0x1ae0   :  { %19963 = vmatpush3.msra.mxu1 %v22791_v48  ;;  %19883 = vmatprep.subr.mxu0 %v23333_v21 }
0x1ae1   :  { %19964 = vmatprep.subr.mxu1 %v23333_v21  ;;  %19884 = vmatpush3.msra.mxu0 %v22991_v9 }
0x1ae2   :  { %19885 = vmatprep.mubr.msk.f32.mxu0 %vm20108_vm0, %v23333_v21  ;;  %19965 = vmatpush3.msra.mxu1 %v22802_v14 }
0x1ae3   :  { %19886 = vmatmul.mubr.f32.vlgmr.msra.gmra.mxu0 %v23028_v8  ;;  %19923 = vmatprep.subr.mxu0 %v23333_v21 }
0x1ae4   :  { %19966 = vmatprep.subr.mxu1 %v23333_v21  ;;  %19924 = vmatpush3.msra.mxu0 %v16148_v45 }
0x1ae5   :  { %19967 = vmatpush3.msra.mxu1 %v22804_v15  ;;  %19925 = vmatprep.subr.mxu0 %v23333_v21 }
0x1ae6   :  { %19968 = vmatprep.subr.mxu1 %v23333_v21  ;;  %19926 = vmatpush3.msra.mxu0 %v16155_v50 }
0x1ae7   :  { %19969 = vmatpush3.msra.mxu1 %v22806_v16  ;;  %19927 = vmatprep.subr.mxu0 %v23333_v21 }
0x1ae8   :  { %19970 = vmatprep.subr.mxu1 %v23333_v21  ;;  %19928 = vmatpush3.msra.mxu0 %v16162_v53 }
0x1ae9   :  { %19971 = vmatpush3.msra.mxu1 %v22821_v41  ;;  %19929 = vmatprep.subr.mxu0 %v23333_v21 }
0x1aea   :  { %19972 = vmatprep.subr.mxu1 %v23333_v21  ;;  %19930 = vmatpush3.msra.mxu0 %v16169_v59 }
0x1aeb   :  { %19973 = vmatpush3.msra.mxu1 %v22888_v39  ;;  %19931 = vmatprep.subr.mxu0 %v23333_v21 }
0x1aec   :  { %19974 = vmatprep.subr.mxu1 %v23333_v21  ;;  %19932 = vmatpush3.msra.mxu0 %v16176_v25 }
0x1aed   :  { %19975 = vmatpush3.msra.mxu1 %v22896_v7  ;;  %19933 = vmatprep.subr.mxu0 %v23333_v21 }
0x1aee   :  { %19976 = vmatprep.subr.mxu1 %v23333_v21  ;;  %19934 = vmatpush3.msra.mxu0 %v16183_v4 }
0x1aef   :  { %19977 = vmatpush3.msra.mxu1 %v22907_v19  ;;  %19935 = vmatprep.subr.mxu0 %v23333_v21 }
0x1af0   :  { %19978 = vmatprep.subr.mxu1 %v23333_v21  ;;  %19936 = vmatpush3.msra.mxu0 %v16190_v23 }
0x1af1   :  { %19979 = vmatpush3.msra.mxu1 %v22921_v30  ;;  %19937 = vmatprep.subr.mxu0 %v23333_v21 }
0x1af2   :  { %19980 = vmatprep.subr.mxu1 %v23333_v21  ;;  %19938 = vmatpush3.msra.mxu0 %v16197_v12 }
0x1af3   :  { %19981 = vmatpush3.msra.mxu1 %v22936_v46  ;;  %19939 = vmatprep.subr.mxu0 %v23333_v21 }
0x1af4   :  { %19982 = vmatprep.subr.mxu1 %v23333_v21  ;;  %19940 = vmatpush3.msra.mxu0 %v16204_v37 }
0x1af5   :  { %19983 = vmatpush3.msra.mxu1 %v22946_v57  ;;  %19941 = vmatprep.subr.mxu0 %v23333_v21 }
0x1af6   :  { %19984 = vmatprep.subr.mxu1 %v23333_v21  ;;  %19942 = vmatpush3.msra.mxu0 %v16211_v49 }
0x1af7   :  { %19985 = vmatpush3.msra.mxu1 %v22962_v40  ;;  %19943 = vmatprep.subr.mxu0 %v23333_v21 }
0x1af8   :  { %19986 = vmatprep.subr.mxu1 %v23333_v21  ;;  %19944 = vmatpush3.msra.mxu0 %v16218_v17 }
0x1af9   :  { %19987 = vmatpush3.msra.mxu1 %v22973_v10  ;;  %19945 = vmatprep.subr.mxu0 %v23333_v21 }
0x1afa   :  { %19988 = vmatprep.subr.mxu1 %v23333_v21  ;;  %19946 = vmatpush3.msra.mxu0 %v16225_v5 }
0x1afb   :  { %19989 = vmatpush3.msra.mxu1 %v22975_v47  ;;  %19990 = vmatprep.mubr.msk.f32.mxu1 %vm20108_vm0, %v23333_v21 }
0x1afc   :  { %19947 = vmatprep.subr.mxu0 %v23333_v21  ;;  %19991 = vmatmul.mubr.f32.vlgmr.msra.gmra.mxu1 %v23024_v13 }
0x1afd   :  { %19948 = vmatpush3.msra.mxu0 %v16232_v38  ;;  %19955 = vmatprep.mubr.msk.f32.mxu0 %vm20108_vm0, %v23333_v21  ;;  %vm16695_vm0 = vcmask 254976  }
0x1afe   :  { %19949 = vmatprep.subr.mxu0 %v23333_v21 }
0x1aff   :  { %19950 = vmatpush3.msra.mxu0 %v16239_v20 }
0x1b00   :  { %19951 = vmatprep.subr.mxu0 %v23333_v21 }
0x1b01   :  { %19952 = vmatpush3.msra.mxu0 %v16246_v56 }
0x1b02   :  { %19953 = vmatprep.subr.mxu0 %v23333_v21 }
0x1b03   :  { %19954 = vmatpush3.msra.mxu0 %v16253_v22 }
0x1b04   :  { %19956 = vmatmul.mubr.f32.vlgmr.msra.gmra.mxu0 %v23024_v13 }
0x1b7a   :  { %v16292_v27 = vpop.f32.mrf.mxu1 }
0x1b7c   :  { %v19852_v6 = vpop.f32.mrf.mxu1 }
0x1b82   :  { %v16141_v48 = vpop.f32.mrf.mxu0 }
0x1b83   :  { %v16142_v41 = vadd.f32 %v16752_v36, %v16141_v48 }
0x1b84   :  { %v19817_v14 = vpop.f32.mrf.mxu0 }
0x1b85   :  { %v16293_v21 = vadd.f32 %v16292_v27, %v16142_v41 }
0x1b9a   :  { %v16485_v15 = vpop.f32.mrf.mxu1 }
0x1b9c   :  { %v19922_v16 = vpop.f32.mrf.mxu1 }
0x1ba3   :  { %v16396_v18 = vpop.f32.mrf.mxu0 }
0x1ba4   :  { %v16397_v45 = vadd.f32 %v16396_v18, %v16293_v21 }
0x1ba5   :  { %v19887_v34 = vpop.f32.mrf.mxu0 }
0x1ba6   :  { %v16486_v50 = vadd.f32 %v16485_v15, %v16397_v45 }
0x1bbc   :  { %v16691_v42 = vpop.f32.mrf.mxu1 }
0x1bbe   :  { %v19992_v43 = vpop.f32.mrf.mxu1 }
0x1bc4   :  { %v16604_v53 = vpop.f32.mrf.mxu0 }
0x1bc5   :  { %v16605_v54 = vadd.f32 %v16604_v53, %v16486_v50 }
0x1bc6   :  { %v19957_v59 = vpop.f32.mrf.mxu0 }
0x1bc7   :  { %v16692_v3 = vadd.f32 %v16691_v42, %v16605_v54 }
0x1bc9   :  { %16696 = vst.msk [vmem:[#allocation5] sm:$0x3] %vm16695_vm0, %v16692_v3 }
0x1bca   :  { %20093 = shalt.err (!%p20090_p9)
}
0x1bcb   :  { %16706 = dma.vmem_to_hbm [thread:$0]  %s16704_s23, 32, %s23194_s3, [#allocation3]  }
0x1bcc   :  { %20104 = dma.done.wait [#allocation3], 32  }
0x1bcd   :  { %20105 = vsyncadd [#allocation3], 4294967264 }
0x1bce   :  { %16710 = vsyncpa [#allocation3], 1 }
0x1bcf   :  { %16711 = vsyncpa [#allocation4], 1 }

</bundles_post_ra>
